<compile_context>
chip_gen: v5e
topology: v5e:2x2
jax: 0.10.0
libtpu: 0.0.40
codegen_flags: <defaults>
</compile_context>

<pallas_src>
import functools

import jax
import jax.numpy as jnp
from jax.experimental import pallas as pl
from jax.experimental.pallas import tpu as pltpu


def _round_up(v, m):
    return (v + m - 1) // m * m


# ---------------------------------------------------------------------------
# Fused Bottleneck kernel (one grid step == one image)
# ---------------------------------------------------------------------------
def _bottleneck_kernel(x_ref, w1_ref, b1_ref, w2_ref, b2_ref, o_ref,
                       xpad_ref, y1pad_ref, acc1_ref, acc2_ref, *, H, W, add):
    """x:(1,H,W,C1p) bf16, w:(9*Cin,Cout) bf16 tap-major, b:(1,Cout) f32.

    Sublane-aligned flat padded layout:
        S = round_up(W + 2, 8)          (row stride, multiple of 8)
        P = S + 8                       (flat row of real pixel (0, 0))
        real pixel (h, w)  ->  flat row  P + h*S + w
    so every per-row store/load base (P + h*S, h*S) is a multiple of 8.
    Conv tap (dy, dx) of output pixel q = h*S + w reads flat row
    q + dy*S + dx + 7, i.e. one contiguous (H*S, Cin) slab per tap feeding one
    bf16 MXU matmul with f32 accumulation.  Every halo read lands in a slab
    region that is kept zero, so no explicit masking is needed.
    """
    S = _round_up(W + 2, 8)
    P = S + 8
    HS = H * S
    C1p = x_ref.shape[-1]
    Cmp = w1_ref.shape[-1]
    C2p = w2_ref.shape[-1]
    n_slab = xpad_ref.shape[0]
    tail = P + H * S

    # ---- zero only the halo / trailing / tail regions (never written by data
    # ---- stores); the interior rows are fully overwritten below.  Re-zeroed
    # ---- every step so this stays correct when the batch axis is split
    # ---- across TensorCores (each core has its own scratch).
    xpad_ref[0:P, :] = jnp.zeros((P, C1p), xpad_ref.dtype)
    y1pad_ref[0:P, :] = jnp.zeros((P, Cmp), y1pad_ref.dtype)
    xpad_ref[tail:n_slab, :] = jnp.zeros((n_slab - tail, C1p), xpad_ref.dtype)
    y1pad_ref[tail:n_slab, :] = jnp.zeros((n_slab - tail, Cmp), y1pad_ref.dtype)

    xz = jnp.zeros((S - W, C1p), xpad_ref.dtype)
    yz = jnp.zeros((S - W, Cmp), y1pad_ref.dtype)

    # ---- scatter the image rows into the flat padded buffer (aligned bases).
    # NOTE: H is small here; for large H convert these loops to lax.fori_loop.
    for h in range(H):
        base = P + h * S
        xpad_ref[base:base + W, :] = x_ref[0, h]
        xpad_ref[base + W:base + S, :] = xz       # right/left-halo zeros
        y1pad_ref[base + W:base + S, :] = yz

    # ---- cv1: 3x3 conv as 9 shifted (HS, C1p) @ (C1p, Cmp) MXU matmuls -----
    # TODO(synk): on v6e/v7x fuse taps along K (K = 2*Cin / 3*Cin) to fill the
    # 256x256 MXU, and strip-tile H for large feature maps (v7x 64 MiB VMEM).
    # TODO(synk): if the Mosaic dump shows per-tap relayout copies for the
    # dx != 1 (sublane-shifted) LHS slices, switch to aligned dy-slices plus an
    # XLU roll of the f32 contribution (shift = 1 - dx along axis 0).
    for dy in range(3):
        for dx in range(3):
            t = dy * 3 + dx
            off = dy * S + dx + 7
            contrib = jnp.dot(xpad_ref[off:off + HS, :],
                              w1_ref[t * C1p:(t + 1) * C1p, :],
                              preferred_element_type=jnp.float32)
            if t == 0:
                acc1_ref[...] = contrib
            else:
                acc1_ref[...] += contrib

    # ---- folded-BN bias + SiLU on the whole slab (single broadcast / EUP op),
    # ---- then aligned per-row scatter into the padded bf16 cv1-output slab.
    a1 = acc1_ref[...] + b1_ref[...]
    acc1_ref[...] = a1 * jax.nn.sigmoid(a1)                 # SiLU
    for h in range(H):
        y1pad_ref[P + h * S:P + h * S + W, :] = (
            acc1_ref[h * S:h * S + W, :].astype(y1pad_ref.dtype))

    # ---- cv2: 3x3 conv, same scheme ----------------------------------------
    for dy in range(3):
        for dx in range(3):
            t = dy * 3 + dx
            off = dy * S + dx + 7
            contrib = jnp.dot(y1pad_ref[off:off + HS, :],
                              w2_ref[t * Cmp:(t + 1) * Cmp, :],
                              preferred_element_type=jnp.float32)
            if t == 0:
                acc2_ref[...] = contrib
            else:
                acc2_ref[...] += contrib

    # ---- bias + SiLU (+ residual) on the whole slab, lane-dense bf16 store --
    a2 = acc2_ref[...] + b2_ref[...]
    y2 = a2 * jax.nn.sigmoid(a2)                            # SiLU
    if add:                                                 # x + cv2(cv1(x))
        # x is already laid out in the slab at (aligned) offset P.
        y2 = y2 + xpad_ref[P:P + HS, :].astype(jnp.float32)
    acc2_ref[...] = y2
    for h in range(H):
        o_ref[0, h] = acc2_ref[h * S:h * S + W, :].astype(o_ref.dtype)


# ---------------------------------------------------------------------------
# Wrapper: one fused pallas_call, gridded over batch
# ---------------------------------------------------------------------------
def bottleneck_forward(x_nchw, kparams, *, c2, add):
    B, c1, H, W = x_nchw.shape
    w1, b1, w2, b2 = kparams["w1"], kparams["b1"], kparams["w2"], kparams["b2"]
    C1p = w1.shape[0] // 9
    Cmp = w1.shape[1]
    C2p = w2.shape[1]
    S = _round_up(W + 2, 8)
    HS = H * S
    n_slab = (H + 2) * S + 16                       # covers max tap offset

    # NCHW -> NHWC, zero-pad channels to the 128-lane multiple, cast to bf16.
    # TODO(synk): keep activations NHWC / channel-padded / bf16 end-to-end in a
    # full network so this transpose+pad (extra HBM round trips) disappears.
    x = jnp.transpose(x_nchw, (0, 2, 3, 1))
    x = jnp.pad(x, ((0, 0), (0, 0), (0, 0), (0, C1p - c1))).astype(jnp.bfloat16)

    kernel = functools.partial(_bottleneck_kernel, H=H, W=W, add=add)

    # TODO(synk): weights/biases are grid-invariant; pipeline_mode=pl.Buffered(1)
    # (or pl.run_scoped phase reuse of xpad/acc2) would shave their duplicate
    # VMEM copies for large-channel configs on v7x.
    vmem_est = (2 * H * W * C1p * 2                 # x blocks (double-buffered, bf16)
                + 2 * H * W * C2p * 2               # out blocks (double-buffered, bf16)
                + 2 * (w1.size + w2.size) * 2       # weights (double-buffered, bf16)
                + 2 * (b1.size + b2.size) * 4       # biases
                + n_slab * (C1p + Cmp) * 2          # padded bf16 slabs
                + HS * (Cmp + C2p) * 4)             # f32 accumulators
    flops = 2 * B * HS * 9 * (C1p * Cmp + Cmp * C2p)

    out = pl.pallas_call(
        kernel,
        out_shape=jax.ShapeDtypeStruct((B, H, W, C2p), jnp.bfloat16),
        grid_spec=pltpu.PrefetchScalarGridSpec(
            num_scalar_prefetch=0,
            grid=(B,),
            in_specs=[
                pl.BlockSpec((1, H, W, C1p), lambda b: (b, 0, 0, 0)),
                pl.BlockSpec((9 * C1p, Cmp), lambda b: (0, 0)),
                pl.BlockSpec((1, Cmp), lambda b: (0, 0)),
                pl.BlockSpec((9 * Cmp, C2p), lambda b: (0, 0)),
                pl.BlockSpec((1, C2p), lambda b: (0, 0)),
            ],
            out_specs=pl.BlockSpec((1, H, W, C2p), lambda b: (b, 0, 0, 0)),
            scratch_shapes=[
                pltpu.VMEM((n_slab, C1p), jnp.bfloat16),     # padded x slab
                pltpu.VMEM((n_slab, Cmp), jnp.bfloat16),     # padded cv1-out slab
                pltpu.VMEM((HS, Cmp), jnp.float32),          # cv1 accum
                pltpu.VMEM((HS, C2p), jnp.float32),          # cv2 accum
            ],
        ),
        compiler_params=pltpu.CompilerParams(
            dimension_semantics=("parallel",),
            vmem_limit_bytes=min(int(vmem_est * 1.4) + (2 << 20), 56 << 20),
        ),
        cost_estimate=pl.CostEstimate(
            flops=flops,
            transcendentals=B * HS * (Cmp + C2p),
            bytes_accessed=x.size * 2 + (w1.size + w2.size) * 2
                           + B * H * W * C2p * 2,
        ),
    )(x, w1, b1, w2, b2)

    out = out[..., :c2]
    return jnp.transpose(out, (0, 3, 1, 2))                  # -> NCHW (bf16)


# ---------------------------------------------------------------------------
# Parameters: eval-mode BN folded into weights; channels padded; bf16 weights
# ---------------------------------------------------------------------------
def _bn_params(key, c, eps=1e-5):
    k1, k2, k3, k4 = jax.random.split(key, 4)
    gamma = 1.0 + 0.1 * jax.random.normal(k1, (c,), jnp.float32)
    beta = 0.1 * jax.random.normal(k2, (c,), jnp.float32)
    mean = 0.1 * jax.random.normal(k3, (c,), jnp.float32)
    var = jnp.abs(jax.random.normal(k4, (c,), jnp.float32)) + 0.5
    scale = gamma * jax.lax.rsqrt(var + eps)
    bias = beta - mean * scale
    return scale, bias


def _conv_bn_params(key, cin, cout, cin_p, cout_p):
    kw, kb = jax.random.split(key)
    w = 0.1 * jax.random.normal(kw, (3, 3, cin, cout), jnp.float32)  # HWIO
    scale, bias = _bn_params(kb, cout)
    w_folded = (w * scale[None, None, None, :]).astype(jnp.bfloat16)
    wp = jnp.zeros((3, 3, cin_p, cout_p), jnp.bfloat16)
    wp = wp.at[:, :, :cin, :cout].set(w_folded)
    w_flat = wp.reshape(9 * cin_p, cout_p)                 # tap-major (9*Cin, Cout)
    bp = jnp.zeros((1, cout_p), jnp.float32).at[:, :cout].set(bias)
    return w_flat, bp, w_folded.astype(jnp.float32), bias


def make_params(key, c1, c2, shortcut=True, e=0.5, lane=128):
    c_ = int(c2 * e)
    C1p, Cmp, C2p = _round_up(c1, lane), _round_up(c_, lane), _round_up(c2, lane)
    k1, k2 = jax.random.split(key)
    w1, b1, w1_hwio, b1_vec = _conv_bn_params(k1, c1, c_, C1p, Cmp)
    w2, b2, w2_hwio, b2_vec = _conv_bn_params(k2, c_, c2, Cmp, C2p)
    kparams = dict(w1=w1, b1=b1, w2=w2, b2=b2)
    meta = dict(add=bool(shortcut and c1 == c2), c1=c1, c2=c2,
                w1_hwio=w1_hwio, b1_vec=b1_vec, w2_hwio=w2_hwio, b2_vec=b2_vec)
    return kparams, meta


# ---------------------------------------------------------------------------
# Pure-JAX reference (same bf16-rounded folded weights / activations)
# ---------------------------------------------------------------------------
def bottleneck_reference(x_nchw, meta):
    x = jnp.transpose(x_nchw, (0, 2, 3, 1)).astype(jnp.bfloat16).astype(jnp.float32)

    def conv_bn_silu(h, w_hwio, b):
        y = jax.lax.conv_general_dilated(
            h, w_hwio, window_strides=(1, 1), padding="SAME",
            dimension_numbers=("NHWC", "HWIO", "NHWC"))
        y = y + b[None, None, None, :]
        return y * jax.nn.sigmoid(y)

    y = conv_bn_silu(x, meta["w1_hwio"], meta["b1_vec"])
    y = y.astype(jnp.bfloat16).astype(jnp.float32)          # kernel stores cv1 in bf16
    y = conv_bn_silu(y, meta["w2_hwio"], meta["b2_vec"])
    if meta["add"]:
        y = y + x
    return jnp.transpose(y, (0, 3, 1, 2))


if __name__ == "__main__":
    key = jax.random.PRNGKey(0)
    kx, kp1, kp2 = jax.random.split(key, 3)

    B, H, W = 2, 16, 16

    # Case 1: shortcut active (c1 == c2 == 8, e=0.5 -> hidden width 4).
    c1 = c2 = 8
    x = jax.random.normal(kx, (B, c1, H, W), jnp.float32)
    kparams, meta = make_params(kp1, c1, c2, shortcut=True, e=0.5)
    fwd = jax.jit(functools.partial(bottleneck_forward, c2=meta["c2"], add=meta["add"]))
    out = jax.block_until_ready(fwd(x, kparams))
    assert out.shape == (B, c2, H, W), out.shape
    ref = bottleneck_reference(x, meta)
    err = float(jnp.max(jnp.abs(out.astype(jnp.float32) - ref)))
    assert err < 6e-2, f"shortcut case mismatch: max|err|={err}"

    # Case 2: no residual (c1 != c2).
    c2b = 16
    kparams2, meta2 = make_params(kp2, c1, c2b, shortcut=True, e=0.5)
    fwd2 = jax.jit(functools.partial(bottleneck_forward, c2=meta2["c2"], add=meta2["add"]))
    out2 = jax.block_until_ready(fwd2(x, kparams2))
    assert out2.shape == (B, c2b, H, W), out2.shape
    ref2 = bottleneck_reference(x, meta2)
    err2 = float(jnp.max(jnp.abs(out2.astype(jnp.float32) - ref2)))
    assert err2 < 6e-2, f"no-shortcut case mismatch: max|err|={err2}"

    print("KERNEL_OK")
</pallas_src>

<mosaic_0001>
module attributes {stable_mosaic.version = 11 : i64} {
  func.func @_bottleneck_kernel(%arg0: i32, %arg1: memref<1x16x16x128xbf16, #tpu.memory_space<vmem>>, %arg2: memref<1152x128xbf16, #tpu.memory_space<vmem>>, %arg3: memref<1x128xf32, #tpu.memory_space<vmem>>, %arg4: memref<1152x128xbf16, #tpu.memory_space<vmem>>, %arg5: memref<1x128xf32, #tpu.memory_space<vmem>>, %arg6: memref<1x16x16x128xbf16, #tpu.memory_space<vmem>>, %arg7: memref<448x128xbf16, #tpu.memory_space<vmem>>, %arg8: memref<448x128xbf16, #tpu.memory_space<vmem>>, %arg9: memref<384x128xf32, #tpu.memory_space<vmem>>, %arg10: memref<384x128xf32, #tpu.memory_space<vmem>>) attributes {dimension_semantics = [#tpu.dimension_semantics<parallel>], iteration_bounds = array<i64: 2>, scalar_prefetch = 0 : i64, scratch_operands = 4 : i64, tpu.core_type = #tpu.core_type<tc>, window_params = [{transform_indices = @transform_0, window_bounds = array<i64: 1, 16, 16, 128>}, {pipeline_mode = #tpu.pipeline_mode<synchronous>, transform_indices = @transform_1, window_bounds = array<i64: 1152, 128>}, {pipeline_mode = #tpu.pipeline_mode<synchronous>, transform_indices = @transform_2, window_bounds = array<i64: 1, 128>}, {pipeline_mode = #tpu.pipeline_mode<synchronous>, transform_indices = @transform_3, window_bounds = array<i64: 1152, 128>}, {pipeline_mode = #tpu.pipeline_mode<synchronous>, transform_indices = @transform_4, window_bounds = array<i64: 1, 128>}, {transform_indices = @transform_5, window_bounds = array<i64: 1, 16, 16, 128>}]} {
    %cst = arith.constant 0.000000e+00 : bf16
    %0 = vector.broadcast %cst : bf16 to vector<32x128xbf16>
    %c0 = arith.constant 0 : index
    %c0_0 = arith.constant 0 : index
    %1 = vector.load %arg7[%c0, %c0_0] : memref<448x128xbf16, #tpu.memory_space<vmem>>, vector<32x128xbf16>
    tpu.vector_store %arg7[%c0, %c0_0], %0 {strides = array<i32>} : memref<448x128xbf16, #tpu.memory_space<vmem>>, vector<32x128xbf16>,
    %cst_1 = arith.constant 0.000000e+00 : bf16
    %2 = vector.broadcast %cst_1 : bf16 to vector<32x128xbf16>
    %c0_2 = arith.constant 0 : index
    %c0_3 = arith.constant 0 : index
    %3 = vector.load %arg8[%c0_2, %c0_3] : memref<448x128xbf16, #tpu.memory_space<vmem>>, vector<32x128xbf16>
    tpu.vector_store %arg8[%c0_2, %c0_3], %2 {strides = array<i32>} : memref<448x128xbf16, #tpu.memory_space<vmem>>, vector<32x128xbf16>,
    %cst_4 = arith.constant 0.000000e+00 : bf16
    %4 = vector.broadcast %cst_4 : bf16 to vector<32x128xbf16>
    %c416 = arith.constant 416 : index
    %c0_5 = arith.constant 0 : index
    %5 = vector.load %arg7[%c416, %c0_5] : memref<448x128xbf16, #tpu.memory_space<vmem>>, vector<32x128xbf16>
    tpu.vector_store %arg7[%c416, %c0_5], %4 {strides = array<i32>} : memref<448x128xbf16, #tpu.memory_space<vmem>>, vector<32x128xbf16>,
    %cst_6 = arith.constant 0.000000e+00 : bf16
    %6 = vector.broadcast %cst_6 : bf16 to vector<32x128xbf16>
    %c416_7 = arith.constant 416 : index
    %c0_8 = arith.constant 0 : index
    %7 = vector.load %arg8[%c416_7, %c0_8] : memref<448x128xbf16, #tpu.memory_space<vmem>>, vector<32x128xbf16>
    tpu.vector_store %arg8[%c416_7, %c0_8], %6 {strides = array<i32>} : memref<448x128xbf16, #tpu.memory_space<vmem>>, vector<32x128xbf16>,
    %cst_9 = arith.constant 0.000000e+00 : bf16
    %8 = vector.broadcast %cst_9 : bf16 to vector<8x128xbf16>
    %cst_10 = arith.constant 0.000000e+00 : bf16
    %9 = vector.broadcast %cst_10 : bf16 to vector<8x128xbf16>
    %c0_11 = arith.constant 0 : index
    %c0_12 = arith.constant 0 : index
    %c0_13 = arith.constant 0 : index
    %c0_14 = arith.constant 0 : index
    %10 = vector.load %arg1[%c0_11, %c0_12, %c0_13, %c0_14] : memref<1x16x16x128xbf16, #tpu.memory_space<vmem>>, vector<1x1x16x128xbf16>
    %11 = vector.shape_cast %10 : vector<1x1x16x128xbf16> to vector<16x128xbf16>
    %c32 = arith.constant 32 : index
    %c0_15 = arith.constant 0 : index
    %12 = vector.load %arg7[%c32, %c0_15] : memref<448x128xbf16, #tpu.memory_space<vmem>>, vector<16x128xbf16>
    tpu.vector_store %arg7[%c32, %c0_15], %11 {strides = array<i32>} : memref<448x128xbf16, #tpu.memory_space<vmem>>, vector<16x128xbf16>,
    %c48 = arith.constant 48 : index
    %c0_16 = arith.constant 0 : index
    %13 = vector.load %arg7[%c48, %c0_16] : memref<448x128xbf16, #tpu.memory_space<vmem>>, vector<8x128xbf16>
    tpu.vector_store %arg7[%c48, %c0_16], %8 {strides = array<i32>} : memref<448x128xbf16, #tpu.memory_space<vmem>>, vector<8x128xbf16>,
    %c48_17 = arith.constant 48 : index
    %c0_18 = arith.constant 0 : index
    %14 = vector.load %arg8[%c48_17, %c0_18] : memref<448x128xbf16, #tpu.memory_space<vmem>>, vector<8x128xbf16>
    tpu.vector_store %arg8[%c48_17, %c0_18], %9 {strides = array<i32>} : memref<448x128xbf16, #tpu.memory_space<vmem>>, vector<8x128xbf16>,
    %c0_19 = arith.constant 0 : index
    %c1 = arith.constant 1 : index
    %c0_20 = arith.constant 0 : index
    %c0_21 = arith.constant 0 : index
    %15 = vector.load %arg1[%c0_19, %c1, %c0_20, %c0_21] : memref<1x16x16x128xbf16, #tpu.memory_space<vmem>>, vector<1x1x16x128xbf16>
    %16 = vector.shape_cast %15 : vector<1x1x16x128xbf16> to vector<16x128xbf16>
    %c56 = arith.constant 56 : index
    %c0_22 = arith.constant 0 : index
    %17 = vector.load %arg7[%c56, %c0_22] : memref<448x128xbf16, #tpu.memory_space<vmem>>, vector<16x128xbf16>
    tpu.vector_store %arg7[%c56, %c0_22], %16 {strides = array<i32>} : memref<448x128xbf16, #tpu.memory_space<vmem>>, vector<16x128xbf16>,
    %c72 = arith.constant 72 : index
    %c0_23 = arith.constant 0 : index
    %18 = vector.load %arg7[%c72, %c0_23] : memref<448x128xbf16, #tpu.memory_space<vmem>>, vector<8x128xbf16>
    tpu.vector_store %arg7[%c72, %c0_23], %8 {strides = array<i32>} : memref<448x128xbf16, #tpu.memory_space<vmem>>, vector<8x128xbf16>,
    %c72_24 = arith.constant 72 : index
    %c0_25 = arith.constant 0 : index
    %19 = vector.load %arg8[%c72_24, %c0_25] : memref<448x128xbf16, #tpu.memory_space<vmem>>, vector<8x128xbf16>
    tpu.vector_store %arg8[%c72_24, %c0_25], %9 {strides = array<i32>} : memref<448x128xbf16, #tpu.memory_space<vmem>>, vector<8x128xbf16>,
    %c0_26 = arith.constant 0 : index
    %c2 = arith.constant 2 : index
    %c0_27 = arith.constant 0 : index
    %c0_28 = arith.constant 0 : index
    %20 = vector.load %arg1[%c0_26, %c2, %c0_27, %c0_28] : memref<1x16x16x128xbf16, #tpu.memory_space<vmem>>, vector<1x1x16x128xbf16>
    %21 = vector.shape_cast %20 : vector<1x1x16x128xbf16> to vector<16x128xbf16>
    %c80 = arith.constant 80 : index
    %c0_29 = arith.constant 0 : index
    %22 = vector.load %arg7[%c80, %c0_29] : memref<448x128xbf16, #tpu.memory_space<vmem>>, vector<16x128xbf16>
    tpu.vector_store %arg7[%c80, %c0_29], %21 {strides = array<i32>} : memref<448x128xbf16, #tpu.memory_space<vmem>>, vector<16x128xbf16>,
    %c96 = arith.constant 96 : index
    %c0_30 = arith.constant 0 : index
    %23 = vector.load %arg7[%c96, %c0_30] : memref<448x128xbf16, #tpu.memory_space<vmem>>, vector<8x128xbf16>
    tpu.vector_store %arg7[%c96, %c0_30], %8 {strides = array<i32>} : memref<448x128xbf16, #tpu.memory_space<vmem>>, vector<8x128xbf16>,
    %c96_31 = arith.constant 96 : index
    %c0_32 = arith.constant 0 : index
    %24 = vector.load %arg8[%c96_31, %c0_32] : memref<448x128xbf16, #tpu.memory_space<vmem>>, vector<8x128xbf16>
    tpu.vector_store %arg8[%c96_31, %c0_32], %9 {strides = array<i32>} : memref<448x128xbf16, #tpu.memory_space<vmem>>, vector<8x128xbf16>,
    %c0_33 = arith.constant 0 : index
    %c3 = arith.constant 3 : index
    %c0_34 = arith.constant 0 : index
    %c0_35 = arith.constant 0 : index
    %25 = vector.load %arg1[%c0_33, %c3, %c0_34, %c0_35] : memref<1x16x16x128xbf16, #tpu.memory_space<vmem>>, vector<1x1x16x128xbf16>
    %26 = vector.shape_cast %25 : vector<1x1x16x128xbf16> to vector<16x128xbf16>
    %c104 = arith.constant 104 : index
    %c0_36 = arith.constant 0 : index
    %27 = vector.load %arg7[%c104, %c0_36] : memref<448x128xbf16, #tpu.memory_space<vmem>>, vector<16x128xbf16>
    tpu.vector_store %arg7[%c104, %c0_36], %26 {strides = array<i32>} : memref<448x128xbf16, #tpu.memory_space<vmem>>, vector<16x128xbf16>,
    %c120 = arith.constant 120 : index
    %c0_37 = arith.constant 0 : index
    %28 = vector.load %arg7[%c120, %c0_37] : memref<448x128xbf16, #tpu.memory_space<vmem>>, vector<8x128xbf16>
    tpu.vector_store %arg7[%c120, %c0_37], %8 {strides = array<i32>} : memref<448x128xbf16, #tpu.memory_space<vmem>>, vector<8x128xbf16>,
    %c120_38 = arith.constant 120 : index
    %c0_39 = arith.constant 0 : index
    %29 = vector.load %arg8[%c120_38, %c0_39] : memref<448x128xbf16, #tpu.memory_space<vmem>>, vector<8x128xbf16>
    tpu.vector_store %arg8[%c120_38, %c0_39], %9 {strides = array<i32>} : memref<448x128xbf16, #tpu.memory_space<vmem>>, vector<8x128xbf16>,
    %c0_40 = arith.constant 0 : index
    %c4 = arith.constant 4 : index
    %c0_41 = arith.constant 0 : index
    %c0_42 = arith.constant 0 : index
    %30 = vector.load %arg1[%c0_40, %c4, %c0_41, %c0_42] : memref<1x16x16x128xbf16, #tpu.memory_space<vmem>>, vector<1x1x16x128xbf16>
    %31 = vector.shape_cast %30 : vector<1x1x16x128xbf16> to vector<16x128xbf16>
    %c128 = arith.constant 128 : index
    %c0_43 = arith.constant 0 : index
    %32 = vector.load %arg7[%c128, %c0_43] : memref<448x128xbf16, #tpu.memory_space<vmem>>, vector<16x128xbf16>
    tpu.vector_store %arg7[%c128, %c0_43], %31 {strides = array<i32>} : memref<448x128xbf16, #tpu.memory_space<vmem>>, vector<16x128xbf16>,
    %c144 = arith.constant 144 : index
    %c0_44 = arith.constant 0 : index
    %33 = vector.load %arg7[%c144, %c0_44] : memref<448x128xbf16, #tpu.memory_space<vmem>>, vector<8x128xbf16>
    tpu.vector_store %arg7[%c144, %c0_44], %8 {strides = array<i32>} : memref<448x128xbf16, #tpu.memory_space<vmem>>, vector<8x128xbf16>,
    %c144_45 = arith.constant 144 : index
    %c0_46 = arith.constant 0 : index
    %34 = vector.load %arg8[%c144_45, %c0_46] : memref<448x128xbf16, #tpu.memory_space<vmem>>, vector<8x128xbf16>
    tpu.vector_store %arg8[%c144_45, %c0_46], %9 {strides = array<i32>} : memref<448x128xbf16, #tpu.memory_space<vmem>>, vector<8x128xbf16>,
    %c0_47 = arith.constant 0 : index
    %c5 = arith.constant 5 : index
    %c0_48 = arith.constant 0 : index
    %c0_49 = arith.constant 0 : index
    %35 = vector.load %arg1[%c0_47, %c5, %c0_48, %c0_49] : memref<1x16x16x128xbf16, #tpu.memory_space<vmem>>, vector<1x1x16x128xbf16>
    %36 = vector.shape_cast %35 : vector<1x1x16x128xbf16> to vector<16x128xbf16>
    %c152 = arith.constant 152 : index
    %c0_50 = arith.constant 0 : index
    %37 = vector.load %arg7[%c152, %c0_50] : memref<448x128xbf16, #tpu.memory_space<vmem>>, vector<16x128xbf16>
    tpu.vector_store %arg7[%c152, %c0_50], %36 {strides = array<i32>} : memref<448x128xbf16, #tpu.memory_space<vmem>>, vector<16x128xbf16>,
    %c168 = arith.constant 168 : index
    %c0_51 = arith.constant 0 : index
    %38 = vector.load %arg7[%c168, %c0_51] : memref<448x128xbf16, #tpu.memory_space<vmem>>, vector<8x128xbf16>
    tpu.vector_store %arg7[%c168, %c0_51], %8 {strides = array<i32>} : memref<448x128xbf16, #tpu.memory_space<vmem>>, vector<8x128xbf16>,
    %c168_52 = arith.constant 168 : index
    %c0_53 = arith.constant 0 : index
    %39 = vector.load %arg8[%c168_52, %c0_53] : memref<448x128xbf16, #tpu.memory_space<vmem>>, vector<8x128xbf16>
    tpu.vector_store %arg8[%c168_52, %c0_53], %9 {strides = array<i32>} : memref<448x128xbf16, #tpu.memory_space<vmem>>, vector<8x128xbf16>,
    %c0_54 = arith.constant 0 : index
    %c6 = arith.constant 6 : index
    %c0_55 = arith.constant 0 : index
    %c0_56 = arith.constant 0 : index
    %40 = vector.load %arg1[%c0_54, %c6, %c0_55, %c0_56] : memref<1x16x16x128xbf16, #tpu.memory_space<vmem>>, vector<1x1x16x128xbf16>
    %41 = vector.shape_cast %40 : vector<1x1x16x128xbf16> to vector<16x128xbf16>
    %c176 = arith.constant 176 : index
    %c0_57 = arith.constant 0 : index
    %42 = vector.load %arg7[%c176, %c0_57] : memref<448x128xbf16, #tpu.memory_space<vmem>>, vector<16x128xbf16>
    tpu.vector_store %arg7[%c176, %c0_57], %41 {strides = array<i32>} : memref<448x128xbf16, #tpu.memory_space<vmem>>, vector<16x128xbf16>,
    %c192 = arith.constant 192 : index
    %c0_58 = arith.constant 0 : index
    %43 = vector.load %arg7[%c192, %c0_58] : memref<448x128xbf16, #tpu.memory_space<vmem>>, vector<8x128xbf16>
    tpu.vector_store %arg7[%c192, %c0_58], %8 {strides = array<i32>} : memref<448x128xbf16, #tpu.memory_space<vmem>>, vector<8x128xbf16>,
    %c192_59 = arith.constant 192 : index
    %c0_60 = arith.constant 0 : index
    %44 = vector.load %arg8[%c192_59, %c0_60] : memref<448x128xbf16, #tpu.memory_space<vmem>>, vector<8x128xbf16>
    tpu.vector_store %arg8[%c192_59, %c0_60], %9 {strides = array<i32>} : memref<448x128xbf16, #tpu.memory_space<vmem>>, vector<8x128xbf16>,
    %c0_61 = arith.constant 0 : index
    %c7 = arith.constant 7 : index
    %c0_62 = arith.constant 0 : index
    %c0_63 = arith.constant 0 : index
    %45 = vector.load %arg1[%c0_61, %c7, %c0_62, %c0_63] : memref<1x16x16x128xbf16, #tpu.memory_space<vmem>>, vector<1x1x16x128xbf16>
    %46 = vector.shape_cast %45 : vector<1x1x16x128xbf16> to vector<16x128xbf16>
    %c200 = arith.constant 200 : index
    %c0_64 = arith.constant 0 : index
    %47 = vector.load %arg7[%c200, %c0_64] : memref<448x128xbf16, #tpu.memory_space<vmem>>, vector<16x128xbf16>
    tpu.vector_store %arg7[%c200, %c0_64], %46 {strides = array<i32>} : memref<448x128xbf16, #tpu.memory_space<vmem>>, vector<16x128xbf16>,
    %c216 = arith.constant 216 : index
    %c0_65 = arith.constant 0 : index
    %48 = vector.load %arg7[%c216, %c0_65] : memref<448x128xbf16, #tpu.memory_space<vmem>>, vector<8x128xbf16>
    tpu.vector_store %arg7[%c216, %c0_65], %8 {strides = array<i32>} : memref<448x128xbf16, #tpu.memory_space<vmem>>, vector<8x128xbf16>,
    %c216_66 = arith.constant 216 : index
    %c0_67 = arith.constant 0 : index
    %49 = vector.load %arg8[%c216_66, %c0_67] : memref<448x128xbf16, #tpu.memory_space<vmem>>, vector<8x128xbf16>
    tpu.vector_store %arg8[%c216_66, %c0_67], %9 {strides = array<i32>} : memref<448x128xbf16, #tpu.memory_space<vmem>>, vector<8x128xbf16>,
    %c0_68 = arith.constant 0 : index
    %c8 = arith.constant 8 : index
    %c0_69 = arith.constant 0 : index
    %c0_70 = arith.constant 0 : index
    %50 = vector.load %arg1[%c0_68, %c8, %c0_69, %c0_70] : memref<1x16x16x128xbf16, #tpu.memory_space<vmem>>, vector<1x1x16x128xbf16>
    %51 = vector.shape_cast %50 : vector<1x1x16x128xbf16> to vector<16x128xbf16>
    %c224 = arith.constant 224 : index
    %c0_71 = arith.constant 0 : index
    %52 = vector.load %arg7[%c224, %c0_71] : memref<448x128xbf16, #tpu.memory_space<vmem>>, vector<16x128xbf16>
    tpu.vector_store %arg7[%c224, %c0_71], %51 {strides = array<i32>} : memref<448x128xbf16, #tpu.memory_space<vmem>>, vector<16x128xbf16>,
    %c240 = arith.constant 240 : index
    %c0_72 = arith.constant 0 : index
    %53 = vector.load %arg7[%c240, %c0_72] : memref<448x128xbf16, #tpu.memory_space<vmem>>, vector<8x128xbf16>
    tpu.vector_store %arg7[%c240, %c0_72], %8 {strides = array<i32>} : memref<448x128xbf16, #tpu.memory_space<vmem>>, vector<8x128xbf16>,
    %c240_73 = arith.constant 240 : index
    %c0_74 = arith.constant 0 : index
    %54 = vector.load %arg8[%c240_73, %c0_74] : memref<448x128xbf16, #tpu.memory_space<vmem>>, vector<8x128xbf16>
    tpu.vector_store %arg8[%c240_73, %c0_74], %9 {strides = array<i32>} : memref<448x128xbf16, #tpu.memory_space<vmem>>, vector<8x128xbf16>,
    %c0_75 = arith.constant 0 : index
    %c9 = arith.constant 9 : index
    %c0_76 = arith.constant 0 : index
    %c0_77 = arith.constant 0 : index
    %55 = vector.load %arg1[%c0_75, %c9, %c0_76, %c0_77] : memref<1x16x16x128xbf16, #tpu.memory_space<vmem>>, vector<1x1x16x128xbf16>
    %56 = vector.shape_cast %55 : vector<1x1x16x128xbf16> to vector<16x128xbf16>
    %c248 = arith.constant 248 : index
    %c0_78 = arith.constant 0 : index
    %57 = vector.load %arg7[%c248, %c0_78] : memref<448x128xbf16, #tpu.memory_space<vmem>>, vector<16x128xbf16>
    tpu.vector_store %arg7[%c248, %c0_78], %56 {strides = array<i32>} : memref<448x128xbf16, #tpu.memory_space<vmem>>, vector<16x128xbf16>,
    %c264 = arith.constant 264 : index
    %c0_79 = arith.constant 0 : index
    %58 = vector.load %arg7[%c264, %c0_79] : memref<448x128xbf16, #tpu.memory_space<vmem>>, vector<8x128xbf16>
    tpu.vector_store %arg7[%c264, %c0_79], %8 {strides = array<i32>} : memref<448x128xbf16, #tpu.memory_space<vmem>>, vector<8x128xbf16>,
    %c264_80 = arith.constant 264 : index
    %c0_81 = arith.constant 0 : index
    %59 = vector.load %arg8[%c264_80, %c0_81] : memref<448x128xbf16, #tpu.memory_space<vmem>>, vector<8x128xbf16>
    tpu.vector_store %arg8[%c264_80, %c0_81], %9 {strides = array<i32>} : memref<448x128xbf16, #tpu.memory_space<vmem>>, vector<8x128xbf16>,
    %c0_82 = arith.constant 0 : index
    %c10 = arith.constant 10 : index
    %c0_83 = arith.constant 0 : index
    %c0_84 = arith.constant 0 : index
    %60 = vector.load %arg1[%c0_82, %c10, %c0_83, %c0_84] : memref<1x16x16x128xbf16, #tpu.memory_space<vmem>>, vector<1x1x16x128xbf16>
    %61 = vector.shape_cast %60 : vector<1x1x16x128xbf16> to vector<16x128xbf16>
    %c272 = arith.constant 272 : index
    %c0_85 = arith.constant 0 : index
    %62 = vector.load %arg7[%c272, %c0_85] : memref<448x128xbf16, #tpu.memory_space<vmem>>, vector<16x128xbf16>
    tpu.vector_store %arg7[%c272, %c0_85], %61 {strides = array<i32>} : memref<448x128xbf16, #tpu.memory_space<vmem>>, vector<16x128xbf16>,
    %c288 = arith.constant 288 : index
    %c0_86 = arith.constant 0 : index
    %63 = vector.load %arg7[%c288, %c0_86] : memref<448x128xbf16, #tpu.memory_space<vmem>>, vector<8x128xbf16>
    tpu.vector_store %arg7[%c288, %c0_86], %8 {strides = array<i32>} : memref<448x128xbf16, #tpu.memory_space<vmem>>, vector<8x128xbf16>,
    %c288_87 = arith.constant 288 : index
    %c0_88 = arith.constant 0 : index
    %64 = vector.load %arg8[%c288_87, %c0_88] : memref<448x128xbf16, #tpu.memory_space<vmem>>, vector<8x128xbf16>
    tpu.vector_store %arg8[%c288_87, %c0_88], %9 {strides = array<i32>} : memref<448x128xbf16, #tpu.memory_space<vmem>>, vector<8x128xbf16>,
    %c0_89 = arith.constant 0 : index
    %c11 = arith.constant 11 : index
    %c0_90 = arith.constant 0 : index
    %c0_91 = arith.constant 0 : index
    %65 = vector.load %arg1[%c0_89, %c11, %c0_90, %c0_91] : memref<1x16x16x128xbf16, #tpu.memory_space<vmem>>, vector<1x1x16x128xbf16>
    %66 = vector.shape_cast %65 : vector<1x1x16x128xbf16> to vector<16x128xbf16>
    %c296 = arith.constant 296 : index
    %c0_92 = arith.constant 0 : index
    %67 = vector.load %arg7[%c296, %c0_92] : memref<448x128xbf16, #tpu.memory_space<vmem>>, vector<16x128xbf16>
    tpu.vector_store %arg7[%c296, %c0_92], %66 {strides = array<i32>} : memref<448x128xbf16, #tpu.memory_space<vmem>>, vector<16x128xbf16>,
    %c312 = arith.constant 312 : index
    %c0_93 = arith.constant 0 : index
    %68 = vector.load %arg7[%c312, %c0_93] : memref<448x128xbf16, #tpu.memory_space<vmem>>, vector<8x128xbf16>
    tpu.vector_store %arg7[%c312, %c0_93], %8 {strides = array<i32>} : memref<448x128xbf16, #tpu.memory_space<vmem>>, vector<8x128xbf16>,
    %c312_94 = arith.constant 312 : index
    %c0_95 = arith.constant 0 : index
    %69 = vector.load %arg8[%c312_94, %c0_95] : memref<448x128xbf16, #tpu.memory_space<vmem>>, vector<8x128xbf16>
    tpu.vector_store %arg8[%c312_94, %c0_95], %9 {strides = array<i32>} : memref<448x128xbf16, #tpu.memory_space<vmem>>, vector<8x128xbf16>,
    %c0_96 = arith.constant 0 : index
    %c12 = arith.constant 12 : index
    %c0_97 = arith.constant 0 : index
    %c0_98 = arith.constant 0 : index
    %70 = vector.load %arg1[%c0_96, %c12, %c0_97, %c0_98] : memref<1x16x16x128xbf16, #tpu.memory_space<vmem>>, vector<1x1x16x128xbf16>
    %71 = vector.shape_cast %70 : vector<1x1x16x128xbf16> to vector<16x128xbf16>
    %c320 = arith.constant 320 : index
    %c0_99 = arith.constant 0 : index
    %72 = vector.load %arg7[%c320, %c0_99] : memref<448x128xbf16, #tpu.memory_space<vmem>>, vector<16x128xbf16>
    tpu.vector_store %arg7[%c320, %c0_99], %71 {strides = array<i32>} : memref<448x128xbf16, #tpu.memory_space<vmem>>, vector<16x128xbf16>,
    %c336 = arith.constant 336 : index
    %c0_100 = arith.constant 0 : index
    %73 = vector.load %arg7[%c336, %c0_100] : memref<448x128xbf16, #tpu.memory_space<vmem>>, vector<8x128xbf16>
    tpu.vector_store %arg7[%c336, %c0_100], %8 {strides = array<i32>} : memref<448x128xbf16, #tpu.memory_space<vmem>>, vector<8x128xbf16>,
    %c336_101 = arith.constant 336 : index
    %c0_102 = arith.constant 0 : index
    %74 = vector.load %arg8[%c336_101, %c0_102] : memref<448x128xbf16, #tpu.memory_space<vmem>>, vector<8x128xbf16>
    tpu.vector_store %arg8[%c336_101, %c0_102], %9 {strides = array<i32>} : memref<448x128xbf16, #tpu.memory_space<vmem>>, vector<8x128xbf16>,
    %c0_103 = arith.constant 0 : index
    %c13 = arith.constant 13 : index
    %c0_104 = arith.constant 0 : index
    %c0_105 = arith.constant 0 : index
    %75 = vector.load %arg1[%c0_103, %c13, %c0_104, %c0_105] : memref<1x16x16x128xbf16, #tpu.memory_space<vmem>>, vector<1x1x16x128xbf16>
    %76 = vector.shape_cast %75 : vector<1x1x16x128xbf16> to vector<16x128xbf16>
    %c344 = arith.constant 344 : index
    %c0_106 = arith.constant 0 : index
    %77 = vector.load %arg7[%c344, %c0_106] : memref<448x128xbf16, #tpu.memory_space<vmem>>, vector<16x128xbf16>
    tpu.vector_store %arg7[%c344, %c0_106], %76 {strides = array<i32>} : memref<448x128xbf16, #tpu.memory_space<vmem>>, vector<16x128xbf16>,
    %c360 = arith.constant 360 : index
    %c0_107 = arith.constant 0 : index
    %78 = vector.load %arg7[%c360, %c0_107] : memref<448x128xbf16, #tpu.memory_space<vmem>>, vector<8x128xbf16>
    tpu.vector_store %arg7[%c360, %c0_107], %8 {strides = array<i32>} : memref<448x128xbf16, #tpu.memory_space<vmem>>, vector<8x128xbf16>,
    %c360_108 = arith.constant 360 : index
    %c0_109 = arith.constant 0 : index
    %79 = vector.load %arg8[%c360_108, %c0_109] : memref<448x128xbf16, #tpu.memory_space<vmem>>, vector<8x128xbf16>
    tpu.vector_store %arg8[%c360_108, %c0_109], %9 {strides = array<i32>} : memref<448x128xbf16, #tpu.memory_space<vmem>>, vector<8x128xbf16>,
    %c0_110 = arith.constant 0 : index
    %c14 = arith.constant 14 : index
    %c0_111 = arith.constant 0 : index
    %c0_112 = arith.constant 0 : index
    %80 = vector.load %arg1[%c0_110, %c14, %c0_111, %c0_112] : memref<1x16x16x128xbf16, #tpu.memory_space<vmem>>, vector<1x1x16x128xbf16>
    %81 = vector.shape_cast %80 : vector<1x1x16x128xbf16> to vector<16x128xbf16>
    %c368 = arith.constant 368 : index
    %c0_113 = arith.constant 0 : index
    %82 = vector.load %arg7[%c368, %c0_113] : memref<448x128xbf16, #tpu.memory_space<vmem>>, vector<16x128xbf16>
    tpu.vector_store %arg7[%c368, %c0_113], %81 {strides = array<i32>} : memref<448x128xbf16, #tpu.memory_space<vmem>>, vector<16x128xbf16>,
    %c384 = arith.constant 384 : index
    %c0_114 = arith.constant 0 : index
    %83 = vector.load %arg7[%c384, %c0_114] : memref<448x128xbf16, #tpu.memory_space<vmem>>, vector<8x128xbf16>
    tpu.vector_store %arg7[%c384, %c0_114], %8 {strides = array<i32>} : memref<448x128xbf16, #tpu.memory_space<vmem>>, vector<8x128xbf16>,
    %c384_115 = arith.constant 384 : index
    %c0_116 = arith.constant 0 : index
    %84 = vector.load %arg8[%c384_115, %c0_116] : memref<448x128xbf16, #tpu.memory_space<vmem>>, vector<8x128xbf16>
    tpu.vector_store %arg8[%c384_115, %c0_116], %9 {strides = array<i32>} : memref<448x128xbf16, #tpu.memory_space<vmem>>, vector<8x128xbf16>,
    %c0_117 = arith.constant 0 : index
    %c15 = arith.constant 15 : index
    %c0_118 = arith.constant 0 : index
    %c0_119 = arith.constant 0 : index
    %85 = vector.load %arg1[%c0_117, %c15, %c0_118, %c0_119] : memref<1x16x16x128xbf16, #tpu.memory_space<vmem>>, vector<1x1x16x128xbf16>
    %86 = vector.shape_cast %85 : vector<1x1x16x128xbf16> to vector<16x128xbf16>
    %c392 = arith.constant 392 : index
    %c0_120 = arith.constant 0 : index
    %87 = vector.load %arg7[%c392, %c0_120] : memref<448x128xbf16, #tpu.memory_space<vmem>>, vector<16x128xbf16>
    tpu.vector_store %arg7[%c392, %c0_120], %86 {strides = array<i32>} : memref<448x128xbf16, #tpu.memory_space<vmem>>, vector<16x128xbf16>,
    %c408 = arith.constant 408 : index
    %c0_121 = arith.constant 0 : index
    %88 = vector.load %arg7[%c408, %c0_121] : memref<448x128xbf16, #tpu.memory_space<vmem>>, vector<8x128xbf16>
    tpu.vector_store %arg7[%c408, %c0_121], %8 {strides = array<i32>} : memref<448x128xbf16, #tpu.memory_space<vmem>>, vector<8x128xbf16>,
    %c408_122 = arith.constant 408 : index
    %c0_123 = arith.constant 0 : index
    %89 = vector.load %arg8[%c408_122, %c0_123] : memref<448x128xbf16, #tpu.memory_space<vmem>>, vector<8x128xbf16>
    tpu.vector_store %arg8[%c408_122, %c0_123], %9 {strides = array<i32>} : memref<448x128xbf16, #tpu.memory_space<vmem>>, vector<8x128xbf16>,
    %c7_124 = arith.constant 7 : index
    %c0_125 = arith.constant 0 : index
    %90 = vector.load %arg7[%c7_124, %c0_125] : memref<448x128xbf16, #tpu.memory_space<vmem>>, vector<384x128xbf16>
    %c0_126 = arith.constant 0 : index
    %c0_127 = arith.constant 0 : index
    %91 = vector.load %arg2[%c0_126, %c0_127] : memref<1152x128xbf16, #tpu.memory_space<vmem>>, vector<128x128xbf16>
    %cst_128 = arith.constant dense<0.000000e+00> : vector<384x128xf32>
    %92 = tpu.matmul %90, %91, %cst_128 {dimension_numbers = #tpu.dot_dimension_numbers<[1], [0], [0], [1], [0, 0, 1, 1], [], []>} : vector<384x128xbf16>, vector<128x128xbf16>, vector<384x128xf32> -> vector<384x128xf32>
    %c0_129 = arith.constant 0 : index
    %c0_130 = arith.constant 0 : index
    %93 = vector.load %arg9[%c0_129, %c0_130] : memref<384x128xf32, #tpu.memory_space<vmem>>, vector<384x128xf32>
    tpu.vector_store %arg9[%c0_129, %c0_130], %92 {strides = array<i32>} : memref<384x128xf32, #tpu.memory_space<vmem>>, vector<384x128xf32>,
    %c8_131 = arith.constant 8 : index
    %c0_132 = arith.constant 0 : index
    %94 = vector.load %arg7[%c8_131, %c0_132] : memref<448x128xbf16, #tpu.memory_space<vmem>>, vector<384x128xbf16>
    %c128_133 = arith.constant 128 : index
    %c0_134 = arith.constant 0 : index
    %95 = vector.load %arg2[%c128_133, %c0_134] : memref<1152x128xbf16, #tpu.memory_space<vmem>>, vector<128x128xbf16>
    %cst_135 = arith.constant dense<0.000000e+00> : vector<384x128xf32>
    %96 = tpu.matmul %94, %95, %cst_135 {dimension_numbers = #tpu.dot_dimension_numbers<[1], [0], [0], [1], [0, 0, 1, 1], [], []>} : vector<384x128xbf16>, vector<128x128xbf16>, vector<384x128xf32> -> vector<384x128xf32>
    %c0_136 = arith.constant 0 : index
    %c0_137 = arith.constant 0 : index
    %97 = vector.load %arg9[%c0_136, %c0_137] : memref<384x128xf32, #tpu.memory_space<vmem>>, vector<384x128xf32>
    %98 = arith.addf %97, %96 : vector<384x128xf32>
    %c0_138 = arith.constant 0 : index
    %c0_139 = arith.constant 0 : index
    %99 = vector.load %arg9[%c0_138, %c0_139] : memref<384x128xf32, #tpu.memory_space<vmem>>, vector<384x128xf32>
    tpu.vector_store %arg9[%c0_138, %c0_139], %98 {strides = array<i32>} : memref<384x128xf32, #tpu.memory_space<vmem>>, vector<384x128xf32>,
    %c9_140 = arith.constant 9 : index
    %c0_141 = arith.constant 0 : index
    %100 = vector.load %arg7[%c9_140, %c0_141] : memref<448x128xbf16, #tpu.memory_space<vmem>>, vector<384x128xbf16>
    %c256 = arith.constant 256 : index
    %c0_142 = arith.constant 0 : index
    %101 = vector.load %arg2[%c256, %c0_142] : memref<1152x128xbf16, #tpu.memory_space<vmem>>, vector<128x128xbf16>
    %cst_143 = arith.constant dense<0.000000e+00> : vector<384x128xf32>
    %102 = tpu.matmul %100, %101, %cst_143 {dimension_numbers = #tpu.dot_dimension_numbers<[1], [0], [0], [1], [0, 0, 1, 1], [], []>} : vector<384x128xbf16>, vector<128x128xbf16>, vector<384x128xf32> -> vector<384x128xf32>
    %c0_144 = arith.constant 0 : index
    %c0_145 = arith.constant 0 : index
    %103 = vector.load %arg9[%c0_144, %c0_145] : memref<384x128xf32, #tpu.memory_space<vmem>>, vector<384x128xf32>
    %104 = arith.addf %103, %102 : vector<384x128xf32>
    %c0_146 = arith.constant 0 : index
    %c0_147 = arith.constant 0 : index
    %105 = vector.load %arg9[%c0_146, %c0_147] : memref<384x128xf32, #tpu.memory_space<vmem>>, vector<384x128xf32>
    tpu.vector_store %arg9[%c0_146, %c0_147], %104 {strides = array<i32>} : memref<384x128xf32, #tpu.memory_space<vmem>>, vector<384x128xf32>,
    %c31 = arith.constant 31 : index
    %c0_148 = arith.constant 0 : index
    %106 = vector.load %arg7[%c31, %c0_148] : memref<448x128xbf16, #tpu.memory_space<vmem>>, vector<384x128xbf16>
    %c384_149 = arith.constant 384 : index
    %c0_150 = arith.constant 0 : index
    %107 = vector.load %arg2[%c384_149, %c0_150] : memref<1152x128xbf16, #tpu.memory_space<vmem>>, vector<128x128xbf16>
    %cst_151 = arith.constant dense<0.000000e+00> : vector<384x128xf32>
    %108 = tpu.matmul %106, %107, %cst_151 {dimension_numbers = #tpu.dot_dimension_numbers<[1], [0], [0], [1], [0, 0, 1, 1], [], []>} : vector<384x128xbf16>, vector<128x128xbf16>, vector<384x128xf32> -> vector<384x128xf32>
    %c0_152 = arith.constant 0 : index
    %c0_153 = arith.constant 0 : index
    %109 = vector.load %arg9[%c0_152, %c0_153] : memref<384x128xf32, #tpu.memory_space<vmem>>, vector<384x128xf32>
    %110 = arith.addf %109, %108 : vector<384x128xf32>
    %c0_154 = arith.constant 0 : index
    %c0_155 = arith.constant 0 : index
    %111 = vector.load %arg9[%c0_154, %c0_155] : memref<384x128xf32, #tpu.memory_space<vmem>>, vector<384x128xf32>
    tpu.vector_store %arg9[%c0_154, %c0_155], %110 {strides = array<i32>} : memref<384x128xf32, #tpu.memory_space<vmem>>, vector<384x128xf32>,
    %c32_156 = arith.constant 32 : index
    %c0_157 = arith.constant 0 : index
    %112 = vector.load %arg7[%c32_156, %c0_157] : memref<448x128xbf16, #tpu.memory_space<vmem>>, vector<384x128xbf16>
    %c512 = arith.constant 512 : index
    %c0_158 = arith.constant 0 : index
    %113 = vector.load %arg2[%c512, %c0_158] : memref<1152x128xbf16, #tpu.memory_space<vmem>>, vector<128x128xbf16>
    %cst_159 = arith.constant dense<0.000000e+00> : vector<384x128xf32>
    %114 = tpu.matmul %112, %113, %cst_159 {dimension_numbers = #tpu.dot_dimension_numbers<[1], [0], [0], [1], [0, 0, 1, 1], [], []>} : vector<384x128xbf16>, vector<128x128xbf16>, vector<384x128xf32> -> vector<384x128xf32>
    %c0_160 = arith.constant 0 : index
    %c0_161 = arith.constant 0 : index
    %115 = vector.load %arg9[%c0_160, %c0_161] : memref<384x128xf32, #tpu.memory_space<vmem>>, vector<384x128xf32>
    %116 = arith.addf %115, %114 : vector<384x128xf32>
    %c0_162 = arith.constant 0 : index
    %c0_163 = arith.constant 0 : index
    %117 = vector.load %arg9[%c0_162, %c0_163] : memref<384x128xf32, #tpu.memory_space<vmem>>, vector<384x128xf32>
    tpu.vector_store %arg9[%c0_162, %c0_163], %116 {strides = array<i32>} : memref<384x128xf32, #tpu.memory_space<vmem>>, vector<384x128xf32>,
    %c33 = arith.constant 33 : index
    %c0_164 = arith.constant 0 : index
    %118 = vector.load %arg7[%c33, %c0_164] : memref<448x128xbf16, #tpu.memory_space<vmem>>, vector<384x128xbf16>
    %c640 = arith.constant 640 : index
    %c0_165 = arith.constant 0 : index
    %119 = vector.load %arg2[%c640, %c0_165] : memref<1152x128xbf16, #tpu.memory_space<vmem>>, vector<128x128xbf16>
    %cst_166 = arith.constant dense<0.000000e+00> : vector<384x128xf32>
    %120 = tpu.matmul %118, %119, %cst_166 {dimension_numbers = #tpu.dot_dimension_numbers<[1], [0], [0], [1], [0, 0, 1, 1], [], []>} : vector<384x128xbf16>, vector<128x128xbf16>, vector<384x128xf32> -> vector<384x128xf32>
    %c0_167 = arith.constant 0 : index
    %c0_168 = arith.constant 0 : index
    %121 = vector.load %arg9[%c0_167, %c0_168] : memref<384x128xf32, #tpu.memory_space<vmem>>, vector<384x128xf32>
    %122 = arith.addf %121, %120 : vector<384x128xf32>
    %c0_169 = arith.constant 0 : index
    %c0_170 = arith.constant 0 : index
    %123 = vector.load %arg9[%c0_169, %c0_170] : memref<384x128xf32, #tpu.memory_space<vmem>>, vector<384x128xf32>
    tpu.vector_store %arg9[%c0_169, %c0_170], %122 {strides = array<i32>} : memref<384x128xf32, #tpu.memory_space<vmem>>, vector<384x128xf32>,
    %c55 = arith.constant 55 : index
    %c0_171 = arith.constant 0 : index
    %124 = vector.load %arg7[%c55, %c0_171] : memref<448x128xbf16, #tpu.memory_space<vmem>>, vector<384x128xbf16>
    %c768 = arith.constant 768 : index
    %c0_172 = arith.constant 0 : index
    %125 = vector.load %arg2[%c768, %c0_172] : memref<1152x128xbf16, #tpu.memory_space<vmem>>, vector<128x128xbf16>
    %cst_173 = arith.constant dense<0.000000e+00> : vector<384x128xf32>
    %126 = tpu.matmul %124, %125, %cst_173 {dimension_numbers = #tpu.dot_dimension_numbers<[1], [0], [0], [1], [0, 0, 1, 1], [], []>} : vector<384x128xbf16>, vector<128x128xbf16>, vector<384x128xf32> -> vector<384x128xf32>
    %c0_174 = arith.constant 0 : index
    %c0_175 = arith.constant 0 : index
    %127 = vector.load %arg9[%c0_174, %c0_175] : memref<384x128xf32, #tpu.memory_space<vmem>>, vector<384x128xf32>
    %128 = arith.addf %127, %126 : vector<384x128xf32>
    %c0_176 = arith.constant 0 : index
    %c0_177 = arith.constant 0 : index
    %129 = vector.load %arg9[%c0_176, %c0_177] : memref<384x128xf32, #tpu.memory_space<vmem>>, vector<384x128xf32>
    tpu.vector_store %arg9[%c0_176, %c0_177], %128 {strides = array<i32>} : memref<384x128xf32, #tpu.memory_space<vmem>>, vector<384x128xf32>,
    %c56_178 = arith.constant 56 : index
    %c0_179 = arith.constant 0 : index
    %130 = vector.load %arg7[%c56_178, %c0_179] : memref<448x128xbf16, #tpu.memory_space<vmem>>, vector<384x128xbf16>
    %c896 = arith.constant 896 : index
    %c0_180 = arith.constant 0 : index
    %131 = vector.load %arg2[%c896, %c0_180] : memref<1152x128xbf16, #tpu.memory_space<vmem>>, vector<128x128xbf16>
    %cst_181 = arith.constant dense<0.000000e+00> : vector<384x128xf32>
    %132 = tpu.matmul %130, %131, %cst_181 {dimension_numbers = #tpu.dot_dimension_numbers<[1], [0], [0], [1], [0, 0, 1, 1], [], []>} : vector<384x128xbf16>, vector<128x128xbf16>, vector<384x128xf32> -> vector<384x128xf32>
    %c0_182 = arith.constant 0 : index
    %c0_183 = arith.constant 0 : index
    %133 = vector.load %arg9[%c0_182, %c0_183] : memref<384x128xf32, #tpu.memory_space<vmem>>, vector<384x128xf32>
    %134 = arith.addf %133, %132 : vector<384x128xf32>
    %c0_184 = arith.constant 0 : index
    %c0_185 = arith.constant 0 : index
    %135 = vector.load %arg9[%c0_184, %c0_185] : memref<384x128xf32, #tpu.memory_space<vmem>>, vector<384x128xf32>
    tpu.vector_store %arg9[%c0_184, %c0_185], %134 {strides = array<i32>} : memref<384x128xf32, #tpu.memory_space<vmem>>, vector<384x128xf32>,
    %c57 = arith.constant 57 : index
    %c0_186 = arith.constant 0 : index
    %136 = vector.load %arg7[%c57, %c0_186] : memref<448x128xbf16, #tpu.memory_space<vmem>>, vector<384x128xbf16>
    %c1024 = arith.constant 1024 : index
    %c0_187 = arith.constant 0 : index
    %137 = vector.load %arg2[%c1024, %c0_187] : memref<1152x128xbf16, #tpu.memory_space<vmem>>, vector<128x128xbf16>
    %cst_188 = arith.constant dense<0.000000e+00> : vector<384x128xf32>
    %138 = tpu.matmul %136, %137, %cst_188 {dimension_numbers = #tpu.dot_dimension_numbers<[1], [0], [0], [1], [0, 0, 1, 1], [], []>} : vector<384x128xbf16>, vector<128x128xbf16>, vector<384x128xf32> -> vector<384x128xf32>
    %c0_189 = arith.constant 0 : index
    %c0_190 = arith.constant 0 : index
    %139 = vector.load %arg9[%c0_189, %c0_190] : memref<384x128xf32, #tpu.memory_space<vmem>>, vector<384x128xf32>
    %140 = arith.addf %139, %138 : vector<384x128xf32>
    %c0_191 = arith.constant 0 : index
    %c0_192 = arith.constant 0 : index
    %141 = vector.load %arg9[%c0_191, %c0_192] : memref<384x128xf32, #tpu.memory_space<vmem>>, vector<384x128xf32>
    tpu.vector_store %arg9[%c0_191, %c0_192], %140 {strides = array<i32>} : memref<384x128xf32, #tpu.memory_space<vmem>>, vector<384x128xf32>,
    %c0_193 = arith.constant 0 : index
    %c0_194 = arith.constant 0 : index
    %142 = vector.load %arg9[%c0_193, %c0_194] : memref<384x128xf32, #tpu.memory_space<vmem>>, vector<384x128xf32>
    %c0_195 = arith.constant 0 : index
    %c0_196 = arith.constant 0 : index
    %143 = vector.load %arg3[%c0_195, %c0_196] : memref<1x128xf32, #tpu.memory_space<vmem>>, vector<1x128xf32>
    %144 = vector.broadcast %143 : vector<1x128xf32> to vector<384x128xf32>
    %145 = arith.addf %142, %144 : vector<384x128xf32>
    %146 = arith.negf %145 : vector<384x128xf32>
    %147 = math.exp %146 : vector<384x128xf32>
    %cst_197 = arith.constant 1.000000e+00 : f32
    %148 = vector.broadcast %cst_197 : f32 to vector<384x128xf32>
    %149 = arith.addf %148, %147 : vector<384x128xf32>
    %150 = arith.divf %148, %149 : vector<384x128xf32>
    %151 = arith.mulf %145, %150 : vector<384x128xf32>
    %c0_198 = arith.constant 0 : index
    %c0_199 = arith.constant 0 : index
    %152 = vector.load %arg9[%c0_198, %c0_199] : memref<384x128xf32, #tpu.memory_space<vmem>>, vector<384x128xf32>
    tpu.vector_store %arg9[%c0_198, %c0_199], %151 {strides = array<i32>} : memref<384x128xf32, #tpu.memory_space<vmem>>, vector<384x128xf32>,
    %c0_200 = arith.constant 0 : index
    %c0_201 = arith.constant 0 : index
    %153 = vector.load %arg9[%c0_200, %c0_201] : memref<384x128xf32, #tpu.memory_space<vmem>>, vector<16x128xf32>
    %154 = arith.truncf %153 : vector<16x128xf32> to vector<16x128xbf16>
    %c32_202 = arith.constant 32 : index
    %c0_203 = arith.constant 0 : index
    %155 = vector.load %arg8[%c32_202, %c0_203] : memref<448x128xbf16, #tpu.memory_space<vmem>>, vector<16x128xbf16>
    tpu.vector_store %arg8[%c32_202, %c0_203], %154 {strides = array<i32>} : memref<448x128xbf16, #tpu.memory_space<vmem>>, vector<16x128xbf16>,
    %c24 = arith.constant 24 : index
    %c0_204 = arith.constant 0 : index
    %156 = vector.load %arg9[%c24, %c0_204] : memref<384x128xf32, #tpu.memory_space<vmem>>, vector<16x128xf32>
    %157 = arith.truncf %156 : vector<16x128xf32> to vector<16x128xbf16>
    %c56_205 = arith.constant 56 : index
    %c0_206 = arith.constant 0 : index
    %158 = vector.load %arg8[%c56_205, %c0_206] : memref<448x128xbf16, #tpu.memory_space<vmem>>, vector<16x128xbf16>
    tpu.vector_store %arg8[%c56_205, %c0_206], %157 {strides = array<i32>} : memref<448x128xbf16, #tpu.memory_space<vmem>>, vector<16x128xbf16>,
    %c48_207 = arith.constant 48 : index
    %c0_208 = arith.constant 0 : index
    %159 = vector.load %arg9[%c48_207, %c0_208] : memref<384x128xf32, #tpu.memory_space<vmem>>, vector<16x128xf32>
    %160 = arith.truncf %159 : vector<16x128xf32> to vector<16x128xbf16>
    %c80_209 = arith.constant 80 : index
    %c0_210 = arith.constant 0 : index
    %161 = vector.load %arg8[%c80_209, %c0_210] : memref<448x128xbf16, #tpu.memory_space<vmem>>, vector<16x128xbf16>
    tpu.vector_store %arg8[%c80_209, %c0_210], %160 {strides = array<i32>} : memref<448x128xbf16, #tpu.memory_space<vmem>>, vector<16x128xbf16>,
    %c72_211 = arith.constant 72 : index
    %c0_212 = arith.constant 0 : index
    %162 = vector.load %arg9[%c72_211, %c0_212] : memref<384x128xf32, #tpu.memory_space<vmem>>, vector<16x128xf32>
    %163 = arith.truncf %162 : vector<16x128xf32> to vector<16x128xbf16>
    %c104_213 = arith.constant 104 : index
    %c0_214 = arith.constant 0 : index
    %164 = vector.load %arg8[%c104_213, %c0_214] : memref<448x128xbf16, #tpu.memory_space<vmem>>, vector<16x128xbf16>
    tpu.vector_store %arg8[%c104_213, %c0_214], %163 {strides = array<i32>} : memref<448x128xbf16, #tpu.memory_space<vmem>>, vector<16x128xbf16>,
    %c96_215 = arith.constant 96 : index
    %c0_216 = arith.constant 0 : index
    %165 = vector.load %arg9[%c96_215, %c0_216] : memref<384x128xf32, #tpu.memory_space<vmem>>, vector<16x128xf32>
    %166 = arith.truncf %165 : vector<16x128xf32> to vector<16x128xbf16>
    %c128_217 = arith.constant 128 : index
    %c0_218 = arith.constant 0 : index
    %167 = vector.load %arg8[%c128_217, %c0_218] : memref<448x128xbf16, #tpu.memory_space<vmem>>, vector<16x128xbf16>
    tpu.vector_store %arg8[%c128_217, %c0_218], %166 {strides = array<i32>} : memref<448x128xbf16, #tpu.memory_space<vmem>>, vector<16x128xbf16>,
    %c120_219 = arith.constant 120 : index
    %c0_220 = arith.constant 0 : index
    %168 = vector.load %arg9[%c120_219, %c0_220] : memref<384x128xf32, #tpu.memory_space<vmem>>, vector<16x128xf32>
    %169 = arith.truncf %168 : vector<16x128xf32> to vector<16x128xbf16>
    %c152_221 = arith.constant 152 : index
    %c0_222 = arith.constant 0 : index
    %170 = vector.load %arg8[%c152_221, %c0_222] : memref<448x128xbf16, #tpu.memory_space<vmem>>, vector<16x128xbf16>
    tpu.vector_store %arg8[%c152_221, %c0_222], %169 {strides = array<i32>} : memref<448x128xbf16, #tpu.memory_space<vmem>>, vector<16x128xbf16>,
    %c144_223 = arith.constant 144 : index
    %c0_224 = arith.constant 0 : index
    %171 = vector.load %arg9[%c144_223, %c0_224] : memref<384x128xf32, #tpu.memory_space<vmem>>, vector<16x128xf32>
    %172 = arith.truncf %171 : vector<16x128xf32> to vector<16x128xbf16>
    %c176_225 = arith.constant 176 : index
    %c0_226 = arith.constant 0 : index
    %173 = vector.load %arg8[%c176_225, %c0_226] : memref<448x128xbf16, #tpu.memory_space<vmem>>, vector<16x128xbf16>
    tpu.vector_store %arg8[%c176_225, %c0_226], %172 {strides = array<i32>} : memref<448x128xbf16, #tpu.memory_space<vmem>>, vector<16x128xbf16>,
    %c168_227 = arith.constant 168 : index
    %c0_228 = arith.constant 0 : index
    %174 = vector.load %arg9[%c168_227, %c0_228] : memref<384x128xf32, #tpu.memory_space<vmem>>, vector<16x128xf32>
    %175 = arith.truncf %174 : vector<16x128xf32> to vector<16x128xbf16>
    %c200_229 = arith.constant 200 : index
    %c0_230 = arith.constant 0 : index
    %176 = vector.load %arg8[%c200_229, %c0_230] : memref<448x128xbf16, #tpu.memory_space<vmem>>, vector<16x128xbf16>
    tpu.vector_store %arg8[%c200_229, %c0_230], %175 {strides = array<i32>} : memref<448x128xbf16, #tpu.memory_space<vmem>>, vector<16x128xbf16>,
    %c192_231 = arith.constant 192 : index
    %c0_232 = arith.constant 0 : index
    %177 = vector.load %arg9[%c192_231, %c0_232] : memref<384x128xf32, #tpu.memory_space<vmem>>, vector<16x128xf32>
    %178 = arith.truncf %177 : vector<16x128xf32> to vector<16x128xbf16>
    %c224_233 = arith.constant 224 : index
    %c0_234 = arith.constant 0 : index
    %179 = vector.load %arg8[%c224_233, %c0_234] : memref<448x128xbf16, #tpu.memory_space<vmem>>, vector<16x128xbf16>
    tpu.vector_store %arg8[%c224_233, %c0_234], %178 {strides = array<i32>} : memref<448x128xbf16, #tpu.memory_space<vmem>>, vector<16x128xbf16>,
    %c216_235 = arith.constant 216 : index
    %c0_236 = arith.constant 0 : index
    %180 = vector.load %arg9[%c216_235, %c0_236] : memref<384x128xf32, #tpu.memory_space<vmem>>, vector<16x128xf32>
    %181 = arith.truncf %180 : vector<16x128xf32> to vector<16x128xbf16>
    %c248_237 = arith.constant 248 : index
    %c0_238 = arith.constant 0 : index
    %182 = vector.load %arg8[%c248_237, %c0_238] : memref<448x128xbf16, #tpu.memory_space<vmem>>, vector<16x128xbf16>
    tpu.vector_store %arg8[%c248_237, %c0_238], %181 {strides = array<i32>} : memref<448x128xbf16, #tpu.memory_space<vmem>>, vector<16x128xbf16>,
    %c240_239 = arith.constant 240 : index
    %c0_240 = arith.constant 0 : index
    %183 = vector.load %arg9[%c240_239, %c0_240] : memref<384x128xf32, #tpu.memory_space<vmem>>, vector<16x128xf32>
    %184 = arith.truncf %183 : vector<16x128xf32> to vector<16x128xbf16>
    %c272_241 = arith.constant 272 : index
    %c0_242 = arith.constant 0 : index
    %185 = vector.load %arg8[%c272_241, %c0_242] : memref<448x128xbf16, #tpu.memory_space<vmem>>, vector<16x128xbf16>
    tpu.vector_store %arg8[%c272_241, %c0_242], %184 {strides = array<i32>} : memref<448x128xbf16, #tpu.memory_space<vmem>>, vector<16x128xbf16>,
    %c264_243 = arith.constant 264 : index
    %c0_244 = arith.constant 0 : index
    %186 = vector.load %arg9[%c264_243, %c0_244] : memref<384x128xf32, #tpu.memory_space<vmem>>, vector<16x128xf32>
    %187 = arith.truncf %186 : vector<16x128xf32> to vector<16x128xbf16>
    %c296_245 = arith.constant 296 : index
    %c0_246 = arith.constant 0 : index
    %188 = vector.load %arg8[%c296_245, %c0_246] : memref<448x128xbf16, #tpu.memory_space<vmem>>, vector<16x128xbf16>
    tpu.vector_store %arg8[%c296_245, %c0_246], %187 {strides = array<i32>} : memref<448x128xbf16, #tpu.memory_space<vmem>>, vector<16x128xbf16>,
    %c288_247 = arith.constant 288 : index
    %c0_248 = arith.constant 0 : index
    %189 = vector.load %arg9[%c288_247, %c0_248] : memref<384x128xf32, #tpu.memory_space<vmem>>, vector<16x128xf32>
    %190 = arith.truncf %189 : vector<16x128xf32> to vector<16x128xbf16>
    %c320_249 = arith.constant 320 : index
    %c0_250 = arith.constant 0 : index
    %191 = vector.load %arg8[%c320_249, %c0_250] : memref<448x128xbf16, #tpu.memory_space<vmem>>, vector<16x128xbf16>
    tpu.vector_store %arg8[%c320_249, %c0_250], %190 {strides = array<i32>} : memref<448x128xbf16, #tpu.memory_space<vmem>>, vector<16x128xbf16>,
    %c312_251 = arith.constant 312 : index
    %c0_252 = arith.constant 0 : index
    %192 = vector.load %arg9[%c312_251, %c0_252] : memref<384x128xf32, #tpu.memory_space<vmem>>, vector<16x128xf32>
    %193 = arith.truncf %192 : vector<16x128xf32> to vector<16x128xbf16>
    %c344_253 = arith.constant 344 : index
    %c0_254 = arith.constant 0 : index
    %194 = vector.load %arg8[%c344_253, %c0_254] : memref<448x128xbf16, #tpu.memory_space<vmem>>, vector<16x128xbf16>
    tpu.vector_store %arg8[%c344_253, %c0_254], %193 {strides = array<i32>} : memref<448x128xbf16, #tpu.memory_space<vmem>>, vector<16x128xbf16>,
    %c336_255 = arith.constant 336 : index
    %c0_256 = arith.constant 0 : index
    %195 = vector.load %arg9[%c336_255, %c0_256] : memref<384x128xf32, #tpu.memory_space<vmem>>, vector<16x128xf32>
    %196 = arith.truncf %195 : vector<16x128xf32> to vector<16x128xbf16>
    %c368_257 = arith.constant 368 : index
    %c0_258 = arith.constant 0 : index
    %197 = vector.load %arg8[%c368_257, %c0_258] : memref<448x128xbf16, #tpu.memory_space<vmem>>, vector<16x128xbf16>
    tpu.vector_store %arg8[%c368_257, %c0_258], %196 {strides = array<i32>} : memref<448x128xbf16, #tpu.memory_space<vmem>>, vector<16x128xbf16>,
    %c360_259 = arith.constant 360 : index
    %c0_260 = arith.constant 0 : index
    %198 = vector.load %arg9[%c360_259, %c0_260] : memref<384x128xf32, #tpu.memory_space<vmem>>, vector<16x128xf32>
    %199 = arith.truncf %198 : vector<16x128xf32> to vector<16x128xbf16>
    %c392_261 = arith.constant 392 : index
    %c0_262 = arith.constant 0 : index
    %200 = vector.load %arg8[%c392_261, %c0_262] : memref<448x128xbf16, #tpu.memory_space<vmem>>, vector<16x128xbf16>
    tpu.vector_store %arg8[%c392_261, %c0_262], %199 {strides = array<i32>} : memref<448x128xbf16, #tpu.memory_space<vmem>>, vector<16x128xbf16>,
    %c7_263 = arith.constant 7 : index
    %c0_264 = arith.constant 0 : index
    %201 = vector.load %arg8[%c7_263, %c0_264] : memref<448x128xbf16, #tpu.memory_space<vmem>>, vector<384x128xbf16>
    %c0_265 = arith.constant 0 : index
    %c0_266 = arith.constant 0 : index
    %202 = vector.load %arg4[%c0_265, %c0_266] : memref<1152x128xbf16, #tpu.memory_space<vmem>>, vector<128x128xbf16>
    %cst_267 = arith.constant dense<0.000000e+00> : vector<384x128xf32>
    %203 = tpu.matmul %201, %202, %cst_267 {dimension_numbers = #tpu.dot_dimension_numbers<[1], [0], [0], [1], [0, 0, 1, 1], [], []>} : vector<384x128xbf16>, vector<128x128xbf16>, vector<384x128xf32> -> vector<384x128xf32>
    %c0_268 = arith.constant 0 : index
    %c0_269 = arith.constant 0 : index
    %204 = vector.load %arg10[%c0_268, %c0_269] : memref<384x128xf32, #tpu.memory_space<vmem>>, vector<384x128xf32>
    tpu.vector_store %arg10[%c0_268, %c0_269], %203 {strides = array<i32>} : memref<384x128xf32, #tpu.memory_space<vmem>>, vector<384x128xf32>,
    %c8_270 = arith.constant 8 : index
    %c0_271 = arith.constant 0 : index
    %205 = vector.load %arg8[%c8_270, %c0_271] : memref<448x128xbf16, #tpu.memory_space<vmem>>, vector<384x128xbf16>
    %c128_272 = arith.constant 128 : index
    %c0_273 = arith.constant 0 : index
    %206 = vector.load %arg4[%c128_272, %c0_273] : memref<1152x128xbf16, #tpu.memory_space<vmem>>, vector<128x128xbf16>
    %cst_274 = arith.constant dense<0.000000e+00> : vector<384x128xf32>
    %207 = tpu.matmul %205, %206, %cst_274 {dimension_numbers = #tpu.dot_dimension_numbers<[1], [0], [0], [1], [0, 0, 1, 1], [], []>} : vector<384x128xbf16>, vector<128x128xbf16>, vector<384x128xf32> -> vector<384x128xf32>
    %c0_275 = arith.constant 0 : index
    %c0_276 = arith.constant 0 : index
    %208 = vector.load %arg10[%c0_275, %c0_276] : memref<384x128xf32, #tpu.memory_space<vmem>>, vector<384x128xf32>
    %209 = arith.addf %208, %207 : vector<384x128xf32>
    %c0_277 = arith.constant 0 : index
    %c0_278 = arith.constant 0 : index
    %210 = vector.load %arg10[%c0_277, %c0_278] : memref<384x128xf32, #tpu.memory_space<vmem>>, vector<384x128xf32>
    tpu.vector_store %arg10[%c0_277, %c0_278], %209 {strides = array<i32>} : memref<384x128xf32, #tpu.memory_space<vmem>>, vector<384x128xf32>,
    %c9_279 = arith.constant 9 : index
    %c0_280 = arith.constant 0 : index
    %211 = vector.load %arg8[%c9_279, %c0_280] : memref<448x128xbf16, #tpu.memory_space<vmem>>, vector<384x128xbf16>
    %c256_281 = arith.constant 256 : index
    %c0_282 = arith.constant 0 : index
    %212 = vector.load %arg4[%c256_281, %c0_282] : memref<1152x128xbf16, #tpu.memory_space<vmem>>, vector<128x128xbf16>
    %cst_283 = arith.constant dense<0.000000e+00> : vector<384x128xf32>
    %213 = tpu.matmul %211, %212, %cst_283 {dimension_numbers = #tpu.dot_dimension_numbers<[1], [0], [0], [1], [0, 0, 1, 1], [], []>} : vector<384x128xbf16>, vector<128x128xbf16>, vector<384x128xf32> -> vector<384x128xf32>
    %c0_284 = arith.constant 0 : index
    %c0_285 = arith.constant 0 : index
    %214 = vector.load %arg10[%c0_284, %c0_285] : memref<384x128xf32, #tpu.memory_space<vmem>>, vector<384x128xf32>
    %215 = arith.addf %214, %213 : vector<384x128xf32>
    %c0_286 = arith.constant 0 : index
    %c0_287 = arith.constant 0 : index
    %216 = vector.load %arg10[%c0_286, %c0_287] : memref<384x128xf32, #tpu.memory_space<vmem>>, vector<384x128xf32>
    tpu.vector_store %arg10[%c0_286, %c0_287], %215 {strides = array<i32>} : memref<384x128xf32, #tpu.memory_space<vmem>>, vector<384x128xf32>,
    %c31_288 = arith.constant 31 : index
    %c0_289 = arith.constant 0 : index
    %217 = vector.load %arg8[%c31_288, %c0_289] : memref<448x128xbf16, #tpu.memory_space<vmem>>, vector<384x128xbf16>
    %c384_290 = arith.constant 384 : index
    %c0_291 = arith.constant 0 : index
    %218 = vector.load %arg4[%c384_290, %c0_291] : memref<1152x128xbf16, #tpu.memory_space<vmem>>, vector<128x128xbf16>
    %cst_292 = arith.constant dense<0.000000e+00> : vector<384x128xf32>
    %219 = tpu.matmul %217, %218, %cst_292 {dimension_numbers = #tpu.dot_dimension_numbers<[1], [0], [0], [1], [0, 0, 1, 1], [], []>} : vector<384x128xbf16>, vector<128x128xbf16>, vector<384x128xf32> -> vector<384x128xf32>
    %c0_293 = arith.constant 0 : index
    %c0_294 = arith.constant 0 : index
    %220 = vector.load %arg10[%c0_293, %c0_294] : memref<384x128xf32, #tpu.memory_space<vmem>>, vector<384x128xf32>
    %221 = arith.addf %220, %219 : vector<384x128xf32>
    %c0_295 = arith.constant 0 : index
    %c0_296 = arith.constant 0 : index
    %222 = vector.load %arg10[%c0_295, %c0_296] : memref<384x128xf32, #tpu.memory_space<vmem>>, vector<384x128xf32>
    tpu.vector_store %arg10[%c0_295, %c0_296], %221 {strides = array<i32>} : memref<384x128xf32, #tpu.memory_space<vmem>>, vector<384x128xf32>,
    %c32_297 = arith.constant 32 : index
    %c0_298 = arith.constant 0 : index
    %223 = vector.load %arg8[%c32_297, %c0_298] : memref<448x128xbf16, #tpu.memory_space<vmem>>, vector<384x128xbf16>
    %c512_299 = arith.constant 512 : index
    %c0_300 = arith.constant 0 : index
    %224 = vector.load %arg4[%c512_299, %c0_300] : memref<1152x128xbf16, #tpu.memory_space<vmem>>, vector<128x128xbf16>
    %cst_301 = arith.constant dense<0.000000e+00> : vector<384x128xf32>
    %225 = tpu.matmul %223, %224, %cst_301 {dimension_numbers = #tpu.dot_dimension_numbers<[1], [0], [0], [1], [0, 0, 1, 1], [], []>} : vector<384x128xbf16>, vector<128x128xbf16>, vector<384x128xf32> -> vector<384x128xf32>
    %c0_302 = arith.constant 0 : index
    %c0_303 = arith.constant 0 : index
    %226 = vector.load %arg10[%c0_302, %c0_303] : memref<384x128xf32, #tpu.memory_space<vmem>>, vector<384x128xf32>
    %227 = arith.addf %226, %225 : vector<384x128xf32>
    %c0_304 = arith.constant 0 : index
    %c0_305 = arith.constant 0 : index
    %228 = vector.load %arg10[%c0_304, %c0_305] : memref<384x128xf32, #tpu.memory_space<vmem>>, vector<384x128xf32>
    tpu.vector_store %arg10[%c0_304, %c0_305], %227 {strides = array<i32>} : memref<384x128xf32, #tpu.memory_space<vmem>>, vector<384x128xf32>,
    %c33_306 = arith.constant 33 : index
    %c0_307 = arith.constant 0 : index
    %229 = vector.load %arg8[%c33_306, %c0_307] : memref<448x128xbf16, #tpu.memory_space<vmem>>, vector<384x128xbf16>
    %c640_308 = arith.constant 640 : index
    %c0_309 = arith.constant 0 : index
    %230 = vector.load %arg4[%c640_308, %c0_309] : memref<1152x128xbf16, #tpu.memory_space<vmem>>, vector<128x128xbf16>
    %cst_310 = arith.constant dense<0.000000e+00> : vector<384x128xf32>
    %231 = tpu.matmul %229, %230, %cst_310 {dimension_numbers = #tpu.dot_dimension_numbers<[1], [0], [0], [1], [0, 0, 1, 1], [], []>} : vector<384x128xbf16>, vector<128x128xbf16>, vector<384x128xf32> -> vector<384x128xf32>
    %c0_311 = arith.constant 0 : index
    %c0_312 = arith.constant 0 : index
    %232 = vector.load %arg10[%c0_311, %c0_312] : memref<384x128xf32, #tpu.memory_space<vmem>>, vector<384x128xf32>
    %233 = arith.addf %232, %231 : vector<384x128xf32>
    %c0_313 = arith.constant 0 : index
    %c0_314 = arith.constant 0 : index
    %234 = vector.load %arg10[%c0_313, %c0_314] : memref<384x128xf32, #tpu.memory_space<vmem>>, vector<384x128xf32>
    tpu.vector_store %arg10[%c0_313, %c0_314], %233 {strides = array<i32>} : memref<384x128xf32, #tpu.memory_space<vmem>>, vector<384x128xf32>,
    %c55_315 = arith.constant 55 : index
    %c0_316 = arith.constant 0 : index
    %235 = vector.load %arg8[%c55_315, %c0_316] : memref<448x128xbf16, #tpu.memory_space<vmem>>, vector<384x128xbf16>
    %c768_317 = arith.constant 768 : index
    %c0_318 = arith.constant 0 : index
    %236 = vector.load %arg4[%c768_317, %c0_318] : memref<1152x128xbf16, #tpu.memory_space<vmem>>, vector<128x128xbf16>
    %cst_319 = arith.constant dense<0.000000e+00> : vector<384x128xf32>
    %237 = tpu.matmul %235, %236, %cst_319 {dimension_numbers = #tpu.dot_dimension_numbers<[1], [0], [0], [1], [0, 0, 1, 1], [], []>} : vector<384x128xbf16>, vector<128x128xbf16>, vector<384x128xf32> -> vector<384x128xf32>
    %c0_320 = arith.constant 0 : index
    %c0_321 = arith.constant 0 : index
    %238 = vector.load %arg10[%c0_320, %c0_321] : memref<384x128xf32, #tpu.memory_space<vmem>>, vector<384x128xf32>
    %239 = arith.addf %238, %237 : vector<384x128xf32>
    %c0_322 = arith.constant 0 : index
    %c0_323 = arith.constant 0 : index
    %240 = vector.load %arg10[%c0_322, %c0_323] : memref<384x128xf32, #tpu.memory_space<vmem>>, vector<384x128xf32>
    tpu.vector_store %arg10[%c0_322, %c0_323], %239 {strides = array<i32>} : memref<384x128xf32, #tpu.memory_space<vmem>>, vector<384x128xf32>,
    %c56_324 = arith.constant 56 : index
    %c0_325 = arith.constant 0 : index
    %241 = vector.load %arg8[%c56_324, %c0_325] : memref<448x128xbf16, #tpu.memory_space<vmem>>, vector<384x128xbf16>
    %c896_326 = arith.constant 896 : index
    %c0_327 = arith.constant 0 : index
    %242 = vector.load %arg4[%c896_326, %c0_327] : memref<1152x128xbf16, #tpu.memory_space<vmem>>, vector<128x128xbf16>
    %cst_328 = arith.constant dense<0.000000e+00> : vector<384x128xf32>
    %243 = tpu.matmul %241, %242, %cst_328 {dimension_numbers = #tpu.dot_dimension_numbers<[1], [0], [0], [1], [0, 0, 1, 1], [], []>} : vector<384x128xbf16>, vector<128x128xbf16>, vector<384x128xf32> -> vector<384x128xf32>
    %c0_329 = arith.constant 0 : index
    %c0_330 = arith.constant 0 : index
    %244 = vector.load %arg10[%c0_329, %c0_330] : memref<384x128xf32, #tpu.memory_space<vmem>>, vector<384x128xf32>
    %245 = arith.addf %244, %243 : vector<384x128xf32>
    %c0_331 = arith.constant 0 : index
    %c0_332 = arith.constant 0 : index
    %246 = vector.load %arg10[%c0_331, %c0_332] : memref<384x128xf32, #tpu.memory_space<vmem>>, vector<384x128xf32>
    tpu.vector_store %arg10[%c0_331, %c0_332], %245 {strides = array<i32>} : memref<384x128xf32, #tpu.memory_space<vmem>>, vector<384x128xf32>,
    %c57_333 = arith.constant 57 : index
    %c0_334 = arith.constant 0 : index
    %247 = vector.load %arg8[%c57_333, %c0_334] : memref<448x128xbf16, #tpu.memory_space<vmem>>, vector<384x128xbf16>
    %c1024_335 = arith.constant 1024 : index
    %c0_336 = arith.constant 0 : index
    %248 = vector.load %arg4[%c1024_335, %c0_336] : memref<1152x128xbf16, #tpu.memory_space<vmem>>, vector<128x128xbf16>
    %cst_337 = arith.constant dense<0.000000e+00> : vector<384x128xf32>
    %249 = tpu.matmul %247, %248, %cst_337 {dimension_numbers = #tpu.dot_dimension_numbers<[1], [0], [0], [1], [0, 0, 1, 1], [], []>} : vector<384x128xbf16>, vector<128x128xbf16>, vector<384x128xf32> -> vector<384x128xf32>
    %c0_338 = arith.constant 0 : index
    %c0_339 = arith.constant 0 : index
    %250 = vector.load %arg10[%c0_338, %c0_339] : memref<384x128xf32, #tpu.memory_space<vmem>>, vector<384x128xf32>
    %251 = arith.addf %250, %249 : vector<384x128xf32>
    %c0_340 = arith.constant 0 : index
    %c0_341 = arith.constant 0 : index
    %252 = vector.load %arg10[%c0_340, %c0_341] : memref<384x128xf32, #tpu.memory_space<vmem>>, vector<384x128xf32>
    tpu.vector_store %arg10[%c0_340, %c0_341], %251 {strides = array<i32>} : memref<384x128xf32, #tpu.memory_space<vmem>>, vector<384x128xf32>,
    %c0_342 = arith.constant 0 : index
    %c0_343 = arith.constant 0 : index
    %253 = vector.load %arg10[%c0_342, %c0_343] : memref<384x128xf32, #tpu.memory_space<vmem>>, vector<384x128xf32>
    %c0_344 = arith.constant 0 : index
    %c0_345 = arith.constant 0 : index
    %254 = vector.load %arg5[%c0_344, %c0_345] : memref<1x128xf32, #tpu.memory_space<vmem>>, vector<1x128xf32>
    %255 = vector.broadcast %254 : vector<1x128xf32> to vector<384x128xf32>
    %256 = arith.addf %253, %255 : vector<384x128xf32>
    %257 = arith.negf %256 : vector<384x128xf32>
    %258 = math.exp %257 : vector<384x128xf32>
    %cst_346 = arith.constant 1.000000e+00 : f32
    %259 = vector.broadcast %cst_346 : f32 to vector<384x128xf32>
    %260 = arith.addf %259, %258 : vector<384x128xf32>
    %261 = arith.divf %259, %260 : vector<384x128xf32>
    %262 = arith.mulf %256, %261 : vector<384x128xf32>
    %c32_347 = arith.constant 32 : index
    %c0_348 = arith.constant 0 : index
    %263 = vector.load %arg7[%c32_347, %c0_348] : memref<448x128xbf16, #tpu.memory_space<vmem>>, vector<384x128xbf16>
    %264 = arith.extf %263 : vector<384x128xbf16> to vector<384x128xf32>
    %265 = arith.addf %262, %264 : vector<384x128xf32>
    %c0_349 = arith.constant 0 : index
    %c0_350 = arith.constant 0 : index
    %266 = vector.load %arg10[%c0_349, %c0_350] : memref<384x128xf32, #tpu.memory_space<vmem>>, vector<384x128xf32>
    tpu.vector_store %arg10[%c0_349, %c0_350], %265 {strides = array<i32>} : memref<384x128xf32, #tpu.memory_space<vmem>>, vector<384x128xf32>,
    %c0_351 = arith.constant 0 : index
    %c0_352 = arith.constant 0 : index
    %267 = vector.load %arg10[%c0_351, %c0_352] : memref<384x128xf32, #tpu.memory_space<vmem>>, vector<16x128xf32>
    %268 = arith.truncf %267 : vector<16x128xf32> to vector<16x128xbf16>
    %c0_353 = arith.constant 0 : index
    %c0_354 = arith.constant 0 : index
    %c0_355 = arith.constant 0 : index
    %c0_356 = arith.constant 0 : index
    %269 = vector.load %arg6[%c0_353, %c0_354, %c0_355, %c0_356] : memref<1x16x16x128xbf16, #tpu.memory_space<vmem>>, vector<1x1x16x128xbf16>
    %270 = vector.shape_cast %269 : vector<1x1x16x128xbf16> to vector<16x128xbf16>
    %271 = vector.shape_cast %268 : vector<16x128xbf16> to vector<1x1x16x128xbf16>
    tpu.vector_store %arg6[%c0_353, %c0_354, %c0_355, %c0_356], %271 {strides = array<i32>} : memref<1x16x16x128xbf16, #tpu.memory_space<vmem>>, vector<1x1x16x128xbf16>,
    %c24_357 = arith.constant 24 : index
    %c0_358 = arith.constant 0 : index
    %272 = vector.load %arg10[%c24_357, %c0_358] : memref<384x128xf32, #tpu.memory_space<vmem>>, vector<16x128xf32>
    %273 = arith.truncf %272 : vector<16x128xf32> to vector<16x128xbf16>
    %c0_359 = arith.constant 0 : index
    %c1_360 = arith.constant 1 : index
    %c0_361 = arith.constant 0 : index
    %c0_362 = arith.constant 0 : index
    %274 = vector.load %arg6[%c0_359, %c1_360, %c0_361, %c0_362] : memref<1x16x16x128xbf16, #tpu.memory_space<vmem>>, vector<1x1x16x128xbf16>
    %275 = vector.shape_cast %274 : vector<1x1x16x128xbf16> to vector<16x128xbf16>
    %276 = vector.shape_cast %273 : vector<16x128xbf16> to vector<1x1x16x128xbf16>
    tpu.vector_store %arg6[%c0_359, %c1_360, %c0_361, %c0_362], %276 {strides = array<i32>} : memref<1x16x16x128xbf16, #tpu.memory_space<vmem>>, vector<1x1x16x128xbf16>,
    %c48_363 = arith.constant 48 : index
    %c0_364 = arith.constant 0 : index
    %277 = vector.load %arg10[%c48_363, %c0_364] : memref<384x128xf32, #tpu.memory_space<vmem>>, vector<16x128xf32>
    %278 = arith.truncf %277 : vector<16x128xf32> to vector<16x128xbf16>
    %c0_365 = arith.constant 0 : index
    %c2_366 = arith.constant 2 : index
    %c0_367 = arith.constant 0 : index
    %c0_368 = arith.constant 0 : index
    %279 = vector.load %arg6[%c0_365, %c2_366, %c0_367, %c0_368] : memref<1x16x16x128xbf16, #tpu.memory_space<vmem>>, vector<1x1x16x128xbf16>
    %280 = vector.shape_cast %279 : vector<1x1x16x128xbf16> to vector<16x128xbf16>
    %281 = vector.shape_cast %278 : vector<16x128xbf16> to vector<1x1x16x128xbf16>
    tpu.vector_store %arg6[%c0_365, %c2_366, %c0_367, %c0_368], %281 {strides = array<i32>} : memref<1x16x16x128xbf16, #tpu.memory_space<vmem>>, vector<1x1x16x128xbf16>,
    %c72_369 = arith.constant 72 : index
    %c0_370 = arith.constant 0 : index
    %282 = vector.load %arg10[%c72_369, %c0_370] : memref<384x128xf32, #tpu.memory_space<vmem>>, vector<16x128xf32>
    %283 = arith.truncf %282 : vector<16x128xf32> to vector<16x128xbf16>
    %c0_371 = arith.constant 0 : index
    %c3_372 = arith.constant 3 : index
    %c0_373 = arith.constant 0 : index
    %c0_374 = arith.constant 0 : index
    %284 = vector.load %arg6[%c0_371, %c3_372, %c0_373, %c0_374] : memref<1x16x16x128xbf16, #tpu.memory_space<vmem>>, vector<1x1x16x128xbf16>
    %285 = vector.shape_cast %284 : vector<1x1x16x128xbf16> to vector<16x128xbf16>
    %286 = vector.shape_cast %283 : vector<16x128xbf16> to vector<1x1x16x128xbf16>
    tpu.vector_store %arg6[%c0_371, %c3_372, %c0_373, %c0_374], %286 {strides = array<i32>} : memref<1x16x16x128xbf16, #tpu.memory_space<vmem>>, vector<1x1x16x128xbf16>,
    %c96_375 = arith.constant 96 : index
    %c0_376 = arith.constant 0 : index
    %287 = vector.load %arg10[%c96_375, %c0_376] : memref<384x128xf32, #tpu.memory_space<vmem>>, vector<16x128xf32>
    %288 = arith.truncf %287 : vector<16x128xf32> to vector<16x128xbf16>
    %c0_377 = arith.constant 0 : index
    %c4_378 = arith.constant 4 : index
    %c0_379 = arith.constant 0 : index
    %c0_380 = arith.constant 0 : index
    %289 = vector.load %arg6[%c0_377, %c4_378, %c0_379, %c0_380] : memref<1x16x16x128xbf16, #tpu.memory_space<vmem>>, vector<1x1x16x128xbf16>
    %290 = vector.shape_cast %289 : vector<1x1x16x128xbf16> to vector<16x128xbf16>
    %291 = vector.shape_cast %288 : vector<16x128xbf16> to vector<1x1x16x128xbf16>
    tpu.vector_store %arg6[%c0_377, %c4_378, %c0_379, %c0_380], %291 {strides = array<i32>} : memref<1x16x16x128xbf16, #tpu.memory_space<vmem>>, vector<1x1x16x128xbf16>,
    %c120_381 = arith.constant 120 : index
    %c0_382 = arith.constant 0 : index
    %292 = vector.load %arg10[%c120_381, %c0_382] : memref<384x128xf32, #tpu.memory_space<vmem>>, vector<16x128xf32>
    %293 = arith.truncf %292 : vector<16x128xf32> to vector<16x128xbf16>
    %c0_383 = arith.constant 0 : index
    %c5_384 = arith.constant 5 : index
    %c0_385 = arith.constant 0 : index
    %c0_386 = arith.constant 0 : index
    %294 = vector.load %arg6[%c0_383, %c5_384, %c0_385, %c0_386] : memref<1x16x16x128xbf16, #tpu.memory_space<vmem>>, vector<1x1x16x128xbf16>
    %295 = vector.shape_cast %294 : vector<1x1x16x128xbf16> to vector<16x128xbf16>
    %296 = vector.shape_cast %293 : vector<16x128xbf16> to vector<1x1x16x128xbf16>
    tpu.vector_store %arg6[%c0_383, %c5_384, %c0_385, %c0_386], %296 {strides = array<i32>} : memref<1x16x16x128xbf16, #tpu.memory_space<vmem>>, vector<1x1x16x128xbf16>,
    %c144_387 = arith.constant 144 : index
    %c0_388 = arith.constant 0 : index
    %297 = vector.load %arg10[%c144_387, %c0_388] : memref<384x128xf32, #tpu.memory_space<vmem>>, vector<16x128xf32>
    %298 = arith.truncf %297 : vector<16x128xf32> to vector<16x128xbf16>
    %c0_389 = arith.constant 0 : index
    %c6_390 = arith.constant 6 : index
    %c0_391 = arith.constant 0 : index
    %c0_392 = arith.constant 0 : index
    %299 = vector.load %arg6[%c0_389, %c6_390, %c0_391, %c0_392] : memref<1x16x16x128xbf16, #tpu.memory_space<vmem>>, vector<1x1x16x128xbf16>
    %300 = vector.shape_cast %299 : vector<1x1x16x128xbf16> to vector<16x128xbf16>
    %301 = vector.shape_cast %298 : vector<16x128xbf16> to vector<1x1x16x128xbf16>
    tpu.vector_store %arg6[%c0_389, %c6_390, %c0_391, %c0_392], %301 {strides = array<i32>} : memref<1x16x16x128xbf16, #tpu.memory_space<vmem>>, vector<1x1x16x128xbf16>,
    %c168_393 = arith.constant 168 : index
    %c0_394 = arith.constant 0 : index
    %302 = vector.load %arg10[%c168_393, %c0_394] : memref<384x128xf32, #tpu.memory_space<vmem>>, vector<16x128xf32>
    %303 = arith.truncf %302 : vector<16x128xf32> to vector<16x128xbf16>
    %c0_395 = arith.constant 0 : index
    %c7_396 = arith.constant 7 : index
    %c0_397 = arith.constant 0 : index
    %c0_398 = arith.constant 0 : index
    %304 = vector.load %arg6[%c0_395, %c7_396, %c0_397, %c0_398] : memref<1x16x16x128xbf16, #tpu.memory_space<vmem>>, vector<1x1x16x128xbf16>
    %305 = vector.shape_cast %304 : vector<1x1x16x128xbf16> to vector<16x128xbf16>
    %306 = vector.shape_cast %303 : vector<16x128xbf16> to vector<1x1x16x128xbf16>
    tpu.vector_store %arg6[%c0_395, %c7_396, %c0_397, %c0_398], %306 {strides = array<i32>} : memref<1x16x16x128xbf16, #tpu.memory_space<vmem>>, vector<1x1x16x128xbf16>,
    %c192_399 = arith.constant 192 : index
    %c0_400 = arith.constant 0 : index
    %307 = vector.load %arg10[%c192_399, %c0_400] : memref<384x128xf32, #tpu.memory_space<vmem>>, vector<16x128xf32>
    %308 = arith.truncf %307 : vector<16x128xf32> to vector<16x128xbf16>
    %c0_401 = arith.constant 0 : index
    %c8_402 = arith.constant 8 : index
    %c0_403 = arith.constant 0 : index
    %c0_404 = arith.constant 0 : index
    %309 = vector.load %arg6[%c0_401, %c8_402, %c0_403, %c0_404] : memref<1x16x16x128xbf16, #tpu.memory_space<vmem>>, vector<1x1x16x128xbf16>
    %310 = vector.shape_cast %309 : vector<1x1x16x128xbf16> to vector<16x128xbf16>
    %311 = vector.shape_cast %308 : vector<16x128xbf16> to vector<1x1x16x128xbf16>
    tpu.vector_store %arg6[%c0_401, %c8_402, %c0_403, %c0_404], %311 {strides = array<i32>} : memref<1x16x16x128xbf16, #tpu.memory_space<vmem>>, vector<1x1x16x128xbf16>,
    %c216_405 = arith.constant 216 : index
    %c0_406 = arith.constant 0 : index
    %312 = vector.load %arg10[%c216_405, %c0_406] : memref<384x128xf32, #tpu.memory_space<vmem>>, vector<16x128xf32>
    %313 = arith.truncf %312 : vector<16x128xf32> to vector<16x128xbf16>
    %c0_407 = arith.constant 0 : index
    %c9_408 = arith.constant 9 : index
    %c0_409 = arith.constant 0 : index
    %c0_410 = arith.constant 0 : index
    %314 = vector.load %arg6[%c0_407, %c9_408, %c0_409, %c0_410] : memref<1x16x16x128xbf16, #tpu.memory_space<vmem>>, vector<1x1x16x128xbf16>
    %315 = vector.shape_cast %314 : vector<1x1x16x128xbf16> to vector<16x128xbf16>
    %316 = vector.shape_cast %313 : vector<16x128xbf16> to vector<1x1x16x128xbf16>
    tpu.vector_store %arg6[%c0_407, %c9_408, %c0_409, %c0_410], %316 {strides = array<i32>} : memref<1x16x16x128xbf16, #tpu.memory_space<vmem>>, vector<1x1x16x128xbf16>,
    %c240_411 = arith.constant 240 : index
    %c0_412 = arith.constant 0 : index
    %317 = vector.load %arg10[%c240_411, %c0_412] : memref<384x128xf32, #tpu.memory_space<vmem>>, vector<16x128xf32>
    %318 = arith.truncf %317 : vector<16x128xf32> to vector<16x128xbf16>
    %c0_413 = arith.constant 0 : index
    %c10_414 = arith.constant 10 : index
    %c0_415 = arith.constant 0 : index
    %c0_416 = arith.constant 0 : index
    %319 = vector.load %arg6[%c0_413, %c10_414, %c0_415, %c0_416] : memref<1x16x16x128xbf16, #tpu.memory_space<vmem>>, vector<1x1x16x128xbf16>
    %320 = vector.shape_cast %319 : vector<1x1x16x128xbf16> to vector<16x128xbf16>
    %321 = vector.shape_cast %318 : vector<16x128xbf16> to vector<1x1x16x128xbf16>
    tpu.vector_store %arg6[%c0_413, %c10_414, %c0_415, %c0_416], %321 {strides = array<i32>} : memref<1x16x16x128xbf16, #tpu.memory_space<vmem>>, vector<1x1x16x128xbf16>,
    %c264_417 = arith.constant 264 : index
    %c0_418 = arith.constant 0 : index
    %322 = vector.load %arg10[%c264_417, %c0_418] : memref<384x128xf32, #tpu.memory_space<vmem>>, vector<16x128xf32>
    %323 = arith.truncf %322 : vector<16x128xf32> to vector<16x128xbf16>
    %c0_419 = arith.constant 0 : index
    %c11_420 = arith.constant 11 : index
    %c0_421 = arith.constant 0 : index
    %c0_422 = arith.constant 0 : index
    %324 = vector.load %arg6[%c0_419, %c11_420, %c0_421, %c0_422] : memref<1x16x16x128xbf16, #tpu.memory_space<vmem>>, vector<1x1x16x128xbf16>
    %325 = vector.shape_cast %324 : vector<1x1x16x128xbf16> to vector<16x128xbf16>
    %326 = vector.shape_cast %323 : vector<16x128xbf16> to vector<1x1x16x128xbf16>
    tpu.vector_store %arg6[%c0_419, %c11_420, %c0_421, %c0_422], %326 {strides = array<i32>} : memref<1x16x16x128xbf16, #tpu.memory_space<vmem>>, vector<1x1x16x128xbf16>,
    %c288_423 = arith.constant 288 : index
    %c0_424 = arith.constant 0 : index
    %327 = vector.load %arg10[%c288_423, %c0_424] : memref<384x128xf32, #tpu.memory_space<vmem>>, vector<16x128xf32>
    %328 = arith.truncf %327 : vector<16x128xf32> to vector<16x128xbf16>
    %c0_425 = arith.constant 0 : index
    %c12_426 = arith.constant 12 : index
    %c0_427 = arith.constant 0 : index
    %c0_428 = arith.constant 0 : index
    %329 = vector.load %arg6[%c0_425, %c12_426, %c0_427, %c0_428] : memref<1x16x16x128xbf16, #tpu.memory_space<vmem>>, vector<1x1x16x128xbf16>
    %330 = vector.shape_cast %329 : vector<1x1x16x128xbf16> to vector<16x128xbf16>
    %331 = vector.shape_cast %328 : vector<16x128xbf16> to vector<1x1x16x128xbf16>
    tpu.vector_store %arg6[%c0_425, %c12_426, %c0_427, %c0_428], %331 {strides = array<i32>} : memref<1x16x16x128xbf16, #tpu.memory_space<vmem>>, vector<1x1x16x128xbf16>,
    %c312_429 = arith.constant 312 : index
    %c0_430 = arith.constant 0 : index
    %332 = vector.load %arg10[%c312_429, %c0_430] : memref<384x128xf32, #tpu.memory_space<vmem>>, vector<16x128xf32>
    %333 = arith.truncf %332 : vector<16x128xf32> to vector<16x128xbf16>
    %c0_431 = arith.constant 0 : index
    %c13_432 = arith.constant 13 : index
    %c0_433 = arith.constant 0 : index
    %c0_434 = arith.constant 0 : index
    %334 = vector.load %arg6[%c0_431, %c13_432, %c0_433, %c0_434] : memref<1x16x16x128xbf16, #tpu.memory_space<vmem>>, vector<1x1x16x128xbf16>
    %335 = vector.shape_cast %334 : vector<1x1x16x128xbf16> to vector<16x128xbf16>
    %336 = vector.shape_cast %333 : vector<16x128xbf16> to vector<1x1x16x128xbf16>
    tpu.vector_store %arg6[%c0_431, %c13_432, %c0_433, %c0_434], %336 {strides = array<i32>} : memref<1x16x16x128xbf16, #tpu.memory_space<vmem>>, vector<1x1x16x128xbf16>,
    %c336_435 = arith.constant 336 : index
    %c0_436 = arith.constant 0 : index
    %337 = vector.load %arg10[%c336_435, %c0_436] : memref<384x128xf32, #tpu.memory_space<vmem>>, vector<16x128xf32>
    %338 = arith.truncf %337 : vector<16x128xf32> to vector<16x128xbf16>
    %c0_437 = arith.constant 0 : index
    %c14_438 = arith.constant 14 : index
    %c0_439 = arith.constant 0 : index
    %c0_440 = arith.constant 0 : index
    %339 = vector.load %arg6[%c0_437, %c14_438, %c0_439, %c0_440] : memref<1x16x16x128xbf16, #tpu.memory_space<vmem>>, vector<1x1x16x128xbf16>
    %340 = vector.shape_cast %339 : vector<1x1x16x128xbf16> to vector<16x128xbf16>
    %341 = vector.shape_cast %338 : vector<16x128xbf16> to vector<1x1x16x128xbf16>
    tpu.vector_store %arg6[%c0_437, %c14_438, %c0_439, %c0_440], %341 {strides = array<i32>} : memref<1x16x16x128xbf16, #tpu.memory_space<vmem>>, vector<1x1x16x128xbf16>,
    %c360_441 = arith.constant 360 : index
    %c0_442 = arith.constant 0 : index
    %342 = vector.load %arg10[%c360_441, %c0_442] : memref<384x128xf32, #tpu.memory_space<vmem>>, vector<16x128xf32>
    %343 = arith.truncf %342 : vector<16x128xf32> to vector<16x128xbf16>
    %c0_443 = arith.constant 0 : index
    %c15_444 = arith.constant 15 : index
    %c0_445 = arith.constant 0 : index
    %c0_446 = arith.constant 0 : index
    %344 = vector.load %arg6[%c0_443, %c15_444, %c0_445, %c0_446] : memref<1x16x16x128xbf16, #tpu.memory_space<vmem>>, vector<1x1x16x128xbf16>
    %345 = vector.shape_cast %344 : vector<1x1x16x128xbf16> to vector<16x128xbf16>
    %346 = vector.shape_cast %343 : vector<16x128xbf16> to vector<1x1x16x128xbf16>
    tpu.vector_store %arg6[%c0_443, %c15_444, %c0_445, %c0_446], %346 {strides = array<i32>} : memref<1x16x16x128xbf16, #tpu.memory_space<vmem>>, vector<1x1x16x128xbf16>,
    return
  }
  func.func @transform_0(%arg0: i32) -> (i32, i32, i32, i32) {
    %c0_i32 = arith.constant 0 : i32
    %c0_i32_0 = arith.constant 0 : i32
    %c0_i32_1 = arith.constant 0 : i32
    %c0_i32_2 = arith.constant 0 : i32
    return %arg0, %c0_i32, %c0_i32_0, %c0_i32_1 : i32, i32, i32, i32
  }
  func.func @transform_1(%arg0: i32) -> (i32, i32) {
    %c0_i32 = arith.constant 0 : i32
    %c0_i32_0 = arith.constant 0 : i32
    %c0_i32_1 = arith.constant 0 : i32
    return %c0_i32, %c0_i32_0 : i32, i32
  }
  func.func @transform_2(%arg0: i32) -> (i32, i32) {
    %c0_i32 = arith.constant 0 : i32
    %c0_i32_0 = arith.constant 0 : i32
    %c0_i32_1 = arith.constant 0 : i32
    return %c0_i32, %c0_i32_0 : i32, i32
  }
  func.func @transform_3(%arg0: i32) -> (i32, i32) {
    %c0_i32 = arith.constant 0 : i32
    %c0_i32_0 = arith.constant 0 : i32
    %c0_i32_1 = arith.constant 0 : i32
    return %c0_i32, %c0_i32_0 : i32, i32
  }
  func.func @transform_4(%arg0: i32) -> (i32, i32) {
    %c0_i32 = arith.constant 0 : i32
    %c0_i32_0 = arith.constant 0 : i32
    %c0_i32_1 = arith.constant 0 : i32
    return %c0_i32, %c0_i32_0 : i32, i32
  }
  func.func @transform_5(%arg0: i32) -> (i32, i32, i32, i32) {
    %c0_i32 = arith.constant 0 : i32
    %c0_i32_0 = arith.constant 0 : i32
    %c0_i32_1 = arith.constant 0 : i32
    %c0_i32_2 = arith.constant 0 : i32
    return %arg0, %c0_i32, %c0_i32_0, %c0_i32_1 : i32, i32, i32, i32
  }
}

</mosaic_0001>

<bundles_post_ra>
// kernel: bottleneck_forward.1
= control target key start
LH: loop header
LB: loop body
LE: loop exit
PB: predicated region body
PF: predicated region fallthrough
CT: control target
= control target key end

     0   :  { %s18514_s18 = smov 0   ;;  %s21631_s0 = inlined_call_operand.vmem [shape: bf16[2,16,16,128], index: 0, kind: input, shape index: {}]   ;;  %s21632_s1 = inlined_call_operand.vmem [shape: bf16[1152,128], index: 1, kind: input, shape index: {}]   ;;  %s21633_s2 = inlined_call_operand.vmem [shape: f32[1,128], index: 2, kind: input, shape index: {}]   ;;  %s21634_s3 = inlined_call_operand.vmem [shape: bf16[1152,128], index: 3, kind: input, shape index: {}]   ;;  %s21635_s4 = inlined_call_operand.vmem [shape: f32[1,128], index: 4, kind: input, shape index: {}]   ;;  %s21636_s5 = inlined_call_operand.vmem [shape: bf16[2,16,16,128], index: 5, kind: output, shape index: {}]  }
   0x1 LB: > { %s14875_s19 = sadd.s32 4294967295, %s18481_s18   ;;  %p14879_p0 = scmp.ge.s32.totalorder %s18481_s18, 1  ;;  %s18481_s18 = sphi %s18514_s18, %s15_s18  }
   0x2   : > { %p187_p1 = scmp.lt.s32.totalorder %s18481_s18, 3 }
   0x4   : > { %p188_p2 = pnand %p14879_p0, %p187_p1 }
   0x6   : > { %191 = sbr.rel (%p188_p2) target bundleno = 2136 (0x858), region = 40 }
   0xb   : > { %v17379_v0 = vld [vmem:[%s21632_s1 + $0x38] sm:$0xff]  ;;  %v18483_v2 = vmov 0   ;;  %v17378_v3 = vld [vmem:[%s21632_s1 + $0x30] sm:$0xff]  ;;  %v17377_v5 = vld [vmem:[%s21632_s1 + $0x28] sm:$0xff]  ;;  %vm541_vm0 = vsmask.f32 4352 }
   0xc   : > { %v17411_v1 = vld [vmem:[%s21632_s1 + $0x78] sm:$0xff]  ;;  %226 = vst [vmem:[#allocation2] sm:$0xf] %v18483_v2  ;;  %838 = vmatpush.bf16.msra.mxu0 %v17379_v0  ;;  %18187 = vmatpush.bf16.msra.mxu2 %v17379_v0  ;;  %v17410_v4 = vld [vmem:[%s21632_s1 + $0x70] sm:$0xff]  ;;  %v17409_v6 = vld [vmem:[%s21632_s1 + $0x68] sm:$0xff]  ;;  %p215_p3 = scmp.lt.s32.totalorder %s14875_s19, 1 }
   0xd   : > { %227 = vst [vmem:[#allocation2 + $0x4] sm:$0xf] %v18483_v2  ;;  %18195 = vmatpush.bf16.msra.mxu3 %v17411_v1  ;;  %1271 = vmatpush.bf16.msra.mxu1 %v17411_v1  ;;  %v17376_v7 = vld [vmem:[%s21632_s1 + $0x20] sm:$0xff]  ;;  %v17375_v11 = vld [vmem:[%s21632_s1 + $0x18] sm:$0xff]  ;;  %v17374_v15 = vld [vmem:[%s21632_s1 + $0x10] sm:$0xff] }
   0xe   : > { %228 = vst [vmem:[#allocation2 + $0x8] sm:$0xf] %v18483_v2  ;;  %v17408_v8 = vld [vmem:[%s21632_s1 + $0x60] sm:$0xff]  ;;  %v17407_v14 = vld [vmem:[%s21632_s1 + $0x58] sm:$0xff]  ;;  %v17406_v20 = vld [vmem:[%s21632_s1 + $0x50] sm:$0xff]  ;;  %s21732_s19 = smov (!%p215_p3, %s14875_s19), 1 }
   0xf   : > { %229 = vst [vmem:[#allocation2 + $0xc] sm:$0xf] %v18483_v2  ;;  %v17373_v21 = vld [vmem:[%s21632_s1 + $0x8] sm:$0xff]  ;;  %v17372_v27 = vld [vmem:[%s21632_s1] sm:$0xff]  ;;  %v17443_v32 = vld [vmem:[%s21632_s1 + $0xb8] sm:$0xff]  ;;  %s17346_s10 = sshll.u32 %s21732_s19, 7 }
  0x10   : > { %230 = vst [vmem:[#allocation3] sm:$0xf] %v18483_v2  ;;  %839 = vmatpush.bf16.msra.mxu0 %v17378_v3  ;;  %18188 = vmatpush.bf16.msra.mxu2 %v17378_v3  ;;  %v17405_v26 = vld [vmem:[%s21632_s1 + $0x48] sm:$0xff]  ;;  %v17404_v30 = vld [vmem:[%s21632_s1 + $0x40] sm:$0xff]  ;;  %v17475_v34 = vld [vmem:[%s21632_s1 + $0xf8] sm:$0xff]  ;;  %s18638_s13 = scalar_lea.vmem %s21631_s0, %s17346_s10  ;;  %s21162_s17 = scalar_lea.vmem %s21636_s5, %s17346_s10 }
  0x11   : > { %231 = vst [vmem:[#allocation3 + $0x4] sm:$0xf] %v18483_v2  ;;  %18196 = vmatpush.bf16.msra.mxu3 %v17410_v4  ;;  %1272 = vmatpush.bf16.msra.mxu1 %v17410_v4  ;;  %v17507_v35 = vld [vmem:[%s21632_s1 + $0x138] sm:$0xff]  ;;  %v242_v37 = vld [vmem:[%s18638_s13] sm:$0xff]   ;;  %v17442_v39 = vld [vmem:[%s21632_s1 + $0xb0] sm:$0xff] }
  0x12   : > { %232 = vst [vmem:[#allocation3 + $0x8] sm:$0xf] %v18483_v2  ;;  %v14896_v36 = vld [vmem:[%s18638_s13 + $0x38] sm:$0xff]   ;;  %v14898_v38 = vld [vmem:[%s18638_s13 + $0x40] sm:$0xff]   ;;  %v17474_v40 = vld [vmem:[%s21632_s1 + $0xf0] sm:$0xff] }
  0x13   : > { %233 = vst [vmem:[#allocation3 + $0xc] sm:$0xf] %v18483_v2  ;;  %v14916_v9 = vld [vmem:[#allocation2] sm:$0x8]  ;;  %v14884_v41 = vld [vmem:[%s18638_s13 + $0x8] sm:$0xff]   ;;  %v17506_v3 = vld [vmem:[%s21632_s1 + $0x130] sm:$0xff] }
  0x14   : > { %234 = vst [vmem:[#allocation2 + $0xd0] sm:$0xf] %v18483_v2  ;;  %840 = vmatpush.bf16.msra.mxu0 %v17377_v5  ;;  %18189 = vmatpush.bf16.msra.mxu2 %v17377_v5  ;;  %v17348_v10 = vld [vmem:[#allocation2] sm:$0xf0]  ;;  %v14900_v42 = vld [vmem:[%s18638_s13 + $0x48] sm:$0xff]  }
  0x15   : > { %235 = vst [vmem:[#allocation2 + $0xd4] sm:$0xf] %v18483_v2  ;;  %18197 = vmatpush.bf16.msra.mxu3 %v17409_v6  ;;  %1273 = vmatpush.bf16.msra.mxu1 %v17409_v6  ;;  %v14917_v13 = vor.u32 %v17348_v10, %v14916_v9  ;;  %v17380_v33 = vld [vmem:[#allocation2 + $0x4] sm:$0xff]  ;;  %vm1732_vm1 = vsmask.f32 7424 }
  0x16   : > { %236 = vst [vmem:[#allocation2 + $0xd8] sm:$0xf] %v18483_v2  ;;  %v17349_v12 = vld [vmem:[#allocation2 + $0x8] sm:$0xff] }
  0x17   : > { %237 = vst [vmem:[#allocation2 + $0xdc] sm:$0xf] %v18483_v2  ;;  %v543_v16 = vshrl.u32 %v14917_v13, 16  ;;  %v546_v17 = vshll.u32 %v14917_v13, 16  ;;  %v551_v18 = vshrl.u32 %v17349_v12, 16  ;;  %v554_v19 = vshll.u32 %v17349_v12, 16 }
  0x18   : > { %238 = vst [vmem:[#allocation3 + $0xd0] sm:$0xf] %v18483_v2  ;;  %841 = vmatpush.bf16.msra.mxu0 %v17376_v7  ;;  %18190 = vmatpush.bf16.msra.mxu2 %v17376_v7 }
  0x19   : > { %239 = vst [vmem:[#allocation3 + $0xd4] sm:$0xf] %v18483_v2  ;;  %18198 = vmatpush.bf16.msra.mxu3 %v17408_v8  ;;  %1274 = vmatpush.bf16.msra.mxu1 %v17408_v8  ;;  %v545_v22 = vrot.slane %v543_v16, 3  ;;  %v548_v23 = vrot.slane %v546_v17, 4  ;;  %v553_v24 = vrot.slane %v551_v18, 3  ;;  %v556_v25 = vrot.slane %v554_v19, 4 }
  0x1a   : > { %240 = vst [vmem:[#allocation3 + $0xd8] sm:$0xf] %v18483_v2 }
  0x1b   : > { %241 = vst [vmem:[#allocation3 + $0xdc] sm:$0xf] %v18483_v2  ;;  %v549_v28 = vor.u32 %v548_v23, %v545_v22  ;;  %v18592_v29 = vor.u32 %v556_v25, %v553_v24  ;;  %v17441_v22 = vld [vmem:[%s21632_s1 + $0xa8] sm:$0xff] }
  0x1c   : > { %246 = vst [vmem:[#allocation2 + $0x18] sm:$0xf] %v18483_v2  ;;  %842 = vmatpush.bf16.msra.mxu0 %v17375_v11  ;;  %18191 = vmatpush.bf16.msra.mxu2 %v17375_v11  ;;  %v17473_v23 = vld [vmem:[%s21632_s1 + $0xe8] sm:$0xff] }
  0x1d   : > { %247 = vst [vmem:[#allocation3 + $0x18] sm:$0xf] %v18483_v2  ;;  %18199 = vmatpush.bf16.msra.mxu3 %v17407_v14  ;;  %1275 = vmatpush.bf16.msra.mxu1 %v17407_v14  ;;  %v558_v31 = vsel %vm541_vm0, %v549_v28, %v18592_v29 }
  0x1e   : > { %253 = vst [vmem:[#allocation2 + $0x24] sm:$0xf] %v18483_v2 }
  0x1f   : > { %254 = vst [vmem:[#allocation3 + $0x24] sm:$0xf] %v18483_v2 }
  0x20   : > { %260 = vst [vmem:[#allocation2 + $0x30] sm:$0xf] %v18483_v2  ;;  %843 = vmatpush.bf16.msra.mxu0 %v17374_v15  ;;  %18192 = vmatpush.bf16.msra.mxu2 %v17374_v15 }
  0x21   : > { %261 = vst [vmem:[#allocation3 + $0x30] sm:$0xf] %v18483_v2  ;;  %18200 = vmatpush.bf16.msra.mxu3 %v17406_v20  ;;  %1276 = vmatpush.bf16.msra.mxu1 %v17406_v20  ;;  %v14886_v20 = vld [vmem:[%s18638_s13 + $0x10] sm:$0xff]  }
  0x22   : > { %267 = vst [vmem:[#allocation2 + $0x3c] sm:$0xf] %v18483_v2 }
  0x23   : > { %268 = vst [vmem:[#allocation3 + $0x3c] sm:$0xf] %v18483_v2 }
  0x24   : > { %274 = vst [vmem:[#allocation2 + $0x48] sm:$0xf] %v18483_v2  ;;  %844 = vmatpush.bf16.msra.mxu0 %v17373_v21  ;;  %18193 = vmatpush.bf16.msra.mxu2 %v17373_v21  ;;  %v14902_v21 = vld [vmem:[%s18638_s13 + $0x50] sm:$0xff]  }
  0x25   : > { %275 = vst [vmem:[#allocation3 + $0x48] sm:$0xf] %v18483_v2  ;;  %18201 = vmatpush.bf16.msra.mxu3 %v17405_v26  ;;  %1277 = vmatpush.bf16.msra.mxu1 %v17405_v26  ;;  %v17505_v26 = vld [vmem:[%s21632_s1 + $0x128] sm:$0xff] }
  0x26   : > { %281 = vst [vmem:[#allocation2 + $0x54] sm:$0xf] %v18483_v2 }
  0x27   : > { %282 = vst [vmem:[#allocation3 + $0x54] sm:$0xf] %v18483_v2 }
  0x28   : > { %288 = vst [vmem:[#allocation2 + $0x60] sm:$0xf] %v18483_v2  ;;  %845 = vmatpush.bf16.msra.mxu0 %v17372_v27  ;;  %18194 = vmatpush.bf16.msra.mxu2 %v17372_v27 }
  0x29   : > { %289 = vst [vmem:[#allocation3 + $0x60] sm:$0xf] %v18483_v2  ;;  %18202 = vmatpush.bf16.msra.mxu3 %v17404_v30  ;;  %1278 = vmatpush.bf16.msra.mxu1 %v17404_v30 }
  0x2a   : > { %295 = vst [vmem:[#allocation2 + $0x6c] sm:$0xf] %v18483_v2 }
  0x2b   : > { %296 = vst [vmem:[#allocation3 + $0x6c] sm:$0xf] %v18483_v2  ;;  %846 = vmatmul.bf16.vlgmr.msra.gmra.mxu0 %v558_v31 }
  0x2c   : > { %302 = vst [vmem:[#allocation2 + $0x78] sm:$0xf] %v18483_v2  ;;  %2001 = vmatpush.bf16.msrb.mxu2 %v17443_v32  ;;  %1279 = vmatmul.bf16.vlgmr.msra.gmra.mxu1 %v17380_v33 }
  0x2d   : > { %303 = vst [vmem:[#allocation3 + $0x78] sm:$0xf] %v18483_v2  ;;  %2758 = vmatpush.bf16.msrb.mxu3 %v17475_v34  ;;  %3287 = vmatpush.bf16.msrb.mxu0 %v17507_v35 }
  0x2e   : > { %309 = vst [vmem:[#allocation2 + $0x84] sm:$0xf] %v18483_v2 }
  0x2f   : > { %310 = vst [vmem:[#allocation3 + $0x84] sm:$0xf] %v18483_v2 }
  0x30   : > { %316 = vst [vmem:[#allocation2 + $0x90] sm:$0xf] %v18483_v2  ;;  %2002 = vmatpush.bf16.msrb.mxu2 %v17442_v39 }
  0x31   : > { %317 = vst [vmem:[#allocation3 + $0x90] sm:$0xf] %v18483_v2  ;;  %2759 = vmatpush.bf16.msrb.mxu3 %v17474_v40  ;;  %3288 = vmatpush.bf16.msrb.mxu0 %v17506_v3 }
  0x32   : > { %323 = vst [vmem:[#allocation2 + $0x9c] sm:$0xf] %v18483_v2 }
  0x33   : > { %324 = vst [vmem:[#allocation3 + $0x9c] sm:$0xf] %v18483_v2 }
  0x34   : > { %330 = vst [vmem:[#allocation2 + $0xa8] sm:$0xf] %v18483_v2  ;;  %2003 = vmatpush.bf16.msrb.mxu2 %v17441_v22 }
  0x35   : > { %331 = vst [vmem:[#allocation3 + $0xa8] sm:$0xf] %v18483_v2  ;;  %2760 = vmatpush.bf16.msrb.mxu3 %v17473_v23  ;;  %3289 = vmatpush.bf16.msrb.mxu0 %v17505_v26 }
  0x36   : > { %337 = vst [vmem:[#allocation2 + $0xb4] sm:$0xf] %v18483_v2 }
  0x37   : > { %338 = vst [vmem:[#allocation3 + $0xb4] sm:$0xf] %v18483_v2 }
  0x38   : > { %344 = vst [vmem:[#allocation2 + $0xc0] sm:$0xf] %v18483_v2 }
  0x39   : > { %345 = vst [vmem:[#allocation3 + $0xc0] sm:$0xf] %v18483_v2 }
  0x3a   : > { %351 = vst [vmem:[#allocation2 + $0xcc] sm:$0xf] %v18483_v2 }
  0x3b   : > { %352 = vst [vmem:[#allocation3 + $0xcc] sm:$0xf] %v18483_v2 }
  0x3c   : > { %293 = vst [vmem:[#allocation2 + $0x64] sm:$0xff] %v14896_v36  }
  0x3d   : > { %244 = vst [vmem:[#allocation2 + $0x10] sm:$0xff] %v242_v37  }
  0x3e   : > { %300 = vst [vmem:[#allocation2 + $0x70] sm:$0xff] %v14898_v38  }
  0x3f   : > { %251 = vst [vmem:[#allocation2 + $0x1c] sm:$0xff] %v14884_v41   ;;  %v14888_v41 = vld [vmem:[%s18638_s13 + $0x18] sm:$0xff]  }
  0x40   : > { %307 = vst [vmem:[#allocation2 + $0x7c] sm:$0xff] %v14900_v42   ;;  %v14904_v42 = vld [vmem:[%s18638_s13 + $0x58] sm:$0xff]  }
  0x41   : > { %258 = vst [vmem:[#allocation2 + $0x28] sm:$0xff] %v14886_v20  }
  0x42   : > { %314 = vst [vmem:[#allocation2 + $0x88] sm:$0xff] %v14902_v21   ;;  %v17503_v21 = vld [vmem:[%s21632_s1 + $0x118] sm:$0xff] }
  0x43   : > { %v17360_v43 = vld [vmem:[#allocation2 + $0x60] sm:$0xff]  ;;  %v17361_v44 = vld [vmem:[#allocation2 + $0x68] sm:$0xff]  ;;  %265 = vst [vmem:[#allocation2 + $0x34] sm:$0xff] %v14888_v41  }
  0x44   : > { %v17392_v45 = vld [vmem:[#allocation2 + $0x64] sm:$0xff]  ;;  %v17350_v46 = vld [vmem:[#allocation2 + $0x10] sm:$0xff]  ;;  %v650_v48 = vshrl.u32 %v17360_v43, 16  ;;  %v653_v49 = vshll.u32 %v17360_v43, 16  ;;  %v659_v50 = vshrl.u32 %v17361_v44, 16  ;;  %v662_v51 = vshll.u32 %v17361_v44, 16 }
  0x45   : > { %v17381_v47 = vld [vmem:[#allocation2 + $0xc] sm:$0xff]  ;;  %1339 = vmatmul.bf16.vlgmr.msra.gmra.mxu3 %v17392_v45  ;;  %v560_v52 = vshrl.u32 %v17350_v46, 16  ;;  %v563_v53 = vshll.u32 %v17350_v46, 16  ;;  %v17382_v13 = vld [vmem:[#allocation2 + $0x14] sm:$0xff]  ;;  %v17440_v43 = vld [vmem:[%s21632_s1 + $0xa0] sm:$0xff]  ;;  %321 = vst [vmem:[#allocation2 + $0x94] sm:$0xff] %v14904_v42  }
  0x46   : > { %1284 = vmatmul.bf16.gmra.mxu1 %v17381_v47  ;;  %v652_v54 = vrot.slane %v650_v48, 3  ;;  %v655_v55 = vrot.slane %v653_v49, 4  ;;  %v661_v56 = vrot.slane %v659_v50, 3  ;;  %v664_v57 = vrot.slane %v662_v51, 4  ;;  %v17362_v62 = vld [vmem:[#allocation2 + $0x70] sm:$0xff]  ;;  %v17351_v0 = vld [vmem:[#allocation2 + $0x18] sm:$0xff]  ;;  %2004 = vmatpush.bf16.msrb.mxu2 %v17440_v43 }
  0x47   : > { %v562_v58 = vrot.slane %v560_v52, 3  ;;  %v565_v59 = vrot.slane %v563_v53, 4  ;;  %v668_v4 = vshrl.u32 %v17362_v62, 16  ;;  %v671_v5 = vshll.u32 %v17362_v62, 16  ;;  %v17393_v10 = vld [vmem:[#allocation2 + $0x6c] sm:$0xff]  ;;  %v17363_v17 = vld [vmem:[#allocation2 + $0x78] sm:$0xff] }
  0x48   : > { %v18656_v60 = vor.u32 %v655_v55, %v652_v54  ;;  %v665_v61 = vor.u32 %v664_v57, %v661_v56  ;;  %v569_v6 = vshrl.u32 %v17351_v0, 16  ;;  %v572_v7 = vshll.u32 %v17351_v0, 16  ;;  %v17352_v19 = vld [vmem:[#allocation2 + $0x20] sm:$0xff]  ;;  %v17394_v31 = vld [vmem:[#allocation2 + $0x74] sm:$0xff]  ;;  %v17353_v40 = vld [vmem:[#allocation2 + $0x28] sm:$0xff] }
  0x49   : > { %v566_v63 = vor.u32 %v565_v59, %v562_v58  ;;  %v670_v8 = vrot.slane %v668_v4, 3  ;;  %v673_v9 = vrot.slane %v671_v5, 4  ;;  %v677_v24 = vshrl.u32 %v17363_v17, 16  ;;  %v17383_v34 = vld [vmem:[#allocation2 + $0x1c] sm:$0xff]  ;;  %v17384_v54 = vld [vmem:[#allocation2 + $0x24] sm:$0xff]  ;;  %v17397_v26 = vld [vmem:[#allocation2 + $0x8c] sm:$0xff] }
  0x4a   : > { %v666_v1 = vsel %vm541_vm0, %v18656_v60, %v665_v61  ;;  %v571_v11 = vrot.slane %v569_v6, 3  ;;  %v574_v12 = vrot.slane %v572_v7, 4  ;;  %v680_v25 = vshll.u32 %v17363_v17, 16  ;;  %v17364_v38 = vld [vmem:[#allocation2 + $0x80] sm:$0xff]  ;;  %v17365_v58 = vld [vmem:[#allocation2 + $0x88] sm:$0xff]  ;;  %v17439_v17 = vld [vmem:[%s21632_s1 + $0x98] sm:$0xff] }
  0x4b   : > { %906 = vmatmul.bf16.vlgmr.msra.gmra.mxu2 %v666_v1  ;;  %v567_v2 = vsel %vm541_vm0, %v18592_v29, %v566_v63  ;;  %v674_v14 = vor.u32 %v673_v9, %v670_v8  ;;  %v578_v27 = vshrl.u32 %v17352_v19, 16  ;;  %v581_v28 = vshll.u32 %v17352_v19, 16  ;;  %v17472_v44 = vld [vmem:[%s21632_s1 + $0xe0] sm:$0xff]  ;;  %v17385_v8 = vld [vmem:[#allocation2 + $0x2c] sm:$0xff] }
  0x4c   : > { %851 = vmatmul.bf16.gmra.mxu0 %v567_v2  ;;  %v575_v15 = vor.u32 %v574_v12, %v571_v11  ;;  %v679_v29 = vrot.slane %v677_v24, 3  ;;  %v682_v30 = vrot.slane %v680_v25, 4  ;;  %v686_v45 = vshrl.u32 %v17364_v38, 16  ;;  %2761 = vmatpush.bf16.msrb.mxu3 %v17472_v44  ;;  %v17395_v51 = vld [vmem:[#allocation2 + $0x7c] sm:$0xff]  ;;  %v17396_v5 = vld [vmem:[#allocation2 + $0x84] sm:$0xff]  ;;  %v17366_v12 = vld [vmem:[#allocation2 + $0x90] sm:$0xff] }
  0x4d   : > { %v675_v16 = vsel %vm541_vm0, %v665_v61, %v674_v14  ;;  %v580_v32 = vrot.slane %v578_v27, 3  ;;  %v583_v33 = vrot.slane %v581_v28, 4  ;;  %v689_v46 = vshll.u32 %v17364_v38, 16  ;;  %v17354_v61 = vld [vmem:[#allocation2 + $0x30] sm:$0xff]  ;;  %v17504_v62 = vld [vmem:[%s21632_s1 + $0x120] sm:$0xff]  ;;  %2005 = vmatpush.bf16.msrb.mxu2 %v17439_v17  ;;  %v17469_v17 = vld [vmem:[%s21632_s1 + $0xc8] sm:$0xff] }
  0x4e   : > { %v576_v18 = vsel %vm541_vm0, %v566_v63, %v575_v15  ;;  %v683_v35 = vor.u32 %v682_v30, %v679_v29  ;;  %v587_v47 = vshrl.u32 %v17353_v40, 16  ;;  %v590_v48 = vshll.u32 %v17353_v40, 16  ;;  %3290 = vmatpush.bf16.msrb.mxu0 %v17504_v62  ;;  %v17386_v29 = vld [vmem:[#allocation2 + $0x34] sm:$0xff] }
  0x4f   : > { %v584_v36 = vor.u32 %v583_v33, %v580_v32  ;;  %v688_v49 = vrot.slane %v686_v45, 3  ;;  %v691_v50 = vrot.slane %v689_v46, 4  ;;  %v695_v63 = vshrl.u32 %v17365_v58, 16  ;;  %v17367_v33 = vld [vmem:[#allocation2 + $0x98] sm:$0xff]  ;;  %v17438_v38 = vld [vmem:[%s21632_s1 + $0x90] sm:$0xff] }
  0x50   : > { %v684_v37 = vsel %vm541_vm0, %v674_v14, %v683_v35  ;;  %v589_v52 = vrot.slane %v587_v47, 3  ;;  %v592_v53 = vrot.slane %v590_v48, 4  ;;  %v698_v0 = vshll.u32 %v17365_v58, 16  ;;  %v17355_v14 = vld [vmem:[#allocation2 + $0x38] sm:$0xff] }
  0x51   : > { %v585_v39 = vsel %vm541_vm0, %v575_v15, %v584_v36  ;;  %v692_v55 = vor.u32 %v691_v50, %v688_v49  ;;  %v596_v1 = vshrl.u32 %v17354_v61, 16  ;;  %v599_v2 = vshll.u32 %v17354_v61, 16  ;;  %v14890_v15 = vld [vmem:[%s18638_s13 + $0x20] sm:$0xff]   ;;  %2006 = vmatpush.bf16.msrb.mxu2 %v17438_v38  ;;  %v17398_v46 = vld [vmem:[#allocation2 + $0x94] sm:$0xff] }
  0x52   : > { %v593_v56 = vor.u32 %v592_v53, %v589_v52  ;;  %v697_v3 = vrot.slane %v695_v63, 3  ;;  %v700_v4 = vrot.slane %v698_v0, 4  ;;  %272 = vst [vmem:[#allocation2 + $0x40] sm:$0xff] %v14890_v15   ;;  %v704_v19 = vshrl.u32 %v17366_v12, 16  ;;  %3291 = vmatpush.bf16.msrb.mxu0 %v17503_v21  ;;  %v14910_v15 = vld [vmem:[%s18638_s13 + $0x70] sm:$0xff]  }
  0x53   : > { %v693_v57 = vsel %vm541_vm0, %v683_v35, %v692_v55  ;;  %v598_v6 = vrot.slane %v596_v1, 3  ;;  %v601_v7 = vrot.slane %v599_v2, 4  ;;  %v707_v20 = vshll.u32 %v17366_v12, 16  ;;  %342 = vst [vmem:[#allocation2 + $0xb8] sm:$0xff] %v14910_v15  }
  0x54   : > { %v594_v59 = vsel %vm541_vm0, %v584_v36, %v593_v56  ;;  %v701_v9 = vor.u32 %v700_v4, %v697_v3  ;;  %v605_v22 = vshrl.u32 %v17355_v14, 16  ;;  %v608_v23 = vshll.u32 %v17355_v14, 16  ;;  %v14892_v36 = vld [vmem:[%s18638_s13 + $0x28] sm:$0xff]   ;;  %v14894_v14 = vld [vmem:[%s18638_s13 + $0x30] sm:$0xff]  }
  0x55   : > { %1344 = vmatmul.bf16.gmra.mxu3 %v17393_v10  ;;  %v602_v10 = vor.u32 %v601_v7, %v598_v6  ;;  %v706_v24 = vrot.slane %v704_v19, 3  ;;  %v709_v25 = vrot.slane %v707_v20, 4  ;;  %279 = vst [vmem:[#allocation2 + $0x4c] sm:$0xff] %v14892_v36   ;;  %v713_v40 = vshrl.u32 %v17367_v33, 16 }
  0x56   : > { %1289 = vmatmul.bf16.gmra.mxu1 %v17382_v13  ;;  %v702_v11 = vsel %vm541_vm0, %v692_v55, %v701_v9  ;;  %v607_v27 = vrot.slane %v605_v22, 3  ;;  %v610_v28 = vrot.slane %v608_v23, 4  ;;  %v716_v41 = vshll.u32 %v17367_v33, 16  ;;  %286 = vst [vmem:[#allocation2 + $0x58] sm:$0xff] %v14894_v14   ;;  %v17501_v22 = vld [vmem:[%s21632_s1 + $0x108] sm:$0xff] }
  0x57   : > { %v603_v13 = vsel %vm541_vm0, %v593_v56, %v602_v10  ;;  %v710_v30 = vor.u32 %v709_v25, %v706_v24  ;;  %v715_v44 = vrot.slane %v713_v40, 3  ;;  %v17537_v14 = vld [vmem:[%s21632_s1 + $0x168] sm:$0xff] }
  0x58   : > { %v718_v45 = vrot.slane %v716_v41, 4 }
  0x59   : > { %v711_v32 = vsel %vm541_vm0, %v701_v9, %v710_v30  ;;  %v17356_v35 = vld [vmem:[#allocation2 + $0x40] sm:$0xff] }
  0x5a   : > { %v614_v42 = vshrl.u32 %v17356_v35, 16  ;;  %v617_v43 = vshll.u32 %v17356_v35, 16  ;;  %v17387_v49 = vld [vmem:[#allocation2 + $0x3c] sm:$0xff]  ;;  %v719_v50 = vor.u32 %v718_v45, %v715_v44  ;;  %v17388_v6 = vld [vmem:[#allocation2 + $0x44] sm:$0xff] }
  0x5b   : > { %911 = vmatmul.bf16.gmra.mxu2 %v675_v16  ;;  %v14906_v16 = vld [vmem:[%s18638_s13 + $0x60] sm:$0xff]  }
  0x5c   : > { %856 = vmatmul.bf16.gmra.mxu0 %v576_v18  ;;  %v17471_v18 = vld [vmem:[%s21632_s1 + $0xd8] sm:$0xff]  ;;  %328 = vst [vmem:[#allocation2 + $0xa0] sm:$0xff] %v14906_v16   ;;  %v616_v47 = vrot.slane %v614_v42, 3  ;;  %v619_v48 = vrot.slane %v617_v43, 4  ;;  %v720_v52 = vsel %vm541_vm0, %v710_v30, %v719_v50  ;;  %v17357_v55 = vld [vmem:[#allocation2 + $0x48] sm:$0xff] }
  0x5d   : > { %2762 = vmatpush.bf16.msrb.mxu3 %v17471_v18  ;;  %v623_v63 = vshrl.u32 %v17357_v55, 16  ;;  %v626_v0 = vshll.u32 %v17357_v55, 16  ;;  %v17437_v16 = vld [vmem:[%s21632_s1 + $0x88] sm:$0xff]  ;;  %v17359_v38 = vld [vmem:[#allocation2 + $0x58] sm:$0xff] }
  0x5e   : > { %2007 = vmatpush.bf16.msrb.mxu2 %v17437_v16  ;;  %v641_v42 = vshrl.u32 %v17359_v38, 16  ;;  %v644_v43 = vshll.u32 %v17359_v38, 16  ;;  %v17390_v55 = vld [vmem:[#allocation2 + $0x54] sm:$0xff] }
  0x5f   : > { %v625_v4 = vrot.slane %v623_v63, 3  ;;  %v17539_v63 = vld [vmem:[%s21632_s1 + $0x178] sm:$0xff] }
  0x60   : > { %4016 = vmatpush.bf16.msrb.mxu1 %v17539_v63  ;;  %v17571_v38 = vld [vmem:[%s21632_s1 + $0x1b8] sm:$0xff] }
  0x63   : > { %v17368_v53 = vld [vmem:[#allocation2 + $0xa0] sm:$0xff] }
  0x64   : > { %v722_v61 = vshrl.u32 %v17368_v53, 16  ;;  %v725_v62 = vshll.u32 %v17368_v53, 16  ;;  %v17399_v3 = vld [vmem:[#allocation2 + $0x9c] sm:$0xff]  ;;  %v643_v53 = vrot.slane %v641_v42, 3  ;;  %v17444_v42 = vld [vmem:[#allocation2 + $0xc] sm:$0xf0] }
  0x65   : > { %1349 = vmatmul.bf16.gmra.mxu3 %v17394_v31  ;;  %v611_v31 = vor.u32 %v610_v28, %v607_v27 }
  0x66   : > { %1294 = vmatmul.bf16.gmra.mxu1 %v17383_v34  ;;  %v724_v1 = vrot.slane %v722_v61, 3  ;;  %v727_v2 = vrot.slane %v725_v62, 4 }
  0x67   : > { %v612_v34 = vsel %vm541_vm0, %v602_v10, %v611_v31 }
  0x68   : > { %v728_v7 = vor.u32 %v727_v2, %v724_v1 }
  0x6a   : > { %v729_v9 = vsel %vm541_vm0, %v719_v50, %v728_v7 }
  0x6b   : > { %916 = vmatmul.bf16.gmra.mxu2 %v684_v37  ;;  %v14908_v37 = vld [vmem:[%s18638_s13 + $0x68] sm:$0xff]  }
  0x6c   : > { %861 = vmatmul.bf16.gmra.mxu0 %v585_v39  ;;  %v17470_v39 = vld [vmem:[%s21632_s1 + $0xd0] sm:$0xff]  ;;  %335 = vst [vmem:[#allocation2 + $0xac] sm:$0xff] %v14908_v37  }
  0x6d   : > { %2763 = vmatpush.bf16.msrb.mxu3 %v17470_v39 }
  0x71   : > { %2764 = vmatpush.bf16.msrb.mxu3 %v17469_v17 }
  0x73   : > { %v17369_v10 = vld [vmem:[#allocation2 + $0xa8] sm:$0xff]  ;;  %v17370_v35 = vld [vmem:[#allocation2 + $0xb0] sm:$0xff] }
  0x74   : > { %v731_v18 = vshrl.u32 %v17369_v10, 16  ;;  %v734_v19 = vshll.u32 %v17369_v10, 16  ;;  %v740_v40 = vshrl.u32 %v17370_v35, 16  ;;  %v743_v41 = vshll.u32 %v17370_v35, 16 }
  0x75   : > { %1354 = vmatmul.bf16.gmra.mxu3 %v17395_v51  ;;  %v620_v51 = vor.u32 %v619_v48, %v616_v47  ;;  %v17436_v47 = vld [vmem:[%s21632_s1 + $0x80] sm:$0xff] }
  0x76   : > { %1299 = vmatmul.bf16.gmra.mxu1 %v17384_v54  ;;  %v733_v24 = vrot.slane %v731_v18, 3  ;;  %v736_v25 = vrot.slane %v734_v19, 4  ;;  %v17468_v48 = vld [vmem:[%s21632_s1 + $0xc0] sm:$0xff]  ;;  %v745_v50 = vrot.slane %v743_v41, 4  ;;  %2008 = vmatpush.bf16.msrb.mxu2 %v17436_v47  ;;  %v17402_v18 = vld [vmem:[#allocation2 + $0xb4] sm:$0xff] }
  0x77   : > { %v621_v54 = vsel %vm541_vm0, %v611_v31, %v620_v51  ;;  %2765 = vmatpush.bf16.msrb.mxu3 %v17468_v48  ;;  %v17536_v19 = vld [vmem:[%s21632_s1 + $0x160] sm:$0xff] }
  0x78   : > { %v737_v31 = vor.u32 %v736_v25, %v733_v24 }
  0x7a   : > { %4773 = vmatpush.bf16.msra.mxu2 %v17571_v38  ;;  %v17510_v38 = vld [vmem:[#allocation2 + $0x20] sm:$0xff] }
  0x7b   : > { %921 = vmatmul.bf16.gmra.mxu2 %v693_v57 }
  0x7c   : > { %866 = vmatmul.bf16.gmra.mxu0 %v594_v59  ;;  %v17502_v59 = vld [vmem:[%s21632_s1 + $0x110] sm:$0xff] }
  0x7d   : > { %3292 = vmatpush.bf16.msrb.mxu0 %v17502_v59 }
  0x81   : > { %3293 = vmatpush.bf16.msrb.mxu0 %v17501_v22  ;;  %v17391_v22 = vld [vmem:[#allocation2 + $0x5c] sm:$0xff] }
  0x85   : > { %1359 = vmatmul.bf16.gmra.mxu3 %v17396_v5  ;;  %v628_v5 = vrot.slane %v626_v0, 4 }
  0x86   : > { %1304 = vmatmul.bf16.gmra.mxu1 %v17385_v8 }
  0x87   : > { %v629_v8 = vor.u32 %v628_v5, %v625_v4 }
  0x89   : > { %v630_v12 = vsel %vm541_vm0, %v620_v51, %v629_v8  ;;  %v17401_v51 = vld [vmem:[#allocation2 + $0xac] sm:$0xff] }
  0x8b   : > { %926 = vmatmul.bf16.gmra.mxu2 %v702_v11 }
  0x8c   : > { %871 = vmatmul.bf16.gmra.mxu0 %v603_v13  ;;  %v17358_v13 = vld [vmem:[#allocation2 + $0x50] sm:$0xff] }
  0x8d   : > { %v632_v20 = vshrl.u32 %v17358_v13, 16  ;;  %v635_v21 = vshll.u32 %v17358_v13, 16 }
  0x8f   : > { %v634_v27 = vrot.slane %v632_v20, 3  ;;  %v637_v28 = vrot.slane %v635_v21, 4  ;;  %v401_v21 = vld [vmem:[#allocation2 + $0xc0] sm:$0xf] }
  0x95   : > { %1364 = vmatmul.bf16.gmra.mxu3 %v17397_v26  ;;  %v17400_v26 = vld [vmem:[#allocation2 + $0xa4] sm:$0xff] }
  0x96   : > { %1309 = vmatmul.bf16.gmra.mxu1 %v17386_v29  ;;  %v17389_v29 = vld [vmem:[#allocation2 + $0x4c] sm:$0xff] }
  0x9b   : > { %931 = vmatmul.bf16.gmra.mxu2 %v711_v32  ;;  %v638_v32 = vor.u32 %v637_v28, %v634_v27  ;;  %v17535_v28 = vld [vmem:[%s21632_s1 + $0x158] sm:$0xff] }
  0x9c   : > { %876 = vmatmul.bf16.gmra.mxu0 %v612_v34  ;;  %v738_v34 = vsel %vm541_vm0, %v728_v7, %v737_v31 }
  0x9d   : > { %v639_v37 = vsel %vm541_vm0, %v629_v8, %v638_v32  ;;  %v17538_v8 = vld [vmem:[%s21632_s1 + $0x170] sm:$0xff] }
  0x9e   : > { %4017 = vmatpush.bf16.msrb.mxu1 %v17538_v8 }
  0xa2   : > { %4018 = vmatpush.bf16.msrb.mxu1 %v17537_v14 }
  0xa5   : > { %1369 = vmatmul.bf16.gmra.mxu3 %v17398_v46 }
  0xa6   : > { %1314 = vmatmul.bf16.gmra.mxu1 %v17387_v49  ;;  %v742_v49 = vrot.slane %v740_v40, 3 }
  0xa7   : > { %4019 = vmatpush.bf16.msrb.mxu1 %v17536_v19 }
  0xa8   : > { %v847_v56 = vpop.f32.mrf.mxu0  ;;  %v746_v59 = vor.u32 %v745_v50, %v742_v49  ;;  %v17508_v49 = vld [vmem:[#allocation2 + $0x10] sm:$0xff] }
  0xa9   : > { %v1280_v57 = vpop.f32.mrf.mxu1 }
  0xaa   : > { %v18718_v58 = vadd.f32 %v1280_v57, %v847_v56  ;;  %v747_v2 = vsel %vm541_vm0, %v737_v31, %v746_v59 }
  0xab   : > { %936 = vmatmul.bf16.gmra.mxu2 %v720_v52  ;;  %4020 = vmatpush.bf16.msrb.mxu1 %v17535_v28 }
  0xac   : > { %881 = vmatmul.bf16.gmra.mxu0 %v621_v54  ;;  %v646_v54 = vrot.slane %v644_v43, 4 }
  0xae   : > { %v647_v61 = vor.u32 %v646_v54, %v643_v53  ;;  %v17532_v54 = vld [vmem:[%s21632_s1 + $0x140] sm:$0xff] }
  0xb0   : > { %v18738_v23 = vpop.f32.mrf.mxu0  ;;  %v648_v5 = vsel %vm541_vm0, %v638_v32, %v647_v61 }
  0xb1   : > { %v18724_v11 = vpop.f32.mrf.mxu1 }
  0xb5   : > { %1374 = vmatmul.bf16.gmra.mxu3 %v17399_v3  ;;  %v17371_v3 = vld [vmem:[#allocation2 + $0xb8] sm:$0xff] }
  0xb6   : > { %1319 = vmatmul.bf16.gmra.mxu1 %v17388_v6  ;;  %v749_v10 = vshrl.u32 %v17371_v3, 16 }
  0xb8   : > { %v751_v16 = vrot.slane %v749_v10, 3 }
  0xbb   : > { %941 = vmatmul.bf16.gmra.mxu2 %v729_v9  ;;  %v17500_v9 = vld [vmem:[%s21632_s1 + $0x100] sm:$0xff] }
  0xbc   : > { %886 = vmatmul.bf16.gmra.mxu0 %v630_v12  ;;  %v752_v12 = vshll.u32 %v17371_v3, 16 }
  0xbd   : > { %3294 = vmatpush.bf16.msrb.mxu0 %v17500_v9 }
  0xbe   : > { %v754_v17 = vrot.slane %v752_v12, 4 }
  0xc0   : > { %v18773_v25 = vor.u32 %v754_v17, %v751_v16  ;;  %v17412_v17 = vld [vmem:[#allocation2 + $0x4] sm:$0xff] }
  0xc1   : > { %v1736_v28 = vshll.u32 %v17412_v17, 16 }
  0xc2   : > { %v756_v31 = vsel %vm541_vm0, %v746_v59, %v18773_v25  ;;  %v17445_v59 = vld [vmem:[#allocation2 + $0x14] sm:$0xff] }
  0xc3   : > { %v1285_v30 = vpop.f32.mrf.mxu1  ;;  %v2471_v9 = vshrl.u32 %v17445_v59, 16  ;;  %v2474_v10 = vshll.u32 %v17445_v59, 16 }
  0xc5   : > { %1379 = vmatmul.bf16.gmra.mxu3 %v17400_v26  ;;  %v515_v26 = vunpack.c.l.b16 %v401_v21 }
  0xc6   : > { %1324 = vmatmul.bf16.gmra.mxu1 %v17389_v29 }
  0xc7   : > { %v540_v32 = vpack.c.b16 %v515_v26, %v515_v26 }
  0xc8   : > { %v1340_v33 = vpop.f32.mrf.mxu3 }
  0xc9   : > { %v852_v36 = vpop.f32.mrf.mxu0  ;;  %v758_v40 = vshrl.u32 %v540_v32, 16  ;;  %v761_v41 = vshll.u32 %v540_v32, 16 }
  0xcb   : > { %v1287_v39 = vpop.f32.mrf.mxu1  ;;  %946 = vmatmul.bf16.gmra.mxu2 %v738_v34  ;;  %v657_v34 = vsel %vm541_vm0, %v647_v61, %v18656_v60  ;;  %v15300_v60 = vld [vmem:[#allocation2 + $0xc] sm:$0x8]  ;;  %v760_v50 = vrot.slane %v758_v40, 3  ;;  %v3751_v61 = vshll.u32 %v17508_v49, 16 }
  0xcc   : > { %891 = vmatmul.bf16.gmra.mxu0 %v639_v37  ;;  %v17534_v37 = vld [vmem:[%s21632_s1 + $0x150] sm:$0xff]  ;;  %v15301_v53 = vor.u32 %v17444_v42, %v15300_v60 }
  0xcd   : > { %4021 = vmatpush.bf16.msrb.mxu1 %v17534_v37  ;;  %v3753_v3 = vrot.slane %v3751_v61, 1 }
  0xce   : > { %v907_v44 = vpop.f32.mrf.mxu2  ;;  %v2466_v8 = vshll.u32 %v15301_v53, 16 }
  0xcf   : > { %v18742_v45 = vadd.f32 %v1340_v33, %v907_v44  ;;  %v17533_v44 = vld [vmem:[%s21632_s1 + $0x148] sm:$0xff] }
  0xd0   : > { %v1342_v46 = vpop.f32.mrf.mxu3  ;;  %v2468_v21 = vrot.slane %v2466_v8, 4 }
  0xd1   : > { %v854_v52 = vpop.f32.mrf.mxu0  ;;  %4022 = vmatpush.bf16.msrb.mxu1 %v17533_v44  ;;  %v3764_v44 = vshll.u32 %v17510_v38, 16 }
  0xd2   : > { %v18750_v56 = vadd.f32 %v1287_v39, %v854_v52  ;;  %v17603_v39 = vld [vmem:[%s21632_s1 + $0x1f8] sm:$0xff] }
  0xd3   : > { %v1290_v57 = vpop.f32.mrf.mxu1  ;;  %5302 = vmatpush.bf16.msra.mxu3 %v17603_v39  ;;  %v17403_v52 = vld [vmem:[#allocation2 + $0xbc] sm:$0xff] }
  0xd5   : > { %1384 = vmatmul.bf16.gmra.mxu3 %v17401_v51  ;;  %v763_v51 = vrot.slane %v761_v41, 4  ;;  %4023 = vmatpush.bf16.msrb.mxu1 %v17532_v54  ;;  %v17446_v41 = vld [vmem:[#allocation2 + $0x1c] sm:$0xff] }
  0xd6   : > { %1329 = vmatmul.bf16.gmra.mxu1 %v17390_v55  ;;  %v909_v62 = vpop.f32.mrf.mxu2  ;;  %v17509_v55 = vld [vmem:[#allocation2 + $0x18] sm:$0xff] }
  0xd7   : > { %v18755_v0 = vadd.f32 %v1342_v46, %v909_v62  ;;  %v17635_v46 = vld [vmem:[%s21632_s1 + $0x238] sm:$0xff] }
  0xd8   : > { %v1345_v1 = vpop.f32.mrf.mxu3  ;;  %6031 = vmatpush.bf16.msra.mxu0 %v17635_v46 }
  0xd9   : > { %v857_v4 = vpop.f32.mrf.mxu0  ;;  %v3749_v1 = vshrl.u32 %v17508_v49, 16 }
  0xda   : > { %v18759_v6 = vadd.f32 %v1290_v57, %v857_v4  ;;  %v764_v4 = vor.u32 %v763_v51, %v760_v50  ;;  %v3766_v50 = vrot.slane %v3764_v44, 1  ;;  %v2480_v51 = vshrl.u32 %v17446_v41, 16 }
  0xdb   : > { %v1292_v7 = vpop.f32.mrf.mxu1  ;;  %951 = vmatmul.bf16.gmra.mxu2 %v747_v2  ;;  %v3756_v2 = vshll.u32 %v17509_v55, 16  ;;  %v3754_v12 = vor.u32 %v3753_v3, %v3749_v1 }
  0xdc   : > { %896 = vmatmul.bf16.gmra.mxu0 %v648_v5  ;;  %v2463_v5 = vshrl.u32 %v15301_v53, 16  ;;  %v765_v16 = vsel %vm541_vm0, %v18773_v25, %v764_v4  ;;  %v1734_v25 = vshrl.u32 %v17412_v17, 16 }
  0xdd   : > { %v3758_v7 = vrot.slane %v3756_v2, 1 }
  0xde   : > { %v912_v13 = vpop.f32.mrf.mxu2 }
  0xe0   : > { %v1347_v15 = vpop.f32.mrf.mxu3 }
  0xe1   : > { %v859_v20 = vpop.f32.mrf.mxu0 }
  0xe2   : > { %v2465_v20 = vrot.slane %v2463_v5, 3  ;;  %v17414_v5 = vld [vmem:[#allocation2 + $0x14] sm:$0xff] }
  0xe3   : > { %v1295_v24 = vpop.f32.mrf.mxu1 }
  0xe5   : > { %1389 = vmatmul.bf16.gmra.mxu3 %v17402_v18  ;;  %v17476_v18 = vld [vmem:[#allocation2 + $0x10] sm:$0xff] }
  0xe6   : > { %1334 = vmatmul.bf16.gmra.mxu1 %v17391_v22  ;;  %v914_v27 = vpop.f32.mrf.mxu2  ;;  %v2473_v22 = vrot.slane %v2471_v9, 3 }
  0xe7   : > { %v18778_v29 = vadd.f32 %v1347_v15, %v914_v27  ;;  %v3759_v15 = vsel %vm1732_vm1, %v3754_v12, %v3758_v7  ;;  %v17413_v27 = vld [vmem:[#allocation2 + $0xc] sm:$0xff]  ;;  %v1749_v12 = vshll.u32 %v17414_v5, 16 }
  0xe8   : > { %v1350_v30 = vpop.f32.mrf.mxu3  ;;  %v1741_v37 = vshll.u32 %v17413_v27, 16 }
  0xe9   : > { %v862_v33 = vpop.f32.mrf.mxu0 }
  0xea   : > { %v18784_v35 = vadd.f32 %v1295_v24, %v862_v33  ;;  %v2476_v24 = vrot.slane %v2474_v10, 4  ;;  %v1745_v10 = vshrl.u32 %v17413_v27, 16 }
  0xeb   : > { %v1297_v36 = vpop.f32.mrf.mxu1  ;;  %956 = vmatmul.bf16.gmra.mxu2 %v756_v31 }
  0xec   : > { %901 = vmatmul.bf16.gmra.mxu0 %v657_v34  ;;  %v2477_v31 = vor.u32 %v2476_v24, %v2473_v22 }
  0xee   : > { %v917_v43 = vpop.f32.mrf.mxu2 }
  0xef   : > { %v18801_v47 = vadd.f32 %v1350_v30, %v917_v43  ;;  %v2469_v30 = vor.u32 %v2468_v21, %v2465_v20  ;;  %v3760_v43 = vshrl.u32 %v17509_v55, 16  ;;  %v2482_v55 = vrot.slane %v2480_v51, 3 }
  0xf0   : > { %v1352_v48 = vpop.f32.mrf.mxu3  ;;  %v1751_v21 = vrot.slane %v1749_v12, 1  ;;  %v1753_v51 = vshrl.u32 %v17414_v5, 16 }
  0xf1   : > { %v864_v57 = vpop.f32.mrf.mxu0  ;;  %v2478_v39 = vsel %vm541_vm0, %v2469_v30, %v2477_v31  ;;  %v1743_v48 = vrot.slane %v1741_v37, 1  ;;  %v3762_v49 = vor.u32 %v3760_v43, %v3758_v7  ;;  %v17415_v43 = vld [vmem:[#allocation2 + $0x1c] sm:$0xff] }
  0xf2   : > { %v18806_v62 = vadd.f32 %v1297_v36, %v864_v57  ;;  %v1738_v36 = vrot.slane %v1736_v28, 1 }
  0xf3   : > { %v1300_v63 = vpop.f32.mrf.mxu1  ;;  %v3767_v54 = vsel %vm1732_vm1, %v3762_v49, %v3766_v50  ;;  %v1747_v20 = vor.u32 %v1745_v10, %v1743_v48 }
  0xf4   : > { %v1739_v46 = vor.u32 %v1738_v36, %v1734_v25  ;;  %v17477_v63 = vld [vmem:[#allocation2 + $0x18] sm:$0xff]  ;;  %v17478_v25 = vld [vmem:[#allocation2 + $0x20] sm:$0xff] }
  0xf5   : > { %1394 = vmatmul.bf16.gmra.mxu3 %v17403_v52  ;;  %v2483_v52 = vshll.u32 %v17446_v41, 16  ;;  %v17570_v41 = vld [vmem:[%s21632_s1 + $0x1b0] sm:$0xff] }
  0xf6   : > { %v919_v13 = vpop.f32.mrf.mxu2  ;;  %4024 = vmatmul.bf16.vlgmr.msrb.gmra.mxu1 %v3759_v15  ;;  %v1744_v61 = vsel %vm1732_vm1, %v1739_v46, %v1743_v48  ;;  %4774 = vmatpush.bf16.msra.mxu2 %v17570_v41  ;;  %v17634_v48 = vld [vmem:[%s21632_s1 + $0x230] sm:$0xff] }
  0xf7   : > { %v2485_v2 = vrot.slane %v2483_v52, 4  ;;  %v17511_v13 = vld [vmem:[#allocation2 + $0x28] sm:$0xff]  ;;  %v1757_v52 = vshll.u32 %v17415_v43, 16  ;;  %6032 = vmatpush.bf16.msra.mxu0 %v17634_v48 }
  0xf8   : > { %v1355_v14 = vpop.f32.mrf.mxu3 }
  0xf9   : > { %v867_v19 = vpop.f32.mrf.mxu0  ;;  %v2486_v7 = vor.u32 %v2485_v2, %v2482_v55  ;;  %v3776_v55 = vshrl.u32 %v17511_v13, 16 }
  0xfa   : > { %v3772_v19 = vshll.u32 %v17511_v13, 16 }
  0xfb   : > { %v1302_v26 = vpop.f32.mrf.mxu1  ;;  %961 = vmatmul.bf16.gmra.mxu2 %v765_v16  ;;  %v17447_v16 = vld [vmem:[#allocation2 + $0x24] sm:$0xff] }
  0xfc   : > { %3295 = vmatmul.bf16.vlgmr.msrb.gmra.mxu0 %v17476_v18  ;;  %v3768_v18 = vshrl.u32 %v17510_v38, 16  ;;  %v3774_v24 = vrot.slane %v3772_v19, 1  ;;  %v2492_v28 = vshll.u32 %v17447_v16, 16 }
  0xfe   : > { %v922_v32 = vpop.f32.mrf.mxu2  ;;  %v3770_v22 = vor.u32 %v3768_v18, %v3766_v50  ;;  %v2494_v38 = vrot.slane %v2492_v28, 4 }
  0xff   : > { %v18811_v33 = vadd.f32 %v1355_v14, %v922_v32  ;;  %v2487_v14 = vsel %vm541_vm0, %v2477_v31, %v2486_v7  ;;  %v1752_v31 = vsel %vm1732_vm1, %v1747_v20, %v1751_v21 }
 0x100   : > { %v1357_v34 = vpop.f32.mrf.mxu3  ;;  %v3775_v32 = vsel %vm1732_vm1, %v3770_v22, %v3774_v24 }
 0x101   : > { %v869_v40 = vpop.f32.mrf.mxu0 }
 0x102   : > { %v18814_v60 = vadd.f32 %v1302_v26, %v869_v40  ;;  %v2489_v26 = vshrl.u32 %v17447_v16, 16 }
 0x103   : > { %v1305_v42 = vpop.f32.mrf.mxu1 }
 0x104   : > { %v2491_v37 = vrot.slane %v2489_v26, 3 }
 0x105   : > { %2766 = vmatmul.bf16.vlgmr.msrb.gmra.mxu3 %v2478_v39 }
 0x106   : > { %v924_v53 = vpop.f32.mrf.mxu2  ;;  %4029 = vmatmul.bf16.gmra.mxu1 %v3767_v54  ;;  %v2495_v44 = vor.u32 %v2494_v38, %v2491_v37 }
 0x107   : > { %v18817_v57 = vadd.f32 %v1357_v34, %v924_v53  ;;  %v17512_v53 = vld [vmem:[#allocation2 + $0x30] sm:$0xff] }
 0x108   : > { %v1360_v59 = vpop.f32.mrf.mxu3  ;;  %v2496_v54 = vsel %vm541_vm0, %v2486_v7, %v2495_v44  ;;  %v3780_v2 = vshll.u32 %v17512_v53, 16 }
 0x109   : > { %v872_v1 = vpop.f32.mrf.mxu0 }
 0x10a   : > { %v18820_v3 = vadd.f32 %v1305_v42, %v872_v1  ;;  %v17602_v42 = vld [vmem:[%s21632_s1 + $0x1f0] sm:$0xff]  ;;  %v3782_v10 = vrot.slane %v3780_v2, 1 }
 0x10b   : > { %v1307_v4 = vpop.f32.mrf.mxu1  ;;  %2009 = vmatmul.bf16.vlgmr.msrb.gmra.mxu2 %v1744_v61  ;;  %5303 = vmatpush.bf16.msra.mxu3 %v17602_v42  ;;  %v17448_v61 = vld [vmem:[#allocation2 + $0x2c] sm:$0xff] }
 0x10c   : > { %3300 = vmatmul.bf16.gmra.mxu0 %v17477_v63  ;;  %v1755_v4 = vor.u32 %v1753_v51, %v1751_v21  ;;  %v2498_v12 = vshrl.u32 %v17448_v61, 16  ;;  %v17416_v21 = vld [vmem:[#allocation2 + $0x24] sm:$0xff] }
 0x10e   : > { %v927_v8 = vpop.f32.mrf.mxu2  ;;  %v2500_v19 = vrot.slane %v2498_v12, 3 }
 0x10f   : > { %v1759_v8 = vrot.slane %v1757_v52, 1 }
 0x110   : > { %v1362_v9 = vpop.f32.mrf.mxu3 }
 0x111   : > { %v874_v15 = vpop.f32.mrf.mxu0  ;;  %v1760_v7 = vsel %vm1732_vm1, %v1755_v4, %v1759_v8 }
 0x113   : > { %v1310_v17 = vpop.f32.mrf.mxu1 }
 0x115   : > { %2771 = vmatmul.bf16.gmra.mxu3 %v2487_v14  ;;  %v2501_v14 = vshll.u32 %v17448_v61, 16 }
 0x116   : > { %v929_v30 = vpop.f32.mrf.mxu2  ;;  %4034 = vmatmul.bf16.gmra.mxu1 %v3775_v32  ;;  %v1765_v32 = vshll.u32 %v17416_v21, 16 }
 0x117   : > { %v18824_v27 = vadd.f32 %v1362_v9, %v929_v30  ;;  %v3778_v9 = vor.u32 %v3776_v55, %v3774_v24  ;;  %v2503_v20 = vrot.slane %v2501_v14, 4  ;;  %v1761_v30 = vshrl.u32 %v17415_v43, 16 }
 0x118   : > { %v1365_v34 = vpop.f32.mrf.mxu3 }
 0x119   : > { %v877_v36 = vpop.f32.mrf.mxu0  ;;  %v3783_v15 = vsel %vm1732_vm1, %v3778_v9, %v3782_v10  ;;  %v2504_v22 = vor.u32 %v2503_v20, %v2500_v19  ;;  %v1763_v42 = vor.u32 %v1761_v30, %v1759_v8  ;;  %v17417_v9 = vld [vmem:[#allocation2 + $0x2c] sm:$0xff] }
 0x11a   : > { %v18827_v39 = vadd.f32 %v1310_v17, %v877_v36  ;;  %v17479_v17 = vld [vmem:[#allocation2 + $0x28] sm:$0xff]  ;;  %v17449_v36 = vld [vmem:[#allocation2 + $0x34] sm:$0xff] }
 0x11b   : > { %v1312_v40 = vpop.f32.mrf.mxu1  ;;  %2014 = vmatmul.bf16.gmra.mxu2 %v1752_v31  ;;  %v2505_v31 = vsel %vm541_vm0, %v2495_v44, %v2504_v22  ;;  %v2507_v51 = vshrl.u32 %v17449_v36, 16  ;;  %v2510_v52 = vshll.u32 %v17449_v36, 16 }
 0x11c   : > { %3305 = vmatmul.bf16.gmra.mxu0 %v17478_v25 }
 0x11d   : > { %v2512_v2 = vrot.slane %v2510_v52, 4  ;;  %v17601_v52 = vld [vmem:[%s21632_s1 + $0x1e8] sm:$0xff] }
 0x11e   : > { %v932_v46 = vpop.f32.mrf.mxu2  ;;  %5304 = vmatpush.bf16.msra.mxu3 %v17601_v52  ;;  %v17516_v52 = vld [vmem:[#allocation2 + $0x50] sm:$0xff] }
 0x11f   : > { %v18838_v49 = vadd.f32 %v1365_v34, %v932_v46  ;;  %v17513_v34 = vld [vmem:[#allocation2 + $0x38] sm:$0xff]  ;;  %v1767_v46 = vrot.slane %v1765_v32, 1 }
 0x120   : > { %v1367_v50 = vpop.f32.mrf.mxu3  ;;  %v3788_v41 = vshll.u32 %v17513_v34, 16  ;;  %v3792_v20 = vshrl.u32 %v17513_v34, 16 }
 0x121   : > { %v879_v59 = vpop.f32.mrf.mxu0  ;;  %v1768_v61 = vsel %vm1732_vm1, %v1763_v42, %v1767_v46 }
 0x122   : > { %v18841_v63 = vadd.f32 %v1312_v40, %v879_v59  ;;  %v3784_v40 = vshrl.u32 %v17512_v53, 16  ;;  %v3790_v50 = vrot.slane %v3788_v41, 1  ;;  %v2509_v53 = vrot.slane %v2507_v51, 3  ;;  %v17481_v41 = vld [vmem:[#allocation2 + $0x38] sm:$0xff] }
 0x123   : > { %v1315_v1 = vpop.f32.mrf.mxu1 }
 0x124   : > { %v3786_v48 = vor.u32 %v3784_v40, %v3782_v10  ;;  %v17480_v1 = vld [vmem:[#allocation2 + $0x30] sm:$0xff]  ;;  %v2513_v10 = vor.u32 %v2512_v2, %v2509_v53  ;;  %v3794_v30 = vor.u32 %v3792_v20, %v3790_v50  ;;  %v1777_v53 = vshrl.u32 %v17417_v9, 16 }
 0x125   : > { %2776 = vmatmul.bf16.gmra.mxu3 %v2496_v54 }
 0x126   : > { %v934_v5 = vpop.f32.mrf.mxu2  ;;  %4039 = vmatmul.bf16.gmra.mxu1 %v3783_v15  ;;  %v3791_v43 = vsel %vm1732_vm1, %v3786_v48, %v3790_v50  ;;  %v1773_v15 = vshll.u32 %v17417_v9, 16  ;;  %v17569_v50 = vld [vmem:[%s21632_s1 + $0x1a8] sm:$0xff] }
 0x127   : > { %v1769_v5 = vshrl.u32 %v17416_v21, 16  ;;  %4775 = vmatpush.bf16.msra.mxu2 %v17569_v50 }
 0x128   : > { %v1370_v16 = vpop.f32.mrf.mxu3 }
 0x129   : > { %v882_v18 = vpop.f32.mrf.mxu0 }
 0x12a   : > { %v17450_v18 = vld [vmem:[#allocation2 + $0x3c] sm:$0xff] }
 0x12b   : > { %v1317_v13 = vpop.f32.mrf.mxu1  ;;  %2019 = vmatmul.bf16.gmra.mxu2 %v1760_v7  ;;  %v2514_v7 = vsel %vm541_vm0, %v2504_v22, %v2513_v10 }
 0x12c   : > { %3310 = vmatmul.bf16.gmra.mxu0 %v17479_v17 }
 0x12e   : > { %v937_v24 = vpop.f32.mrf.mxu2 }
 0x12f   : > { %v18845_v26 = vadd.f32 %v1370_v16, %v937_v24  ;;  %v17514_v16 = vld [vmem:[#allocation2 + $0x40] sm:$0xff]  ;;  %v1771_v24 = vor.u32 %v1769_v5, %v1767_v46 }
 0x130   : > { %v1372_v28 = vpop.f32.mrf.mxu3  ;;  %v17451_v5 = vld [vmem:[#allocation2 + $0x44] sm:$0xff] }
 0x131   : > { %v884_v25 = vpop.f32.mrf.mxu0 }
 0x132   : > { %v18848_v37 = vadd.f32 %v1317_v13, %v884_v25  ;;  %v3796_v13 = vshll.u32 %v17514_v16, 16  ;;  %v2519_v25 = vshll.u32 %v17450_v18, 16 }
 0x133   : > { %v1320_v38 = vpop.f32.mrf.mxu1 }
 0x134   : > { %v3798_v32 = vrot.slane %v3796_v13, 1  ;;  %v2521_v48 = vrot.slane %v2519_v25, 4 }
 0x135   : > { %2781 = vmatmul.bf16.gmra.mxu3 %v2505_v31  ;;  %v2516_v31 = vshrl.u32 %v17450_v18, 16 }
 0x136   : > { %v939_v54 = vpop.f32.mrf.mxu2  ;;  %4044 = vmatmul.bf16.gmra.mxu1 %v3791_v43 }
 0x137   : > { %v18851_v59 = vadd.f32 %v1372_v28, %v939_v54  ;;  %v1775_v28 = vrot.slane %v1773_v15, 1  ;;  %v2518_v34 = vrot.slane %v2516_v31, 3  ;;  %v17418_v54 = vld [vmem:[#allocation2 + $0x34] sm:$0xff]  ;;  %v2528_v31 = vshll.u32 %v17451_v5, 16 }
 0x138   : > { %v1375_v44 = vpop.f32.mrf.mxu3  ;;  %v1781_v2 = vshll.u32 %v17418_v54, 16 }
 0x139   : > { %v887_v55 = vpop.f32.mrf.mxu0  ;;  %v1776_v22 = vsel %vm1732_vm1, %v1771_v24, %v1775_v28  ;;  %v2522_v43 = vor.u32 %v2521_v48, %v2518_v34 }
 0x13a   : > { %v18854_v4 = vadd.f32 %v1320_v38, %v887_v55  ;;  %v3799_v38 = vsel %vm1732_vm1, %v3794_v30, %v3798_v32  ;;  %v1783_v20 = vrot.slane %v1781_v2, 1  ;;  %v2525_v30 = vshrl.u32 %v17451_v5, 16 }
 0x13b   : > { %v1322_v8 = vpop.f32.mrf.mxu1  ;;  %2024 = vmatmul.bf16.gmra.mxu2 %v1768_v61  ;;  %v17633_v61 = vld [vmem:[%s21632_s1 + $0x228] sm:$0xff] }
 0x13c   : > { %3315 = vmatmul.bf16.gmra.mxu0 %v17480_v1  ;;  %v17515_v8 = vld [vmem:[#allocation2 + $0x48] sm:$0xff] }
 0x13d   : > { %6033 = vmatpush.bf16.msra.mxu0 %v17633_v61  ;;  %v3804_v18 = vshll.u32 %v17515_v8, 16 }
 0x13e   : > { %v942_v12 = vpop.f32.mrf.mxu2 }
 0x13f   : > { %v2523_v12 = vsel %vm541_vm0, %v2513_v10, %v2522_v43  ;;  %v3806_v24 = vrot.slane %v3804_v18, 1 }
 0x140   : > { %v1377_v14 = vpop.f32.mrf.mxu3 }
 0x141   : > { %v889_v17 = vpop.f32.mrf.mxu0 }
 0x142   : > { %v3800_v17 = vshrl.u32 %v17514_v16, 16 }
 0x143   : > { %v1325_v19 = vpop.f32.mrf.mxu1 }
 0x144   : > { %v3802_v13 = vor.u32 %v3800_v17, %v3798_v32 }
 0x145   : > { %2786 = vmatmul.bf16.gmra.mxu3 %v2514_v7 }
 0x146   : > { %v944_v36 = vpop.f32.mrf.mxu2  ;;  %4049 = vmatmul.bf16.gmra.mxu1 %v3799_v38  ;;  %v3807_v25 = vsel %vm1732_vm1, %v3802_v13, %v3806_v24  ;;  %v17482_v38 = vld [vmem:[#allocation2 + $0x40] sm:$0xff] }
 0x147   : > { %v18858_v21 = vadd.f32 %v1377_v14, %v944_v36 }
 0x148   : > { %v1380_v40 = vpop.f32.mrf.mxu3 }
 0x149   : > { %v892_v42 = vpop.f32.mrf.mxu0 }
 0x14a   : > { %v18861_v46 = vadd.f32 %v1325_v19, %v892_v42  ;;  %v1779_v19 = vor.u32 %v1777_v53, %v1775_v28  ;;  %v17419_v28 = vld [vmem:[#allocation2 + $0x3c] sm:$0xff] }
 0x14b   : > { %v1327_v51 = vpop.f32.mrf.mxu1  ;;  %2029 = vmatmul.bf16.gmra.mxu2 %v1776_v22  ;;  %v2527_v22 = vrot.slane %v2525_v30, 3  ;;  %v1789_v50 = vshll.u32 %v17419_v28, 16 }
 0x14c   : > { %3320 = vmatmul.bf16.gmra.mxu0 %v17481_v41  ;;  %v1784_v10 = vsel %vm1732_vm1, %v1779_v19, %v1783_v20  ;;  %v2530_v41 = vrot.slane %v2528_v31, 4 }
 0x14e   : > { %v947_v44 = vpop.f32.mrf.mxu2  ;;  %v2531_v42 = vor.u32 %v2530_v41, %v2527_v22 }
 0x14f   : > { %v18872_v1 = vadd.f32 %v1380_v40, %v947_v44 }
 0x150   : > { %v1382_v55 = vpop.f32.mrf.mxu3  ;;  %v2532_v44 = vsel %vm541_vm0, %v2522_v43, %v2531_v42 }
 0x151   : > { %v894_v14 = vpop.f32.mrf.mxu0  ;;  %v17452_v55 = vld [vmem:[#allocation2 + $0x4c] sm:$0xff] }
 0x152   : > { %v18875_v15 = vadd.f32 %v1327_v51, %v894_v14  ;;  %v1785_v51 = vshrl.u32 %v17418_v54, 16  ;;  %v3812_v14 = vshll.u32 %v17516_v52, 16  ;;  %v2534_v19 = vshrl.u32 %v17452_v55, 16 }
 0x153   : > { %v1330_v7 = vpop.f32.mrf.mxu1  ;;  %v2537_v13 = vshll.u32 %v17452_v55, 16 }
 0x154   : > { %v1787_v5 = vor.u32 %v1785_v51, %v1783_v20  ;;  %v1791_v7 = vrot.slane %v1789_v50, 1  ;;  %v3814_v18 = vrot.slane %v3812_v14, 1 }
 0x155   : > { %2791 = vmatmul.bf16.gmra.mxu3 %v2523_v12  ;;  %v3808_v12 = vshrl.u32 %v17515_v8, 16  ;;  %v2536_v8 = vrot.slane %v2534_v19, 3 }
 0x156   : > { %v949_v9 = vpop.f32.mrf.mxu2  ;;  %4054 = vmatmul.bf16.gmra.mxu1 %v3807_v25  ;;  %v17483_v25 = vld [vmem:[#allocation2 + $0x48] sm:$0xff] }
 0x157   : > { %v3810_v17 = vor.u32 %v3808_v12, %v3806_v24  ;;  %v1792_v9 = vsel %vm1732_vm1, %v1787_v5, %v1791_v7  ;;  %v17420_v24 = vld [vmem:[#allocation2 + $0x44] sm:$0xff] }
 0x158   : > { %v1385_v36 = vpop.f32.mrf.mxu3 }
 0x159   : > { %v897_v40 = vpop.f32.mrf.mxu0  ;;  %v3815_v54 = vsel %vm1732_vm1, %v3810_v17, %v3814_v18 }
 0x15b   : > { %v1332_v16 = vpop.f32.mrf.mxu1  ;;  %2034 = vmatmul.bf16.gmra.mxu2 %v1784_v10  ;;  %v2539_v10 = vrot.slane %v2537_v13, 4 }
 0x15c   : > { %3325 = vmatmul.bf16.gmra.mxu0 %v17482_v38 }
 0x15d   : > { %v2540_v40 = vor.u32 %v2539_v10, %v2536_v8 }
 0x15e   : > { %v952_v32 = vpop.f32.mrf.mxu2 }
 0x15f   : > { %v18879_v34 = vadd.f32 %v1385_v36, %v952_v32  ;;  %v1797_v32 = vshll.u32 %v17420_v24, 16  ;;  %v2541_v51 = vsel %vm541_vm0, %v2531_v42, %v2540_v40 }
 0x160   : > { %v1387_v48 = vpop.f32.mrf.mxu3 }
 0x161   : > { %v899_v61 = vpop.f32.mrf.mxu0  ;;  %v1799_v14 = vrot.slane %v1797_v32, 1 }
 0x162   : > { %v18882_v53 = vadd.f32 %v1332_v16, %v899_v61  ;;  %v1793_v16 = vshrl.u32 %v17419_v28, 16  ;;  %v3816_v61 = vshrl.u32 %v17516_v52, 16 }
 0x163   : > { %v1335_v2 = vpop.f32.mrf.mxu1 }
 0x164   : > { %v1795_v12 = vor.u32 %v1793_v16, %v1791_v7 }
 0x165   : > { %2796 = vmatmul.bf16.gmra.mxu3 %v2532_v44  ;;  %v17453_v44 = vld [vmem:[#allocation2 + $0x54] sm:$0xff] }
 0x166   : > { %v954_v30 = vpop.f32.mrf.mxu2  ;;  %4059 = vmatmul.bf16.gmra.mxu1 %v3815_v54  ;;  %v2543_v17 = vshrl.u32 %v17453_v44, 16  ;;  %v2546_v19 = vshll.u32 %v17453_v44, 16  ;;  %v1800_v42 = vsel %vm1732_vm1, %v1795_v12, %v1799_v14  ;;  %v17518_v44 = vld [vmem:[#allocation2 + $0x60] sm:$0xff] }
 0x167   : > { %v18885_v31 = vadd.f32 %v1387_v48, %v954_v30  ;;  %v17517_v48 = vld [vmem:[#allocation2 + $0x58] sm:$0xff] }
 0x168   : > { %v1390_v43 = vpop.f32.mrf.mxu3  ;;  %v3820_v55 = vshll.u32 %v17517_v48, 16  ;;  %v2545_v7 = vrot.slane %v2543_v17, 3  ;;  %v17454_v12 = vld [vmem:[#allocation2 + $0x5c] sm:$0xff]  ;;  %v3828_v17 = vshll.u32 %v17518_v44, 16 }
 0x169   : > { %v902_v36 = vpop.f32.mrf.mxu0 }
 0x16a   : > { %v18888_v20 = vadd.f32 %v1335_v2, %v902_v36  ;;  %v3818_v2 = vor.u32 %v3816_v61, %v3814_v18  ;;  %v3822_v5 = vrot.slane %v3820_v55, 1  ;;  %v17568_v18 = vld [vmem:[%s21632_s1 + $0x1a0] sm:$0xff]  ;;  %v17421_v36 = vld [vmem:[#allocation2 + $0x4c] sm:$0xff] }
 0x16b   : > { %v1337_v38 = vpop.f32.mrf.mxu1  ;;  %2039 = vmatmul.bf16.gmra.mxu2 %v1792_v9  ;;  %v17484_v9 = vld [vmem:[#allocation2 + $0x50] sm:$0xff] }
 0x16c   : > { %3330 = vmatmul.bf16.gmra.mxu0 %v17483_v25  ;;  %v3823_v28 = vsel %vm1732_vm1, %v3818_v2, %v3822_v5  ;;  %v2548_v25 = vrot.slane %v2546_v19, 4  ;;  %4776 = vmatpush.bf16.msra.mxu2 %v17568_v18  ;;  %v17600_v38 = vld [vmem:[%s21632_s1 + $0x1e0] sm:$0xff]  ;;  %v3824_v2 = vshrl.u32 %v17517_v48, 16 }
 0x16d   : > { %5305 = vmatpush.bf16.msra.mxu3 %v17600_v38 }
 0x16e   : > { %v957_v22 = vpop.f32.mrf.mxu2  ;;  %v2549_v8 = vor.u32 %v2548_v25, %v2545_v7 }
 0x170   : > { %v1392_v41 = vpop.f32.mrf.mxu3  ;;  %v2550_v61 = vsel %vm541_vm0, %v2540_v40, %v2549_v8 }
 0x171   : > { %v904_v50 = vpop.f32.mrf.mxu0 }
 0x172   : > { %v1805_v50 = vshll.u32 %v17421_v36, 16 }
 0x173   : > { %v18891_v13 = vpop.f32.mrf.mxu1 }
 0x175   : > { %2801 = vmatmul.bf16.gmra.mxu3 %v2541_v51  ;;  %v1801_v51 = vshrl.u32 %v17420_v24, 16 }
 0x176   : > { %v959_v30 = vpop.f32.mrf.mxu2  ;;  %4064 = vmatmul.bf16.gmra.mxu1 %v3823_v28  ;;  %v3826_v28 = vor.u32 %v3824_v2, %v3822_v5 }
 0x177   : > { %v18894_v54 = vadd.f32 %v1392_v41, %v959_v30  ;;  %v17632_v41 = vld [vmem:[%s21632_s1 + $0x220] sm:$0xff]  ;;  %v1803_v19 = vor.u32 %v1801_v51, %v1799_v14  ;;  %v1807_v30 = vrot.slane %v1805_v50, 1  ;;  %v17422_v14 = vld [vmem:[#allocation2 + $0x54] sm:$0xff] }
 0x178   : > { %v1395_v43 = vpop.f32.mrf.mxu3  ;;  %6034 = vmatpush.bf16.msra.mxu0 %v17632_v41  ;;  %v1813_v2 = vshll.u32 %v17422_v14, 16 }
 0x179   : > { %v3296_v52 = vpop.f32.mrf.mxu0  ;;  %v1808_v38 = vsel %vm1732_vm1, %v1803_v19, %v1807_v30 }
 0x17b   : > { %2044 = vmatmul.bf16.gmra.mxu2 %v1800_v42  ;;  %v18900_v10 = vpop.f32.mrf.mxu1  ;;  %v3830_v42 = vrot.slane %v3828_v17, 1  ;;  %v17519_v17 = vld [vmem:[#allocation2 + $0x68] sm:$0xff] }
 0x17c   : > { %3335 = vmatmul.bf16.gmra.mxu0 %v17484_v9  ;;  %v2552_v9 = vshrl.u32 %v17454_v12, 16 }
 0x17d   : > { %v3831_v24 = vsel %vm1732_vm1, %v3826_v28, %v3830_v42 }
 0x17e   : > { %v962_v22 = vpop.f32.mrf.mxu2  ;;  %v2554_v41 = vrot.slane %v2552_v9, 3  ;;  %v17455_v9 = vld [vmem:[#allocation2 + $0x64] sm:$0xff] }
 0x17f   : > { %v18908_v16 = vadd.f32 %v1395_v43, %v962_v22  ;;  %v2555_v43 = vshll.u32 %v17454_v12, 16  ;;  %v17485_v22 = vld [vmem:[#allocation2 + $0x58] sm:$0xff]  ;;  %v1809_v12 = vshrl.u32 %v17421_v36, 16 }
 0x180   : > { %v1397_v32 = vpop.f32.mrf.mxu3 }
 0x181   : > { %v3298_v55 = vpop.f32.mrf.mxu0  ;;  %v2557_v48 = vrot.slane %v2555_v43, 4  ;;  %v3832_v43 = vshrl.u32 %v17518_v44, 16 }
 0x183   : > { %v4030_v7 = vpop.f32.mrf.mxu1  ;;  %v2558_v32 = vor.u32 %v2557_v48, %v2554_v41  ;;  %v2564_v48 = vshll.u32 %v17455_v9, 16 }
 0x185   : > { %2806 = vmatmul.bf16.gmra.mxu3 %v2550_v61  ;;  %v2559_v19 = vsel %vm541_vm0, %v2549_v8, %v2558_v32 }
 0x186   : > { %v964_v25 = vpop.f32.mrf.mxu2  ;;  %4069 = vmatmul.bf16.gmra.mxu1 %v3831_v24 }
 0x187   : > { %v3836_v25 = vshll.u32 %v17519_v17, 16 }
 0x188   : > { %v2767_v18 = vpop.f32.mrf.mxu3 }
 0x189   : > { %v3301_v40 = vpop.f32.mrf.mxu0  ;;  %v3838_v41 = vrot.slane %v3836_v25, 1 }
 0x18a   : > { %v3834_v40 = vor.u32 %v3832_v43, %v3830_v42 }
 0x18b   : > { %2049 = vmatmul.bf16.gmra.mxu2 %v1808_v38  ;;  %v18913_v5 = vpop.f32.mrf.mxu1  ;;  %v1811_v38 = vor.u32 %v1809_v12, %v1807_v30  ;;  %v17486_v12 = vld [vmem:[#allocation2 + $0x60] sm:$0xff] }
 0x18c   : > { %3340 = vmatmul.bf16.gmra.mxu0 %v17485_v22  ;;  %v1815_v22 = vrot.slane %v1813_v2, 1  ;;  %v3839_v44 = vsel %vm1732_vm1, %v3834_v40, %v3838_v41 }
 0x18e   : > { %v2010_v51 = vpop.f32.mrf.mxu2  ;;  %v1816_v30 = vsel %vm1732_vm1, %v1811_v38, %v1815_v22  ;;  %v1817_v38 = vshrl.u32 %v17422_v14, 16 }
 0x18f   : > { %v2178_v50 = vadd.f32 %v2010_v51, %v18718_v58  ;;  %v1449_v58 = vadd.f32 %v18724_v11, %v18738_v23  ;;  %v2566_v23 = vrot.slane %v2564_v48, 4  ;;  %v17456_v48 = vld [vmem:[#allocation2 + $0x6c] sm:$0xff] }
 0x190   : > { %v2769_v61 = vpop.f32.mrf.mxu3  ;;  %v2570_v14 = vshrl.u32 %v17456_v48, 16 }
 0x191   : > { %v2935_v28 = vadd.f32 %v2767_v18, %v2178_v50  ;;  %v18917_v7 = vpop.f32.mrf.mxu0  ;;  %v2561_v18 = vshrl.u32 %v17455_v9, 16 }
 0x193   : > { %v3464_v24 = vadd.f32 %v3296_v52, %v2935_v28  ;;  %v18924_v8 = vpop.f32.mrf.mxu1  ;;  %v2563_v11 = vrot.slane %v2561_v18, 3  ;;  %v18930_v28 = vld [vmem:[#allocation2 + $0x5c] sm:$0xff] }
 0x194   : > { %v1821_v40 = vshll.u32 %v18930_v28, 16 }
 0x195   : > { %2811 = vmatmul.bf16.gmra.mxu3 %v2559_v19  ;;  %v18922_v36 = vadd.f32 %v18891_v13, %v3464_v24  ;;  %v2567_v9 = vor.u32 %v2566_v23, %v2563_v11 }
 0x196   : > { %v2012_v51 = vpop.f32.mrf.mxu2  ;;  %4074 = vmatmul.bf16.gmra.mxu1 %v3839_v44 }
 0x197   : > { %v2179_v50 = vadd.f32 %v2012_v51, %v1449_v58  ;;  %v2568_v58 = vsel %vm541_vm0, %v2558_v32, %v2567_v9  ;;  %v3840_v51 = vshrl.u32 %v17519_v17, 16  ;;  %v17487_v17 = vld [vmem:[#allocation2 + $0x68] sm:$0xff] }
 0x198   : > { %v2772_v52 = vpop.f32.mrf.mxu3 }
 0x199   : > { %v2936_v42 = vadd.f32 %v2769_v61, %v2179_v50  ;;  %v18928_v2 = vpop.f32.mrf.mxu0  ;;  %v17520_v61 = vld [vmem:[#allocation2 + $0x70] sm:$0xff]  ;;  %v1823_v50 = vrot.slane %v1821_v40, 1  ;;  %v3842_v52 = vor.u32 %v3840_v51, %v3838_v41 }
 0x19a   : > { %v3844_v44 = vshll.u32 %v17520_v61, 16 }
 0x19b   : > { %2054 = vmatmul.bf16.gmra.mxu2 %v1816_v30  ;;  %v3465_v13 = vadd.f32 %v3298_v55, %v2936_v42  ;;  %v4037_v43 = vpop.f32.mrf.mxu1  ;;  %v17667_v55 = vld [vmem:[%s21634_s3 + $0x38] sm:$0xff] }
 0x19c   : > { %3345 = vmatmul.bf16.gmra.mxu0 %v17486_v12  ;;  %7992 = vmatpush.bf16.msra.mxu1 %v17667_v55  ;;  %v3846_v30 = vrot.slane %v3844_v44, 1  ;;  %v2573_v12 = vshll.u32 %v17456_v48, 16 }
 0x19d   : > { %v18933_v19 = vadd.f32 %v18900_v10, %v3465_v13  ;;  %v1819_v10 = vor.u32 %v1817_v38, %v1815_v22  ;;  %v2572_v38 = vrot.slane %v2570_v14, 3  ;;  %v17521_v14 = vld [vmem:[#allocation2 + $0x78] sm:$0xff] }
 0x19e   : > { %v2015_v25 = vpop.f32.mrf.mxu2  ;;  %v3847_v32 = vsel %vm1732_vm1, %v3842_v52, %v3846_v30  ;;  %v2575_v41 = vrot.slane %v2573_v12, 4 }
 0x19f   : > { %v1824_v43 = vsel %vm1732_vm1, %v1819_v10, %v1823_v50 }
 0x1a0   : > { %v2774_v24 = vpop.f32.mrf.mxu3  ;;  %v2576_v48 = vor.u32 %v2575_v41, %v2572_v38 }
 0x1a1   : > { %v3308_v18 = vpop.f32.mrf.mxu0 }
 0x1a2   : > { %v17424_v18 = vld [vmem:[#allocation2 + $0x64] sm:$0xff] }
 0x1a3   : > { %v18940_v42 = vpop.f32.mrf.mxu1  ;;  %v1829_v52 = vshll.u32 %v17424_v18, 16 }
 0x1a5   : > { %2816 = vmatmul.bf16.gmra.mxu3 %v2568_v58  ;;  %v17567_v58 = vld [vmem:[%s21632_s1 + $0x198] sm:$0xff]  ;;  %v1831_v41 = vrot.slane %v1829_v52, 1 }
 0x1a6   : > { %v2017_v11 = vpop.f32.mrf.mxu2  ;;  %4079 = vmatmul.bf16.gmra.mxu1 %v3847_v32  ;;  %4777 = vmatpush.bf16.msra.mxu2 %v17567_v58 }
 0x1a7   : > { %v2181_v23 = vadd.f32 %v2017_v11, %v18750_v56  ;;  %v2577_v11 = vsel %vm541_vm0, %v2567_v9, %v2576_v48 }
 0x1a8   : > { %v2777_v13 = vpop.f32.mrf.mxu3 }
 0x1a9   : > { %v2938_v25 = vadd.f32 %v2774_v24, %v2181_v23  ;;  %v18945_v22 = vpop.f32.mrf.mxu0  ;;  %v17599_v24 = vld [vmem:[%s21632_s1 + $0x1d8] sm:$0xff] }
 0x1aa   : > { %5306 = vmatpush.bf16.msra.mxu3 %v17599_v24  ;;  %v17457_v23 = vld [vmem:[#allocation2 + $0x74] sm:$0xff] }
 0x1ab   : > { %2059 = vmatmul.bf16.gmra.mxu2 %v1824_v43  ;;  %v3467_v40 = vadd.f32 %v18917_v7, %v2938_v25  ;;  %v18954_v55 = vpop.f32.mrf.mxu1  ;;  %v17631_v7 = vld [vmem:[%s21632_s1 + $0x218] sm:$0xff]  ;;  %v3848_v43 = vshrl.u32 %v17520_v61, 16  ;;  %v2582_v24 = vshll.u32 %v17457_v23, 16 }
 0x1ac   : > { %3350 = vmatmul.bf16.gmra.mxu0 %v17487_v17  ;;  %v3852_v17 = vshll.u32 %v17521_v14, 16 }
 0x1ad   : > { %v18952_v56 = vadd.f32 %v18913_v5, %v3467_v40  ;;  %v1825_v5 = vshrl.u32 %v18930_v28, 16  ;;  %6035 = vmatpush.bf16.msra.mxu0 %v17631_v7  ;;  %v2579_v28 = vshrl.u32 %v17457_v23, 16  ;;  %v1833_v23 = vshrl.u32 %v17424_v18, 16 }
 0x1ae   : > { %v2020_v51 = vpop.f32.mrf.mxu2  ;;  %v3854_v40 = vrot.slane %v3852_v17, 1  ;;  %v17522_v17 = vld [vmem:[#allocation2 + $0x80] sm:$0xff] }
 0x1af   : > { %v2182_v44 = vadd.f32 %v2020_v51, %v18759_v6  ;;  %v1827_v38 = vor.u32 %v1825_v5, %v1823_v50  ;;  %v3850_v6 = vor.u32 %v3848_v43, %v3846_v30  ;;  %v2581_v50 = vrot.slane %v2579_v28, 3  ;;  %v17425_v30 = vld [vmem:[#allocation2 + $0x6c] sm:$0xff]  ;;  %v17458_v28 = vld [vmem:[#allocation2 + $0x7c] sm:$0xff] }
 0x1b0   : > { %v2779_v10 = vpop.f32.mrf.mxu3  ;;  %v1837_v43 = vshll.u32 %v17425_v30, 16  ;;  %v2588_v18 = vshrl.u32 %v17458_v28, 16 }
 0x1b1   : > { %v2939_v12 = vadd.f32 %v2777_v13, %v2182_v44  ;;  %v3313_v32 = vpop.f32.mrf.mxu0  ;;  %v3855_v9 = vsel %vm1732_vm1, %v3850_v6, %v3854_v40  ;;  %v1832_v61 = vsel %vm1732_vm1, %v1827_v38, %v1831_v41  ;;  %v17488_v44 = vld [vmem:[#allocation2 + $0x70] sm:$0xff]  ;;  %v2584_v10 = vrot.slane %v2582_v24, 4 }
 0x1b2   : > { %v3856_v24 = vshrl.u32 %v17521_v14, 16 }
 0x1b3   : > { %v3468_v25 = vadd.f32 %v18928_v2, %v2939_v12  ;;  %v4045_v51 = vpop.f32.mrf.mxu1  ;;  %v2585_v5 = vor.u32 %v2584_v10, %v2581_v50  ;;  %v2591_v50 = vshll.u32 %v17458_v28, 16 }
 0x1b4   : > { %v3860_v51 = vshll.u32 %v17522_v17, 16 }
 0x1b5   : > { %2821 = vmatmul.bf16.gmra.mxu3 %v2577_v11  ;;  %v18967_v58 = vadd.f32 %v18924_v8, %v3468_v25  ;;  %v2586_v38 = vsel %vm541_vm0, %v2576_v48, %v2585_v5 }
 0x1b6   : > { %v2022_v13 = vpop.f32.mrf.mxu2  ;;  %4084 = vmatmul.bf16.gmra.mxu1 %v3855_v9  ;;  %v1835_v9 = vor.u32 %v1833_v23, %v1831_v41  ;;  %v17489_v41 = vld [vmem:[#allocation2 + $0x78] sm:$0xff]  ;;  %v2590_v23 = vrot.slane %v2588_v18, 3 }
 0x1b8   : > { %v2782_v7 = vpop.f32.mrf.mxu3 }
 0x1b9   : > { %v3316_v2 = vpop.f32.mrf.mxu0 }
 0x1ba   : > { %v3862_v2 = vrot.slane %v3860_v51, 1 }
 0x1bb   : > { %2064 = vmatmul.bf16.gmra.mxu2 %v1832_v61  ;;  %v18971_v8 = vpop.f32.mrf.mxu1  ;;  %v1839_v61 = vrot.slane %v1837_v43, 1 }
 0x1bc   : > { %3355 = vmatmul.bf16.gmra.mxu0 %v17488_v44  ;;  %v3858_v44 = vor.u32 %v3856_v24, %v3854_v40 }
 0x1be   : > { %v2025_v52 = vpop.f32.mrf.mxu2  ;;  %v3863_v10 = vsel %vm1732_vm1, %v3858_v44, %v3862_v2 }
 0x1bf   : > { %v2184_v12 = vadd.f32 %v2025_v52, %v18784_v35 }
 0x1c0   : > { %v2784_v11 = vpop.f32.mrf.mxu3 }
 0x1c1   : > { %v2941_v25 = vadd.f32 %v2782_v7, %v2184_v12  ;;  %v18975_v6 = vpop.f32.mrf.mxu0 }
 0x1c3   : > { %v3470_v13 = vadd.f32 %v18945_v22, %v2941_v25  ;;  %v18981_v7 = vpop.f32.mrf.mxu1  ;;  %v1840_v22 = vsel %vm1732_vm1, %v1835_v9, %v1839_v61  ;;  %v18988_v25 = vld [vmem:[#allocation2 + $0x74] sm:$0xff] }
 0x1c4   : > { %v1845_v9 = vshll.u32 %v18988_v25, 16 }
 0x1c5   : > { %2826 = vmatmul.bf16.gmra.mxu3 %v2586_v38  ;;  %v18979_v35 = vadd.f32 %v18940_v42, %v3470_v13  ;;  %v2593_v42 = vrot.slane %v2591_v50, 4  ;;  %v1841_v13 = vshrl.u32 %v17425_v30, 16  ;;  %v17459_v50 = vld [vmem:[#allocation2 + $0x84] sm:$0xff] }
 0x1c6   : > { %v2027_v48 = vpop.f32.mrf.mxu2  ;;  %4089 = vmatmul.bf16.gmra.mxu1 %v3863_v10  ;;  %v2597_v30 = vshrl.u32 %v17459_v50, 16 }
 0x1c7   : > { %v2185_v14 = vadd.f32 %v2027_v48, %v18806_v62  ;;  %v2594_v28 = vor.u32 %v2593_v42, %v2590_v23  ;;  %v3864_v48 = vshrl.u32 %v17522_v17, 16  ;;  %v17490_v17 = vld [vmem:[#allocation2 + $0x80] sm:$0xff] }
 0x1c8   : > { %v2787_v52 = vpop.f32.mrf.mxu3 }
 0x1c9   : > { %v2942_v12 = vadd.f32 %v2784_v11, %v2185_v14  ;;  %v18986_v40 = vpop.f32.mrf.mxu0  ;;  %v17523_v11 = vld [vmem:[#allocation2 + $0x88] sm:$0xff]  ;;  %v2595_v44 = vsel %vm541_vm0, %v2585_v5, %v2594_v28  ;;  %v1847_v14 = vrot.slane %v1845_v9, 1  ;;  %v3866_v52 = vor.u32 %v3864_v48, %v3862_v2 }
 0x1ca   : > { %v3868_v10 = vshll.u32 %v17523_v11, 16 }
 0x1cb   : > { %2069 = vmatmul.bf16.gmra.mxu2 %v1840_v22  ;;  %v3471_v43 = vadd.f32 %v3313_v32, %v2942_v12  ;;  %v4052_v62 = vpop.f32.mrf.mxu1  ;;  %v17666_v32 = vld [vmem:[%s21634_s3 + $0x30] sm:$0xff] }
 0x1cc   : > { %3360 = vmatmul.bf16.gmra.mxu0 %v17489_v41  ;;  %7993 = vmatpush.bf16.msra.mxu1 %v17666_v32  ;;  %v3870_v22 = vrot.slane %v3868_v10, 1  ;;  %v2600_v41 = vshll.u32 %v17459_v50, 16 }
 0x1cd   : > { %v18991_v38 = vadd.f32 %v18954_v55, %v3471_v43  ;;  %v1843_v55 = vor.u32 %v1841_v13, %v1839_v61  ;;  %v2599_v13 = vrot.slane %v2597_v30, 3  ;;  %v17524_v30 = vld [vmem:[#allocation2 + $0x90] sm:$0xff] }
 0x1ce   : > { %v2030_v24 = vpop.f32.mrf.mxu2  ;;  %v3871_v5 = vsel %vm1732_vm1, %v3866_v52, %v3870_v22  ;;  %v2602_v2 = vrot.slane %v2600_v41, 4 }
 0x1cf   : > { %v1848_v62 = vsel %vm1732_vm1, %v1843_v55, %v1847_v14 }
 0x1d0   : > { %v2789_v51 = vpop.f32.mrf.mxu3  ;;  %v2603_v50 = vor.u32 %v2602_v2, %v2599_v13 }
 0x1d1   : > { %v3323_v18 = vpop.f32.mrf.mxu0 }
 0x1d2   : > { %v17427_v18 = vld [vmem:[#allocation2 + $0x7c] sm:$0xff] }
 0x1d3   : > { %v18998_v12 = vpop.f32.mrf.mxu1  ;;  %v1853_v52 = vshll.u32 %v17427_v18, 16 }
 0x1d5   : > { %2831 = vmatmul.bf16.gmra.mxu3 %v2595_v44  ;;  %v17566_v44 = vld [vmem:[%s21632_s1 + $0x190] sm:$0xff]  ;;  %v1855_v2 = vrot.slane %v1853_v52, 1 }
 0x1d6   : > { %v2032_v23 = vpop.f32.mrf.mxu2  ;;  %4094 = vmatmul.bf16.gmra.mxu1 %v3871_v5  ;;  %4778 = vmatpush.bf16.msra.mxu2 %v17566_v44 }
 0x1d7   : > { %v2187_v42 = vadd.f32 %v2032_v23, %v18814_v60  ;;  %v2604_v23 = vsel %vm541_vm0, %v2594_v28, %v2603_v50 }
 0x1d8   : > { %v2792_v43 = vpop.f32.mrf.mxu3 }
 0x1d9   : > { %v2944_v24 = vadd.f32 %v2789_v51, %v2187_v42  ;;  %v19003_v61 = vpop.f32.mrf.mxu0  ;;  %v17598_v51 = vld [vmem:[%s21632_s1 + $0x1d0] sm:$0xff] }
 0x1da   : > { %5307 = vmatpush.bf16.msra.mxu3 %v17598_v51  ;;  %v17460_v42 = vld [vmem:[#allocation2 + $0x8c] sm:$0xff] }
 0x1db   : > { %2074 = vmatmul.bf16.gmra.mxu2 %v1848_v62  ;;  %v3473_v9 = vadd.f32 %v18975_v6, %v2944_v24  ;;  %v19012_v32 = vpop.f32.mrf.mxu1  ;;  %v17630_v6 = vld [vmem:[%s21632_s1 + $0x210] sm:$0xff]  ;;  %v3872_v62 = vshrl.u32 %v17523_v11, 16  ;;  %v2609_v51 = vshll.u32 %v17460_v42, 16 }
 0x1dc   : > { %3365 = vmatmul.bf16.gmra.mxu0 %v17490_v17  ;;  %v3876_v17 = vshll.u32 %v17524_v30, 16 }
 0x1dd   : > { %v19010_v60 = vadd.f32 %v18971_v8, %v3473_v9  ;;  %v1849_v8 = vshrl.u32 %v18988_v25, 16  ;;  %6036 = vmatpush.bf16.msra.mxu0 %v17630_v6  ;;  %v2606_v25 = vshrl.u32 %v17460_v42, 16  ;;  %v1857_v42 = vshrl.u32 %v17427_v18, 16 }
 0x1de   : > { %v2035_v48 = vpop.f32.mrf.mxu2  ;;  %v3878_v9 = vrot.slane %v3876_v17, 1  ;;  %v17525_v17 = vld [vmem:[#allocation2 + $0x98] sm:$0xff] }
 0x1df   : > { %v2188_v10 = vadd.f32 %v2035_v48, %v18820_v3  ;;  %v1851_v13 = vor.u32 %v1849_v8, %v1847_v14  ;;  %v3874_v3 = vor.u32 %v3872_v62, %v3870_v22  ;;  %v2608_v14 = vrot.slane %v2606_v25, 3  ;;  %v17428_v22 = vld [vmem:[#allocation2 + $0x84] sm:$0xff]  ;;  %v17461_v25 = vld [vmem:[#allocation2 + $0x94] sm:$0xff] }
 0x1e0   : > { %v2794_v55 = vpop.f32.mrf.mxu3  ;;  %v1861_v62 = vshll.u32 %v17428_v22, 16  ;;  %v2615_v18 = vshrl.u32 %v17461_v25, 16 }
 0x1e1   : > { %v2945_v41 = vadd.f32 %v2792_v43, %v2188_v10  ;;  %v3328_v5 = vpop.f32.mrf.mxu0  ;;  %v3879_v28 = vsel %vm1732_vm1, %v3874_v3, %v3878_v9  ;;  %v1856_v11 = vsel %vm1732_vm1, %v1851_v13, %v1855_v2  ;;  %v17491_v10 = vld [vmem:[#allocation2 + $0x88] sm:$0xff]  ;;  %v2611_v55 = vrot.slane %v2609_v51, 4 }
 0x1e2   : > { %v3880_v51 = vshrl.u32 %v17524_v30, 16 }
 0x1e3   : > { %v3474_v24 = vadd.f32 %v18986_v40, %v2945_v41  ;;  %v4060_v48 = vpop.f32.mrf.mxu1  ;;  %v2612_v8 = vor.u32 %v2611_v55, %v2608_v14  ;;  %v2618_v14 = vshll.u32 %v17461_v25, 16 }
 0x1e4   : > { %v3884_v48 = vshll.u32 %v17525_v17, 16 }
 0x1e5   : > { %2836 = vmatmul.bf16.gmra.mxu3 %v2604_v23  ;;  %v19025_v44 = vadd.f32 %v18981_v7, %v3474_v24  ;;  %v2613_v13 = vsel %vm541_vm0, %v2603_v50, %v2612_v8 }
 0x1e6   : > { %v2037_v43 = vpop.f32.mrf.mxu2  ;;  %4099 = vmatmul.bf16.gmra.mxu1 %v3879_v28  ;;  %v1859_v28 = vor.u32 %v1857_v42, %v1855_v2  ;;  %v17492_v2 = vld [vmem:[#allocation2 + $0x90] sm:$0xff]  ;;  %v2617_v42 = vrot.slane %v2615_v18, 3 }
 0x1e8   : > { %v2797_v6 = vpop.f32.mrf.mxu3 }
 0x1e9   : > { %v3331_v40 = vpop.f32.mrf.mxu0 }
 0x1ea   : > { %v3886_v40 = vrot.slane %v3884_v48, 1 }
 0x1eb   : > { %2079 = vmatmul.bf16.gmra.mxu2 %v1856_v11  ;;  %v19029_v7 = vpop.f32.mrf.mxu1  ;;  %v1863_v11 = vrot.slane %v1861_v62, 1 }
 0x1ec   : > { %3370 = vmatmul.bf16.gmra.mxu0 %v17491_v10  ;;  %v3882_v10 = vor.u32 %v3880_v51, %v3878_v9 }
 0x1ee   : > { %v2040_v52 = vpop.f32.mrf.mxu2  ;;  %v3887_v55 = vsel %vm1732_vm1, %v3882_v10, %v3886_v40 }
 0x1ef   : > { %v2190_v41 = vadd.f32 %v2040_v52, %v18827_v39 }
 0x1f0   : > { %v2799_v23 = vpop.f32.mrf.mxu3 }
 0x1f1   : > { %v2947_v24 = vadd.f32 %v2797_v6, %v2190_v41  ;;  %v19033_v3 = vpop.f32.mrf.mxu0 }
 0x1f3   : > { %v3476_v43 = vadd.f32 %v19003_v61, %v2947_v24  ;;  %v19039_v6 = vpop.f32.mrf.mxu1  ;;  %v1864_v61 = vsel %vm1732_vm1, %v1859_v28, %v1863_v11  ;;  %v19046_v24 = vld [vmem:[#allocation2 + $0x8c] sm:$0xff] }
 0x1f4   : > { %v1869_v28 = vshll.u32 %v19046_v24, 16 }
 0x1f5   : > { %2841 = vmatmul.bf16.gmra.mxu3 %v2613_v13  ;;  %v19037_v39 = vadd.f32 %v18998_v12, %v3476_v43  ;;  %v2620_v12 = vrot.slane %v2618_v14, 4  ;;  %v1865_v43 = vshrl.u32 %v17428_v22, 16  ;;  %v17462_v14 = vld [vmem:[#allocation2 + $0x9c] sm:$0xff] }
 0x1f6   : > { %v2042_v50 = vpop.f32.mrf.mxu2  ;;  %4104 = vmatmul.bf16.gmra.mxu1 %v3887_v55  ;;  %v2624_v22 = vshrl.u32 %v17462_v14, 16 }
 0x1f7   : > { %v2191_v30 = vadd.f32 %v2042_v50, %v18841_v63  ;;  %v2621_v25 = vor.u32 %v2620_v12, %v2617_v42  ;;  %v3888_v50 = vshrl.u32 %v17525_v17, 16  ;;  %v17493_v17 = vld [vmem:[#allocation2 + $0x98] sm:$0xff] }
 0x1f8   : > { %v2802_v52 = vpop.f32.mrf.mxu3 }
 0x1f9   : > { %v2948_v41 = vadd.f32 %v2799_v23, %v2191_v30  ;;  %v19044_v9 = vpop.f32.mrf.mxu0  ;;  %v17526_v23 = vld [vmem:[#allocation2 + $0xa0] sm:$0xff]  ;;  %v2622_v10 = vsel %vm541_vm0, %v2612_v8, %v2621_v25  ;;  %v1871_v30 = vrot.slane %v1869_v28, 1  ;;  %v3890_v52 = vor.u32 %v3888_v50, %v3886_v40 }
 0x1fa   : > { %v3892_v55 = vshll.u32 %v17526_v23, 16 }
 0x1fb   : > { %2084 = vmatmul.bf16.gmra.mxu2 %v1864_v61  ;;  %v3477_v62 = vadd.f32 %v3328_v5, %v2948_v41  ;;  %v4067_v63 = vpop.f32.mrf.mxu1  ;;  %v17665_v5 = vld [vmem:[%s21634_s3 + $0x28] sm:$0xff] }
 0x1fc   : > { %3375 = vmatmul.bf16.gmra.mxu0 %v17492_v2  ;;  %7994 = vmatpush.bf16.msra.mxu1 %v17665_v5  ;;  %v3894_v61 = vrot.slane %v3892_v55, 1  ;;  %v2627_v2 = vshll.u32 %v17462_v14, 16 }
 0x1fd   : > { %v19049_v13 = vadd.f32 %v19012_v32, %v3477_v62  ;;  %v1867_v32 = vor.u32 %v1865_v43, %v1863_v11  ;;  %v2626_v43 = vrot.slane %v2624_v22, 3  ;;  %v17527_v22 = vld [vmem:[#allocation2 + $0xa8] sm:$0xff] }
 0x1fe   : > { %v2045_v51 = vpop.f32.mrf.mxu2  ;;  %v3895_v8 = vsel %vm1732_vm1, %v3890_v52, %v3894_v61  ;;  %v2629_v40 = vrot.slane %v2627_v2, 4 }
 0x1ff   : > { %v1872_v63 = vsel %vm1732_vm1, %v1867_v32, %v1871_v30 }
 0x200   : > { %v2804_v48 = vpop.f32.mrf.mxu3  ;;  %v2630_v14 = vor.u32 %v2629_v40, %v2626_v43 }
 0x201   : > { %v3338_v18 = vpop.f32.mrf.mxu0 }
 0x202   : > { %v17430_v18 = vld [vmem:[#allocation2 + $0x94] sm:$0xff] }
 0x203   : > { %v19056_v41 = vpop.f32.mrf.mxu1  ;;  %v1877_v52 = vshll.u32 %v17430_v18, 16 }
 0x205   : > { %2846 = vmatmul.bf16.gmra.mxu3 %v2622_v10  ;;  %v17565_v10 = vld [vmem:[%s21632_s1 + $0x188] sm:$0xff]  ;;  %v1879_v40 = vrot.slane %v1877_v52, 1 }
 0x206   : > { %v2047_v42 = vpop.f32.mrf.mxu2  ;;  %4109 = vmatmul.bf16.gmra.mxu1 %v3895_v8  ;;  %4779 = vmatpush.bf16.msra.mxu2 %v17565_v10 }
 0x207   : > { %v2193_v12 = vadd.f32 %v2047_v42, %v18848_v37  ;;  %v2631_v42 = vsel %vm541_vm0, %v2621_v25, %v2630_v14 }
 0x208   : > { %v2807_v62 = vpop.f32.mrf.mxu3 }
 0x209   : > { %v2950_v51 = vadd.f32 %v2804_v48, %v2193_v12  ;;  %v19061_v11 = vpop.f32.mrf.mxu0  ;;  %v17597_v48 = vld [vmem:[%s21632_s1 + $0x1c8] sm:$0xff] }
 0x20a   : > { %5308 = vmatpush.bf16.msra.mxu3 %v17597_v48  ;;  %v17463_v12 = vld [vmem:[#allocation2 + $0xa4] sm:$0xff] }
 0x20b   : > { %2089 = vmatmul.bf16.gmra.mxu2 %v1872_v63  ;;  %v3479_v28 = vadd.f32 %v19033_v3, %v2950_v51  ;;  %v19070_v5 = vpop.f32.mrf.mxu1  ;;  %v17629_v3 = vld [vmem:[%s21632_s1 + $0x208] sm:$0xff]  ;;  %v3896_v63 = vshrl.u32 %v17526_v23, 16  ;;  %v2636_v48 = vshll.u32 %v17463_v12, 16 }
 0x20c   : > { %3380 = vmatmul.bf16.gmra.mxu0 %v17493_v17  ;;  %v3900_v17 = vshll.u32 %v17527_v22, 16 }
 0x20d   : > { %v19068_v37 = vadd.f32 %v19029_v7, %v3479_v28  ;;  %v1873_v7 = vshrl.u32 %v19046_v24, 16  ;;  %6037 = vmatpush.bf16.msra.mxu0 %v17629_v3  ;;  %v2633_v24 = vshrl.u32 %v17463_v12, 16  ;;  %v1881_v12 = vshrl.u32 %v17430_v18, 16 }
 0x20e   : > { %v2050_v50 = vpop.f32.mrf.mxu2  ;;  %v3902_v28 = vrot.slane %v3900_v17, 1  ;;  %v17528_v17 = vld [vmem:[#allocation2 + $0xb0] sm:$0xff] }
 0x20f   : > { %v2194_v55 = vadd.f32 %v2050_v50, %v18854_v4  ;;  %v1875_v43 = vor.u32 %v1873_v7, %v1871_v30  ;;  %v3898_v4 = vor.u32 %v3896_v63, %v3894_v61  ;;  %v2635_v30 = vrot.slane %v2633_v24, 3  ;;  %v17431_v61 = vld [vmem:[#allocation2 + $0x9c] sm:$0xff]  ;;  %v17464_v24 = vld [vmem:[#allocation2 + $0xac] sm:$0xff] }
 0x210   : > { %v2809_v32 = vpop.f32.mrf.mxu3  ;;  %v1885_v63 = vshll.u32 %v17431_v61, 16  ;;  %v2642_v18 = vshrl.u32 %v17464_v24, 16 }
 0x211   : > { %v2951_v2 = vadd.f32 %v2807_v62, %v2194_v55  ;;  %v3343_v8 = vpop.f32.mrf.mxu0  ;;  %v3903_v25 = vsel %vm1732_vm1, %v3898_v4, %v3902_v28  ;;  %v1880_v23 = vsel %vm1732_vm1, %v1875_v43, %v1879_v40  ;;  %v17494_v55 = vld [vmem:[#allocation2 + $0xa0] sm:$0xff]  ;;  %v2638_v32 = vrot.slane %v2636_v48, 4 }
 0x212   : > { %v3904_v48 = vshrl.u32 %v17527_v22, 16 }
 0x213   : > { %v3480_v51 = vadd.f32 %v19044_v9, %v2951_v2  ;;  %v4075_v50 = vpop.f32.mrf.mxu1  ;;  %v2639_v7 = vor.u32 %v2638_v32, %v2635_v30  ;;  %v2645_v30 = vshll.u32 %v17464_v24, 16 }
 0x214   : > { %v3908_v50 = vshll.u32 %v17528_v17, 16 }
 0x215   : > { %2851 = vmatmul.bf16.gmra.mxu3 %v2631_v42  ;;  %v19083_v10 = vadd.f32 %v19039_v6, %v3480_v51  ;;  %v2640_v43 = vsel %vm541_vm0, %v2630_v14, %v2639_v7 }
 0x216   : > { %v2052_v62 = vpop.f32.mrf.mxu2  ;;  %4114 = vmatmul.bf16.gmra.mxu1 %v3903_v25  ;;  %v1883_v25 = vor.u32 %v1881_v12, %v1879_v40  ;;  %v17495_v40 = vld [vmem:[#allocation2 + $0xa8] sm:$0xff]  ;;  %v2644_v12 = vrot.slane %v2642_v18, 3 }
 0x218   : > { %v2812_v3 = vpop.f32.mrf.mxu3 }
 0x219   : > { %v3346_v9 = vpop.f32.mrf.mxu0 }
 0x21a   : > { %v3910_v9 = vrot.slane %v3908_v50, 1 }
 0x21b   : > { %2094 = vmatmul.bf16.gmra.mxu2 %v1880_v23  ;;  %v19087_v6 = vpop.f32.mrf.mxu1  ;;  %v1887_v23 = vrot.slane %v1885_v63, 1 }
 0x21c   : > { %3385 = vmatmul.bf16.gmra.mxu0 %v17494_v55  ;;  %v3906_v55 = vor.u32 %v3904_v48, %v3902_v28 }
 0x21e   : > { %v2055_v52 = vpop.f32.mrf.mxu2  ;;  %v3911_v32 = vsel %vm1732_vm1, %v3906_v55, %v3910_v9 }
 0x21f   : > { %v2196_v2 = vadd.f32 %v2055_v52, %v18861_v46 }
 0x220   : > { %v2814_v42 = vpop.f32.mrf.mxu3 }
 0x221   : > { %v2953_v51 = vadd.f32 %v2812_v3, %v2196_v2  ;;  %v19091_v4 = vpop.f32.mrf.mxu0 }
 0x223   : > { %v3482_v62 = vadd.f32 %v19061_v11, %v2953_v51  ;;  %v19097_v3 = vpop.f32.mrf.mxu1  ;;  %v1888_v11 = vsel %vm1732_vm1, %v1883_v25, %v1887_v23  ;;  %v19104_v51 = vld [vmem:[#allocation2 + $0xa4] sm:$0xff] }
 0x224   : > { %v1893_v25 = vshll.u32 %v19104_v51, 16 }
 0x225   : > { %2856 = vmatmul.bf16.gmra.mxu3 %v2640_v43  ;;  %v19095_v46 = vadd.f32 %v19056_v41, %v3482_v62  ;;  %v2647_v41 = vrot.slane %v2645_v30, 4  ;;  %v1889_v62 = vshrl.u32 %v17431_v61, 16  ;;  %v17465_v30 = vld [vmem:[#allocation2 + $0xb4] sm:$0xff] }
 0x226   : > { %v2057_v14 = vpop.f32.mrf.mxu2  ;;  %4119 = vmatmul.bf16.gmra.mxu1 %v3911_v32 }
 0x227   : > { %v2197_v22 = vadd.f32 %v2057_v14, %v18875_v15  ;;  %v2648_v24 = vor.u32 %v2647_v41, %v2644_v12  ;;  %v3912_v14 = vshrl.u32 %v17528_v17, 16 }
 0x228   : > { %v2817_v52 = vpop.f32.mrf.mxu3 }
 0x229   : > { %v2954_v2 = vadd.f32 %v2814_v42, %v2197_v22  ;;  %v19102_v28 = vpop.f32.mrf.mxu0  ;;  %v17529_v42 = vld [vmem:[#allocation2 + $0xb8] sm:$0xff]  ;;  %v2649_v55 = vsel %vm541_vm0, %v2639_v7, %v2648_v24  ;;  %v1895_v22 = vrot.slane %v1893_v25, 1  ;;  %v3914_v52 = vor.u32 %v3912_v14, %v3910_v9  ;;  %v17596_v14 = vld [vmem:[%s21632_s1 + $0x1c0] sm:$0xff] }
 0x22a   : > { %v3916_v32 = vshll.u32 %v17529_v42, 16  ;;  %5309 = vmatpush.bf16.msra.mxu3 %v17596_v14 }
 0x22b   : > { %2099 = vmatmul.bf16.gmra.mxu2 %v1888_v11  ;;  %v3483_v63 = vadd.f32 %v3343_v8, %v2954_v2  ;;  %v4082_v15 = vpop.f32.mrf.mxu1  ;;  %v17664_v8 = vld [vmem:[%s21634_s3 + $0x20] sm:$0xff]  ;;  %v2651_v11 = vshrl.u32 %v17465_v30, 16 }
 0x22c   : > { %3390 = vmatmul.bf16.gmra.mxu0 %v17495_v40  ;;  %7995 = vmatpush.bf16.msra.mxu1 %v17664_v8  ;;  %v3918_v61 = vrot.slane %v3916_v32, 1  ;;  %v2654_v40 = vshll.u32 %v17465_v30, 16  ;;  %v17496_v15 = vld [vmem:[#allocation2 + $0xb0] sm:$0xff] }
 0x22d   : > { %v19107_v43 = vadd.f32 %v19070_v5, %v3483_v63  ;;  %v1891_v5 = vor.u32 %v1889_v62, %v1887_v23  ;;  %v2653_v9 = vrot.slane %v2651_v11, 3 }
 0x22e   : > { %v2060_v48 = vpop.f32.mrf.mxu2  ;;  %v3919_v12 = vsel %vm1732_vm1, %v3914_v52, %v3918_v61  ;;  %v2656_v25 = vrot.slane %v2654_v40, 4 }
 0x22f   : > { %v1896_v17 = vsel %vm1732_vm1, %v1891_v5, %v1895_v22  ;;  %v14912_v48 = vld [vmem:[%s18638_s13 + $0x78] sm:$0xff]  }
 0x230   : > { %v2819_v50 = vpop.f32.mrf.mxu3  ;;  %349 = vst [vmem:[#allocation2 + $0xc4] sm:$0xff] %v14912_v48   ;;  %v2657_v8 = vor.u32 %v2656_v25, %v2653_v9 }
 0x231   : > { %v3353_v18 = vpop.f32.mrf.mxu0 }
 0x232   : > { %v17564_v18 = vld [vmem:[%s21632_s1 + $0x180] sm:$0xff] }
 0x233   : > { %v19114_v2 = vpop.f32.mrf.mxu1  ;;  %4780 = vmatpush.bf16.msra.mxu2 %v17564_v18 }
 0x235   : > { %2861 = vmatmul.bf16.gmra.mxu3 %v2649_v55 }
 0x236   : > { %v2062_v7 = vpop.f32.mrf.mxu2  ;;  %4124 = vmatmul.bf16.gmra.mxu1 %v3919_v12  ;;  %v2658_v12 = vsel %vm541_vm0, %v2648_v24, %v2657_v8 }
 0x237   : > { %v2199_v41 = vadd.f32 %v2062_v7, %v18882_v53  ;;  %v17433_v53 = vld [vmem:[#allocation2 + $0xac] sm:$0xff]  ;;  %v17530_v40 = vld [vmem:[#allocation2 + $0xc0] sm:$0xff] }
 0x238   : > { %v2822_v63 = vpop.f32.mrf.mxu3  ;;  %v1901_v11 = vshll.u32 %v17433_v53, 16  ;;  %v3924_v48 = vshll.u32 %v17530_v40, 16 }
 0x239   : > { %v2956_v23 = vadd.f32 %v2819_v50, %v2199_v41  ;;  %v19120_v62 = vpop.f32.mrf.mxu0 }
 0x23a   : > { %v1903_v25 = vrot.slane %v1901_v11, 1 }
 0x23b   : > { %2104 = vmatmul.bf16.gmra.mxu2 %v1896_v17  ;;  %v3485_v55 = vadd.f32 %v19091_v4, %v2956_v23  ;;  %v19129_v50 = vpop.f32.mrf.mxu1  ;;  %v17628_v4 = vld [vmem:[%s21632_s1 + $0x200] sm:$0xff] }
 0x23c   : > { %3395 = vmatmul.bf16.gmra.mxu0 %v17496_v15  ;;  %v17466_v17 = vld [vmem:[#allocation2 + $0xbc] sm:$0xff]  ;;  %v3920_v15 = vshrl.u32 %v17529_v42, 16 }
 0x23d   : > { %v19127_v30 = vadd.f32 %v19087_v6, %v3485_v55  ;;  %v1897_v6 = vshrl.u32 %v19104_v51, 16  ;;  %6038 = vmatpush.bf16.msra.mxu0 %v17628_v4  ;;  %v3926_v55 = vrot.slane %v3924_v48, 1  ;;  %v2660_v18 = vshrl.u32 %v17466_v17, 16  ;;  %v17531_v48 = vld [vmem:[#allocation2 + $0xc8] sm:$0xff] }
 0x23e   : > { %v2065_v32 = vpop.f32.mrf.mxu2  ;;  %v2663_v14 = vshll.u32 %v17466_v17, 16  ;;  %v1905_v17 = vshrl.u32 %v17433_v53, 16 }
 0x23f   : > { %v2200_v5 = vadd.f32 %v2065_v32, %v18888_v20  ;;  %v1899_v9 = vor.u32 %v1897_v6, %v1895_v22  ;;  %v3922_v20 = vor.u32 %v3920_v15, %v3918_v61  ;;  %v2662_v22 = vrot.slane %v2660_v18, 3  ;;  %v17434_v61 = vld [vmem:[#allocation2 + $0xb4] sm:$0xff]  ;;  %v17467_v18 = vld [vmem:[#allocation2 + $0xc4] sm:$0xff] }
 0x240   : > { %v2824_v52 = vpop.f32.mrf.mxu3  ;;  %v1909_v15 = vshll.u32 %v17434_v61, 16  ;;  %v2669_v53 = vshrl.u32 %v17467_v18, 16 }
 0x241   : > { %v2957_v7 = vadd.f32 %v2822_v63, %v2200_v5  ;;  %v19140_v41 = vpop.f32.mrf.mxu0  ;;  %v3927_v24 = vsel %vm1732_vm1, %v3922_v20, %v3926_v55  ;;  %v1904_v42 = vsel %vm1732_vm1, %v1899_v9, %v1903_v25  ;;  %v17497_v5 = vld [vmem:[#allocation2 + $0xb8] sm:$0xff]  ;;  %v2665_v52 = vrot.slane %v2663_v14, 4 }
 0x242   : > { %v3928_v14 = vshrl.u32 %v17530_v40, 16 }
 0x243   : > { %v3486_v23 = vadd.f32 %v19102_v28, %v2957_v7  ;;  %v4090_v63 = vpop.f32.mrf.mxu1  ;;  %v2666_v6 = vor.u32 %v2665_v52, %v2662_v22  ;;  %v2672_v22 = vshll.u32 %v17467_v18, 16 }
 0x244   : > { %v3932_v63 = vshll.u32 %v17531_v48, 16 }
 0x245   : > { %2866 = vmatmul.bf16.gmra.mxu3 %v2658_v12  ;;  %v19144_v51 = vadd.f32 %v19097_v3, %v3486_v23  ;;  %v2667_v9 = vsel %vm541_vm0, %v2657_v8, %v2666_v6 }
 0x246   : > { %v2067_v32 = vpop.f32.mrf.mxu2  ;;  %4129 = vmatmul.bf16.gmra.mxu1 %v3927_v24  ;;  %v1907_v24 = vor.u32 %v1905_v17, %v1903_v25  ;;  %v17498_v25 = vld [vmem:[#allocation2 + $0xc0] sm:$0xff]  ;;  %v2671_v17 = vrot.slane %v2669_v53, 3 }
 0x248   : > { %v2827_v4 = vpop.f32.mrf.mxu3 }
 0x249   : > { %v3361_v28 = vpop.f32.mrf.mxu0 }
 0x24a   : > { %v3934_v28 = vrot.slane %v3932_v63, 1  ;;  %v3608_v63 = vld [vmem:[#allocation2 + $0xd0] sm:$0x1] }
 0x24b   : > { %2109 = vmatmul.bf16.gmra.mxu2 %v1904_v42  ;;  %v19148_v3 = vpop.f32.mrf.mxu1  ;;  %v1911_v42 = vrot.slane %v1909_v15, 1  ;;  %v2322_v15 = vld [vmem:[#allocation2 + $0xcc] sm:$0xf] }
 0x24c   : > { %3400 = vmatmul.bf16.gmra.mxu0 %v17497_v5  ;;  %v3930_v5 = vor.u32 %v3928_v14, %v3926_v55  ;;  %v2436_v18 = vunpack.c.l.b16 %v2322_v15 }
 0x24e   : > { %v2070_v11 = vpop.f32.mrf.mxu2  ;;  %v3935_v52 = vsel %vm1732_vm1, %v3930_v5, %v3934_v28 }
 0x24f   : > { %v2202_v7 = vadd.f32 %v2070_v11, %v18742_v45 }
 0x250   : > { %v2829_v12 = vpop.f32.mrf.mxu3 }
 0x251   : > { %v2959_v23 = vadd.f32 %v2827_v4, %v2202_v7  ;;  %v19152_v20 = vpop.f32.mrf.mxu0 }
 0x253   : > { %v3488_v32 = vadd.f32 %v19120_v62, %v2959_v23  ;;  %v19158_v4 = vpop.f32.mrf.mxu1  ;;  %v1912_v62 = vsel %vm1732_vm1, %v1907_v24, %v1911_v42  ;;  %v3722_v24 = vunpack.c.l.b16 %v3608_v63 }
 0x255   : > { %2871 = vmatmul.bf16.gmra.mxu3 %v2667_v9  ;;  %v19156_v45 = vadd.f32 %v19114_v2, %v3488_v32  ;;  %v2674_v2 = vrot.slane %v2672_v22, 4  ;;  %v17435_v9 = vld [vmem:[#allocation2 + $0xbc] sm:$0xff] }
 0x256   : > { %v2072_v8 = vpop.f32.mrf.mxu2  ;;  %4134 = vmatmul.bf16.gmra.mxu1 %v3935_v52  ;;  %v2461_v52 = vpack.c.b16 %v2436_v18, %v2436_v18 }
 0x257   : > { %v2203_v40 = vadd.f32 %v2072_v8, %v18755_v0  ;;  %v2675_v14 = vor.u32 %v2674_v2, %v2671_v17  ;;  %v1913_v8 = vshrl.u32 %v17434_v61, 16 }
 0x258   : > { %v2832_v11 = vpop.f32.mrf.mxu3  ;;  %v2678_v17 = vshrl.u32 %v2461_v52, 16  ;;  %v2681_v2 = vshll.u32 %v2461_v52, 16 }
 0x259   : > { %v2960_v7 = vadd.f32 %v2829_v12, %v2203_v40  ;;  %v19163_v55 = vpop.f32.mrf.mxu0  ;;  %v1917_v12 = vshll.u32 %v17435_v9, 16  ;;  %v3747_v40 = vpack.c.b16 %v3722_v24, %v3722_v24  ;;  %v2676_v53 = vsel %vm541_vm0, %v2666_v6, %v2675_v14 }
 0x25a   : > { %v3936_v11 = vshrl.u32 %v17531_v48, 16 }
 0x25b   : > { %2114 = vmatmul.bf16.gmra.mxu2 %v1912_v62  ;;  %v19166_v23 = vadd.f32 %v19140_v41, %v2960_v7  ;;  %v4097_v0 = vpop.f32.mrf.mxu1  ;;  %v17663_v41 = vld [vmem:[%s21634_s3 + $0x18] sm:$0xff]  ;;  %v3940_v62 = vshll.u32 %v3747_v40, 16  ;;  %v1919_v7 = vrot.slane %v1917_v12, 1  ;;  %v17499_v12 = vld [vmem:[#allocation2 + $0xc8] sm:$0xff] }
 0x25c   : > { %3405 = vmatmul.bf16.gmra.mxu0 %v17498_v25  ;;  %v1915_v25 = vor.u32 %v1913_v8, %v1911_v42  ;;  %7996 = vmatpush.bf16.msra.mxu1 %v17663_v41  ;;  %v3938_v15 = vor.u32 %v3936_v11, %v3934_v28  ;;  %v1592_v0 = vld [vmem:[#allocation2 + $0xc4] sm:$0x1]  ;;  %v2680_v42 = vrot.slane %v2678_v17, 3  ;;  %v2683_v8 = vrot.slane %v2681_v2, 4  ;;  %v17604_v28 = vld [vmem:[#allocation2 + $0x1c] sm:$0xff] }
 0x25d   : > { %v3942_v61 = vrot.slane %v3940_v62, 1  ;;  %v1706_v40 = vunpack.c.l.b16 %v1592_v0  ;;  %v17605_v62 = vld [vmem:[#allocation2 + $0x24] sm:$0xff] }
 0x25e   : > { %v2075_v32 = vpop.f32.mrf.mxu2  ;;  %v1920_v48 = vsel %vm1732_vm1, %v1915_v25, %v1919_v7  ;;  %v2684_v11 = vor.u32 %v2683_v8, %v2680_v42 }
 0x25f   : > { %v3943_v6 = vsel %vm1732_vm1, %v3938_v15, %v3942_v61  ;;  %v1731_v41 = vpack.c.b16 %v1706_v40, %v1706_v40  ;;  %v1921_v61 = vshrl.u32 %v17435_v9, 16 }
 0x260   : > { %v2834_v5 = vpop.f32.mrf.mxu3 }
 0x261   : > { %v3368_v22 = vpop.f32.mrf.mxu0  ;;  %v1925_v0 = vshll.u32 %v1731_v41, 16  ;;  %v1923_v42 = vor.u32 %v1921_v61, %v1919_v7 }
 0x263   : > { %v19172_v18 = vpop.f32.mrf.mxu1  ;;  %v1927_v8 = vrot.slane %v1925_v0, 1  ;;  %v17606_v0 = vld [vmem:[#allocation2 + $0x2c] sm:$0xff] }
 0x265   : > { %2876 = vmatmul.bf16.gmra.mxu3 %v2676_v53 }
 0x266   : > { %v2077_v63 = vpop.f32.mrf.mxu2  ;;  %4139 = vmatmul.bf16.gmra.mxu1 %v3943_v6 }
 0x267   : > { %v2205_v32 = vadd.f32 %v2077_v63, %v18778_v29  ;;  %v5766_v29 = vshll.u32 %v17604_v28, 16 }
 0x268   : > { %v2837_v24 = vpop.f32.mrf.mxu3 }
 0x269   : > { %v2962_v53 = vadd.f32 %v2834_v5, %v2205_v32  ;;  %v3371_v52 = vpop.f32.mrf.mxu0  ;;  %v2685_v5 = vsel %vm541_vm0, %v2675_v14, %v2684_v11  ;;  %v5764_v32 = vshrl.u32 %v17604_v28, 16  ;;  %v17541_v28 = vld [vmem:[#allocation2 + $0x20] sm:$0xff] }
 0x26a   : > { %v4486_v61 = vshrl.u32 %v17541_v28, 16 }
 0x26b   : > { %2119 = vmatmul.bf16.gmra.mxu2 %v1920_v48  ;;  %v19178_v22 = vadd.f32 %v19152_v20, %v2962_v53  ;;  %v19180_v15 = vpop.f32.mrf.mxu1  ;;  %v5768_v20 = vrot.slane %v5766_v29, 1  ;;  %v5771_v48 = vshll.u32 %v17605_v62, 16  ;;  %v15684_v53 = vld [vmem:[#allocation2 + $0x18] sm:$0x8] }
 0x26c   : > { %3410 = vmatmul.bf16.gmra.mxu0 %v17499_v12 }
 0x26d   : > { %v5773_v9 = vrot.slane %v5771_v48, 1 }
 0x26e   : > { %v2080_v25 = vpop.f32.mrf.mxu2 }
 0x26f   : > { %v2206_v17 = vadd.f32 %v2080_v25, %v18801_v47  ;;  %v17540_v47 = vld [vmem:[#allocation2 + $0x18] sm:$0xf0]  ;;  %v5769_v25 = vor.u32 %v5768_v20, %v5764_v32 }
 0x270   : > { %v2839_v2 = vpop.f32.mrf.mxu3  ;;  %v15685_v11 = vor.u32 %v17540_v47, %v15684_v53  ;;  %v17572_v53 = vld [vmem:[#allocation2 + $0x1c] sm:$0xff] }
 0x271   : > { %v2963_v63 = vadd.f32 %v2837_v24, %v2206_v17  ;;  %v3373_v6 = vpop.f32.mrf.mxu0  ;;  %v1928_v24 = vsel %vm1732_vm1, %v1923_v42, %v1927_v8  ;;  %v4488_v42 = vrot.slane %v4486_v61, 3 }
 0x272   : > { %v4478_v7 = vshrl.u32 %v15685_v11, 16  ;;  %v4481_v17 = vshll.u32 %v15685_v11, 16 }
 0x273   : > { %v3492_v40 = vadd.f32 %v19163_v55, %v2963_v63  ;;  %v4105_v41 = vpop.f32.mrf.mxu1  ;;  %v5774_v55 = vsel %vm1732_vm1, %v5769_v25, %v5773_v9 }
 0x274   : > { %v4480_v48 = vrot.slane %v4478_v7, 3  ;;  %v5775_v41 = vshrl.u32 %v17605_v62, 16 }
 0x275   : > { %2881 = vmatmul.bf16.gmra.mxu3 %v2685_v5  ;;  %v19186_v12 = vadd.f32 %v19158_v4, %v3492_v40  ;;  %v4489_v4 = vshll.u32 %v17541_v28, 16  ;;  %v4483_v40 = vrot.slane %v4481_v17, 4 }
 0x276   : > { %v2082_v2 = vpop.f32.mrf.mxu2 }
 0x277   : > { %v4491_v8 = vrot.slane %v4489_v4, 4  ;;  %v5779_v2 = vshll.u32 %v17606_v0, 16  ;;  %v4484_v11 = vor.u32 %v4483_v40, %v4480_v48 }
 0x278   : > { %v2842_v14 = vpop.f32.mrf.mxu3 }
 0x279   : > { %v3376_v29 = vpop.f32.mrf.mxu0  ;;  %v4492_v28 = vor.u32 %v4491_v8, %v4488_v42 }
 0x27b   : > { %2124 = vmatmul.bf16.gmra.mxu2 %v1928_v24  ;;  %v19190_v5 = vpop.f32.mrf.mxu1  ;;  %v4493_v61 = vsel %vm541_vm0, %v4484_v11, %v4492_v28 }
 0x27c   : > { %6039 = vmatmul.bf16.vlgmr.msra.gmra.mxu0 %v5774_v55  ;;  %21637 = vst [vmem:[#allocation6_spill] sm:$0xff] %v19190_v5  ;;  %v5777_v55 = vor.u32 %v5775_v41, %v5773_v9  ;;  %v5781_v5 = vrot.slane %v5779_v2, 1  ;;  %v17607_v9 = vld [vmem:[#allocation2 + $0x34] sm:$0xff]  ;;  %v5783_v2 = vshrl.u32 %v17606_v0, 16 }
 0x27e   : > { %v2085_v63 = vpop.f32.mrf.mxu2  ;;  %v5785_v11 = vor.u32 %v5783_v2, %v5781_v5  ;;  %v17574_v2 = vld [vmem:[#allocation2 + $0x2c] sm:$0xff] }
 0x27f   : > { %v2208_v32 = vadd.f32 %v2085_v63, %v18811_v33 }
 0x280   : > { %v2844_v20 = vpop.f32.mrf.mxu3 }
 0x281   : > { %v2965_v47 = vadd.f32 %v2842_v14, %v2208_v32  ;;  %v3378_v25 = vpop.f32.mrf.mxu0  ;;  %v17542_v14 = vld [vmem:[#allocation2 + $0x28] sm:$0xff] }
 0x282   : > { %v4495_v48 = vshrl.u32 %v17542_v14, 16 }
 0x283   : > { %v3494_v24 = vadd.f32 %v3371_v52, %v2965_v47  ;;  %v4110_v33 = vpop.f32.mrf.mxu1  ;;  %v5782_v52 = vsel %vm1732_vm1, %v5777_v55, %v5781_v5  ;;  %v17573_v47 = vld [vmem:[#allocation2 + $0x24] sm:$0xff]  ;;  %v17608_v5 = vld [vmem:[#allocation2 + $0x3c] sm:$0xff] }
 0x285   : > { %5310 = vmatmul.bf16.vlgmr.msra.gmra.mxu3 %v17572_v53  ;;  %v19194_v29 = vadd.f32 %v19172_v18, %v3494_v24  ;;  %v4498_v18 = vshll.u32 %v17542_v14, 16  ;;  %v4497_v53 = vrot.slane %v4495_v48, 3  ;;  %v5787_v24 = vshll.u32 %v17607_v9, 16 }
 0x286   : > { %v2087_v63 = vpop.f32.mrf.mxu2 }
 0x287   : > { %v2209_v7 = vadd.f32 %v2087_v63, %v18817_v57  ;;  %v4500_v57 = vrot.slane %v4498_v18, 4  ;;  %v5789_v55 = vrot.slane %v5787_v24, 1 }
 0x288   : > { %v2847_v17 = vpop.f32.mrf.mxu3 }
 0x289   : > { %v2966_v4 = vadd.f32 %v2844_v20, %v2209_v7  ;;  %v3381_v62 = vpop.f32.mrf.mxu0  ;;  %v17662_v20 = vld [vmem:[%s21634_s3 + $0x10] sm:$0xff]  ;;  %v5790_v48 = vsel %vm1732_vm1, %v5785_v11, %v5789_v55  ;;  %v5795_v11 = vshll.u32 %v17608_v5, 16 }
 0x28a   : > { %7997 = vmatpush.bf16.msra.mxu1 %v17662_v20  ;;  %v5791_v20 = vshrl.u32 %v17607_v9, 16 }
 0x28b   : > { %4781 = vmatmul.bf16.vlgmr.msra.gmra.mxu2 %v4493_v61  ;;  %v19199_v32 = vadd.f32 %v3373_v6, %v2966_v4  ;;  %v4112_v40 = vpop.f32.mrf.mxu1  ;;  %v4501_v6 = vor.u32 %v4500_v57, %v4497_v53  ;;  %v17543_v4 = vld [vmem:[#allocation2 + $0x30] sm:$0xff] }
 0x28c   : > { %6044 = vmatmul.bf16.gmra.mxu0 %v5782_v52  ;;  %v4504_v40 = vshrl.u32 %v17543_v4, 16 }
 0x28d   : > { %v4502_v14 = vsel %vm541_vm0, %v4492_v28, %v4501_v6 }
 0x28e   : > { %v2090_v42 = vpop.f32.mrf.mxu2 }
 0x28f   : > { %v4507_v42 = vshll.u32 %v17543_v4, 16  ;;  %v5797_v4 = vrot.slane %v5795_v11, 1 }
 0x290   : > { %v2849_v8 = vpop.f32.mrf.mxu3 }
 0x291   : > { %v3383_v41 = vpop.f32.mrf.mxu0  ;;  %v4509_v28 = vrot.slane %v4507_v42, 4 }
 0x292   : > { %v4506_v41 = vrot.slane %v4504_v40, 3 }
 0x293   : > { %v4115_v63 = vpop.f32.mrf.mxu1 }
 0x295   : > { %5315 = vmatmul.bf16.gmra.mxu3 %v17573_v47 }
 0x296   : > { %v2092_v7 = vpop.f32.mrf.mxu2 }
 0x297   : > { %v2211_v17 = vadd.f32 %v2092_v7, %v18824_v27 }
 0x298   : > { %v2852_v61 = vpop.f32.mrf.mxu3 }
 0x299   : > { %v2968_v52 = vadd.f32 %v2849_v8, %v2211_v17  ;;  %v3386_v0 = vpop.f32.mrf.mxu0 }
 0x29b   : > { %4786 = vmatmul.bf16.gmra.mxu2 %v4502_v14  ;;  %v19207_v18 = vadd.f32 %v3378_v25, %v2968_v52  ;;  %v19209_v53 = vpop.f32.mrf.mxu1  ;;  %v4510_v25 = vor.u32 %v4509_v28, %v4506_v41  ;;  %v5793_v14 = vor.u32 %v5791_v20, %v5789_v55  ;;  %v5799_v20 = vshrl.u32 %v17608_v5, 16 }
 0x29c   : > { %6049 = vmatmul.bf16.gmra.mxu0 %v5790_v48  ;;  %21638 = vst [vmem:[#allocation7_spill] sm:$0xff] %v19209_v53 }
 0x29d   : > { %v5798_v42 = vsel %vm1732_vm1, %v5793_v14, %v5797_v4 }
 0x29e   : > { %v2095_v57 = vpop.f32.mrf.mxu2 }
 0x29f   : > { %v2212_v27 = vadd.f32 %v2095_v57, %v18838_v49  ;;  %v4511_v49 = vsel %vm541_vm0, %v4501_v6, %v4510_v25  ;;  %v17544_v57 = vld [vmem:[#allocation2 + $0x38] sm:$0xff] }
 0x2a0   : > { %v2854_v47 = vpop.f32.mrf.mxu3  ;;  %v4516_v9 = vshll.u32 %v17544_v57, 16 }
 0x2a1   : > { %v2969_v8 = vadd.f32 %v2852_v61, %v2212_v27  ;;  %v3388_v24 = vpop.f32.mrf.mxu0  ;;  %v4513_v61 = vshrl.u32 %v17544_v57, 16 }
 0x2a2   : > { %v4518_v28 = vrot.slane %v4516_v9, 4  ;;  %v17545_v9 = vld [vmem:[#allocation2 + $0x40] sm:$0xff] }
 0x2a3   : > { %v3498_v7 = vadd.f32 %v3381_v62, %v2969_v8  ;;  %v4120_v52 = vpop.f32.mrf.mxu1  ;;  %v17609_v62 = vld [vmem:[#allocation2 + $0x44] sm:$0xff]  ;;  %v4515_v41 = vrot.slane %v4513_v61, 3 }
 0x2a4   : > { %v5803_v11 = vshll.u32 %v17609_v62, 16 }
 0x2a5   : > { %5320 = vmatmul.bf16.gmra.mxu3 %v17574_v2  ;;  %v19212_v17 = vadd.f32 %v4110_v33, %v3498_v7  ;;  %v17575_v2 = vld [vmem:[#allocation2 + $0x34] sm:$0xff]  ;;  %v4519_v14 = vor.u32 %v4518_v28, %v4515_v41 }
 0x2a6   : > { %v2097_v48 = vpop.f32.mrf.mxu2 }
 0x2a7   : > { %v5801_v48 = vor.u32 %v5799_v20, %v5797_v4  ;;  %v4520_v61 = vsel %vm541_vm0, %v4510_v25, %v4519_v14  ;;  %v17610_v4 = vld [vmem:[#allocation2 + $0x4c] sm:$0xff]  ;;  %v17576_v20 = vld [vmem:[#allocation2 + $0x3c] sm:$0xff]  ;;  %v5807_v25 = vshrl.u32 %v17609_v62, 16 }
 0x2a8   : > { %v2857_v53 = vpop.f32.mrf.mxu3 }
 0x2a9   : > { %v3391_v40 = vpop.f32.mrf.mxu0 }
 0x2ab   : > { %4791 = vmatmul.bf16.gmra.mxu2 %v4511_v49  ;;  %v19216_v27 = vpop.f32.mrf.mxu1  ;;  %v5805_v49 = vrot.slane %v5803_v11, 1 }
 0x2ac   : > { %6054 = vmatmul.bf16.gmra.mxu0 %v5798_v42  ;;  %21639 = vst [vmem:[#allocation8_spill] sm:$0xff] %v19216_v27 }
 0x2ad   : > { %v5806_v5 = vsel %vm1732_vm1, %v5801_v48, %v5805_v49  ;;  %v5809_v48 = vor.u32 %v5807_v25, %v5805_v49  ;;  %v17611_v49 = vld [vmem:[#allocation2 + $0x54] sm:$0xff] }
 0x2ae   : > { %v2100_v33 = vpop.f32.mrf.mxu2 }
 0x2af   : > { %v2214_v55 = vadd.f32 %v2100_v33, %v18845_v26 }
 0x2b0   : > { %v2859_v47 = vpop.f32.mrf.mxu3 }
 0x2b1   : > { %v2971_v8 = vadd.f32 %v2857_v53, %v2214_v55  ;;  %v3393_v6 = vpop.f32.mrf.mxu0  ;;  %v4522_v55 = vshrl.u32 %v17545_v9, 16 }
 0x2b3   : > { %v3500_v7 = vadd.f32 %v3386_v0, %v2971_v8  ;;  %v4125_v57 = vpop.f32.mrf.mxu1  ;;  %v4524_v8 = vrot.slane %v4522_v55, 3 }
 0x2b5   : > { %5325 = vmatmul.bf16.gmra.mxu3 %v17575_v2  ;;  %v19219_v52 = vadd.f32 %v4115_v63, %v3500_v7  ;;  %v4525_v63 = vshll.u32 %v17545_v9, 16  ;;  %v5811_v7 = vshll.u32 %v17610_v4, 16 }
 0x2b6   : > { %v2102_v40 = vpop.f32.mrf.mxu2 }
 0x2b7   : > { %v2215_v42 = vadd.f32 %v2102_v40, %v18851_v59  ;;  %v4527_v59 = vrot.slane %v4525_v63, 4  ;;  %v5813_v40 = vrot.slane %v5811_v7, 1  ;;  %v17577_v7 = vld [vmem:[#allocation2 + $0x44] sm:$0xff] }
 0x2b8   : > { %v2862_v26 = vpop.f32.mrf.mxu3 }
 0x2b9   : > { %v2972_v33 = vadd.f32 %v2859_v47, %v2215_v42  ;;  %v3396_v53 = vpop.f32.mrf.mxu0  ;;  %v17661_v47 = vld [vmem:[%s21634_s3 + $0x8] sm:$0xff]  ;;  %v5814_v63 = vsel %vm1732_vm1, %v5809_v48, %v5813_v40  ;;  %v5819_v48 = vshll.u32 %v17611_v49, 16 }
 0x2ba   : > { %7998 = vmatpush.bf16.msra.mxu1 %v17661_v47 }
 0x2bb   : > { %4796 = vmatmul.bf16.gmra.mxu2 %v4520_v61  ;;  %v19224_v0 = vadd.f32 %v3388_v24, %v2972_v33  ;;  %v4127_v41 = vpop.f32.mrf.mxu1  ;;  %v4528_v24 = vor.u32 %v4527_v59, %v4524_v8 }
 0x2bc   : > { %6059 = vmatmul.bf16.gmra.mxu0 %v5806_v5  ;;  %v17546_v5 = vld [vmem:[#allocation2 + $0x48] sm:$0xff] }
 0x2bd   : > { %v4529_v33 = vsel %vm541_vm0, %v4519_v14, %v4528_v24  ;;  %v4534_v8 = vshll.u32 %v17546_v5, 16 }
 0x2be   : > { %v2105_v28 = vpop.f32.mrf.mxu2 }
 0x2bf   : > { %v4531_v28 = vshrl.u32 %v17546_v5, 16  ;;  %v4536_v14 = vrot.slane %v4534_v8, 4 }
 0x2c0   : > { %v2864_v2 = vpop.f32.mrf.mxu3 }
 0x2c1   : > { %v3398_v11 = vpop.f32.mrf.mxu0  ;;  %v4533_v25 = vrot.slane %v4531_v28, 3 }
 0x2c3   : > { %v4130_v42 = vpop.f32.mrf.mxu1 }
 0x2c5   : > { %5330 = vmatmul.bf16.gmra.mxu3 %v17576_v20 }
 0x2c6   : > { %v2107_v26 = vpop.f32.mrf.mxu2 }
 0x2c7   : > { %v2217_v61 = vadd.f32 %v2107_v26, %v18858_v21  ;;  %v5815_v26 = vshrl.u32 %v17610_v4, 16 }
 0x2c8   : > { %v2867_v9 = vpop.f32.mrf.mxu3 }
 0x2c9   : > { %v2974_v55 = vadd.f32 %v2864_v2, %v2217_v61  ;;  %v3401_v62 = vpop.f32.mrf.mxu0  ;;  %v5817_v5 = vor.u32 %v5815_v26, %v5813_v40 }
 0x2cb   : > { %4801 = vmatmul.bf16.gmra.mxu2 %v4529_v33  ;;  %v19232_v41 = vadd.f32 %v3393_v6, %v2974_v55  ;;  %v19234_v59 = vpop.f32.mrf.mxu1  ;;  %v4537_v6 = vor.u32 %v4536_v14, %v4533_v25  ;;  %v5821_v55 = vrot.slane %v5819_v48, 1  ;;  %v17578_v14 = vld [vmem:[#allocation2 + $0x4c] sm:$0xff] }
 0x2cc   : > { %6064 = vmatmul.bf16.gmra.mxu0 %v5814_v63  ;;  %21640 = vst [vmem:[#allocation9_spill] sm:$0xff] %v19234_v59 }
 0x2cd   : > { %v5822_v8 = vsel %vm1732_vm1, %v5817_v5, %v5821_v55 }
 0x2ce   : > { %v2110_v20 = vpop.f32.mrf.mxu2 }
 0x2cf   : > { %v2218_v21 = vadd.f32 %v2110_v20, %v18872_v1  ;;  %v4538_v1 = vsel %vm541_vm0, %v4528_v24, %v4537_v6  ;;  %v17547_v20 = vld [vmem:[#allocation2 + $0x50] sm:$0xff] }
 0x2d0   : > { %v2869_v11 = vpop.f32.mrf.mxu3  ;;  %v4543_v4 = vshll.u32 %v17547_v20, 16 }
 0x2d1   : > { %v2975_v2 = vadd.f32 %v2867_v9, %v2218_v21  ;;  %v3403_v47 = vpop.f32.mrf.mxu0  ;;  %v4540_v9 = vshrl.u32 %v17547_v20, 16 }
 0x2d3   : > { %v3504_v61 = vadd.f32 %v3396_v53, %v2975_v2  ;;  %v4135_v63 = vpop.f32.mrf.mxu1  ;;  %v17612_v53 = vld [vmem:[#allocation2 + $0x5c] sm:$0xff]  ;;  %v4542_v25 = vrot.slane %v4540_v9, 3  ;;  %v5823_v2 = vshrl.u32 %v17611_v49, 16 }
 0x2d4   : > { %v5827_v26 = vshll.u32 %v17612_v53, 16 }
 0x2d5   : > { %5335 = vmatmul.bf16.gmra.mxu3 %v17577_v7  ;;  %v19237_v33 = vadd.f32 %v4125_v57, %v3504_v61  ;;  %v5825_v63 = vor.u32 %v5823_v2, %v5821_v55  ;;  %v17613_v55 = vld [vmem:[#allocation2 + $0x64] sm:$0xff]  ;;  %v17579_v2 = vld [vmem:[#allocation2 + $0x54] sm:$0xff] }
 0x2d6   : > { %v2112_v59 = vpop.f32.mrf.mxu2 }
 0x2d7   : > { %v4545_v59 = vrot.slane %v4543_v4, 4  ;;  %v17548_v4 = vld [vmem:[#allocation2 + $0x58] sm:$0xff] }
 0x2d8   : > { %v2872_v27 = vpop.f32.mrf.mxu3 }
 0x2d9   : > { %v3406_v28 = vpop.f32.mrf.mxu0  ;;  %v4546_v61 = vor.u32 %v4545_v59, %v4542_v25 }
 0x2db   : > { %4806 = vmatmul.bf16.gmra.mxu2 %v4538_v1  ;;  %v19241_v21 = vpop.f32.mrf.mxu1  ;;  %v5829_v1 = vrot.slane %v5827_v26, 1  ;;  %v4547_v9 = vsel %vm541_vm0, %v4537_v6, %v4546_v61  ;;  %v5831_v6 = vshrl.u32 %v17612_v53, 16 }
 0x2dc   : > { %6069 = vmatmul.bf16.gmra.mxu0 %v5822_v8  ;;  %21641 = vst [vmem:[#allocation10_spill] sm:$0xff] %v19241_v21 }
 0x2dd   : > { %v5830_v49 = vsel %vm1732_vm1, %v5825_v63, %v5829_v1 }
 0x2de   : > { %v2115_v57 = vpop.f32.mrf.mxu2 }
 0x2df   : > { %v2220_v40 = vadd.f32 %v2115_v57, %v18879_v34 }
 0x2e0   : > { %v2874_v11 = vpop.f32.mrf.mxu3 }
 0x2e1   : > { %v2977_v7 = vadd.f32 %v2872_v27, %v2220_v40  ;;  %v3408_v24 = vpop.f32.mrf.mxu0  ;;  %v4549_v40 = vshrl.u32 %v17548_v4, 16 }
 0x2e3   : > { %v3506_v48 = vadd.f32 %v3401_v62, %v2977_v7  ;;  %v4140_v20 = vpop.f32.mrf.mxu1  ;;  %v4551_v7 = vrot.slane %v4549_v40, 3 }
 0x2e5   : > { %5340 = vmatmul.bf16.gmra.mxu3 %v17578_v14  ;;  %v19244_v5 = vadd.f32 %v4130_v42, %v3506_v48  ;;  %v4552_v42 = vshll.u32 %v17548_v4, 16  ;;  %v5835_v48 = vshll.u32 %v17613_v55, 16  ;;  %v17549_v4 = vld [vmem:[#allocation2 + $0x60] sm:$0xff] }
 0x2e6   : > { %v2117_v28 = vpop.f32.mrf.mxu2  ;;  %v4558_v53 = vshrl.u32 %v17549_v4, 16 }
 0x2e7   : > { %21642 = vst [vmem:[#allocation11_spill] sm:$0xff] %v19244_v5  ;;  %v2221_v8 = vadd.f32 %v2117_v28, %v18885_v31  ;;  %v4554_v31 = vrot.slane %v4552_v42, 4  ;;  %v5833_v28 = vor.u32 %v5831_v6, %v5829_v1  ;;  %v5837_v63 = vrot.slane %v5835_v48, 1 }
 0x2e8   : > { %v2877_v34 = vpop.f32.mrf.mxu3 }
 0x2e9   : > { %v2978_v57 = vadd.f32 %v2874_v11, %v2221_v8  ;;  %v3411_v27 = vpop.f32.mrf.mxu0  ;;  %v4555_v11 = vor.u32 %v4554_v31, %v4551_v7  ;;  %v5838_v40 = vsel %vm1732_vm1, %v5833_v28, %v5837_v63 }
 0x2eb   : > { %4811 = vmatmul.bf16.gmra.mxu2 %v4547_v9  ;;  %v19249_v62 = vadd.f32 %v3403_v47, %v2978_v57  ;;  %v4142_v25 = vpop.f32.mrf.mxu1  ;;  %v4556_v9 = vsel %vm541_vm0, %v4546_v61, %v4555_v11 }
 0x2ec   : > { %6074 = vmatmul.bf16.gmra.mxu0 %v5830_v49  ;;  %v4561_v25 = vshll.u32 %v17549_v4, 16 }
 0x2ed   : > { %21643 = vst [vmem:[#allocation12_spill] sm:$0xff] %v19249_v62 }
 0x2ee   : > { %v2120_v59 = vpop.f32.mrf.mxu2 }
 0x2ef   : > { %v17614_v59 = vld [vmem:[#allocation2 + $0x6c] sm:$0xff] }
 0x2f0   : > { %v2879_v14 = vpop.f32.mrf.mxu3  ;;  %v5843_v48 = vshll.u32 %v17614_v59, 16 }
 0x2f1   : > { %v3413_v26 = vpop.f32.mrf.mxu0 }
 0x2f2   : > { %v17580_v26 = vld [vmem:[#allocation2 + $0x5c] sm:$0xff] }
 0x2f5   : > { %5345 = vmatmul.bf16.gmra.mxu3 %v17579_v2  ;;  %v4563_v2 = vrot.slane %v4561_v25, 4 }
 0x2f6   : > { %v2122_v8 = vpop.f32.mrf.mxu2 }
 0x2f7   : > { %v2223_v47 = vadd.f32 %v2122_v8, %v18894_v54  ;;  %v4560_v54 = vrot.slane %v4558_v53, 3 }
 0x2f8   : > { %v2882_v34 = vpop.f32.mrf.mxu3 }
 0x2f9   : > { %v2980_v57 = vadd.f32 %v2879_v14, %v2223_v47  ;;  %v6040_v49 = vpop.f32.mrf.mxu0  ;;  %v5839_v14 = vshrl.u32 %v17613_v55, 16  ;;  %v4564_v8 = vor.u32 %v4563_v2, %v4560_v54  ;;  %v19263_v55 = vld [vmem:[#allocation2 + $0x74] sm:$0xff]  ;;  %v16116_v54 = vld [vmem:[#allocation3] sm:$0x8]  ;;  %v17636_v2 = vld [vmem:[#allocation3] sm:$0xf0] }
 0x2fb   : > { %4816 = vmatmul.bf16.gmra.mxu2 %v4556_v9  ;;  %v19254_v42 = vadd.f32 %v3408_v24, %v2980_v57  ;;  %v5841_v47 = vor.u32 %v5839_v14, %v5837_v63  ;;  %v5845_v9 = vrot.slane %v5843_v48, 1  ;;  %v19269_v48 = vld [vmem:[%s21633_s2] ss:$0 sm:$0xff] }
 0x2fc   : > { %6079 = vmatmul.bf16.gmra.mxu0 %v5838_v40  ;;  %v17550_v40 = vld [vmem:[#allocation2 + $0x68] sm:$0xff] }
 0x2fd   : > { %21644 = vst [vmem:[#allocation13_spill] sm:$0xff] %v19254_v42  ;;  %v5846_v25 = vsel %vm1732_vm1, %v5841_v47, %v5845_v9  ;;  %v5847_v47 = vshrl.u32 %v17614_v59, 16 }
 0x2fe   : > { %v2125_v1 = vpop.f32.mrf.mxu2 }
 0x2ff   : > { %v2224_v7 = vadd.f32 %v2125_v1, %v18908_v16  ;;  %v4565_v16 = vsel %vm541_vm0, %v4555_v11, %v4564_v8  ;;  %v4570_v1 = vshll.u32 %v17550_v40, 16  ;;  %v16117_v11 = vor.u32 %v17636_v2, %v16116_v54 }
 0x300   : > { %v2884_v31 = vpop.f32.mrf.mxu3  ;;  %v5849_v2 = vor.u32 %v5847_v47, %v5845_v9 }
 0x301   : > { %v2981_v61 = vadd.f32 %v2882_v34, %v2224_v7  ;;  %v19257_v6 = vpop.f32.mrf.mxu0  ;;  %v4567_v34 = vshrl.u32 %v17550_v40, 16  ;;  %v4572_v31 = vrot.slane %v4570_v1, 4  ;;  %v7697_v40 = vshrl.u32 %v16117_v11, 16 }
 0x303   : > { %v3510_v28 = vadd.f32 %v3411_v27, %v2981_v61  ;;  %v4569_v63 = vrot.slane %v4567_v34, 3  ;;  %v17637_v61 = vld [vmem:[#allocation3 + $0x8] sm:$0xff]  ;;  %v7699_v1 = vrot.slane %v7697_v40, 3 }
 0x305   : > { %5350 = vmatmul.bf16.gmra.mxu3 %v17580_v26  ;;  %v19259_v24 = vadd.f32 %v4140_v20, %v3510_v28  ;;  %v17581_v26 = vld [vmem:[#allocation2 + $0x64] sm:$0xff] }
 0x306   : > { %v2127_v4 = vpop.f32.mrf.mxu2 }
 0x307   : > { %21645 = vst [vmem:[#allocation14_spill] sm:$0xff] %v19259_v24  ;;  %v5851_v4 = vshll.u32 %v19263_v55, 16 }
 0x308   : > { %v5311_v57 = vpop.f32.mrf.mxu3 }
 0x309   : > { %v6045_v53 = vpop.f32.mrf.mxu0  ;;  %v5853_v24 = vrot.slane %v5851_v4, 1 }
 0x30a   : > { %v7705_v53 = vshrl.u32 %v17637_v61, 16 }
 0x30b   : > { %4821 = vmatmul.bf16.gmra.mxu2 %v4565_v16  ;;  %v7700_v16 = vshll.u32 %v16117_v11, 16  ;;  %v5854_v9 = vsel %vm1732_vm1, %v5849_v2, %v5853_v24 }
 0x30c   : > { %6084 = vmatmul.bf16.gmra.mxu0 %v5846_v25  ;;  %v7708_v25 = vshll.u32 %v17637_v61, 16 }
 0x30e   : > { %v4782_v27 = vpop.f32.mrf.mxu2  ;;  %v7710_v54 = vrot.slane %v7708_v25, 4 }
 0x30f   : > { %v4950_v20 = vadd.f32 %v4782_v27, %v18922_v36  ;;  %v17660_v36 = vld [vmem:[%s21634_s3] sm:$0xff]  ;;  %v7702_v27 = vrot.slane %v7700_v16, 4 }
 0x310   : > { %v5313_v7 = vpop.f32.mrf.mxu3  ;;  %7999 = vmatpush.bf16.msra.mxu1 %v17660_v36 }
 0x311   : > { %v5479_v14 = vadd.f32 %v5311_v57, %v4950_v20  ;;  %v19271_v28 = vpop.f32.mrf.mxu0  ;;  %v4573_v57 = vor.u32 %v4572_v31, %v4569_v63  ;;  %v7707_v20 = vrot.slane %v7705_v53, 3  ;;  %v7703_v42 = vor.u32 %v7702_v27, %v7699_v1  ;;  %v17582_v1 = vld [vmem:[#allocation2 + $0x6c] sm:$0xff] }
 0x312   : > { %v5855_v27 = vshrl.u32 %v19263_v55, 16 }
 0x313   : > { %v6208_v34 = vadd.f32 %v6040_v49, %v5479_v14  ;;  %v19280_v62 = vor.u32 %v7710_v54, %v7707_v20  ;;  %v4574_v31 = vsel %vm541_vm0, %v4564_v8, %v4573_v57 }
 0x314   : > { %v5857_v2 = vor.u32 %v5855_v27, %v5853_v24 }
 0x315   : > { %5355 = vmatmul.bf16.gmra.mxu3 %v17581_v26  ;;  %v19278_v59 = vadd.f32 %v19269_v48, %v6208_v34  ;;  %v17551_v26 = vld [vmem:[#allocation2 + $0x70] sm:$0xff]  ;;  %v7712_v61 = vsel %vm541_vm0, %v7703_v42, %v19280_v62 }
 0x316   : > { %v4784_v21 = vpop.f32.mrf.mxu2  ;;  %8000 = vmatmul.bf16.vlgmr.msra.gmra.mxu1 %v7712_v61  ;;  %v4576_v4 = vshrl.u32 %v17551_v26, 16  ;;  %v4579_v40 = vshll.u32 %v17551_v26, 16  ;;  %v17552_v61 = vld [vmem:[#allocation2 + $0x78] sm:$0xff] }
 0x317   : > { %v16066_v11 = vmul.f32 -1.442695, %v19278_v59  ;;  %v4951_v49 = vadd.f32 %v4784_v21, %v18933_v19  ;;  %v19294_v21 = vld [vmem:[#allocation2 + $0x7c] sm:$0xff] }
 0x318   : > { %v5316_v63 = vpop.f32.mrf.mxu3  ;;  %v4578_v25 = vrot.slane %v4576_v4, 3  ;;  %v4581_v34 = vrot.slane %v4579_v40, 4  ;;  %v5859_v20 = vshll.u32 %v19294_v21, 16 }
 0x319   : > { %18214 = vpow2.f32 %v16066_v11  ;;  %v5480_v14 = vadd.f32 %v5313_v7, %v4951_v49  ;;  %v19287_v36 = vpop.f32.mrf.mxu0 }
 0x31a   : > { %v19302_v54 = vor.u32 %v4581_v34, %v4578_v25  ;;  %v5861_v11 = vrot.slane %v5859_v20, 1 }
 0x31b   : > { %v6209_v47 = vadd.f32 %v19257_v6, %v5480_v14  ;;  %4826 = vmatmul.bf16.gmra.mxu2 %v4574_v31 }
 0x31c   : > { %6089 = vmatmul.bf16.gmra.mxu0 %v5854_v9  ;;  %v4583_v55 = vsel %vm541_vm0, %v4573_v57, %v19302_v54  ;;  %v5862_v24 = vsel %vm1732_vm1, %v5857_v2, %v5861_v11  ;;  %v19318_v57 = vld [vmem:[#allocation2 + $0x84] sm:$0xff] }
 0x31d   : > { %v19292_v19 = vadd.f32 %v19269_v48, %v6209_v47 }
 0x31e   : > { %v4787_v8 = vpop.f32.mrf.mxu2 }
 0x31f   : > { %v18215_v42 = vpop.eup %18214  ;;  %v16067_v7 = vmul.f32 -1.442695, %v19292_v19 }
 0x320   : > { %v5318_v16 = vpop.f32.mrf.mxu3  ;;  %v19297_v53 = vadd.f32 1.0, %v18215_v42  ;;  %v4585_v42 = vshrl.u32 %v17552_v61, 16 }
 0x321   : > { %18216 = vpow2.f32 %v16067_v7  ;;  %v6052_v6 = vpop.f32.mrf.mxu0  ;;  %v4588_v7 = vshll.u32 %v17552_v61, 16 }
 0x322   : > { %18218 = vrcp.f32 %v19297_v53  ;;  %v4587_v20 = vrot.slane %v4585_v42, 3  ;;  %vm6601_vm3 = vweird.f32 %v19297_v53 }
 0x323   : > { %v4590_v2 = vrot.slane %v4588_v7, 4 }
 0x325   : > { %5360 = vmatmul.bf16.gmra.mxu3 %v17582_v1 }
 0x326   : > { %v4789_v49 = vpop.f32.mrf.mxu2 }
 0x327   : > { %v18217_v63 = vpop.eup %18216  ;;  %v4953_v31 = vadd.f32 %v4789_v49, %v18952_v56 }
 0x328   : > { %v5321_v26 = vpop.f32.mrf.mxu3  ;;  %v18219_v14 = vpop.eup %18218  ;;  %v19305_v9 = vadd.f32 1.0, %v18217_v63  ;;  %v5863_v63 = vshrl.u32 %v19294_v21, 16 }
 0x329   : > { %v6597_v47 = vmul.f32 %v18219_v14, %v19297_v53  ;;  %v5482_v4 = vadd.f32 %v5318_v16, %v4953_v31  ;;  %v19310_v40 = vpop.f32.mrf.mxu0  ;;  %vm6602_vm2 = vweird.f32 %v18219_v14 }
 0x32a   : > { %18220 = vrcp.f32 %v19305_v9  ;;  %vm19332_vm4 = vmor %vm6601_vm3, %vm6602_vm2  ;;  %v6620_v42 = vand.u32 2147483647, %v19305_v9  ;;  %v6622_v7 = vand.u32 2147483648, %v19305_v9  ;;  %vm6616_vm7 = vweird.f32 %v19305_v9 }
 0x32b   : > { %v6598_v8 = vsub.f32 1.0, %v6597_v47  ;;  %v6211_v56 = vadd.f32 %v19271_v28, %v5482_v4  ;;  %4831 = vmatmul.bf16.gmra.mxu2 %v4583_v55  ;;  %v17583_v28 = vld [vmem:[#allocation2 + $0x74] sm:$0xff]  ;;  %v5867_v47 = vshll.u32 %v19318_v57, 16  ;;  %v6607_v4 = vand.u32 2147483648, %v19297_v53 }
 0x32c   : > { %6094 = vmatmul.bf16.gmra.mxu0 %v5862_v24  ;;  %vm6621_vm9 = vcmp.eq.f32.partialorder %v6620_v42, 8.507059e+37 }
 0x32d   : > { %v6599_v25 = vmul.f32 %v18219_v14, %v6598_v8  ;;  %v19316_v34 = vadd.f32 %v19269_v48, %v6211_v56  ;;  %v19330_v56 = vor.u32 %v4590_v2, %v4587_v20  ;;  %v17553_v2 = vld [vmem:[#allocation2 + $0x80] sm:$0xff] }
 0x32e   : > { %v4792_v16 = vpop.f32.mrf.mxu2 }
 0x32f   : > { %v16069_v1 = vmul.f32 -1.442695, %v19316_v34  ;;  %v4954_v6 = vadd.f32 %v4792_v16, %v18967_v58  ;;  %v6600_v31 = vadd.f32 %v18219_v14, %v6599_v25  ;;  %v6605_v58 = vand.u32 2147483647, %v19297_v53 }
 0x330   : > { %v5323_v27 = vpop.f32.mrf.mxu3  ;;  %v18221_v49 = vpop.eup %18220  ;;  %v5865_v16 = vor.u32 %v5863_v63, %v5861_v11  ;;  %v5869_v53 = vrot.slane %v5867_v47, 1  ;;  %v6623_v11 = vor.u32 1.1754944e-38, %v6622_v7  ;;  %v17699_v47 = vld [vmem:[%s21634_s3 + $0x78] sm:$0xff] }
 0x331   : > { %v6612_v61 = vmul.f32 %v18221_v49, %v19305_v9  ;;  %18222 = vpow2.f32 %v16069_v1  ;;  %v19324_v55 = vpop.f32.mrf.mxu0  ;;  %v5483_v24 = vadd.f32 %v5321_v26, %v4954_v6  ;;  %v6604_v26 = vsel %vm19332_vm4, %v18219_v14, %v6600_v31  ;;  %8425 = vmatpush.bf16.msrb.mxu2 %v17699_v47 }
 0x332   : > { %vm6617_vm5 = vweird.f32 %v18221_v49  ;;  %v6608_v6 = vor.u32 1.1754944e-38, %v6607_v4  ;;  %vm6606_vm6 = vcmp.eq.f32.partialorder %v6605_v58, 8.507059e+37  ;;  %v17731_v4 = vld [vmem:[%s21634_s3 + $0xb8] sm:$0xff]  ;;  %v4592_v9 = vsel %vm541_vm0, %v19302_v54, %v19330_v56 }
 0x333   : > { %v6613_v8 = vsub.f32 1.0, %v6612_v61  ;;  %v6212_v25 = vadd.f32 %v19287_v36, %v5483_v24  ;;  %vm6618_vm8 = vmor %vm6616_vm7, %vm6617_vm5  ;;  %v5870_v58 = vsel %vm1732_vm1, %v5865_v16, %v5869_v53  ;;  %9154 = vmatpush.bf16.msrb.mxu3 %v17731_v4 }
 0x335   : > { %5365 = vmatmul.bf16.gmra.mxu3 %v17583_v28  ;;  %v6614_v1 = vmul.f32 %v18221_v49, %v6613_v8  ;;  %v19342_v27 = vadd.f32 %v19269_v48, %v6212_v25  ;;  %v6609_v28 = vsel %vm6606_vm6, %v6608_v6, %v6604_v26  ;;  %v19361_v25 = vld [vmem:[#allocation2 + $0x8c] sm:$0xff] }
 0x336   : > { %v4794_v20 = vpop.f32.mrf.mxu2  ;;  %v7316_v21 = vmul.f32 %v6609_v28, %v19278_v59  ;;  %v5871_v59 = vshrl.u32 %v19318_v57, 16  ;;  %v17795_v57 = vld [vmem:[%s21634_s3 + $0x138] sm:$0xff] }
 0x337   : > { %v18223_v61 = vpop.eup %18222  ;;  %v6615_v5 = vadd.f32 %v18221_v49, %v6614_v1  ;;  %v16070_v14 = vmul.f32 -1.442695, %v19342_v27  ;;  %10440 = vmatpush.bf16.msrb.mxu1 %v17795_v57 }
 0x338   : > { %v5326_v36 = vpop.f32.mrf.mxu3  ;;  %v19345_v63 = vadd.f32 1.0, %v18223_v61 }
 0x339   : > { %v6619_v31 = vsel %vm6618_vm8, %v18221_v49, %v6615_v5  ;;  %v6060_v24 = vpop.f32.mrf.mxu0  ;;  %v4594_v5 = vshrl.u32 %v17553_v2, 16  ;;  %v4597_v49 = vshll.u32 %v17553_v2, 16  ;;  %v17584_v2 = vld [vmem:[#allocation2 + $0x7c] sm:$0xff] }
 0x33a   : > { %v6624_v8 = vsel %vm6621_vm9, %v6623_v11, %v6619_v31  ;;  %18224 = vrcp.f32 %v19345_v63  ;;  %v6652_v24 = vand.u32 2147483648, %v19345_v63  ;;  %vm6646_vm11 = vweird.f32 %v19345_v63 }
 0x33b   : > { %v7317_v42 = vmul.f32 %v6624_v8, %v19292_v19  ;;  %18226 = vpow2.f32 %v16070_v14  ;;  %4836 = vmatmul.bf16.gmra.mxu2 %v4592_v9  ;;  %v4596_v26 = vrot.slane %v4594_v5, 3  ;;  %v4599_v16 = vrot.slane %v4597_v49, 4  ;;  %v17763_v9 = vld [vmem:[%s21634_s3 + $0xf8] sm:$0xff] }
 0x33c   : > { %6099 = vmatmul.bf16.gmra.mxu0 %v5870_v58  ;;  %v5875_v14 = vshll.u32 %v19361_v25, 16  ;;  %v5873_v58 = vor.u32 %v5871_v59, %v5869_v53  ;;  %v17554_v59 = vld [vmem:[#allocation2 + $0x88] sm:$0xff] }
 0x33d   : > { %v17927_v7 = vpack.c.bf16 %v7317_v42, %v7316_v21  ;;  %v19371_v47 = vor.u32 %v4599_v16, %v4596_v26  ;;  %9911 = vmatpush.bf16.msrb.mxu0 %v17763_v9  ;;  %v6653_v16 = vor.u32 1.1754944e-38, %v6652_v24 }
 0x33e   : > { %v4797_v54 = vpop.f32.mrf.mxu2  ;;  %v19386_v5 = vrot.slane %v5875_v14, 1 }
 0x33f   : > { %18140 = vst [vmem:[#allocation3 + $0x10] sm:$0xff] %v17927_v7   ;;  %v4956_v1 = vadd.f32 %v4797_v54, %v18979_v35  ;;  %v4601_v21 = vsel %vm541_vm0, %v19330_v56, %v19371_v47 }
 0x340   : > { %v5328_v6 = vpop.f32.mrf.mxu3  ;;  %v18225_v20 = vpop.eup %18224  ;;  %v5878_v56 = vsel %vm1732_vm1, %v5873_v58, %v19386_v5 }
 0x341   : > { %v18227_v19 = vpop.eup %18226  ;;  %v6642_v61 = vmul.f32 %v18225_v20, %v19345_v63  ;;  %v5485_v28 = vadd.f32 %v5326_v36, %v4956_v1  ;;  %v19366_v11 = vpop.f32.mrf.mxu0  ;;  %v6650_v36 = vand.u32 2147483647, %v19345_v63  ;;  %vm6647_vm10 = vweird.f32 %v18225_v20 }
 0x342   : > { %v19369_v31 = vadd.f32 1.0, %v18227_v19  ;;  %vm6648_vm12 = vmor %vm6646_vm11, %vm6647_vm10 }
 0x343   : > { %v6643_v4 = vsub.f32 1.0, %v6642_v61  ;;  %v6214_v35 = vadd.f32 %v19310_v40, %v5485_v28  ;;  %vm6651_vm13 = vcmp.eq.f32.partialorder %v6650_v36, 8.507059e+37 }
 0x344   : > { %18228 = vrcp.f32 %v19369_v31  ;;  %vm6661_vm15 = vweird.f32 %v19369_v31 }
 0x345   : > { %5370 = vmatmul.bf16.gmra.mxu3 %v17584_v2  ;;  %v6644_v8 = vmul.f32 %v18225_v20, %v6643_v4  ;;  %v19384_v40 = vadd.f32 %v19269_v48, %v6214_v35 }
 0x346   : > { %v4799_v49 = vpop.f32.mrf.mxu2  ;;  %v17638_v42 = vld [vmem:[#allocation3 + $0x10] sm:$0xff] }
 0x347   : > { %v6645_v7 = vadd.f32 %v18225_v20, %v6644_v8  ;;  %v16072_v53 = vmul.f32 -1.442695, %v19384_v40  ;;  %v4957_v54 = vadd.f32 %v4799_v49, %v18991_v38  ;;  %v7714_v1 = vshrl.u32 %v17638_v42, 16  ;;  %v19406_v49 = vld [vmem:[#allocation2 + $0x94] sm:$0xff] }
 0x348   : > { %v5331_v26 = vpop.f32.mrf.mxu3  ;;  %v7717_v2 = vshll.u32 %v17638_v42, 16  ;;  %v6667_v42 = vand.u32 2147483648, %v19369_v31 }
 0x349   : > { %v6649_v19 = vsel %vm6648_vm12, %v18225_v20, %v6645_v7  ;;  %18230 = vpow2.f32 %v16072_v53  ;;  %v5486_v61 = vadd.f32 %v5328_v6, %v4957_v54  ;;  %v19394_v28 = vpop.f32.mrf.mxu0  ;;  %v7716_v4 = vrot.slane %v7714_v1, 3 }
 0x34a   : > { %v18229_v63 = vpop.eup %18228  ;;  %v6654_v14 = vsel %vm6651_vm13, %v6653_v16, %v6649_v19  ;;  %v7719_v35 = vrot.slane %v7717_v2, 4  ;;  %v4603_v20 = vshrl.u32 %v17554_v59, 16  ;;  %v4606_v6 = vshll.u32 %v17554_v59, 16  ;;  %v17585_v59 = vld [vmem:[#allocation2 + $0x84] sm:$0xff] }
 0x34b   : > { %v7319_v38 = vmul.f32 %v6654_v14, %v19316_v34  ;;  %v6657_v9 = vmul.f32 %v18229_v63, %v19369_v31  ;;  %v6215_v57 = vadd.f32 %v19324_v55, %v5486_v61  ;;  %4841 = vmatmul.bf16.gmra.mxu2 %v4601_v21  ;;  %vm6662_vm14 = vweird.f32 %v18229_v63 }
 0x34c   : > { %v19401_v36 = vor.u32 %v7719_v35, %v7716_v4  ;;  %6104 = vmatmul.bf16.gmra.mxu0 %v5878_v56  ;;  %v6665_v53 = vand.u32 2147483647, %v19369_v31  ;;  %v4605_v1 = vrot.slane %v4603_v20, 3  ;;  %v4608_v2 = vrot.slane %v4606_v6, 4  ;;  %vm6663_vm2 = vmor %vm6661_vm15, %vm6662_vm14  ;;  %v17555_v6 = vld [vmem:[#allocation2 + $0x90] sm:$0xff] }
 0x34d   : > { %v7420_v24 = vpack.c.bf16 %v7319_v38, %v7319_v38  ;;  %v6658_v8 = vsub.f32 1.0, %v6657_v9  ;;  %v19404_v58 = vadd.f32 %v19269_v48, %v6215_v57  ;;  %v5879_v61 = vshrl.u32 %v19361_v25, 16 }
 0x34e   : > { %v4802_v34 = vpop.f32.mrf.mxu2  ;;  %v7721_v55 = vsel %vm541_vm0, %v19280_v62, %v19401_v36  ;;  %v5883_v56 = vshll.u32 %v19406_v49, 16  ;;  %v6668_v14 = vor.u32 1.1754944e-38, %v6667_v42  ;;  %vm6666_vm3 = vcmp.eq.f32.partialorder %v6665_v53, 8.507059e+37 }
 0x34f   : > { %v18231_v21 = vpop.eup %18230  ;;  %7422 = vst [vmem:[#allocation3 + $0x1c] sm:$0xf] %v7420_v24  ;;  %v6659_v7 = vmul.f32 %v18229_v63, %v6658_v8  ;;  %v16073_v54 = vmul.f32 -1.442695, %v19404_v58  ;;  %8005 = vmatmul.bf16.gmra.mxu1 %v7721_v55  ;;  %v19422_v38 = vor.u32 %v4608_v2, %v4605_v1  ;;  %v5881_v9 = vor.u32 %v5879_v61, %v19386_v5 }
 0x350   : > { %v5333_v26 = vpop.f32.mrf.mxu3  ;;  %v19415_v16 = vadd.f32 1.0, %v18231_v21  ;;  %v5885_v57 = vrot.slane %v5883_v56, 1  ;;  %v4612_v1 = vshrl.u32 %v17555_v6, 16  ;;  %v4615_v2 = vshll.u32 %v17555_v6, 16 }
 0x351   : > { %v6660_v19 = vadd.f32 %v18229_v63, %v6659_v7  ;;  %18232 = vpow2.f32 %v16073_v54  ;;  %v6067_v62 = vpop.f32.mrf.mxu0  ;;  %v4610_v53 = vsel %vm541_vm0, %v19371_v47, %v19422_v38 }
 0x352   : > { %18234 = vrcp.f32 %v19415_v16  ;;  %vm6691_vm5 = vweird.f32 %v19415_v16 }
 0x353   : > { %v6664_v4 = vsel %vm6663_vm2, %v18229_v63, %v6660_v19 }
 0x354   : > { %v6669_v31 = vsel %vm6666_vm3, %v6668_v14, %v6664_v4  ;;  %v19446_v14 = vld [vmem:[#allocation2 + $0x9c] sm:$0xff] }
 0x355   : > { %5375 = vmatmul.bf16.gmra.mxu3 %v17585_v59  ;;  %v7320_v35 = vmul.f32 %v6669_v31, %v19342_v27  ;;  %v4614_v31 = vrot.slane %v4612_v1, 3 }
 0x356   : > { %v4804_v20 = vpop.f32.mrf.mxu2  ;;  %v17639_v25 = vld [vmem:[#allocation3 + $0x18] sm:$0xff] }
 0x357   : > { %v18233_v24 = vpop.eup %18232  ;;  %v7421_v8 = vpack.c.bf16 %v7320_v35, %v7320_v35  ;;  %v4959_v42 = vadd.f32 %v4804_v20, %v19010_v60  ;;  %v7723_v21 = vshrl.u32 %v17639_v25, 16  ;;  %v7726_v7 = vshll.u32 %v17639_v25, 16 }
 0x358   : > { %v5336_v34 = vpop.f32.mrf.mxu3  ;;  %v19426_v55 = vpop.eup %18234  ;;  %v19428_v63 = vadd.f32 1.0, %v18233_v24  ;;  %v5886_v60 = vsel %vm1732_vm1, %v5881_v9, %v5885_v57  ;;  %v4617_v35 = vrot.slane %v4615_v2, 4  ;;  %v17586_v24 = vld [vmem:[#allocation2 + $0x8c] sm:$0xff] }
 0x359   : > { %7423 = vst [vmem:[#allocation3 + $0x20] sm:$0xf] %v7421_v8  ;;  %v6687_v27 = vmul.f32 %v19426_v55, %v19415_v16  ;;  %v5488_v5 = vadd.f32 %v5333_v26, %v4959_v42  ;;  %v19435_v54 = vpop.f32.mrf.mxu0  ;;  %v7725_v62 = vrot.slane %v7723_v21, 3  ;;  %v7728_v61 = vrot.slane %v7726_v7, 4 }
 0x35a   : > { %18236 = vrcp.f32 %v19428_v63  ;;  %vm6692_vm4 = vweird.f32 %v19426_v55  ;;  %v5887_v42 = vshrl.u32 %v19406_v49, 16  ;;  %vm6706_vm9 = vweird.f32 %v19428_v63 }
 0x35b   : > { %v6688_v59 = vsub.f32 1.0, %v6687_v27  ;;  %v6217_v19 = vadd.f32 %v19366_v11, %v5488_v5  ;;  %4846 = vmatmul.bf16.gmra.mxu2 %v4610_v53  ;;  %v19444_v47 = vor.u32 %v7728_v61, %v7725_v62  ;;  %v6697_v5 = vand.u32 2147483648, %v19415_v16  ;;  %vm19467_vm6 = vmor %vm6691_vm5, %vm6692_vm4 }
 0x35c   : > { %6109 = vmatmul.bf16.gmra.mxu0 %v5886_v60  ;;  %v19462_v60 = vor.u32 %v4617_v35, %v4614_v31  ;;  %v6712_v62 = vand.u32 2147483648, %v19428_v63 }
 0x35d   : > { %v6689_v26 = vmul.f32 %v19426_v55, %v6688_v59  ;;  %v19442_v56 = vadd.f32 %v19269_v48, %v6217_v19  ;;  %v7730_v20 = vsel %vm541_vm0, %v19401_v36, %v19444_v47  ;;  %v6695_v36 = vand.u32 2147483647, %v19415_v16 }
 0x35e   : > { %v4807_v4 = vpop.f32.mrf.mxu2  ;;  %v6710_v19 = vand.u32 2147483647, %v19428_v63  ;;  %v6698_v31 = vor.u32 1.1754944e-38, %v6697_v5 }
 0x35f   : > { %v16075_v9 = vmul.f32 -1.442695, %v19442_v56  ;;  %v4960_v11 = vadd.f32 %v4807_v4, %v19025_v44  ;;  %8010 = vmatmul.bf16.gmra.mxu1 %v7730_v20  ;;  %v6690_v21 = vadd.f32 %v19426_v55, %v6689_v26  ;;  %v5891_v44 = vshll.u32 %v19446_v14, 16 }
 0x360   : > { %v5338_v25 = vpop.f32.mrf.mxu3  ;;  %v18237_v6 = vpop.eup %18236  ;;  %v17640_v8 = vld [vmem:[#allocation3 + $0x20] sm:$0xff]  ;;  %vm6696_vm8 = vcmp.eq.f32.partialorder %v6695_v36, 8.507059e+37  ;;  %vm6711_vm11 = vcmp.eq.f32.partialorder %v6710_v19, 8.507059e+37  ;;  %v4619_v36 = vsel %vm541_vm0, %v19422_v38, %v19462_v60 }
 0x361   : > { %v6702_v7 = vmul.f32 %v18237_v6, %v19428_v63  ;;  %18238 = vpow2.f32 %v16075_v9  ;;  %v19457_v27 = vpop.f32.mrf.mxu0  ;;  %v5489_v53 = vadd.f32 %v5336_v34, %v4960_v11  ;;  %v7732_v49 = vshrl.u32 %v17640_v8, 16  ;;  %v17556_v11 = vld [vmem:[#allocation2 + $0x98] sm:$0xff]  ;;  %v17730_v63 = vld [vmem:[%s21634_s3 + $0xb0] sm:$0xff] }
 0x362   : > { %v7735_v2 = vshll.u32 %v17640_v8, 16  ;;  %v5889_v34 = vor.u32 %v5887_v42, %v5885_v57  ;;  %v6694_v16 = vsel %vm19467_vm6, %v19426_v55, %v6690_v21  ;;  %vm6707_vm7 = vweird.f32 %v18237_v6  ;;  %9155 = vmatpush.bf16.msrb.mxu3 %v17730_v63 }
 0x363   : > { %v6703_v1 = vsub.f32 1.0, %v6702_v7  ;;  %v6218_v61 = vadd.f32 %v19394_v28, %v5489_v53  ;;  %v19477_v4 = vrot.slane %v5891_v44, 1  ;;  %v7734_v57 = vrot.slane %v7732_v49, 3  ;;  %vm6708_vm10 = vmor %vm6706_vm9, %vm6707_vm7  ;;  %v17698_v44 = vld [vmem:[%s21634_s3 + $0x70] sm:$0xff] }
 0x364   : > { %v6699_v8 = vsel %vm6696_vm8, %v6698_v31, %v6694_v16  ;;  %v6713_v55 = vor.u32 1.1754944e-38, %v6712_v62  ;;  %v4624_v49 = vshll.u32 %v17556_v11, 16  ;;  %8426 = vmatpush.bf16.msrb.mxu2 %v17698_v44  ;;  %v19502_v62 = vld [vmem:[#allocation2 + $0xa4] sm:$0xff] }
 0x365   : > { %5380 = vmatmul.bf16.gmra.mxu3 %v17586_v24  ;;  %v6704_v26 = vmul.f32 %v18237_v6, %v6703_v1  ;;  %v19480_v35 = vadd.f32 %v19269_v48, %v6218_v61  ;;  %v7737_v24 = vrot.slane %v7735_v2, 4  ;;  %v5894_v53 = vsel %vm1732_vm1, %v5889_v34, %v19477_v4 }
 0x366   : > { %v4809_v9 = vpop.f32.mrf.mxu2  ;;  %v7322_v2 = vmul.f32 %v6699_v8, %v19384_v40  ;;  %v4626_v16 = vrot.slane %v4624_v49, 4  ;;  %v5899_v8 = vshll.u32 %v19502_v62, 16 }
 0x367   : > { %v18239_v20 = vpop.eup %18238  ;;  %v6705_v25 = vadd.f32 %v18237_v6, %v6704_v26  ;;  %v16076_v21 = vmul.f32 -1.442695, %v19480_v35  ;;  %v19500_v19 = vor.u32 %v7737_v24, %v7734_v57  ;;  %v17587_v9 = vld [vmem:[#allocation2 + $0x94] sm:$0xff] }
 0x368   : > { %v5341_v28 = vpop.f32.mrf.mxu3  ;;  %v19483_v42 = vadd.f32 1.0, %v18239_v20 }
 0x369   : > { %v6709_v7 = vsel %vm6708_vm10, %v18237_v6, %v6705_v25  ;;  %v6075_v5 = vpop.f32.mrf.mxu0  ;;  %v4621_v6 = vshrl.u32 %v17556_v11, 16  ;;  %v7739_v40 = vsel %vm541_vm0, %v19444_v47, %v19500_v19  ;;  %v5895_v11 = vshrl.u32 %v19446_v14, 16  ;;  %v17794_v14 = vld [vmem:[%s21634_s3 + $0x130] sm:$0xff] }
 0x36a   : > { %v6714_v1 = vsel %vm6711_vm11, %v6713_v55, %v6709_v7  ;;  %18240 = vrcp.f32 %v19483_v42  ;;  %v17762_v7 = vld [vmem:[%s21634_s3 + $0xf0] sm:$0xff]  ;;  %v6742_v44 = vand.u32 2147483648, %v19483_v42  ;;  %10441 = vmatpush.bf16.msrb.mxu1 %v17794_v14  ;;  %v19531_v5 = vrot.slane %v5899_v8, 1 }
 0x36b   : > { %v7323_v59 = vmul.f32 %v6714_v1, %v19404_v58  ;;  %18242 = vpow2.f32 %v16076_v21  ;;  %4851 = vmatmul.bf16.gmra.mxu2 %v4619_v36  ;;  %v4623_v34 = vrot.slane %v4621_v6, 3  ;;  %v5897_v63 = vor.u32 %v5895_v11, %v19477_v4  ;;  %9912 = vmatpush.bf16.msrb.mxu0 %v17762_v7 }
 0x36c   : > { %6114 = vmatmul.bf16.gmra.mxu0 %v5894_v53  ;;  %vm6736_vm13 = vweird.f32 %v19483_v42 }
 0x36d   : > { %v17932_v38 = vpack.c.bf16 %v7323_v59, %v7322_v2 }
 0x36e   : > { %v4812_v61 = vpop.f32.mrf.mxu2 }
 0x36f   : > { %18141 = vst [vmem:[#allocation3 + $0x28] sm:$0xff] %v17932_v38   ;;  %v4962_v26 = vadd.f32 %v4812_v61, %v19037_v39  ;;  %8015 = vmatmul.bf16.gmra.mxu1 %v7739_v40  ;;  %v19515_v39 = vor.u32 %v4626_v16, %v4623_v34  ;;  %v6743_v38 = vor.u32 1.1754944e-38, %v6742_v44  ;;  %v17557_v16 = vld [vmem:[#allocation2 + $0xa0] sm:$0xff] }
 0x370   : > { %v5343_v58 = vpop.f32.mrf.mxu3  ;;  %v18241_v31 = vpop.eup %18240 }
 0x371   : > { %v18243_v20 = vpop.eup %18242  ;;  %v6732_v25 = vmul.f32 %v18241_v31, %v19483_v42  ;;  %v5491_v57 = vadd.f32 %v5341_v28, %v4962_v26  ;;  %v19510_v24 = vpop.f32.mrf.mxu0  ;;  %v6740_v28 = vand.u32 2147483647, %v19483_v42  ;;  %vm6737_vm12 = vweird.f32 %v18241_v31 }
 0x372   : > { %v19513_v55 = vadd.f32 1.0, %v18243_v20  ;;  %v4628_v1 = vsel %vm541_vm0, %v19462_v60, %v19515_v39  ;;  %vm6738_vm14 = vmor %vm6736_vm13, %vm6737_vm12  ;;  %v5902_v60 = vsel %vm1732_vm1, %v5897_v63, %v19531_v5 }
 0x373   : > { %v6733_v21 = vsub.f32 1.0, %v6732_v25  ;;  %v6220_v47 = vadd.f32 %v19435_v54, %v5491_v57  ;;  %vm6741_vm15 = vcmp.eq.f32.partialorder %v6740_v28, 8.507059e+37  ;;  %v19551_v28 = vld [vmem:[#allocation2 + $0xac] sm:$0xff] }
 0x374   : > { %18244 = vrcp.f32 %v19513_v55  ;;  %v6757_v44 = vand.u32 2147483648, %v19513_v55  ;;  %vm6751_vm3 = vweird.f32 %v19513_v55 }
 0x375   : > { %5385 = vmatmul.bf16.gmra.mxu3 %v17587_v9  ;;  %v6734_v36 = vmul.f32 %v18241_v31, %v6733_v21  ;;  %v19529_v54 = vadd.f32 %v19269_v48, %v6220_v47 }
 0x376   : > { %v4814_v53 = vpop.f32.mrf.mxu2  ;;  %v17641_v6 = vld [vmem:[#allocation3 + $0x28] sm:$0xff] }
 0x377   : > { %v6735_v49 = vadd.f32 %v18241_v31, %v6734_v36  ;;  %v16078_v4 = vmul.f32 -1.442695, %v19529_v54  ;;  %v4963_v2 = vadd.f32 %v4814_v53, %v19049_v13  ;;  %v7741_v61 = vshrl.u32 %v17641_v6, 16 }
 0x378   : > { %v5346_v59 = vpop.f32.mrf.mxu3  ;;  %v7744_v34 = vshll.u32 %v17641_v6, 16  ;;  %v6755_v53 = vand.u32 2147483647, %v19513_v55 }
 0x379   : > { %v6739_v26 = vsel %vm6738_vm14, %v18241_v31, %v6735_v49  ;;  %18246 = vpow2.f32 %v16078_v4  ;;  %v5492_v40 = vadd.f32 %v5343_v58, %v4963_v2  ;;  %v19539_v9 = vpop.f32.mrf.mxu0  ;;  %v7743_v20 = vrot.slane %v7741_v61, 3  ;;  %v17588_v59 = vld [vmem:[#allocation2 + $0x9c] sm:$0xff] }
 0x37a   : > { %v18245_v42 = vpop.eup %18244  ;;  %v6744_v11 = vsel %vm6741_vm15, %v6743_v38, %v6739_v26  ;;  %v7746_v25 = vrot.slane %v7744_v34, 4  ;;  %v4630_v31 = vshrl.u32 %v17557_v16, 16  ;;  %v4633_v58 = vshll.u32 %v17557_v16, 16 }
 0x37b   : > { %v7325_v13 = vmul.f32 %v6744_v11, %v19442_v56  ;;  %v6747_v57 = vmul.f32 %v18245_v42, %v19513_v55  ;;  %v6221_v8 = vadd.f32 %v19457_v27, %v5492_v40  ;;  %4856 = vmatmul.bf16.gmra.mxu2 %v4628_v1  ;;  %vm6752_vm2 = vweird.f32 %v18245_v42 }
 0x37c   : > { %v19546_v21 = vor.u32 %v7746_v25, %v7743_v20  ;;  %6119 = vmatmul.bf16.gmra.mxu0 %v5902_v60  ;;  %v4632_v4 = vrot.slane %v4630_v31, 3  ;;  %v4635_v2 = vrot.slane %v4633_v58, 4  ;;  %v5903_v61 = vshrl.u32 %v19502_v62, 16  ;;  %vm6753_vm4 = vmor %vm6751_vm3, %vm6752_vm2 }
 0x37d   : > { %v7432_v47 = vpack.c.bf16 %v7325_v13, %v7325_v13  ;;  %v6748_v7 = vsub.f32 1.0, %v6747_v57  ;;  %v19549_v14 = vadd.f32 %v19269_v48, %v6221_v8  ;;  %v5907_v34 = vshll.u32 %v19551_v28, 16  ;;  %v17558_v13 = vld [vmem:[#allocation2 + $0xa8] sm:$0xff] }
 0x37e   : > { %v4817_v56 = vpop.f32.mrf.mxu2  ;;  %v7748_v27 = vsel %vm541_vm0, %v19500_v19, %v19546_v21  ;;  %v6758_v16 = vor.u32 1.1754944e-38, %v6757_v44  ;;  %vm6756_vm5 = vcmp.eq.f32.partialorder %v6755_v53, 8.507059e+37  ;;  %v19567_v60 = vor.u32 %v4635_v2, %v4632_v4 }
 0x37f   : > { %v18247_v63 = vpop.eup %18246  ;;  %7434 = vst [vmem:[#allocation3 + $0x34] sm:$0xf] %v7432_v47  ;;  %v6749_v36 = vmul.f32 %v18245_v42, %v6748_v7  ;;  %v16079_v1 = vmul.f32 -1.442695, %v19549_v14  ;;  %8020 = vmatmul.bf16.gmra.mxu1 %v7748_v27  ;;  %v5905_v11 = vor.u32 %v5903_v61, %v19531_v5  ;;  %v5909_v20 = vrot.slane %v5907_v34, 1 }
 0x380   : > { %v5348_v6 = vpop.f32.mrf.mxu3  ;;  %v19560_v49 = vadd.f32 1.0, %v18247_v63  ;;  %v4637_v56 = vsel %vm541_vm0, %v19515_v39, %v19567_v60  ;;  %v4639_v63 = vshrl.u32 %v17558_v13, 16 }
 0x381   : > { %v6750_v38 = vadd.f32 %v18245_v42, %v6749_v36  ;;  %18248 = vpow2.f32 %v16079_v1  ;;  %v6082_v19 = vpop.f32.mrf.mxu0  ;;  %v4642_v36 = vshll.u32 %v17558_v13, 16 }
 0x382   : > { %18250 = vrcp.f32 %v19560_v49  ;;  %v4641_v61 = vrot.slane %v4639_v63, 3  ;;  %vm6781_vm7 = vweird.f32 %v19560_v49 }
 0x383   : > { %v6754_v26 = vsel %vm6753_vm4, %v18245_v42, %v6750_v38  ;;  %v19591_v38 = vld [vmem:[#allocation2 + $0xb4] sm:$0xff]  ;;  %v4644_v34 = vrot.slane %v4642_v36, 4 }
 0x384   : > { %v6759_v55 = vsel %vm6756_vm5, %v6758_v16, %v6754_v26 }
 0x385   : > { %5390 = vmatmul.bf16.gmra.mxu3 %v17588_v59  ;;  %v7326_v40 = vmul.f32 %v6759_v55, %v19480_v35 }
 0x386   : > { %v4819_v25 = vpop.f32.mrf.mxu2  ;;  %v17642_v62 = vld [vmem:[#allocation3 + $0x30] sm:$0xff] }
 0x387   : > { %v18249_v57 = vpop.eup %18248  ;;  %v7433_v8 = vpack.c.bf16 %v7326_v40, %v7326_v40  ;;  %v4965_v31 = vadd.f32 %v4819_v25, %v19068_v37  ;;  %v7750_v7 = vshrl.u32 %v17642_v62, 16  ;;  %v7753_v44 = vshll.u32 %v17642_v62, 16 }
 0x388   : > { %v5351_v58 = vpop.f32.mrf.mxu3  ;;  %v19571_v47 = vpop.eup %18250  ;;  %v19573_v42 = vadd.f32 1.0, %v18249_v57  ;;  %v5910_v37 = vsel %vm1732_vm1, %v5905_v11, %v5909_v20  ;;  %v5911_v25 = vshrl.u32 %v19551_v28, 16 }
 0x389   : > { %7435 = vst [vmem:[#allocation3 + $0x38] sm:$0xf] %v7433_v8  ;;  %v6777_v35 = vmul.f32 %v19571_v47, %v19560_v49  ;;  %v5494_v5 = vadd.f32 %v5348_v6, %v4965_v31  ;;  %v19580_v27 = vpop.f32.mrf.mxu0  ;;  %v7752_v4 = vrot.slane %v7750_v7, 3  ;;  %v7755_v2 = vrot.slane %v7753_v44, 4 }
 0x38a   : > { %18252 = vrcp.f32 %v19573_v42  ;;  %vm6782_vm6 = vweird.f32 %v19571_v47  ;;  %v6787_v8 = vand.u32 2147483648, %v19560_v49  ;;  %v19607_v7 = vor.u32 %v4644_v34, %v4641_v61 }
 0x38b   : > { %v6778_v53 = vsub.f32 1.0, %v6777_v35  ;;  %v6223_v1 = vadd.f32 %v19510_v24, %v5494_v5  ;;  %4861 = vmatmul.bf16.gmra.mxu2 %v4637_v56  ;;  %v19589_v39 = vor.u32 %v7755_v2, %v7752_v4  ;;  %vm19612_vm8 = vmor %vm6781_vm7, %vm6782_vm6  ;;  %v6800_v56 = vand.u32 2147483647, %v19573_v42  ;;  %v19627_v4 = vld [vmem:[%s21633_s2] ss:$0 sm:$0xff] }
 0x38c   : > { %6124 = vmatmul.bf16.gmra.mxu0 %v5910_v37  ;;  %v6802_v37 = vand.u32 2147483648, %v19573_v42  ;;  %vm6796_vm11 = vweird.f32 %v19573_v42 }
 0x38d   : > { %v6779_v6 = vmul.f32 %v19571_v47, %v6778_v53  ;;  %v19587_v59 = vadd.f32 %v19269_v48, %v6223_v1  ;;  %v7757_v26 = vsel %vm541_vm0, %v19546_v21, %v19589_v39  ;;  %v17589_v48 = vld [vmem:[#allocation2 + $0xa4] sm:$0xff]  ;;  %v6785_v21 = vand.u32 2147483647, %v19560_v49 }
 0x38e   : > { %v4822_v19 = vpop.f32.mrf.mxu2  ;;  %v6788_v1 = vor.u32 1.1754944e-38, %v6787_v8  ;;  %vm6801_vm13 = vcmp.eq.f32.partialorder %v6800_v56, 8.507059e+37 }
 0x38f   : > { %v16081_v16 = vmul.f32 -1.442695, %v19587_v59  ;;  %v4966_v24 = vadd.f32 %v4822_v19, %v19083_v10  ;;  %8025 = vmatmul.bf16.gmra.mxu1 %v7757_v26  ;;  %v6780_v62 = vadd.f32 %v19571_v47, %v6779_v6  ;;  %v5915_v10 = vshll.u32 %v19591_v38, 16 }
 0x390   : > { %v5353_v55 = vpop.f32.mrf.mxu3  ;;  %v18253_v40 = vpop.eup %18252  ;;  %v17643_v11 = vld [vmem:[#allocation3 + $0x38] sm:$0xff]  ;;  %vm6786_vm10 = vcmp.eq.f32.partialorder %v6785_v21, 8.507059e+37 }
 0x391   : > { %v6792_v13 = vmul.f32 %v18253_v40, %v19573_v42  ;;  %18254 = vpow2.f32 %v16081_v16  ;;  %v19602_v57 = vpop.f32.mrf.mxu0  ;;  %v5495_v31 = vadd.f32 %v5351_v58, %v4966_v24  ;;  %v7759_v28 = vshrl.u32 %v17643_v11, 16  ;;  %v17729_v42 = vld [vmem:[%s21634_s3 + $0xa8] sm:$0xff] }
 0x392   : > { %v7762_v35 = vshll.u32 %v17643_v11, 16  ;;  %v5913_v58 = vor.u32 %v5911_v25, %v5909_v20  ;;  %v6784_v49 = vsel %vm19612_vm8, %v19571_v47, %v6780_v62  ;;  %vm6797_vm9 = vweird.f32 %v18253_v40  ;;  %v17559_v20 = vld [vmem:[#allocation2 + $0xb0] sm:$0xff]  ;;  %v17697_v11 = vld [vmem:[%s21634_s3 + $0x68] sm:$0xff]  ;;  %9156 = vmatpush.bf16.msrb.mxu3 %v17729_v42 }
 0x393   : > { %v6793_v44 = vsub.f32 1.0, %v6792_v13  ;;  %v6224_v63 = vadd.f32 %v19539_v9, %v5495_v31  ;;  %v19622_v53 = vrot.slane %v5915_v10, 1  ;;  %v7761_v61 = vrot.slane %v7759_v28, 3  ;;  %vm6798_vm12 = vmor %vm6796_vm11, %vm6797_vm9  ;;  %8427 = vmatpush.bf16.msrb.mxu2 %v17697_v11  ;;  %v19653_v28 = vld [vmem:[#allocation2 + $0xbc] sm:$0xff] }
 0x394   : > { %v7764_v34 = vrot.slane %v7762_v35, 4  ;;  %v6789_v16 = vsel %vm6786_vm10, %v6788_v1, %v6784_v49  ;;  %v6803_v24 = vor.u32 1.1754944e-38, %v6802_v37  ;;  %v4646_v25 = vsel %vm541_vm0, %v19567_v60, %v19607_v7 }
 0x395   : > { %5395 = vmatmul.bf16.gmra.mxu3 %v17589_v48  ;;  %v6794_v36 = vmul.f32 %v18253_v40, %v6793_v44  ;;  %v19630_v2 = vadd.f32 %v19627_v4, %v6224_v63  ;;  %v5918_v13 = vsel %vm1732_vm1, %v5913_v58, %v19622_v53  ;;  %v4651_v21 = vshll.u32 %v17559_v20, 16  ;;  %v17590_v58 = vld [vmem:[#allocation2 + $0xac] sm:$0xff] }
 0x396   : > { %v4824_v9 = vpop.f32.mrf.mxu2  ;;  %v7328_v8 = vmul.f32 %v6789_v16, %v19529_v54  ;;  %v19651_v44 = vor.u32 %v7764_v34, %v7761_v61  ;;  %v5919_v49 = vshrl.u32 %v19591_v38, 16  ;;  %v17761_v34 = vld [vmem:[%s21634_s3 + $0xe8] sm:$0xff] }
 0x397   : > { %v18255_v6 = vpop.eup %18254  ;;  %v6795_v19 = vadd.f32 %v18253_v40, %v6794_v36  ;;  %v16082_v55 = vmul.f32 -1.442695, %v19630_v2  ;;  %v4653_v56 = vrot.slane %v4651_v21, 4  ;;  %v17793_v38 = vld [vmem:[%s21634_s3 + $0x128] sm:$0xff]  ;;  %9913 = vmatpush.bf16.msrb.mxu0 %v17761_v34 }
 0x398   : > { %v5356_v47 = vpop.f32.mrf.mxu3  ;;  %v19634_v26 = vadd.f32 1.0, %v18255_v6  ;;  %v7766_v54 = vsel %vm541_vm0, %v19589_v39, %v19651_v44  ;;  %v5923_v6 = vshll.u32 %v19653_v28, 16  ;;  %10442 = vmatpush.bf16.msrb.mxu1 %v17793_v38 }
 0x399   : > { %v6799_v48 = vsel %vm6798_vm12, %v18253_v40, %v6795_v19  ;;  %v6090_v62 = vpop.f32.mrf.mxu0  ;;  %v4648_v40 = vshrl.u32 %v17559_v20, 16 }
 0x39a   : > { %v6804_v10 = vsel %vm6801_vm13, %v6803_v24, %v6799_v48  ;;  %18256 = vrcp.f32 %v19634_v26  ;;  %v6832_v16 = vand.u32 2147483648, %v19634_v26  ;;  %v5921_v24 = vor.u32 %v5919_v49, %v19622_v53 }
 0x39b   : > { %v7329_v31 = vmul.f32 %v6804_v10, %v19549_v14  ;;  %18258 = vpow2.f32 %v16082_v55  ;;  %4866 = vmatmul.bf16.gmra.mxu2 %v4646_v25  ;;  %v4650_v5 = vrot.slane %v4648_v40, 3  ;;  %v19682_v48 = vrot.slane %v5923_v6, 1 }
 0x39c   : > { %6129 = vmatmul.bf16.gmra.mxu0 %v5918_v13  ;;  %vm6826_vm15 = vweird.f32 %v19634_v26  ;;  %v6833_v40 = vor.u32 1.1754944e-38, %v6832_v16 }
 0x39d   : > { %v17937_v60 = vpack.c.bf16 %v7329_v31, %v7328_v8  ;;  %v17560_v31 = vld [vmem:[#allocation2 + $0xb8] sm:$0xff] }
 0x39e   : > { %v4827_v35 = vpop.f32.mrf.mxu2 }
 0x39f   : > { %18142 = vst [vmem:[#allocation3 + $0x40] sm:$0xff] %v17937_v60   ;;  %v4968_v37 = vadd.f32 %v4827_v35, %v19095_v46  ;;  %8030 = vmatmul.bf16.gmra.mxu1 %v7766_v54  ;;  %v19666_v46 = vor.u32 %v4653_v56, %v4650_v5 }
 0x3a0   : > { %v5358_v14 = vpop.f32.mrf.mxu3  ;;  %v18257_v63 = vpop.eup %18256 }
 0x3a1   : > { %v18259_v36 = vpop.eup %18258  ;;  %v6822_v1 = vmul.f32 %v18257_v63, %v19634_v26  ;;  %v5497_v9 = vadd.f32 %v5356_v47, %v4968_v37  ;;  %v19661_v20 = vpop.f32.mrf.mxu0  ;;  %v6830_v47 = vand.u32 2147483647, %v19634_v26  ;;  %vm6827_vm14 = vweird.f32 %v18257_v63 }
 0x3a2   : > { %v19664_v19 = vadd.f32 1.0, %v18259_v36  ;;  %v4655_v42 = vsel %vm541_vm0, %v19607_v7, %v19666_v46  ;;  %vm6828_vm2 = vmor %vm6826_vm15, %vm6827_vm14  ;;  %v5926_v7 = vsel %vm1732_vm1, %v5921_v24, %v19682_v48 }
 0x3a3   : > { %v6823_v61 = vsub.f32 1.0, %v6822_v1  ;;  %v6226_v39 = vadd.f32 %v19580_v27, %v5497_v9  ;;  %vm6831_vm3 = vcmp.eq.f32.partialorder %v6830_v47, 8.507059e+37 }
 0x3a4   : > { %18260 = vrcp.f32 %v19664_v19  ;;  %v6845_v47 = vand.u32 2147483647, %v19664_v19  ;;  %vm6841_vm5 = vweird.f32 %v19664_v19 }
 0x3a5   : > { %5400 = vmatmul.bf16.gmra.mxu3 %v17590_v58  ;;  %v6824_v55 = vmul.f32 %v18257_v63, %v6823_v61  ;;  %v19680_v27 = vadd.f32 %v19627_v4, %v6226_v39  ;;  %v19702_v61 = vld [vmem:[#allocation2 + $0xc4] sm:$0xff]  ;;  %v6847_v39 = vand.u32 2147483648, %v19664_v19 }
 0x3a6   : > { %v4829_v11 = vpop.f32.mrf.mxu2  ;;  %v17644_v25 = vld [vmem:[#allocation3 + $0x40] sm:$0xff]  ;;  %vm6846_vm7 = vcmp.eq.f32.partialorder %v6845_v47, 8.507059e+37 }
 0x3a7   : > { %v6825_v62 = vadd.f32 %v18257_v63, %v6824_v55  ;;  %v16084_v53 = vmul.f32 -1.442695, %v19680_v27  ;;  %v4969_v13 = vadd.f32 %v4829_v11, %v19107_v43  ;;  %v7768_v21 = vshrl.u32 %v17644_v25, 16 }
 0x3a8   : > { %v5361_v10 = vpop.f32.mrf.mxu3  ;;  %v7771_v8 = vshll.u32 %v17644_v25, 16  ;;  %v17591_v25 = vld [vmem:[#allocation2 + $0xb4] sm:$0xff] }
 0x3a9   : > { %v6829_v60 = vsel %vm6828_vm2, %v18257_v63, %v6825_v62  ;;  %18262 = vpow2.f32 %v16084_v53  ;;  %v5498_v35 = vadd.f32 %v5358_v14, %v4969_v13  ;;  %v19690_v5 = vpop.f32.mrf.mxu0  ;;  %v7770_v37 = vrot.slane %v7768_v21, 3 }
 0x3aa   : > { %v18261_v26 = vpop.eup %18260  ;;  %v6834_v56 = vsel %vm6831_vm3, %v6833_v40, %v6829_v60  ;;  %v7773_v54 = vrot.slane %v7771_v8, 4  ;;  %v4657_v63 = vshrl.u32 %v17560_v31, 16  ;;  %v4660_v14 = vshll.u32 %v17560_v31, 16 }
 0x3ab   : > { %v7331_v43 = vmul.f32 %v6834_v56, %v19587_v59  ;;  %v6837_v58 = vmul.f32 %v18261_v26, %v19664_v19  ;;  %v6227_v49 = vadd.f32 %v19602_v57, %v5498_v35  ;;  %4871 = vmatmul.bf16.gmra.mxu2 %v4655_v42  ;;  %vm6842_vm4 = vweird.f32 %v18261_v26 }
 0x3ac   : > { %v19697_v36 = vor.u32 %v7773_v54, %v7770_v37  ;;  %6134 = vmatmul.bf16.gmra.mxu0 %v5926_v7  ;;  %v4659_v11 = vrot.slane %v4657_v63, 3  ;;  %v4662_v42 = vrot.slane %v4660_v14, 4  ;;  %v5927_v53 = vshrl.u32 %v19653_v28, 16  ;;  %vm6843_vm6 = vmor %vm6841_vm5, %vm6842_vm4  ;;  %v17561_v7 = vld [vmem:[#allocation2 + $0xc0] sm:$0xff] }
 0x3ad   : > { %v7444_v1 = vpack.c.bf16 %v7331_v43, %v7331_v43  ;;  %v6838_v9 = vsub.f32 1.0, %v6837_v58  ;;  %v19700_v6 = vadd.f32 %v19627_v4, %v6227_v49  ;;  %v5931_v13 = vshll.u32 %v19702_v61, 16 }
 0x3ae   : > { %v4832_v59 = vpop.f32.mrf.mxu2  ;;  %v7775_v57 = vsel %vm541_vm0, %v19651_v44, %v19697_v36  ;;  %v6848_v10 = vor.u32 1.1754944e-38, %v6847_v39  ;;  %v19718_v8 = vor.u32 %v4662_v42, %v4659_v11  ;;  %v5929_v31 = vor.u32 %v5927_v53, %v19682_v48  ;;  %v19747_v11 = vld [vmem:[#allocation2 + $0xcc] sm:$0xff] }
 0x3af   : > { %v18263_v34 = vpop.eup %18262  ;;  %7446 = vst [vmem:[#allocation3 + $0x4c] sm:$0xf] %v7444_v1  ;;  %v6839_v38 = vmul.f32 %v18261_v26, %v6838_v9  ;;  %v16085_v16 = vmul.f32 -1.442695, %v19700_v6  ;;  %8035 = vmatmul.bf16.gmra.mxu1 %v7775_v57  ;;  %v19721_v60 = vrot.slane %v5931_v13, 1  ;;  %v19738_v9 = vpop.f32.mrf.mxu1  ;;  %v4666_v39 = vshrl.u32 %v17561_v7, 16 }
 0x3b0   : > { %v5363_v24 = vpop.f32.mrf.mxu3  ;;  %v19711_v55 = vadd.f32 1.0, %v18263_v34  ;;  %v4664_v14 = vsel %vm541_vm0, %v19666_v46, %v19718_v8  ;;  %v4669_v59 = vshll.u32 %v17561_v7, 16 }
 0x3b1   : > { %v6840_v62 = vadd.f32 %v18261_v26, %v6839_v38  ;;  %18264 = vpow2.f32 %v16085_v16  ;;  %v6097_v44 = vpop.f32.mrf.mxu0  ;;  %v4668_v42 = vrot.slane %v4666_v39, 3 }
 0x3b2   : > { %18266 = vrcp.f32 %v19711_v55  ;;  %v6875_v7 = vand.u32 2147483647, %v19711_v55  ;;  %vm6871_vm9 = vweird.f32 %v19711_v55 }
 0x3b3   : > { %v6844_v40 = vsel %vm6843_vm6, %v18261_v26, %v6840_v62 }
 0x3b4   : > { %v6849_v19 = vsel %vm6846_vm7, %v6848_v10, %v6844_v40  ;;  %v17592_v40 = vld [vmem:[#allocation2 + $0xbc] sm:$0xff]  ;;  %vm6876_vm12 = vcmp.eq.f32.partialorder %v6875_v7, 8.507059e+37 }
 0x3b5   : > { %5405 = vmatmul.bf16.gmra.mxu3 %v17591_v25  ;;  %v7332_v21 = vmul.f32 %v6849_v19, %v19630_v2  ;;  %v4671_v25 = vrot.slane %v4669_v59, 4 }
 0x3b6   : > { %v4834_v28 = vpop.f32.mrf.mxu2  ;;  %v17645_v35 = vld [vmem:[#allocation3 + $0x48] sm:$0xff] }
 0x3b7   : > { %v18265_v56 = vpop.eup %18264  ;;  %v7445_v37 = vpack.c.bf16 %v7332_v21, %v7332_v21  ;;  %v4971_v54 = vadd.f32 %v4834_v28, %v19127_v30  ;;  %v7777_v49 = vshrl.u32 %v17645_v35, 16  ;;  %v7780_v2 = vshll.u32 %v17645_v35, 16 }
 0x3b8   : > { %v5366_v43 = vpop.f32.mrf.mxu3  ;;  %v19724_v26 = vpop.eup %18266  ;;  %v19726_v58 = vadd.f32 1.0, %v18265_v56  ;;  %v5934_v30 = vsel %vm1732_vm1, %v5929_v31, %v19721_v60  ;;  %v5935_v21 = vshrl.u32 %v19702_v61, 16  ;;  %v6877_v56 = vand.u32 2147483648, %v19711_v55 }
 0x3b9   : > { %7447 = vst [vmem:[#allocation3 + $0x50] sm:$0xf] %v7445_v37  ;;  %v6867_v48 = vmul.f32 %v19724_v26, %v19711_v55  ;;  %v5500_v63 = vadd.f32 %v5363_v24, %v4971_v54  ;;  %v19733_v1 = vpop.f32.mrf.mxu0  ;;  %v7779_v38 = vrot.slane %v7777_v49, 3  ;;  %v7782_v47 = vrot.slane %v7780_v2, 4 }
 0x3ba   : > { %18268 = vrcp.f32 %v19726_v58  ;;  %vm6872_vm8 = vweird.f32 %v19724_v26  ;;  %v5937_v55 = vor.u32 %v5935_v21, %v19721_v60  ;;  %vm6886_vm13 = vweird.f32 %v19726_v58 }
 0x3bb   : > { %v6868_v57 = vsub.f32 1.0, %v6867_v48  ;;  %v6229_v34 = vadd.f32 %v19661_v20, %v5500_v63  ;;  %4876 = vmatmul.bf16.gmra.mxu2 %v4664_v14  ;;  %v19745_v24 = vor.u32 %v7782_v47, %v7779_v38  ;;  %vm19768_vm10 = vmor %vm6871_vm9, %vm6872_vm8  ;;  %v6890_v48 = vand.u32 2147483647, %v19726_v58  ;;  %v19774_v14 = vpop.f32.mrf.mxu1  ;;  %v17562_v38 = vld [vmem:[#allocation2 + $0xc8] sm:$0xff] }
 0x3bc   : > { %6139 = vmatmul.bf16.gmra.mxu0 %v5934_v30  ;;  %v6892_v63 = vand.u32 2147483648, %v19726_v58 }
 0x3bd   : > { %v6869_v46 = vmul.f32 %v19724_v26, %v6868_v57  ;;  %v19743_v16 = vadd.f32 %v19627_v4, %v6229_v34  ;;  %v7784_v20 = vsel %vm541_vm0, %v19697_v36, %v19745_v24  ;;  %v5939_v36 = vshll.u32 %v19747_v11, 16 }
 0x3be   : > { %v4837_v44 = vpop.f32.mrf.mxu2  ;;  %v6878_v57 = vor.u32 1.1754944e-38, %v6877_v56  ;;  %vm6891_vm15 = vcmp.eq.f32.partialorder %v6890_v48, 8.507059e+37 }
 0x3bf   : > { %v16087_v62 = vmul.f32 -1.442695, %v19743_v16  ;;  %v4972_v10 = vadd.f32 %v4837_v44, %v19144_v51  ;;  %8040 = vmatmul.bf16.gmra.mxu1 %v7784_v20  ;;  %v6870_v31 = vadd.f32 %v19724_v26, %v6869_v46  ;;  %v19763_v51 = vor.u32 %v4671_v25, %v4668_v42 }
 0x3c0   : > { %v5368_v53 = vpop.f32.mrf.mxu3  ;;  %v18269_v13 = vpop.eup %18268  ;;  %v17646_v19 = vld [vmem:[#allocation3 + $0x50] sm:$0xff]  ;;  %v19781_v59 = vrot.slane %v5939_v36, 1 }
 0x3c1   : > { %v6882_v28 = vmul.f32 %v18269_v13, %v19726_v58  ;;  %18270 = vpow2.f32 %v16087_v62  ;;  %v19758_v35 = vpop.f32.mrf.mxu0  ;;  %v5501_v37 = vadd.f32 %v5366_v43, %v4972_v10  ;;  %v7786_v61 = vshrl.u32 %v17646_v19, 16  ;;  %v17696_v10 = vld [vmem:[%s21634_s3 + $0x60] sm:$0xff] }
 0x3c2   : > { %v7789_v49 = vshll.u32 %v17646_v19, 16  ;;  %v6874_v30 = vsel %vm19768_vm10, %v19724_v26, %v6870_v31  ;;  %vm6887_vm11 = vweird.f32 %v18269_v13  ;;  %v6893_v26 = vor.u32 1.1754944e-38, %v6892_v63  ;;  %v17728_v58 = vld [vmem:[%s21634_s3 + $0xa0] sm:$0xff]  ;;  %8428 = vmatpush.bf16.msrb.mxu2 %v17696_v10 }
 0x3c3   : > { %v6883_v54 = vsub.f32 1.0, %v6882_v28  ;;  %v6230_v43 = vadd.f32 %v19690_v5, %v5501_v37  ;;  %v7788_v42 = vrot.slane %v7786_v61, 3  ;;  %v6879_v62 = vsel %vm6876_vm12, %v6878_v57, %v6874_v30  ;;  %vm6888_vm14 = vmor %vm6886_vm13, %vm6887_vm11  ;;  %9157 = vmatpush.bf16.msrb.mxu3 %v17728_v58 }
 0x3c4   : > { %v7791_v25 = vrot.slane %v7789_v49, 4  ;;  %v5942_v21 = vsel %vm1732_vm1, %v5937_v55, %v19781_v59  ;;  %v4678_v28 = vshll.u32 %v17562_v38, 16  ;;  %v7334_v36 = vmul.f32 %v6879_v62, %v19680_v27 }
 0x3c5   : > { %5410 = vmatmul.bf16.gmra.mxu3 %v17592_v40  ;;  %v6884_v39 = vmul.f32 %v18269_v13, %v6883_v54  ;;  %v19784_v34 = vadd.f32 %v19627_v4, %v6230_v43  ;;  %v4673_v40 = vsel %vm541_vm0, %v19718_v8, %v19763_v51  ;;  %v19806_v54 = vld [vmem:[#allocation2 + $0xd4] sm:$0xff]  ;;  %v17593_v43 = vld [vmem:[#allocation2 + $0xc4] sm:$0xff]  ;;  %v5943_v55 = vshrl.u32 %v19747_v11, 16 }
 0x3c6   : > { %v4839_v5 = vpop.f32.mrf.mxu2  ;;  %v19804_v56 = vor.u32 %v7791_v25, %v7788_v42  ;;  %v4680_v49 = vrot.slane %v4678_v28, 4  ;;  %v4218_v10 = vadd.f32 %v19129_v50, %v19166_v23 }
 0x3c7   : > { %v18271_v47 = vpop.eup %18270  ;;  %v6885_v46 = vadd.f32 %v18269_v13, %v6884_v39  ;;  %v16088_v20 = vmul.f32 -1.442695, %v19784_v34  ;;  %v5945_v25 = vor.u32 %v5943_v55, %v19781_v59 }
 0x3c8   : > { %v5371_v60 = vpop.f32.mrf.mxu3  ;;  %v19787_v44 = vadd.f32 1.0, %v18271_v47  ;;  %v7793_v27 = vsel %vm541_vm0, %v19745_v24, %v19804_v56 }
 0x3c9   : > { %v6889_v53 = vsel %vm6888_vm14, %v18269_v13, %v6885_v46  ;;  %v6105_v19 = vpop.f32.mrf.mxu0  ;;  %v4675_v13 = vshrl.u32 %v17562_v38, 16  ;;  %v5947_v38 = vshll.u32 %v19806_v54, 16 }
 0x3ca   : > { %v6894_v31 = vsel %vm6891_vm15, %v6893_v26, %v6889_v53  ;;  %18272 = vrcp.f32 %v19787_v44  ;;  %v6920_v42 = vand.u32 2147483647, %v19787_v44  ;;  %vm6916_vm3 = vweird.f32 %v19787_v44 }
 0x3cb   : > { %v7335_v7 = vmul.f32 %v6894_v31, %v19700_v6  ;;  %18274 = vpow2.f32 %v16088_v20  ;;  %4881 = vmatmul.bf16.gmra.mxu2 %v4673_v40  ;;  %v4677_v61 = vrot.slane %v4675_v13, 3  ;;  %v17792_v20 = vld [vmem:[%s21634_s3 + $0x120] sm:$0xff]  ;;  %v19834_v53 = vrot.slane %v5947_v38, 1  ;;  %v5623_v40 = vld [vmem:[#allocation2 + $0xdc] sm:$0x1] }
 0x3cc   : > { %v8006_v8 = vpop.f32.mrf.mxu1  ;;  %6144 = vmatmul.bf16.gmra.mxu0 %v5942_v21  ;;  %vm19842_vm4 = vcmp.eq.f32.partialorder %v6920_v42, 8.507059e+37  ;;  %10443 = vmatpush.bf16.msrb.mxu1 %v17792_v20 }
 0x3cd   : > { %v17942_v37 = vpack.c.bf16 %v7335_v7, %v7334_v36  ;;  %v19819_v5 = vor.u32 %v4680_v49, %v4677_v61  ;;  %v17563_v36 = vld [vmem:[#allocation2 + $0xd0] sm:$0xff]  ;;  %v5737_v61 = vunpack.c.l.b16 %v5623_v40 }
 0x3ce   : > { %v4842_v2 = vpop.f32.mrf.mxu2  ;;  %v4684_v38 = vshrl.u32 %v17563_v36, 16 }
 0x3cf   : > { %18143 = vst [vmem:[#allocation3 + $0x58] sm:$0xff] %v17942_v37   ;;  %v4974_v63 = vadd.f32 %v4842_v2, %v19156_v45  ;;  %8045 = vmatmul.bf16.gmra.mxu1 %v7793_v27  ;;  %v6922_v45 = vand.u32 2147483648, %v19787_v44  ;;  %v4682_v59 = vsel %vm541_vm0, %v19763_v51, %v19819_v5  ;;  %v5950_v37 = vsel %vm1732_vm1, %v5945_v25, %v19834_v53 }
 0x3d0   : > { %v5373_v6 = vpop.f32.mrf.mxu3  ;;  %v18273_v48 = vpop.eup %18272  ;;  %v5762_v25 = vpack.c.b16 %v5737_v61, %v5737_v61 }
 0x3d1   : > { %v18275_v30 = vpop.eup %18274  ;;  %v6912_v39 = vmul.f32 %v18273_v48, %v19787_v44  ;;  %v19814_v57 = vpop.f32.mrf.mxu0  ;;  %v5503_v46 = vadd.f32 %v5371_v60, %v4974_v63  ;;  %vm6917_vm2 = vweird.f32 %v18273_v48  ;;  %v17760_v60 = vld [vmem:[%s21634_s3 + $0xe0] sm:$0xff]  ;;  %v6923_v23 = vor.u32 1.1754944e-38, %v6922_v45 }
 0x3d2   : > { %v19817_v47 = vadd.f32 1.0, %v18275_v30  ;;  %9914 = vmatpush.bf16.msrb.mxu0 %v17760_v60  ;;  %vm6918_vm5 = vmor %vm6916_vm3, %vm6917_vm2 }
 0x3d3   : > { %v6913_v24 = vsub.f32 1.0, %v6912_v39  ;;  %v6232_v26 = vadd.f32 %v19733_v1, %v5503_v46  ;;  %v4687_v46 = vshll.u32 %v17563_v36, 16  ;;  %v17726_v36 = vld [vmem:[%s21634_s3 + $0x90] sm:$0xff] }
 0x3d4   : > { %18276 = vrcp.f32 %v19817_v47  ;;  %v19824_v11 = vpop.f32.mrf.mxu1  ;;  %vm6931_vm7 = vweird.f32 %v19817_v47 }
 0x3d5   : > { %5415 = vmatmul.bf16.gmra.mxu3 %v17593_v43  ;;  %v6914_v62 = vmul.f32 %v18273_v48, %v6913_v24  ;;  %v19847_v21 = vadd.f32 %v19627_v4, %v6232_v26  ;;  %v4689_v19 = vrot.slane %v4687_v46, 4  ;;  %v17725_v46 = vld [vmem:[%s21634_s3 + $0x88] sm:$0xff] }
 0x3d6   : > { %v17647_v58 = vld [vmem:[#allocation3 + $0x58] sm:$0xff]  ;;  %v4844_v31 = vpop.f32.mrf.mxu2 }
 0x3d7   : > { %v6915_v1 = vadd.f32 %v18273_v48, %v6914_v62  ;;  %v4975_v51 = vadd.f32 %v4844_v31, %v4218_v10  ;;  %v7795_v13 = vshrl.u32 %v17647_v58, 16  ;;  %v7798_v28 = vshll.u32 %v17647_v58, 16  ;;  %v17594_v31 = vld [vmem:[#allocation2 + $0xcc] sm:$0xff] }
 0x3d8   : > { %v5376_v50 = vpop.f32.mrf.mxu3  ;;  %v16090_v44 = vmul.f32 -1.442695, %v19847_v21  ;;  %v6937_v62 = vand.u32 2147483648, %v19817_v47  ;;  %v6935_v10 = vand.u32 2147483647, %v19817_v47 }
 0x3d9   : > { %v6919_v7 = vsel %vm6918_vm5, %v18273_v48, %v6915_v1  ;;  %v19851_v8 = vpop.f32.mrf.mxu0  ;;  %v5504_v27 = vadd.f32 %v5373_v6, %v4975_v51  ;;  %v7797_v63 = vrot.slane %v7795_v13, 3  ;;  %v7800_v43 = vrot.slane %v7798_v28, 4  ;;  %v17695_v6 = vld [vmem:[%s21634_s3 + $0x58] sm:$0xff]  ;;  %v17694_v28 = vld [vmem:[%s21634_s3 + $0x50] sm:$0xff] }
 0x3da   : > { %v18277_v49 = vpop.eup %18276  ;;  %v6924_v2 = vsel %vm19842_vm4, %v6923_v23, %v6919_v7  ;;  %18278 = vpow2.f32 %v16090_v44  ;;  %8429 = vmatpush.bf16.msrb.mxu2 %v17695_v6  ;;  %v4686_v1 = vrot.slane %v4684_v38, 3  ;;  %v5951_v51 = vshrl.u32 %v19806_v54, 16  ;;  %v17758_v7 = vld [vmem:[%s21634_s3 + $0xd0] sm:$0xff]  ;;  %v4337_v54 = vld [vmem:[#allocation2 + $0xd8] sm:$0xf] }
 0x3db   : > { %v7337_v55 = vmul.f32 %v6924_v2, %v19743_v16  ;;  %v6927_v30 = vmul.f32 %v18277_v49, %v19817_v47  ;;  %v6233_v48 = vadd.f32 %v19758_v35, %v5504_v27  ;;  %4886 = vmatmul.bf16.gmra.mxu2 %v4682_v59  ;;  %v19860_v39 = vor.u32 %v7800_v43, %v7797_v63  ;;  %v17727_v16 = vld [vmem:[%s21634_s3 + $0x98] sm:$0xff]  ;;  %v16500_v27 = vld [vmem:[#allocation3 + $0xc] sm:$0x8]  ;;  %v17732_v63 = vld [vmem:[#allocation3 + $0xc] sm:$0xf0] }
 0x3dc   : > { %6149 = vmatmul.bf16.gmra.mxu0 %v5950_v37  ;;  %v19862_v45 = vpop.f32.mrf.mxu1  ;;  %v17759_v35 = vld [vmem:[%s21634_s3 + $0xd8] sm:$0xff]  ;;  %vm6932_vm6 = vweird.f32 %v18277_v49  ;;  %9158 = vmatpush.bf16.msrb.mxu3 %v17727_v16  ;;  %v5955_v13 = vshll.u32 %v5762_v25, 16  ;;  %v6938_v44 = vor.u32 1.1754944e-38, %v6937_v62  ;;  %vm6936_vm9 = vcmp.eq.f32.partialorder %v6935_v10, 8.507059e+37  ;;  %v19916_v25 = vld [vmem:[#allocation3 + $0x4] sm:$0xff] }
 0x3dd   : > { %v7456_v24 = vpack.c.bf16 %v7337_v55, %v7337_v55  ;;  %v6928_v42 = vsub.f32 1.0, %v6927_v30  ;;  %v19875_v26 = vadd.f32 %v19627_v4, %v6233_v48  ;;  %v7802_v60 = vsel %vm541_vm0, %v19804_v56, %v19860_v39  ;;  %9915 = vmatpush.bf16.msrb.mxu0 %v17759_v35  ;;  %vm6933_vm8 = vmor %vm6931_vm7, %vm6932_vm6  ;;  %v17733_v10 = vld [vmem:[#allocation3 + $0x14] sm:$0xff] }
 0x3de   : > { %v4847_v59 = vpop.f32.mrf.mxu2  ;;  %8430 = vmatpush.bf16.msrb.mxu2 %v17694_v28  ;;  %v19899_v2 = vor.u32 %v4689_v19, %v4686_v1  ;;  %v4451_v30 = vunpack.c.l.b16 %v4337_v54  ;;  %v5953_v48 = vor.u32 %v5951_v51, %v19834_v53  ;;  %v5957_v38 = vrot.slane %v5955_v13, 1 }
 0x3df   : > { %7458 = vst [vmem:[#allocation3 + $0x64] sm:$0xf] %v7456_v24  ;;  %v6929_v20 = vmul.f32 %v18277_v49, %v6928_v42  ;;  %v16091_v40 = vmul.f32 -1.442695, %v19875_v26  ;;  %8050 = vmatmul.bf16.gmra.mxu1 %v7802_v60  ;;  %v17757_v24 = vld [vmem:[%s21634_s3 + $0xc8] sm:$0xff]  ;;  %v16501_v59 = vor.u32 %v17732_v63, %v16500_v27 }
 0x3e0   : > { %v19881_v58 = vpop.f32.mrf.mxu3  ;;  %v18279_v50 = vpop.eup %18278  ;;  %9159 = vmatpush.bf16.msrb.mxu3 %v17726_v36  ;;  %v4476_v1 = vpack.c.b16 %v4451_v30, %v4451_v30  ;;  %v5958_v19 = vsel %vm1732_vm1, %v5953_v48, %v5957_v38  ;;  %v8889_v36 = vshll.u32 %v19916_v25, 16 }
 0x3e1   : > { %v6930_v23 = vadd.f32 %v18277_v49, %v6929_v20  ;;  %v6112_v56 = vpop.f32.mrf.mxu0  ;;  %v19896_v47 = vadd.f32 1.0, %v18279_v50  ;;  %18280 = vpow2.f32 %v16091_v40  ;;  %9916 = vmatpush.bf16.msrb.mxu0 %v17758_v7  ;;  %v17724_v50 = vld [vmem:[%s21634_s3 + $0x80] sm:$0xff]  ;;  %v9616_v54 = vshrl.u32 %v16501_v59, 16 }
 0x3e2   : > { %v4693_v27 = vshrl.u32 %v4476_v1, 16  ;;  %v4696_v63 = vshll.u32 %v4476_v1, 16 }
 0x3e3   : > { %v6934_v37 = vsel %vm6933_vm8, %v18277_v49, %v6930_v23  ;;  %18282 = vrcp.f32 %v19896_v47  ;;  %v17693_v49 = vld [vmem:[%s21634_s3 + $0x48] sm:$0xff]  ;;  %v17756_v23 = vld [vmem:[%s21634_s3 + $0xc0] sm:$0xff]  ;;  %vm6961_vm11 = vweird.f32 %v19896_v47 }
 0x3e4   : > { %v6939_v61 = vsel %vm6936_vm9, %v6938_v44, %v6934_v37  ;;  %v8013_v55 = vpop.f32.mrf.mxu1  ;;  %8431 = vmatpush.bf16.msrb.mxu2 %v17693_v49  ;;  %9160 = vmatpush.bf16.msrb.mxu3 %v17725_v46  ;;  %v9624_v37 = vshrl.u32 %v17733_v10, 16  ;;  %v8887_v49 = vshrl.u32 %v19916_v25, 16  ;;  %v19955_v46 = vrot.slane %v8889_v36, 1 }
 0x3e5   : > { %5420 = vmatmul.bf16.gmra.mxu3 %v17594_v31  ;;  %v7338_v43 = vmul.f32 %v6939_v61, %v19784_v34  ;;  %v4220_v34 = vadd.f32 %v19148_v3, %v19178_v22  ;;  %9917 = vmatpush.bf16.msrb.mxu0 %v17757_v24  ;;  %v4691_v3 = vsel %vm541_vm0, %v19819_v5, %v19899_v2  ;;  %v17692_v31 = vld [vmem:[%s21634_s3 + $0x40] sm:$0xff]  ;;  %v9627_v24 = vshll.u32 %v17733_v10, 16 }
 0x3e6   : > { %v17648_v42 = vld [vmem:[#allocation3 + $0x60] sm:$0xff]  ;;  %v4849_v16 = vpop.f32.mrf.mxu2 }
 0x3e7   : > { %v7457_v6 = vpack.c.bf16 %v7338_v43, %v7338_v43  ;;  %v18281_v35 = vpop.eup %18280  ;;  %v4977_v62 = vadd.f32 %v4849_v16, %v4220_v34  ;;  %v7804_v60 = vshrl.u32 %v17648_v42, 16  ;;  %v7807_v20 = vshll.u32 %v17648_v42, 16 }
 0x3e8   : > { %v19914_v53 = vpop.f32.mrf.mxu3  ;;  %v19918_v40 = vadd.f32 1.0, %v18281_v35  ;;  %8432 = vmatpush.bf16.msrb.mxu2 %v17692_v31  ;;  %9161 = vmatpush.bf16.msrb.mxu3 %v17724_v50  ;;  %v9619_v43 = vshll.u32 %v16501_v59, 16  ;;  %v9618_v35 = vrot.slane %v9616_v54, 3 }
 0x3e9   : > { %7459 = vst [vmem:[#allocation3 + $0x68] sm:$0xf] %v7457_v6  ;;  %v19923_v22 = vpop.f32.mrf.mxu0  ;;  %v19935_v56 = vpop.eup %18282  ;;  %v5506_v5 = vadd.f32 %v19881_v58, %v4977_v62  ;;  %v7806_v51 = vrot.slane %v7804_v60, 3  ;;  %v7809_v13 = vrot.slane %v7807_v20, 4  ;;  %9918 = vmatpush.bf16.msrb.mxu0 %v17756_v23  ;;  %v17595_v6 = vld [vmem:[#allocation2 + $0xd4] sm:$0xff]  ;;  %v9626_v62 = vrot.slane %v9624_v37, 3 }
 0x3ea   : > { %v6957_v28 = vmul.f32 %v19935_v56, %v19896_v47  ;;  %18284 = vrcp.f32 %v19918_v40  ;;  %vm6962_vm10 = vweird.f32 %v19935_v56  ;;  %v4698_v20 = vrot.slane %v4696_v63, 4 }
 0x3eb   : > { %v6235_v7 = vadd.f32 %v19814_v57, %v5506_v5  ;;  %4891 = vmatmul.bf16.gmra.mxu2 %v4691_v3  ;;  %v19943_v44 = vor.u32 %v7809_v13, %v7806_v51  ;;  %v9621_v3 = vrot.slane %v9619_v43, 4  ;;  %v9629_v23 = vrot.slane %v9627_v24, 4  ;;  %vm19971_vm12 = vmor %vm6961_vm11, %vm6962_vm10 }
 0x3ec   : > { %6154 = vmatmul.bf16.gmra.mxu0 %v5958_v19  ;;  %v6958_v58 = vsub.f32 1.0, %v6957_v28  ;;  %v19945_v61 = vpop.f32.mrf.mxu1  ;;  %v6967_v19 = vand.u32 2147483648, %v19896_v47  ;;  %v6965_v5 = vand.u32 2147483647, %v19896_v47  ;;  %v6982_v36 = vand.u32 2147483648, %v19918_v40 }
 0x3ed   : > { %v19948_v55 = vadd.f32 %v19627_v4, %v6235_v7  ;;  %v7811_v57 = vsel %vm541_vm0, %v19860_v39, %v19943_v44  ;;  %v4695_v39 = vrot.slane %v4693_v27, 3  ;;  %v9622_v37 = vor.u32 %v9621_v3, %v9618_v35  ;;  %v19985_v27 = vld [vmem:[#allocation3 + $0xc] sm:$0xff] }
 0x3ee   : > { %v6959_v30 = vmul.f32 %v19935_v56, %v6958_v58  ;;  %v4852_v48 = vpop.f32.mrf.mxu2  ;;  %v6968_v63 = vor.u32 1.1754944e-38, %v6967_v19  ;;  %vm6966_vm14 = vcmp.eq.f32.partialorder %v6965_v5, 8.507059e+37  ;;  %vm6976_vm15 = vweird.f32 %v19918_v40 }
 0x3ef   : > { %v16093_v34 = vmul.f32 -1.442695, %v19948_v55  ;;  %v4978_v42 = vadd.f32 %v4852_v48, %v19186_v12  ;;  %8055 = vmatmul.bf16.gmra.mxu1 %v7811_v57  ;;  %v4699_v54 = vor.u32 %v4698_v20, %v4695_v39  ;;  %v17734_v39 = vld [vmem:[#allocation3 + $0x1c] sm:$0xff]  ;;  %v8894_v20 = vshll.u32 %v19985_v27, 16 }
 0x3f0   : > { %v5383_v38 = vpop.f32.mrf.mxu3  ;;  %v17649_v16 = vld [vmem:[#allocation3 + $0x68] sm:$0xff]  ;;  %v18285_v60 = vpop.eup %18284  ;;  %v6960_v1 = vadd.f32 %v19935_v56, %v6959_v30  ;;  %v9636_v19 = vshll.u32 %v17734_v39, 16 }
 0x3f1   : > { %v19960_v59 = vpop.f32.mrf.mxu0  ;;  %v6972_v10 = vmul.f32 %v18285_v60, %v19918_v40  ;;  %18286 = vpow2.f32 %v16093_v34  ;;  %v5507_v12 = vadd.f32 %v19914_v53, %v4978_v42  ;;  %v7813_v31 = vshrl.u32 %v17649_v16, 16 }
 0x3f2   : > { %v7816_v50 = vshll.u32 %v17649_v16, 16  ;;  %v6980_v53 = vand.u32 2147483647, %v19918_v40  ;;  %v6964_v47 = vsel %vm19971_vm12, %v19935_v56, %v6960_v1  ;;  %vm6977_vm13 = vweird.f32 %v18285_v60 }
 0x3f3   : > { %v6973_v51 = vsub.f32 1.0, %v6972_v10  ;;  %v6236_v13 = vadd.f32 %v19851_v8, %v5507_v12  ;;  %v7815_v30 = vrot.slane %v7813_v31, 3  ;;  %v19987_v38 = vor.u32 %v9629_v23, %v9626_v62  ;;  %vm6978_vm2 = vmor %vm6976_vm15, %vm6977_vm13 }
 0x3f4   : > { %v19977_v7 = vpop.f32.mrf.mxu1  ;;  %v7818_v48 = vrot.slane %v7816_v50, 4  ;;  %v6969_v42 = vsel %vm6966_vm14, %v6968_v63, %v6964_v47  ;;  %v4700_v16 = vsel %vm541_vm0, %v19899_v2, %v4699_v54  ;;  %vm6981_vm3 = vcmp.eq.f32.partialorder %v6980_v53, 8.507059e+37 }
 0x3f5   : > { %5425 = vmatmul.bf16.gmra.mxu3 %v17595_v6  ;;  %v6974_v8 = vmul.f32 %v18285_v60, %v6973_v51  ;;  %v19983_v58 = vadd.f32 %v19627_v4, %v6236_v13  ;;  %v6983_v4 = vor.u32 1.1754944e-38, %v6982_v36  ;;  %v9631_v1 = vsel %vm541_vm0, %v9622_v37, %v19987_v38 }
 0x3f6   : > { %v4854_v43 = vpop.f32.mrf.mxu2  ;;  %v19998_v40 = vor.u32 %v7818_v48, %v7815_v30  ;;  %v7340_v10 = vmul.f32 %v6969_v42, %v19847_v21  ;;  %v8892_v51 = vor.u32 %v19955_v46, %v8887_v49  ;;  %v20010_v13 = vrot.slane %v8894_v20, 1 }
 0x3f7   : > { %v18287_v24 = vpop.eup %18286  ;;  %v6975_v34 = vadd.f32 %v18285_v60, %v6974_v8  ;;  %v16094_v56 = vmul.f32 -1.442695, %v19983_v58  ;;  %v9638_v37 = vrot.slane %v9636_v19, 4  ;;  %v4224_v8 = vadd.f32 %v19180_v15, %v19199_v32 }
 0x3f8   : > { %v5386_v57 = vpop.f32.mrf.mxu3  ;;  %v19992_v6 = vadd.f32 1.0, %v18287_v24  ;;  %v7820_v23 = vsel %vm541_vm0, %v19943_v44, %v19998_v40  ;;  %v8897_v25 = vsel %vm1732_vm1, %v8892_v51, %v20010_v13 }
 0x3f9   : > { %v6120_v35 = vpop.f32.mrf.mxu0  ;;  %v6979_v62 = vsel %vm6978_vm2, %v18285_v60, %v6975_v34  ;;  %18288 = vpow2.f32 %v16094_v56  ;;  %v9633_v60 = vshrl.u32 %v17734_v39, 16  ;;  %v8898_v56 = vshrl.u32 %v19985_v27, 16  ;;  %v20044_v39 = vld [vmem:[#allocation3 + $0x14] sm:$0xff] }
 0x3fa   : > { %v6984_v3 = vsel %vm6981_vm3, %v6983_v4, %v6979_v62  ;;  %18290 = vrcp.f32 %v19992_v6  ;;  %v7012_v63 = vand.u32 2147483648, %v19992_v6  ;;  %v7010_v48 = vand.u32 2147483647, %v19992_v6  ;;  %v17668_v35 = vld [vmem:[#allocation3 + $0x4] sm:$0xff] }
 0x3fb   : > { %v7341_v12 = vmul.f32 %v6984_v3, %v19875_v26  ;;  %4896 = vmatmul.bf16.gmra.mxu2 %v4700_v16  ;;  %v9635_v54 = vrot.slane %v9633_v60, 3  ;;  %vm7006_vm5 = vweird.f32 %v19992_v6 }
 0x3fc   : > { %9919 = vmatmul.bf16.vlgmr.msrb.gmra.mxu0 %v9631_v1  ;;  %v8021_v2 = vpop.f32.mrf.mxu1  ;;  %v7013_v20 = vor.u32 1.1754944e-38, %v7012_v63  ;;  %vm7011_vm7 = vcmp.eq.f32.partialorder %v7010_v48, 8.507059e+37 }
 0x3fd   : > { %v17947_v31 = vpack.c.bf16 %v7341_v12, %v7340_v10 }
 0x3fe   : > { %v4857_v50 = vpop.f32.mrf.mxu2 }
 0x3ff   : > { %v18289_v21 = vpop.eup %18288  ;;  %18144 = vst [vmem:[#allocation3 + $0x70] sm:$0xff] %v17947_v31   ;;  %v4980_v26 = vadd.f32 %v4857_v50, %v19194_v29  ;;  %8060 = vmatmul.bf16.gmra.mxu1 %v7820_v23  ;;  %v17791_v29 = vld [vmem:[%s21634_s3 + $0x118] sm:$0xff]  ;;  %v17735_v50 = vld [vmem:[#allocation3 + $0x24] sm:$0xff] }
 0x400   : > { %v5388_v5 = vpop.f32.mrf.mxu3  ;;  %v18291_v28 = vpop.eup %18290  ;;  %v20013_v53 = vadd.f32 1.0, %v18289_v21  ;;  %10444 = vmatpush.bf16.msrb.mxu1 %v17791_v29  ;;  %v8902_v21 = vshll.u32 %v20044_v39, 16  ;;  %v9645_v29 = vshll.u32 %v17735_v50, 16 }
 0x401   : > { %v20015_v36 = vpop.f32.mrf.mxu0  ;;  %v7002_v44 = vmul.f32 %v18291_v28, %v19992_v6  ;;  %v5509_v47 = vadd.f32 %v5386_v57, %v4980_v26  ;;  %v20030_v57 = vor.u32 %v9638_v37, %v9635_v54  ;;  %vm7007_vm4 = vweird.f32 %v18291_v28 }
 0x402   : > { %18292 = vrcp.f32 %v20013_v53  ;;  %vm7008_vm6 = vmor %vm7006_vm5, %vm7007_vm4  ;;  %v7027_v26 = vand.u32 2147483648, %v20013_v53  ;;  %vm7021_vm9 = vweird.f32 %v20013_v53 }
 0x403   : > { %v7003_v49 = vsub.f32 1.0, %v7002_v44  ;;  %v6238_v46 = vadd.f32 %v19923_v22, %v5509_v47  ;;  %v20036_v22 = vld [vmem:[%s21633_s2] ss:$0 sm:$0xff]  ;;  %v9640_v27 = vsel %vm541_vm0, %v19987_v38, %v20030_v57 }
 0x404   : > { %v20028_v43 = vpop.f32.mrf.mxu1 }
 0x405   : > { %9162 = vmatmul.bf16.vlgmr.msrb.gmra.mxu3 %v8897_v25  ;;  %v7004_v30 = vmul.f32 %v18291_v28, %v7003_v49  ;;  %v20039_v24 = vadd.f32 %v20036_v22, %v6238_v46  ;;  %v9642_v46 = vshrl.u32 %v17735_v50, 16 }
 0x406   : > { %v4859_v15 = vpop.f32.mrf.mxu2  ;;  %v17650_v34 = vld [vmem:[#allocation3 + $0x70] sm:$0xff] }
 0x407   : > { %v7005_v42 = vadd.f32 %v18291_v28, %v7004_v30  ;;  %v16096_v4 = vmul.f32 -1.442695, %v20039_v24  ;;  %v4981_v16 = vadd.f32 %v4859_v15, %v4224_v8  ;;  %v7822_v3 = vshrl.u32 %v17650_v34, 16 }
 0x408   : > { %v5391_v32 = vpop.f32.mrf.mxu3  ;;  %v18293_v62 = vpop.eup %18292  ;;  %v7825_v1 = vshll.u32 %v17650_v34, 16  ;;  %v7028_v30 = vor.u32 1.1754944e-38, %v7027_v26  ;;  %v17736_v26 = vld [vmem:[#allocation3 + $0x2c] sm:$0xff] }
 0x409   : > { %v20047_v10 = vpop.f32.mrf.mxu0  ;;  %v7009_v12 = vsel %vm7008_vm6, %v18291_v28, %v7005_v42  ;;  %v7017_v6 = vmul.f32 %v18293_v62, %v20013_v53  ;;  %18294 = vpow2.f32 %v16096_v4  ;;  %v5510_v60 = vadd.f32 %v5388_v5, %v4981_v16 }
 0x40a   : > { %v7014_v2 = vsel %vm7011_vm7, %v7013_v20, %v7009_v12  ;;  %v7824_v19 = vrot.slane %v7822_v3, 3  ;;  %v7827_v31 = vrot.slane %v7825_v1, 4  ;;  %v8900_v5 = vor.u32 %v8898_v56, %v20010_v13  ;;  %v20078_v1 = vld [vmem:[#allocation3 + $0x1c] sm:$0xff] }
 0x40b   : > { %v7343_v23 = vmul.f32 %v7014_v2, %v19948_v55  ;;  %v7018_v51 = vsub.f32 1.0, %v7017_v6  ;;  %8433 = vmatmul.bf16.vlgmr.msrb.gmra.mxu2 %v17668_v35  ;;  %v6239_v38 = vadd.f32 %v19960_v59, %v5510_v60  ;;  %vm7022_vm8 = vweird.f32 %v18293_v62  ;;  %v21658_v35 = vld [vmem:[#allocation6_spill] sm:$0xff] }
 0x40c   : > { %9924 = vmatmul.bf16.gmra.mxu0 %v9640_v27  ;;  %v20057_v28 = vpop.f32.mrf.mxu1  ;;  %v20059_v54 = vor.u32 %v7827_v31, %v7824_v19  ;;  %v7025_v55 = vand.u32 2147483647, %v20013_v53  ;;  %v8904_v13 = vrot.slane %v8902_v21, 1  ;;  %vm7023_vm10 = vmor %vm7021_vm9, %vm7022_vm8  ;;  %v9644_v42 = vrot.slane %v9642_v46, 3 }
 0x40d   : > { %v7468_v37 = vpack.c.bf16 %v7343_v23, %v7343_v23  ;;  %v7019_v44 = vmul.f32 %v18293_v62, %v7018_v51  ;;  %v20064_v47 = vadd.f32 %v20036_v22, %v6239_v38  ;;  %v9647_v4 = vrot.slane %v9645_v29, 4  ;;  %v17669_v51 = vld [vmem:[#allocation3 + $0xc] sm:$0xff] }
 0x40e   : > { %v4862_v25 = vpop.f32.mrf.mxu2  ;;  %v7829_v49 = vsel %vm541_vm0, %v19998_v40, %v20059_v54  ;;  %vm7026_vm11 = vcmp.eq.f32.partialorder %v7025_v55, 8.507059e+37  ;;  %v8905_v40 = vsel %vm1732_vm1, %v8900_v5, %v8904_v13  ;;  %v4226_v20 = vadd.f32 %v21658_v35, %v19207_v18 }
 0x40f   : > { %v18295_v8 = vpop.eup %18294  ;;  %7470 = vst [vmem:[#allocation3 + $0x7c] sm:$0xf] %v7468_v37  ;;  %v7020_v63 = vadd.f32 %v18293_v62, %v7019_v44  ;;  %8065 = vmatmul.bf16.gmra.mxu1 %v7829_v49  ;;  %v16097_v15 = vmul.f32 -1.442695, %v20064_v47  ;;  %v20080_v6 = vor.u32 %v9647_v4, %v9644_v42  ;;  %v8910_v21 = vshll.u32 %v20078_v1, 16 }
 0x410   : > { %v5393_v59 = vpop.f32.mrf.mxu3  ;;  %v20070_v48 = vadd.f32 1.0, %v18295_v8  ;;  %v9651_v29 = vshrl.u32 %v17736_v26, 16  ;;  %v9654_v8 = vshll.u32 %v17736_v26, 16 }
 0x411   : > { %v6127_v32 = vpop.f32.mrf.mxu0  ;;  %v7024_v34 = vsel %vm7023_vm10, %v18293_v62, %v7020_v63  ;;  %v9649_v44 = vsel %vm541_vm0, %v20030_v57, %v20080_v6 }
 0x412   : > { %v7029_v56 = vsel %vm7026_vm11, %v7028_v30, %v7024_v34  ;;  %18296 = vrcp.f32 %v20070_v48  ;;  %v9656_v35 = vrot.slane %v9654_v8, 4  ;;  %vm7051_vm13 = vweird.f32 %v20070_v48 }
 0x413   : > { %v7344_v53 = vmul.f32 %v7029_v56, %v19983_v58  ;;  %18298 = vpow2.f32 %v16097_v15  ;;  %v8906_v15 = vshrl.u32 %v20044_v39, 16 }
 0x414   : > { %v8028_v16 = vpop.f32.mrf.mxu1 }
 0x415   : > { %9167 = vmatmul.bf16.gmra.mxu3 %v8905_v40  ;;  %v7469_v3 = vpack.c.bf16 %v7344_v53, %v7344_v53  ;;  %v8908_v42 = vor.u32 %v8906_v15, %v8904_v13  ;;  %v9653_v16 = vrot.slane %v9651_v29, 3 }
 0x416   : > { %v4864_v62 = vpop.f32.mrf.mxu2  ;;  %v17651_v12 = vld [vmem:[#allocation3 + $0x78] sm:$0xff] }
 0x417   : > { %7471 = vst [vmem:[#allocation3 + $0x80] sm:$0xf] %v7469_v3  ;;  %v4983_v2 = vadd.f32 %v4864_v62, %v4226_v20  ;;  %v7831_v19 = vshrl.u32 %v17651_v12, 16  ;;  %v7834_v58 = vshll.u32 %v17651_v12, 16 }
 0x418   : > { %v5396_v27 = vpop.f32.mrf.mxu3  ;;  %v20082_v60 = vpop.eup %18296 }
 0x419   : > { %v20084_v31 = vpop.f32.mrf.mxu0  ;;  %v18299_v50 = vpop.eup %18298  ;;  %v7047_v18 = vmul.f32 %v20082_v60, %v20070_v48  ;;  %v5512_v23 = vadd.f32 %v5393_v59, %v4983_v2  ;;  %v7833_v5 = vrot.slane %v7831_v19, 3  ;;  %v7836_v37 = vrot.slane %v7834_v58, 4  ;;  %v20124_v2 = vld [vmem:[#allocation3 + $0x24] sm:$0xff] }
 0x41a   : > { %v20089_v38 = vadd.f32 1.0, %v18299_v50  ;;  %vm7052_vm12 = vweird.f32 %v20082_v60  ;;  %v7055_v58 = vand.u32 2147483647, %v20070_v48 }
 0x41b   : > { %v7048_v55 = vsub.f32 1.0, %v7047_v18  ;;  %v6241_v25 = vadd.f32 %v20015_v36, %v5512_v23  ;;  %8438 = vmatmul.bf16.gmra.mxu2 %v17669_v51  ;;  %v20101_v46 = vor.u32 %v7836_v37, %v7833_v5  ;;  %v20105_v36 = vrot.slane %v8910_v21, 1  ;;  %vm20126_vm14 = vmor %vm7051_vm13, %vm7052_vm12 }
 0x41c   : > { %9929 = vmatmul.bf16.gmra.mxu0 %v9649_v44  ;;  %18300 = vrcp.f32 %v20089_v38  ;;  %v20096_v49 = vpop.f32.mrf.mxu1  ;;  %v7070_v51 = vand.u32 2147483647, %v20089_v38  ;;  %v7072_v21 = vand.u32 2147483648, %v20089_v38  ;;  %vm7056_vm2 = vcmp.eq.f32.partialorder %v7055_v58, 8.507059e+37 }
 0x41d   : > { %v20099_v59 = vadd.f32 %v20036_v22, %v6241_v25  ;;  %v7049_v63 = vmul.f32 %v20082_v60, %v7048_v55  ;;  %v7838_v56 = vsel %vm541_vm0, %v20059_v54, %v20101_v46  ;;  %vm7066_vm3 = vweird.f32 %v20089_v38 }
 0x41e   : > { %v4867_v30 = vpop.f32.mrf.mxu2  ;;  %v17652_v32 = vld [vmem:[#allocation3 + $0x80] sm:$0xff]  ;;  %vm7071_vm5 = vcmp.eq.f32.partialorder %v7070_v51, 8.507059e+37 }
 0x41f   : > { %v16099_v34 = vmul.f32 -1.442695, %v20099_v59  ;;  %v4984_v40 = vadd.f32 %v4867_v30, %v19212_v17  ;;  %8070 = vmatmul.bf16.gmra.mxu1 %v7838_v56  ;;  %v7050_v20 = vadd.f32 %v20082_v60, %v7049_v63  ;;  %v8913_v17 = vsel %vm1732_vm1, %v8908_v42, %v20105_v36  ;;  %v17737_v30 = vld [vmem:[#allocation3 + $0x34] sm:$0xff] }
 0x420   : > { %v5398_v57 = vpop.f32.mrf.mxu3  ;;  %v7840_v3 = vshrl.u32 %v17652_v32, 16  ;;  %v7843_v13 = vshll.u32 %v17652_v32, 16  ;;  %v8918_v63 = vshll.u32 %v20124_v2, 16 }
 0x421   : > { %18302 = vpow2.f32 %v16099_v34  ;;  %v5513_v4 = vadd.f32 %v5396_v27, %v4984_v40  ;;  %v20112_v53 = vpop.f32.mrf.mxu0  ;;  %v7057_v27 = vand.u32 2147483648, %v20070_v48  ;;  %v7054_v23 = vsel %vm20126_vm14, %v20082_v60, %v7050_v20  ;;  %v17670_v57 = vld [vmem:[#allocation3 + $0x14] sm:$0xff] }
 0x422   : > { %v18301_v39 = vpop.eup %18300  ;;  %v7842_v37 = vrot.slane %v7840_v3, 3  ;;  %v7845_v25 = vrot.slane %v7843_v13, 4  ;;  %v7073_v34 = vor.u32 1.1754944e-38, %v7072_v21  ;;  %v8920_v13 = vrot.slane %v8918_v63, 1 }
 0x423   : > { %v7062_v62 = vmul.f32 %v18301_v39, %v20089_v38  ;;  %v6242_v54 = vadd.f32 %v20047_v10, %v5513_v4  ;;  %v20134_v10 = vor.u32 %v9656_v35, %v9653_v16  ;;  %vm7067_vm15 = vweird.f32 %v18301_v39 }
 0x424   : > { %v20122_v12 = vpop.f32.mrf.mxu1  ;;  %v7058_v29 = vor.u32 1.1754944e-38, %v7057_v27  ;;  %vm7068_vm4 = vmor %vm7066_vm3, %vm7067_vm15  ;;  %v20150_v42 = vor.u32 %v7845_v25, %v7842_v37  ;;  %v9660_v16 = vshrl.u32 %v17737_v30, 16  ;;  %v9663_v35 = vshll.u32 %v17737_v30, 16  ;;  %v17790_v37 = vld [vmem:[%s21634_s3 + $0x110] sm:$0xff] }
 0x425   : > { %9172 = vmatmul.bf16.gmra.mxu3 %v8913_v17  ;;  %v7063_v50 = vsub.f32 1.0, %v7062_v62  ;;  %v20132_v18 = vadd.f32 %v20036_v22, %v6242_v54  ;;  %v9658_v40 = vsel %vm541_vm0, %v20080_v6, %v20134_v10  ;;  %v8914_v54 = vshrl.u32 %v20078_v1, 16  ;;  %10445 = vmatpush.bf16.msrb.mxu1 %v17790_v37 }
 0x426   : > { %v4869_v26 = vpop.f32.mrf.mxu2  ;;  %v7059_v32 = vsel %vm7056_vm2, %v7058_v29, %v7054_v23  ;;  %v7847_v19 = vsel %vm541_vm0, %v20101_v46, %v20150_v42  ;;  %v9665_v23 = vrot.slane %v9663_v35, 4 }
 0x427   : > { %v18303_v44 = vpop.eup %18302  ;;  %v7064_v55 = vmul.f32 %v18301_v39, %v7063_v50  ;;  %v16100_v48 = vmul.f32 -1.442695, %v20132_v18  ;;  %v7346_v20 = vmul.f32 %v7059_v32, %v20039_v24  ;;  %v8916_v24 = vor.u32 %v8914_v54, %v20105_v36  ;;  %v21661_v36 = vld [vmem:[#allocation7_spill] sm:$0xff] }
 0x428   : > { %v5401_v5 = vpop.f32.mrf.mxu3  ;;  %v20142_v8 = vadd.f32 1.0, %v18303_v44  ;;  %v4230_v44 = vadd.f32 %v21661_v36, %v19224_v0 }
 0x429   : > { %v7065_v60 = vadd.f32 %v18301_v39, %v7064_v55  ;;  %18304 = vpow2.f32 %v16100_v48  ;;  %v6135_v15 = vpop.f32.mrf.mxu0 }
 0x42a   : > { %18306 = vrcp.f32 %v20142_v8  ;;  %v7102_v55 = vand.u32 2147483648, %v20142_v8  ;;  %v7100_v29 = vand.u32 2147483647, %v20142_v8  ;;  %vm7096_vm7 = vweird.f32 %v20142_v8  ;;  %v20184_v15 = vld [vmem:[#allocation3 + $0x2c] sm:$0xff] }
 0x42b   : > { %v7069_v56 = vsel %vm7068_vm4, %v18301_v39, %v7065_v60  ;;  %8443 = vmatmul.bf16.gmra.mxu2 %v17670_v57 }
 0x42c   : > { %9934 = vmatmul.bf16.gmra.mxu0 %v9658_v40  ;;  %v7074_v4 = vsel %vm7071_vm5, %v7073_v34, %v7069_v56  ;;  %v8036_v38 = vpop.f32.mrf.mxu1  ;;  %v7103_v34 = vor.u32 1.1754944e-38, %v7102_v55  ;;  %v8922_v56 = vshrl.u32 %v20124_v2, 16  ;;  %vm7101_vm9 = vcmp.eq.f32.partialorder %v7100_v29, 8.507059e+37 }
 0x42d   : > { %v7347_v17 = vmul.f32 %v7074_v4, %v20064_v47  ;;  %v9662_v47 = vrot.slane %v9660_v16, 3 }
 0x42e   : > { %v4872_v3 = vpop.f32.mrf.mxu2 }
 0x42f   : > { %v18305_v6 = vpop.eup %18304  ;;  %v17952_v39 = vpack.c.bf16 %v7347_v17, %v7346_v20  ;;  %v4986_v27 = vadd.f32 %v4872_v3, %v19219_v52  ;;  %8075 = vmatmul.bf16.gmra.mxu1 %v7847_v19  ;;  %v8921_v52 = vsel %vm1732_vm1, %v8916_v24, %v8920_v13  ;;  %v20176_v48 = vor.u32 %v9665_v23, %v9662_v47 }
 0x430   : > { %v5403_v62 = vpop.f32.mrf.mxu3  ;;  %v18307_v58 = vpop.eup %18306  ;;  %v20159_v50 = vadd.f32 1.0, %v18305_v6  ;;  %v17738_v6 = vld [vmem:[#allocation3 + $0x3c] sm:$0xff] }
 0x431   : > { %18145 = vst [vmem:[#allocation3 + $0x88] sm:$0xff] %v17952_v39   ;;  %v7092_v1 = vmul.f32 %v18307_v58, %v20142_v8  ;;  %v5515_v51 = vadd.f32 %v5401_v5, %v4986_v27  ;;  %v20163_v21 = vpop.f32.mrf.mxu0  ;;  %vm7097_vm6 = vweird.f32 %v18307_v58  ;;  %v9667_v4 = vsel %vm541_vm0, %v20134_v10, %v20176_v48  ;;  %v17671_v8 = vld [vmem:[#allocation3 + $0x1c] sm:$0xff] }
 0x432   : > { %18308 = vrcp.f32 %v20159_v50  ;;  %vm7098_vm8 = vmor %vm7096_vm7, %vm7097_vm6  ;;  %v8924_v27 = vor.u32 %v8922_v56, %v8920_v13  ;;  %v8926_v10 = vshll.u32 %v20184_v15, 16  ;;  %v7117_v19 = vand.u32 2147483648, %v20159_v50 }
 0x433   : > { %v7093_v26 = vsub.f32 1.0, %v7092_v1  ;;  %v6244_v46 = vadd.f32 %v20084_v31, %v5515_v51  ;;  %v7115_v51 = vand.u32 2147483647, %v20159_v50  ;;  %v9672_v37 = vshll.u32 %v17738_v6, 16 }
 0x434   : > { %v20174_v5 = vpop.f32.mrf.mxu1  ;;  %vm7111_vm11 = vweird.f32 %v20159_v50  ;;  %v7118_v55 = vor.u32 1.1754944e-38, %v7117_v19 }
 0x435   : > { %9177 = vmatmul.bf16.gmra.mxu3 %v8921_v52  ;;  %v7094_v25 = vmul.f32 %v18307_v58, %v7093_v26  ;;  %v20180_v31 = vadd.f32 %v20036_v22, %v6244_v46  ;;  %v9669_v46 = vshrl.u32 %v17738_v6, 16  ;;  %vm7116_vm13 = vcmp.eq.f32.partialorder %v7115_v51, 8.507059e+37 }
 0x436   : > { %v4874_v63 = vpop.f32.mrf.mxu2 }
 0x437   : > { %v7095_v60 = vadd.f32 %v18307_v58, %v7094_v25  ;;  %v16102_v0 = vmul.f32 -1.442695, %v20180_v31  ;;  %v4987_v57 = vadd.f32 %v4874_v63, %v4230_v44  ;;  %v8928_v44 = vrot.slane %v8926_v10, 1 }
 0x438   : > { %v5406_v30 = vpop.f32.mrf.mxu3  ;;  %v18309_v32 = vpop.eup %18308  ;;  %v17653_v40 = vld [vmem:[#allocation3 + $0x88] sm:$0xff] }
 0x439   : > { %v7099_v38 = vsel %vm7098_vm8, %v18307_v58, %v7095_v60  ;;  %v7107_v16 = vmul.f32 %v18309_v32, %v20159_v50  ;;  %18310 = vpow2.f32 %v16102_v0  ;;  %v20191_v35 = vpop.f32.mrf.mxu0  ;;  %v5516_v17 = vadd.f32 %v5403_v62, %v4987_v57 }
 0x43a   : > { %v7104_v20 = vsel %vm7101_vm9, %v7103_v34, %v7099_v38  ;;  %v7849_v3 = vshrl.u32 %v17653_v40, 16  ;;  %v7852_v54 = vshll.u32 %v17653_v40, 16  ;;  %vm7112_vm10 = vweird.f32 %v18309_v32 }
 0x43b   : > { %v7349_v39 = vmul.f32 %v7104_v20, %v20099_v59  ;;  %v7108_v2 = vsub.f32 1.0, %v7107_v16  ;;  %8448 = vmatmul.bf16.gmra.mxu2 %v17671_v8  ;;  %v6245_v58 = vadd.f32 %v20112_v53, %v5516_v17  ;;  %vm7113_vm12 = vmor %vm7111_vm11, %vm7112_vm10  ;;  %v8929_v60 = vsel %vm1732_vm1, %v8924_v27, %v8928_v44 }
 0x43c   : > { %9939 = vmatmul.bf16.gmra.mxu0 %v9667_v4  ;;  %v20197_v24 = vpop.f32.mrf.mxu1  ;;  %v7851_v47 = vrot.slane %v7849_v3, 3  ;;  %v7854_v23 = vrot.slane %v7852_v54, 4  ;;  %v9671_v50 = vrot.slane %v9669_v46, 3  ;;  %v9674_v34 = vrot.slane %v9672_v37, 4  ;;  %v21662_v4 = vld [vmem:[#allocation8_spill] sm:$0xff] }
 0x43d   : > { %v7480_v62 = vpack.c.bf16 %v7349_v39, %v7349_v39  ;;  %v7109_v1 = vmul.f32 %v18309_v32, %v7108_v2  ;;  %v20201_v59 = vadd.f32 %v20036_v22, %v6245_v58  ;;  %v4232_v38 = vadd.f32 %v21662_v4, %v19232_v41  ;;  %v17672_v41 = vld [vmem:[#allocation3 + $0x24] sm:$0xff]  ;;  %v20255_v4 = vld [vmem:[#allocation3 + $0x3c] sm:$0xff] }
 0x43e   : > { %v4877_v13 = vpop.f32.mrf.mxu2  ;;  %v20203_v52 = vor.u32 %v7854_v23, %v7851_v47  ;;  %v20219_v17 = vor.u32 %v9674_v34, %v9671_v50 }
 0x43f   : > { %v18311_v36 = vpop.eup %18310  ;;  %7482 = vst [vmem:[#allocation3 + $0x94] sm:$0xf] %v7480_v62  ;;  %v7110_v53 = vadd.f32 %v18309_v32, %v7109_v1  ;;  %v16103_v29 = vmul.f32 -1.442695, %v20201_v59  ;;  %v17739_v1 = vld [vmem:[#allocation3 + $0x44] sm:$0xff] }
 0x440   : > { %v5408_v26 = vpop.f32.mrf.mxu3  ;;  %v20206_v25 = vadd.f32 1.0, %v18311_v36  ;;  %v7856_v63 = vsel %vm541_vm0, %v20150_v42, %v20203_v52  ;;  %v9676_v62 = vsel %vm541_vm0, %v20176_v48, %v20219_v17 }
 0x441   : > { %v7114_v30 = vsel %vm7113_vm12, %v18309_v32, %v7110_v53  ;;  %8080 = vmatmul.bf16.gmra.mxu1 %v7856_v63  ;;  %v6142_v0 = vpop.f32.mrf.mxu0  ;;  %v20217_v32 = vld [vmem:[#allocation3 + $0x34] sm:$0xff]  ;;  %v9681_v63 = vshll.u32 %v17739_v1, 16 }
 0x442   : > { %v7119_v57 = vsel %vm7116_vm13, %v7118_v55, %v7114_v30  ;;  %18312 = vrcp.f32 %v20206_v25  ;;  %v8934_v19 = vshll.u32 %v20217_v32, 16  ;;  %v8930_v55 = vshrl.u32 %v20184_v15, 16 }
 0x443   : > { %v7350_v40 = vmul.f32 %v7119_v57, %v20132_v18  ;;  %18314 = vpow2.f32 %v16103_v29  ;;  %v9678_v29 = vshrl.u32 %v17739_v1, 16  ;;  %vm7141_vm15 = vweird.f32 %v20206_v25 }
 0x444   : > { %v8043_v56 = vpop.f32.mrf.mxu1  ;;  %v20243_v48 = vrot.slane %v8934_v19, 1  ;;  %v8932_v57 = vor.u32 %v8930_v55, %v8928_v44 }
 0x445   : > { %9182 = vmatmul.bf16.gmra.mxu3 %v8929_v60  ;;  %v7481_v42 = vpack.c.bf16 %v7350_v40, %v7350_v40 }
 0x446   : > { %v4879_v16 = vpop.f32.mrf.mxu2  ;;  %v17654_v20 = vld [vmem:[#allocation3 + $0x90] sm:$0xff]  ;;  %v8937_v56 = vsel %vm1732_vm1, %v8932_v57, %v20243_v48 }
 0x447   : > { %7483 = vst [vmem:[#allocation3 + $0x98] sm:$0xf] %v7481_v42  ;;  %v4989_v3 = vadd.f32 %v4879_v16, %v4232_v38  ;;  %v7858_v6 = vshrl.u32 %v17654_v20, 16  ;;  %v7861_v18 = vshll.u32 %v17654_v20, 16  ;;  %v9680_v38 = vrot.slane %v9678_v29, 3  ;;  %v17740_v29 = vld [vmem:[#allocation3 + $0x4c] sm:$0xff] }
 0x448   : > { %v5411_v8 = vpop.f32.mrf.mxu3  ;;  %v20221_v54 = vpop.eup %18312  ;;  %v9683_v42 = vrot.slane %v9681_v63, 4  ;;  %v7147_v16 = vand.u32 2147483648, %v20206_v25 }
 0x449   : > { %v18315_v39 = vpop.eup %18314  ;;  %v7137_v2 = vmul.f32 %v20221_v54, %v20206_v25  ;;  %v5518_v27 = vadd.f32 %v5408_v26, %v4989_v3  ;;  %v20225_v10 = vpop.f32.mrf.mxu0  ;;  %v7860_v47 = vrot.slane %v7858_v6, 3  ;;  %v7863_v23 = vrot.slane %v7861_v18, 4 }
 0x44a   : > { %v20228_v58 = vadd.f32 1.0, %v18315_v39  ;;  %vm7142_vm14 = vweird.f32 %v20221_v54  ;;  %v7145_v6 = vand.u32 2147483647, %v20206_v25 }
 0x44b   : > { %v7138_v51 = vsub.f32 1.0, %v7137_v2  ;;  %v6247_v13 = vadd.f32 %v20163_v21, %v5518_v27  ;;  %8453 = vmatmul.bf16.gmra.mxu2 %v17672_v41  ;;  %v20240_v37 = vor.u32 %v7863_v23, %v7860_v47  ;;  %vm20269_vm2 = vmor %vm7141_vm15, %vm7142_vm14  ;;  %v8942_v47 = vshll.u32 %v20255_v4, 16 }
 0x44c   : > { %9944 = vmatmul.bf16.gmra.mxu0 %v9676_v62  ;;  %18316 = vrcp.f32 %v20228_v58  ;;  %v20235_v26 = vpop.f32.mrf.mxu1  ;;  %v7162_v27 = vand.u32 2147483648, %v20228_v58  ;;  %v20276_v23 = vor.u32 %v9683_v42, %v9680_v38  ;;  %vm7146_vm4 = vcmp.eq.f32.partialorder %v7145_v6, 8.507059e+37 }
 0x44d   : > { %v20238_v46 = vadd.f32 %v20036_v22, %v6247_v13  ;;  %v7139_v21 = vmul.f32 %v20221_v54, %v7138_v51  ;;  %v7865_v0 = vsel %vm541_vm0, %v20203_v52, %v20240_v37  ;;  %v7148_v13 = vor.u32 1.1754944e-38, %v7147_v16 }
 0x44e   : > { %v4882_v36 = vpop.f32.mrf.mxu2  ;;  %v17655_v50 = vld [vmem:[#allocation3 + $0x98] sm:$0xff]  ;;  %vm7156_vm5 = vweird.f32 %v20228_v58  ;;  %v9690_v38 = vshll.u32 %v17740_v29, 16 }
 0x44f   : > { %v16105_v30 = vmul.f32 -1.442695, %v20238_v46  ;;  %v4990_v60 = vadd.f32 %v4882_v36, %v19237_v33  ;;  %v7140_v33 = vadd.f32 %v20221_v54, %v7139_v21  ;;  %v7867_v20 = vshrl.u32 %v17655_v50, 16  ;;  %v17673_v21 = vld [vmem:[#allocation3 + $0x2c] sm:$0xff] }
 0x450   : > { %v5413_v53 = vpop.f32.mrf.mxu3  ;;  %v7870_v3 = vshll.u32 %v17655_v50, 16 }
 0x451   : > { %18318 = vpow2.f32 %v16105_v30  ;;  %v5519_v34 = vadd.f32 %v5411_v8, %v4990_v60  ;;  %8085 = vmatmul.bf16.gmra.mxu1 %v7865_v0  ;;  %v20251_v15 = vpop.f32.mrf.mxu0  ;;  %v7144_v25 = vsel %vm20269_vm2, %v20221_v54, %v7140_v33  ;;  %v7869_v53 = vrot.slane %v7867_v20, 3 }
 0x452   : > { %v18317_v40 = vpop.eup %18316  ;;  %v7872_v55 = vrot.slane %v7870_v3, 4  ;;  %v7149_v60 = vsel %vm7146_vm4, %v7148_v13, %v7144_v25  ;;  %v7163_v54 = vor.u32 1.1754944e-38, %v7162_v27  ;;  %v9685_v0 = vsel %vm541_vm0, %v20219_v17, %v20276_v23  ;;  %v21665_v3 = vld [vmem:[#allocation11_spill] sm:$0xff] }
 0x453   : > { %v7152_v52 = vmul.f32 %v18317_v40, %v20228_v58  ;;  %v6248_v44 = vadd.f32 %v20191_v35, %v5519_v34  ;;  %v7160_v35 = vand.u32 2147483647, %v20228_v58  ;;  %vm7157_vm3 = vweird.f32 %v18317_v40 }
 0x454   : > { %v20262_v8 = vpop.f32.mrf.mxu1  ;;  %vm7158_vm6 = vmor %vm7156_vm5, %vm7157_vm3  ;;  %v9687_v58 = vshrl.u32 %v17740_v29, 16  ;;  %v7352_v42 = vmul.f32 %v7149_v60, %v20180_v31  ;;  %v8944_v20 = vrot.slane %v8942_v47, 1 }
 0x455   : > { %9187 = vmatmul.bf16.gmra.mxu3 %v8937_v56  ;;  %v7153_v18 = vsub.f32 1.0, %v7152_v52  ;;  %v20267_v39 = vadd.f32 %v20036_v22, %v6248_v44  ;;  %vm7161_vm7 = vcmp.eq.f32.partialorder %v7160_v35, 8.507059e+37  ;;  %v20289_v56 = vor.u32 %v7872_v55, %v7869_v53 }
 0x456   : > { %v4884_v41 = vpop.f32.mrf.mxu2  ;;  %v8938_v52 = vshrl.u32 %v20217_v32, 16  ;;  %v9689_v27 = vrot.slane %v9687_v58, 3 }
 0x457   : > { %v18319_v62 = vpop.eup %18318  ;;  %v7154_v1 = vmul.f32 %v18317_v40, %v7153_v18  ;;  %v16106_v51 = vmul.f32 -1.442695, %v20267_v39  ;;  %v7874_v31 = vsel %vm541_vm0, %v20240_v37, %v20289_v56  ;;  %v17789_v37 = vld [vmem:[%s21634_s3 + $0x108] sm:$0xff] }
 0x458   : > { %v5416_v19 = vpop.f32.mrf.mxu3  ;;  %v20282_v36 = vadd.f32 1.0, %v18319_v62  ;;  %v8940_v18 = vor.u32 %v8938_v52, %v20243_v48  ;;  %10446 = vmatpush.bf16.msrb.mxu1 %v17789_v37 }
 0x459   : > { %v7155_v63 = vadd.f32 %v18317_v40, %v7154_v1  ;;  %18320 = vpow2.f32 %v16106_v51  ;;  %v6150_v30 = vpop.f32.mrf.mxu0  ;;  %v21666_v1 = vld [vmem:[#allocation12_spill] sm:$0xff]  ;;  %v21667_v51 = vld [vmem:[#allocation9_spill] sm:$0xff] }
 0x45a   : > { %18322 = vrcp.f32 %v20282_v36  ;;  %v8945_v48 = vsel %vm1732_vm1, %v8940_v18, %v8944_v20  ;;  %v4236_v13 = vadd.f32 %v21667_v51, %v21666_v1  ;;  %vm7186_vm9 = vweird.f32 %v20282_v36  ;;  %v17741_v18 = vld [vmem:[#allocation3 + $0x54] sm:$0xff] }
 0x45b   : > { %v7159_v57 = vsel %vm7158_vm6, %v18317_v40, %v7155_v63  ;;  %8458 = vmatmul.bf16.gmra.mxu2 %v17673_v21  ;;  %v7190_v63 = vand.u32 2147483647, %v20282_v36  ;;  %v9696_v51 = vshrl.u32 %v17741_v18, 16 }
 0x45c   : > { %9949 = vmatmul.bf16.gmra.mxu0 %v9685_v0  ;;  %v7164_v50 = vsel %vm7161_vm7, %v7163_v54, %v7159_v57  ;;  %v8051_v34 = vpop.f32.mrf.mxu1  ;;  %v20323_v57 = vld [vmem:[#allocation3 + $0x44] sm:$0xff] }
 0x45d   : > { %v7353_v33 = vmul.f32 %v7164_v50, %v20201_v59  ;;  %v9692_v59 = vrot.slane %v9690_v38, 4  ;;  %v8946_v38 = vshrl.u32 %v20255_v4, 16  ;;  %vm7191_vm11 = vcmp.eq.f32.partialorder %v7190_v63, 8.507059e+37 }
 0x45e   : > { %v4887_v44 = vpop.f32.mrf.mxu2 }
 0x45f   : > { %v18321_v17 = vpop.eup %18320  ;;  %v17957_v40 = vpack.c.bf16 %v7353_v33, %v7352_v42  ;;  %v4992_v6 = vadd.f32 %v4887_v44, %v21665_v3  ;;  %v20315_v55 = vor.u32 %v9692_v59, %v9689_v27  ;;  %v8948_v27 = vor.u32 %v8946_v38, %v8944_v20 }
 0x460   : > { %v5418_v16 = vpop.f32.mrf.mxu3  ;;  %v18323_v2 = vpop.eup %18322  ;;  %v20296_v35 = vadd.f32 1.0, %v18321_v17 }
 0x461   : > { %18146 = vst [vmem:[#allocation3 + $0xa0] sm:$0xff] %v17957_v40   ;;  %v7182_v32 = vmul.f32 %v18323_v2, %v20282_v36  ;;  %v5521_v41 = vadd.f32 %v5416_v19, %v4992_v6  ;;  %8090 = vmatmul.bf16.gmra.mxu1 %v7874_v31  ;;  %v20302_v47 = vpop.f32.mrf.mxu0  ;;  %v7192_v19 = vand.u32 2147483648, %v20282_v36  ;;  %vm7187_vm8 = vweird.f32 %v18323_v2  ;;  %v17674_v36 = vld [vmem:[#allocation3 + $0x34] sm:$0xff] }
 0x462   : > { %18324 = vrcp.f32 %v20296_v35  ;;  %vm7188_vm10 = vmor %vm7186_vm9, %vm7187_vm8  ;;  %v9694_v42 = vsel %vm541_vm0, %v20276_v23, %v20315_v55  ;;  %v8950_v23 = vshll.u32 %v20323_v57, 16  ;;  %vm7201_vm13 = vweird.f32 %v20296_v35 }
 0x463   : > { %v7183_v62 = vsub.f32 1.0, %v7182_v32  ;;  %v6250_v25 = vadd.f32 %v20225_v10, %v5521_v41  ;;  %v7193_v34 = vor.u32 1.1754944e-38, %v7192_v19 }
 0x464   : > { %v20313_v53 = vpop.f32.mrf.mxu1 }
 0x465   : > { %9192 = vmatmul.bf16.gmra.mxu3 %v8945_v48  ;;  %v7184_v29 = vmul.f32 %v18323_v2, %v7183_v62  ;;  %v20319_v10 = vadd.f32 %v20036_v22, %v6250_v25  ;;  %v7205_v25 = vand.u32 2147483647, %v20296_v35 }
 0x466   : > { %v4889_v21 = vpop.f32.mrf.mxu2 }
 0x467   : > { %v7185_v60 = vadd.f32 %v18323_v2, %v7184_v29  ;;  %v16108_v54 = vmul.f32 -1.442695, %v20319_v10  ;;  %v4993_v0 = vadd.f32 %v4889_v21, %v4236_v13  ;;  %v9699_v13 = vshll.u32 %v17741_v18, 16 }
 0x468   : > { %v5421_v30 = vpop.f32.mrf.mxu3  ;;  %v18325_v50 = vpop.eup %18324  ;;  %v17656_v58 = vld [vmem:[#allocation3 + $0xa0] sm:$0xff]  ;;  %v8952_v29 = vrot.slane %v8950_v23, 1  ;;  %vm7206_vm15 = vcmp.eq.f32.partialorder %v7205_v25, 8.507059e+37 }
 0x469   : > { %v7189_v33 = vsel %vm7188_vm10, %v18323_v2, %v7185_v60  ;;  %v7197_v52 = vmul.f32 %v18325_v50, %v20296_v35  ;;  %18326 = vpow2.f32 %v16108_v54  ;;  %v20330_v44 = vpop.f32.mrf.mxu0  ;;  %v5522_v40 = vadd.f32 %v5418_v16, %v4993_v0 }
 0x46a   : > { %v7194_v17 = vsel %vm7191_vm11, %v7193_v34, %v7189_v33  ;;  %v7876_v3 = vshrl.u32 %v17656_v58, 16  ;;  %v7879_v6 = vshll.u32 %v17656_v58, 16  ;;  %v7207_v2 = vand.u32 2147483648, %v20296_v35 }
 0x46b   : > { %v7355_v31 = vmul.f32 %v7194_v17, %v20238_v46  ;;  %v7198_v4 = vsub.f32 1.0, %v7197_v52  ;;  %8463 = vmatmul.bf16.gmra.mxu2 %v17674_v36  ;;  %v6251_v59 = vadd.f32 %v20251_v15, %v5522_v40  ;;  %vm7202_vm12 = vweird.f32 %v18325_v50  ;;  %v21668_v52 = vld [vmem:[#allocation13_spill] sm:$0xff]  ;;  %v21669_v36 = vld [vmem:[#allocation10_spill] sm:$0xff] }
 0x46c   : > { %9954 = vmatmul.bf16.gmra.mxu0 %v9694_v42  ;;  %v20336_v32 = vpop.f32.mrf.mxu1  ;;  %v7878_v41 = vrot.slane %v7876_v3, 3  ;;  %v7881_v48 = vrot.slane %v7879_v6, 4  ;;  %vm7203_vm14 = vmor %vm7201_vm13, %vm7202_vm12  ;;  %v7208_v63 = vor.u32 1.1754944e-38, %v7207_v2  ;;  %v8953_v0 = vsel %vm1732_vm1, %v8948_v27, %v8952_v29 }
 0x46d   : > { %v7492_v16 = vpack.c.bf16 %v7355_v31, %v7355_v31  ;;  %v7199_v62 = vmul.f32 %v18325_v50, %v7198_v4  ;;  %v20340_v46 = vadd.f32 %v20036_v22, %v6251_v59  ;;  %v9698_v35 = vrot.slane %v9696_v51, 3  ;;  %v17742_v51 = vld [vmem:[#allocation3 + $0x5c] sm:$0xff] }
 0x46e   : > { %v4892_v20 = vpop.f32.mrf.mxu2  ;;  %v20342_v37 = vor.u32 %v7881_v48, %v7878_v41  ;;  %v9701_v38 = vrot.slane %v9699_v13, 4  ;;  %v4238_v17 = vadd.f32 %v21669_v36, %v21668_v52  ;;  %v17675_v41 = vld [vmem:[#allocation3 + $0x3c] sm:$0xff] }
 0x46f   : > { %v18327_v19 = vpop.eup %18326  ;;  %7494 = vst [vmem:[#allocation3 + $0xac] sm:$0xf] %v7492_v16  ;;  %v7200_v15 = vadd.f32 %v18325_v50, %v7199_v62  ;;  %v16109_v30 = vmul.f32 -1.442695, %v20340_v46 }
 0x470   : > { %v5423_v1 = vpop.f32.mrf.mxu3  ;;  %v20345_v21 = vadd.f32 1.0, %v18327_v19  ;;  %v7883_v60 = vsel %vm541_vm0, %v20289_v56, %v20342_v37  ;;  %v20358_v18 = vor.u32 %v9701_v38, %v9698_v35  ;;  %v21670_v38 = vld [vmem:[#allocation14_spill] sm:$0xff] }
 0x471   : > { %v7204_v54 = vsel %vm7203_vm14, %v18325_v50, %v7200_v15  ;;  %8095 = vmatmul.bf16.gmra.mxu1 %v7883_v60  ;;  %v6157_v34 = vpop.f32.mrf.mxu0  ;;  %v20356_v50 = vld [vmem:[#allocation3 + $0x4c] sm:$0xff] }
 0x472   : > { %v7209_v58 = vsel %vm7206_vm15, %v7208_v63, %v7204_v54  ;;  %18328 = vrcp.f32 %v20345_v21  ;;  %v8958_v48 = vshll.u32 %v20356_v50, 16  ;;  %v9703_v20 = vsel %vm541_vm0, %v20315_v55, %v20358_v18 }
 0x473   : > { %v7356_v42 = vmul.f32 %v7209_v58, %v20267_v39  ;;  %18330 = vpow2.f32 %v16109_v30  ;;  %v8954_v55 = vshrl.u32 %v20323_v57, 16  ;;  %v9708_v34 = vshll.u32 %v17742_v51, 16 }
 0x474   : > { %v8058_v33 = vpop.f32.mrf.mxu1  ;;  %vm7231_vm3 = vweird.f32 %v20345_v21 }
 0x475   : > { %9197 = vmatmul.bf16.gmra.mxu3 %v8953_v0  ;;  %v7493_v56 = vpack.c.bf16 %v7356_v42, %v7356_v42  ;;  %v20382_v0 = vrot.slane %v8958_v48, 1  ;;  %v8956_v33 = vor.u32 %v8954_v55, %v8952_v29  ;;  %v18472_v48 = vld [vmem:[%s21633_s2] ss:$0 sm:$0xff] }
 0x476   : > { %v4894_v40 = vpop.f32.mrf.mxu2  ;;  %v17657_v6 = vld [vmem:[#allocation3 + $0xa8] sm:$0xff] }
 0x477   : > { %7495 = vst [vmem:[#allocation3 + $0xb0] sm:$0xf] %v7493_v56  ;;  %v4995_v31 = vadd.f32 %v4894_v40, %v4238_v17  ;;  %v7885_v27 = vshrl.u32 %v17657_v6, 16  ;;  %v7888_v39 = vshll.u32 %v17657_v6, 16  ;;  %v8961_v17 = vsel %vm1732_vm1, %v8956_v33, %v20382_v0  ;;  %v20392_v56 = vld [vmem:[#allocation3 + $0x54] sm:$0xff]  ;;  %v17676_v33 = vld [vmem:[#allocation3 + $0x44] sm:$0xff] }
 0x478   : > { %v5426_v3 = vpop.f32.mrf.mxu3  ;;  %v20360_v4 = vpop.eup %18328  ;;  %v9710_v6 = vrot.slane %v9708_v34, 4  ;;  %v17788_v34 = vld [vmem:[%s21634_s3 + $0x100] sm:$0xff] }
 0x479   : > { %v18331_v23 = vpop.eup %18330  ;;  %v7227_v2 = vmul.f32 %v20360_v4, %v20345_v21  ;;  %v5524_v59 = vadd.f32 %v5423_v1, %v4995_v31  ;;  %v7887_v62 = vrot.slane %v7885_v27, 3  ;;  %v7890_v25 = vrot.slane %v7888_v39, 4  ;;  %v20371_v15 = vpop.f32.mrf.mxu0  ;;  %10447 = vmatpush.bf16.msrb.mxu1 %v17788_v34 }
 0x47a   : > { %v20365_v16 = vadd.f32 1.0, %v18331_v23  ;;  %vm7232_vm2 = vweird.f32 %v20360_v4 }
 0x47b   : > { %v7228_v13 = vsub.f32 1.0, %v7227_v2  ;;  %v6253_v19 = vadd.f32 %v20302_v47, %v5524_v59  ;;  %8468 = vmatmul.bf16.gmra.mxu2 %v17675_v41  ;;  %v20379_v30 = vor.u32 %v7890_v25, %v7887_v62  ;;  %v9705_v47 = vshrl.u32 %v17742_v51, 16  ;;  %vm20410_vm4 = vmor %vm7231_vm3, %vm7232_vm2 }
 0x47c   : > { %9959 = vmatmul.bf16.gmra.mxu0 %v9703_v20  ;;  %18332 = vrcp.f32 %v20365_v16  ;;  %v20374_v1 = vpop.f32.mrf.mxu1  ;;  %v7235_v59 = vand.u32 2147483647, %v20345_v21  ;;  %v7250_v25 = vand.u32 2147483647, %v20365_v16  ;;  %v7252_v20 = vand.u32 2147483648, %v20365_v16 }
 0x47d   : > { %v20377_v63 = vadd.f32 %v20036_v22, %v6253_v19  ;;  %v7229_v58 = vmul.f32 %v20360_v4, %v7228_v13  ;;  %v7892_v22 = vsel %vm541_vm0, %v20342_v37, %v20379_v30  ;;  %v9707_v40 = vrot.slane %v9705_v47, 3 }
 0x47e   : > { %v4897_v60 = vpop.f32.mrf.mxu2  ;;  %v17658_v52 = vld [vmem:[#allocation3 + $0xb0] sm:$0xff]  ;;  %v8966_v19 = vshll.u32 %v20392_v56, 16  ;;  %vm7236_vm6 = vcmp.eq.f32.partialorder %v7235_v59, 8.507059e+37  ;;  %vm7246_vm7 = vweird.f32 %v20365_v16  ;;  %vm7251_vm9 = vcmp.eq.f32.partialorder %v7250_v25, 8.507059e+37 }
 0x47f   : > { %v16111_v35 = vmul.f32 -1.442695, %v20377_v63  ;;  %v4996_v42 = vadd.f32 %v4897_v60, %v21670_v38  ;;  %v7230_v31 = vadd.f32 %v20360_v4, %v7229_v58  ;;  %v7894_v23 = vshrl.u32 %v17658_v52, 16 }
 0x480   : > { %v5428_v54 = vpop.f32.mrf.mxu3  ;;  %v7897_v2 = vshll.u32 %v17658_v52, 16  ;;  %v7253_v52 = vor.u32 1.1754944e-38, %v7252_v20  ;;  %v8962_v59 = vshrl.u32 %v20356_v50, 16 }
 0x481   : > { %18334 = vpow2.f32 %v16111_v35  ;;  %v5525_v36 = vadd.f32 %v5426_v3, %v4996_v42  ;;  %8100 = vmatmul.bf16.gmra.mxu1 %v7892_v22  ;;  %v20398_v29 = vpop.f32.mrf.mxu0  ;;  %v7237_v3 = vand.u32 2147483648, %v20345_v21  ;;  %v20417_v21 = vor.u32 %v9710_v6, %v9707_v40 }
 0x482   : > { %v18333_v57 = vpop.eup %18332  ;;  %v7234_v54 = vsel %vm20410_vm4, %v20360_v4, %v7230_v31  ;;  %v7896_v38 = vrot.slane %v7894_v23, 3  ;;  %v7899_v42 = vrot.slane %v7897_v2, 4 }
 0x483   : > { %v7242_v27 = vmul.f32 %v18333_v57, %v20365_v16  ;;  %v6254_v37 = vadd.f32 %v20330_v44, %v5525_v36  ;;  %vm7247_vm5 = vweird.f32 %v18333_v57  ;;  %v7238_v58 = vor.u32 1.1754944e-38, %v7237_v3 }
 0x484   : > { %v20401_v39 = vpop.f32.mrf.mxu1  ;;  %vm7248_vm8 = vmor %vm7246_vm7, %vm7247_vm5  ;;  %v9712_v36 = vsel %vm541_vm0, %v20358_v18, %v20417_v21 }
 0x485   : > { %9202 = vmatmul.bf16.gmra.mxu3 %v8961_v17  ;;  %v7243_v41 = vsub.f32 1.0, %v7242_v27  ;;  %v20408_v62 = vadd.f32 %v18472_v48, %v6254_v37  ;;  %v7239_v4 = vsel %vm7236_vm6, %v7238_v58, %v7234_v54  ;;  %v17743_v17 = vld [vmem:[#allocation3 + $0x64] sm:$0xff]  ;;  %v20433_v27 = vor.u32 %v7899_v42, %v7896_v38 }
 0x486   : > { %v4899_v51 = vpop.f32.mrf.mxu2  ;;  %v7358_v37 = vmul.f32 %v7239_v4, %v20319_v10  ;;  %v9714_v18 = vshrl.u32 %v17743_v17, 16  ;;  %v17859_v4 = vld [vmem:[%s21634_s3 + $0x1b8] sm:$0xff] }
 0x487   : > { %v18335_v60 = vpop.eup %18334  ;;  %v7244_v55 = vmul.f32 %v18333_v57, %v7243_v41  ;;  %v16112_v47 = vmul.f32 -1.442695, %v20408_v62  ;;  %v20438_v41 = vrot.slane %v8966_v19, 1  ;;  %v7901_v10 = vsel %vm541_vm0, %v20379_v30, %v20433_v27  ;;  %11926 = vmatpush.bf16.msra.mxu3 %v17859_v4 }
 0x488   : > { %v9163_v13 = vpop.f32.mrf.mxu3  ;;  %v20426_v35 = vadd.f32 1.0, %v18335_v60  ;;  %v17827_v60 = vld [vmem:[%s21634_s3 + $0x178] sm:$0xff]  ;;  %v9716_v54 = vrot.slane %v9714_v18, 3 }
 0x489   : > { %v7245_v22 = vadd.f32 %v18333_v57, %v7244_v55  ;;  %18336 = vpow2.f32 %v16112_v47  ;;  %v9925_v6 = vpop.f32.mrf.mxu0  ;;  %11169 = vmatpush.bf16.msra.mxu2 %v17827_v60 }
 0x48a   : > { %18338 = vrcp.f32 %v20426_v35  ;;  %v7280_v38 = vand.u32 2147483647, %v20426_v35  ;;  %vm7276_vm11 = vweird.f32 %v20426_v35 }
 0x48b   : > { %v7249_v40 = vsel %vm7248_vm8, %v18333_v57, %v7245_v22  ;;  %8473 = vmatmul.bf16.gmra.mxu2 %v17676_v33  ;;  %v9717_v57 = vshll.u32 %v17743_v17, 16 }
 0x48c   : > { %9964 = vmatmul.bf16.gmra.mxu0 %v9712_v36  ;;  %v7254_v31 = vsel %vm7251_vm9, %v7253_v52, %v7249_v40  ;;  %v8066_v16 = vpop.f32.mrf.mxu1  ;;  %v20470_v36 = vld [vmem:[#allocation3 + $0x5c] sm:$0xff]  ;;  %vm7281_vm13 = vcmp.eq.f32.partialorder %v7280_v38, 8.507059e+37 }
 0x48d   : > { %v7359_v3 = vmul.f32 %v7254_v31, %v20340_v46  ;;  %v8964_v46 = vor.u32 %v8962_v59, %v20382_v0  ;;  %v9719_v55 = vrot.slane %v9717_v57, 4  ;;  %v8970_v31 = vshrl.u32 %v20392_v56, 16  ;;  %v7556_v59 = vld [vmem:[#allocation3 + $0xc0] sm:$0xf] }
 0x48e   : > { %v8434_v23 = vpop.f32.mrf.mxu2 }
 0x48f   : > { %v18337_v48 = vpop.eup %18336  ;;  %v17962_v44 = vpack.c.bf16 %v7359_v3, %v7358_v37  ;;  %v8602_v25 = vadd.f32 %v8434_v23, %v19738_v9  ;;  %v8969_v9 = vsel %vm1732_vm1, %v8964_v46, %v20438_v41  ;;  %v20463_v33 = vor.u32 %v9719_v55, %v9716_v54  ;;  %v17677_v23 = vld [vmem:[#allocation3 + $0x4c] sm:$0xff] }
 0x490   : > { %v9165_v2 = vpop.f32.mrf.mxu3  ;;  %v18339_v20 = vpop.eup %18338  ;;  %v20441_v51 = vadd.f32 1.0, %v18337_v48  ;;  %v17744_v48 = vld [vmem:[#allocation3 + $0x6c] sm:$0xff] }
 0x491   : > { %18147 = vst [vmem:[#allocation3 + $0xb8] sm:$0xff] %v17962_v44   ;;  %v7272_v50 = vmul.f32 %v18339_v20, %v20426_v35  ;;  %v9331_v19 = vadd.f32 %v9163_v13, %v8602_v25  ;;  %8105 = vmatmul.bf16.gmra.mxu1 %v7901_v10  ;;  %v20454_v30 = vpop.f32.mrf.mxu0  ;;  %v7282_v13 = vand.u32 2147483648, %v20426_v35  ;;  %vm7277_vm10 = vweird.f32 %v18339_v20 }
 0x492   : > { %18340 = vrcp.f32 %v20441_v51  ;;  %vm7278_vm12 = vmor %vm7276_vm11, %vm7277_vm10  ;;  %v7297_v10 = vand.u32 2147483648, %v20441_v51  ;;  %vm7291_vm15 = vweird.f32 %v20441_v51 }
 0x493   : > { %v7273_v47 = vsub.f32 1.0, %v7272_v50  ;;  %v20457_v0 = vadd.f32 %v20371_v15, %v9331_v19  ;;  %v7283_v40 = vor.u32 1.1754944e-38, %v7282_v13  ;;  %v7670_v19 = vunpack.c.l.b16 %v7556_v59 }
 0x494   : > { %v20460_v34 = vpop.f32.mrf.mxu1  ;;  %v8972_v13 = vor.u32 %v8970_v31, %v20438_v41  ;;  %v17891_v41 = vld [vmem:[%s21634_s3 + $0x1f8] sm:$0xff] }
 0x495   : > { %9207 = vmatmul.bf16.gmra.mxu3 %v8969_v9  ;;  %v7274_v58 = vmul.f32 %v18339_v20, %v7273_v47  ;;  %12455 = vmatpush.bf16.msra.mxu0 %v17891_v41 }
 0x496   : > { %v8436_v42 = vpop.f32.mrf.mxu2 }
 0x497   : > { %v7275_v52 = vadd.f32 %v18339_v20, %v7274_v58  ;;  %v8603_v15 = vadd.f32 %v8436_v42, %v19774_v14  ;;  %v9721_v14 = vsel %vm541_vm0, %v20417_v21, %v20463_v33  ;;  %v9723_v58 = vshrl.u32 %v17744_v48, 16 }
 0x498   : > { %v9168_v22 = vpop.f32.mrf.mxu3  ;;  %v18341_v17 = vpop.eup %18340  ;;  %v17659_v6 = vld [vmem:[#allocation3 + $0xb8] sm:$0xff]  ;;  %v7298_v42 = vor.u32 1.1754944e-38, %v7297_v10 }
 0x499   : > { %v7279_v16 = vsel %vm7278_vm12, %v18339_v20, %v7275_v52  ;;  %v7287_v37 = vmul.f32 %v18341_v17, %v20441_v51  ;;  %v9332_v3 = vadd.f32 %v9165_v2, %v8603_v15  ;;  %v7903_v35 = vshrl.u32 %v17659_v6, 16  ;;  %v20478_v56 = vpop.f32.mrf.mxu0  ;;  %v17678_v10 = vld [vmem:[#allocation3 + $0x54] sm:$0xff] }
 0x49a   : > { %v7284_v18 = vsel %vm7281_vm13, %v7283_v40, %v7279_v16  ;;  %v7906_v57 = vshll.u32 %v17659_v6, 16  ;;  %v8974_v20 = vshll.u32 %v20470_v36, 16  ;;  %vm7292_vm14 = vweird.f32 %v18341_v17  ;;  %v17923_v40 = vld [vmem:[%s21634_s3 + $0x238] sm:$0xff] }
 0x49b   : > { %v7361_v44 = vmul.f32 %v7284_v18, %v20377_v63  ;;  %v7288_v25 = vsub.f32 1.0, %v7287_v37  ;;  %8478 = vmatmul.bf16.gmra.mxu2 %v17677_v23  ;;  %v20482_v2 = vadd.f32 %v20398_v29, %v9332_v3  ;;  %v7905_v46 = vrot.slane %v7903_v35, 3  ;;  %vm7293_vm2 = vmor %vm7291_vm15, %vm7292_vm14  ;;  %13184 = vmatpush.bf16.msra.mxu1 %v17923_v40 }
 0x49c   : > { %9969 = vmatmul.bf16.gmra.mxu0 %v9721_v14  ;;  %v7908_v50 = vrot.slane %v7906_v57, 4  ;;  %v7295_v63 = vand.u32 2147483647, %v20441_v51  ;;  %v20486_v9 = vpop.f32.mrf.mxu1  ;;  %v9726_v29 = vshll.u32 %v17744_v48, 16  ;;  %v8976_v4 = vrot.slane %v8974_v20, 1  ;;  %v17712_v57 = vld [vmem:[#allocation3 + $0x64] sm:$0xff] }
 0x49d   : > { %v7504_v60 = vpack.c.bf16 %v7361_v44, %v7361_v44  ;;  %v7289_v21 = vmul.f32 %v18341_v17, %v7288_v25  ;;  %v7695_v52 = vpack.c.b16 %v7670_v19, %v7670_v19  ;;  %v9725_v31 = vrot.slane %v9723_v58, 3 }
 0x49e   : > { %v8439_v54 = vpop.f32.mrf.mxu2  ;;  %v7909_v55 = vor.u32 %v7908_v50, %v7905_v46  ;;  %vm7296_vm3 = vcmp.eq.f32.partialorder %v7295_v63, 8.507059e+37  ;;  %v8977_v51 = vsel %vm1732_vm1, %v8972_v13, %v8976_v4  ;;  %v9728_v16 = vrot.slane %v9726_v29, 4  ;;  %v17745_v50 = vld [vmem:[#allocation3 + $0x74] sm:$0xff] }
 0x49f   : > { %7506 = vst [vmem:[#allocation3 + $0xc4] sm:$0xf] %v7504_v60  ;;  %v7290_v38 = vadd.f32 %v18341_v17, %v7289_v21  ;;  %v7915_v3 = vshll.u32 %v7695_v52, 16  ;;  %v8978_v13 = vshrl.u32 %v20470_v36, 16  ;;  %v9732_v58 = vshrl.u32 %v17745_v50, 16 }
 0x4a0   : > { %v9170_v47 = vpop.f32.mrf.mxu3  ;;  %v7910_v22 = vsel %vm541_vm0, %v20433_v27, %v7909_v55  ;;  %v9729_v14 = vor.u32 %v9728_v16, %v9725_v31  ;;  %v9735_v29 = vshll.u32 %v17745_v50, 16  ;;  %v17713_v31 = vld [vmem:[#allocation3 + $0x6c] sm:$0xff]  ;;  %v17679_v16 = vld [vmem:[#allocation3 + $0x5c] sm:$0xff] }
 0x4a1   : > { %v7294_v15 = vsel %vm7293_vm2, %v18341_v17, %v7290_v38  ;;  %8110 = vmatmul.bf16.gmra.mxu1 %v7910_v22  ;;  %v9932_v37 = vpop.f32.mrf.mxu0  ;;  %v7912_v17 = vshrl.u32 %v7695_v52, 16  ;;  %v7917_v25 = vrot.slane %v7915_v3, 4  ;;  %v9734_v52 = vrot.slane %v9732_v58, 3  ;;  %v17714_v58 = vld [vmem:[#allocation3 + $0x74] sm:$0xff] }
 0x4a2   : > { %v7299_v6 = vsel %vm7296_vm3, %v7298_v42, %v7294_v15  ;;  %v9730_v46 = vsel %vm541_vm0, %v20463_v33, %v9729_v14  ;;  %v8980_v42 = vor.u32 %v8978_v13, %v8976_v4  ;;  %v9737_v15 = vrot.slane %v9735_v29, 4 }
 0x4a3   : > { %v7362_v27 = vmul.f32 %v7299_v6, %v20408_v62  ;;  %v7914_v44 = vrot.slane %v7912_v17, 3  ;;  %v8982_v62 = vshll.u32 %v17712_v57, 16 }
 0x4a4   : > { %v8073_v59 = vpop.f32.mrf.mxu1 }
 0x4a5   : > { %9212 = vmatmul.bf16.gmra.mxu3 %v8977_v51  ;;  %v7505_v23 = vpack.c.bf16 %v7362_v27, %v7362_v27  ;;  %v7918_v21 = vor.u32 %v7917_v25, %v7914_v44  ;;  %v17746_v27 = vld [vmem:[#allocation3 + $0x7c] sm:$0xff] }
 0x4a6   : > { %v8441_v18 = vpop.f32.mrf.mxu2 }
 0x4a7   : > { %7507 = vst [vmem:[#allocation3 + $0xc8] sm:$0xf] %v7505_v23  ;;  %v8605_v48 = vadd.f32 %v8441_v18, %v19824_v11  ;;  %v7919_v33 = vsel %vm541_vm0, %v7909_v55, %v7918_v21  ;;  %v8990_v55 = vshll.u32 %v17713_v31, 16  ;;  %v8986_v23 = vshrl.u32 %v17712_v57, 16 }
 0x4a8   : > { %v9173_v35 = vpop.f32.mrf.mxu3  ;;  %v9744_v18 = vshll.u32 %v17746_v27, 16 }
 0x4a9   : > { %v9334_v20 = vadd.f32 %v9170_v47, %v8605_v48  ;;  %v9935_v19 = vpop.f32.mrf.mxu0  ;;  %v8984_v47 = vrot.slane %v8982_v62, 1  ;;  %v8992_v59 = vrot.slane %v8990_v55, 1  ;;  %v17764_v48 = vld [vmem:[#allocation3 + $0x10] sm:$0xff]  ;;  %v17765_v55 = vld [vmem:[#allocation3 + $0x18] sm:$0xff] }
 0x4ab   : > { %8483 = vmatmul.bf16.gmra.mxu2 %v17678_v10  ;;  %v20504_v60 = vadd.f32 %v20454_v30, %v9334_v20  ;;  %v8985_v30 = vsel %vm1732_vm1, %v8980_v42, %v8984_v47  ;;  %v8988_v25 = vor.u32 %v8986_v23, %v8984_v47  ;;  %v17747_v42 = vld [vmem:[#allocation3 + $0x84] sm:$0xff] }
 0x4ac   : > { %9974 = vmatmul.bf16.gmra.mxu0 %v9730_v46  ;;  %v20506_v63 = vpop.f32.mrf.mxu1  ;;  %v9746_v46 = vrot.slane %v9744_v18, 4 }
 0x4ad   : > { %v8993_v10 = vsel %vm1732_vm1, %v8988_v25, %v8992_v59  ;;  %v17681_v25 = vld [vmem:[#allocation3 + $0x6c] sm:$0xff] }
 0x4ae   : > { %v8444_v54 = vpop.f32.mrf.mxu2 }
 0x4af   : > { %v8606_v38 = vadd.f32 %v8444_v54, %v19862_v45  ;;  %v9738_v45 = vor.u32 %v9737_v15, %v9734_v52  ;;  %v8998_v52 = vshll.u32 %v17714_v58, 16 }
 0x4b0   : > { %v9175_v11 = vpop.f32.mrf.mxu3 }
 0x4b1   : > { %v9335_v22 = vadd.f32 %v9173_v35, %v8606_v38  ;;  %8115 = vmatmul.bf16.gmra.mxu1 %v7919_v33  ;;  %v9937_v41 = vpop.f32.mrf.mxu0  ;;  %v9739_v4 = vsel %vm541_vm0, %v9729_v14, %v9738_v45  ;;  %v17826_v14 = vld [vmem:[%s21634_s3 + $0x170] sm:$0xff]  ;;  %v17680_v38 = vld [vmem:[#allocation3 + $0x64] sm:$0xff] }
 0x4b2   : > { %11170 = vmatpush.bf16.msra.mxu2 %v17826_v14  ;;  %v17858_v11 = vld [vmem:[%s21634_s3 + $0x1b0] sm:$0xff] }
 0x4b3   : > { %v20513_v40 = vadd.f32 %v20478_v56, %v9335_v22  ;;  %v9741_v56 = vshrl.u32 %v17746_v27, 16  ;;  %11927 = vmatpush.bf16.msra.mxu3 %v17858_v11  ;;  %v9000_v27 = vrot.slane %v8998_v52, 1 }
 0x4b4   : > { %v20515_v36 = vpop.f32.mrf.mxu1 }
 0x4b5   : > { %9217 = vmatmul.bf16.gmra.mxu3 %v8985_v30  ;;  %v9743_v62 = vrot.slane %v9741_v56, 3  ;;  %v8994_v30 = vshrl.u32 %v17713_v31, 16  ;;  %v17715_v56 = vld [vmem:[#allocation3 + $0x7c] sm:$0xff] }
 0x4b6   : > { %v8446_v6 = vpop.f32.mrf.mxu2 }
 0x4b7   : > { %v9747_v54 = vor.u32 %v9746_v46, %v9743_v62 }
 0x4b8   : > { %v9178_v51 = vpop.f32.mrf.mxu3 }
 0x4b9   : > { %v9940_v37 = vpop.f32.mrf.mxu0  ;;  %v9748_v33 = vsel %vm541_vm0, %v9738_v45, %v9747_v54  ;;  %v17890_v45 = vld [vmem:[%s21634_s3 + $0x1f0] sm:$0xff] }
 0x4ba   : > { %12456 = vmatpush.bf16.msra.mxu0 %v17890_v45  ;;  %v17682_v45 = vld [vmem:[#allocation3 + $0x74] sm:$0xff] }
 0x4bb   : > { %8488 = vmatmul.bf16.gmra.mxu2 %v17679_v16  ;;  %v9753_v16 = vshll.u32 %v17747_v42, 16 }
 0x4bc   : > { %9979 = vmatmul.bf16.gmra.mxu0 %v9739_v4 }
 0x4be   : > { %v8081_v17 = vpop.f32.mrf.mxu1  ;;  %v8449_v3 = vpop.f32.mrf.mxu2 }
 0x4bf   : > { %v8608_v35 = vadd.f32 %v8449_v3, %v19945_v61  ;;  %v9755_v17 = vrot.slane %v9753_v16, 4  ;;  %v17716_v16 = vld [vmem:[#allocation3 + $0x84] sm:$0xff] }
 0x4c0   : > { %v9180_v44 = vpop.f32.mrf.mxu3 }
 0x4c1   : > { %v9337_v20 = vadd.f32 %v9178_v51, %v8608_v35  ;;  %10448 = vmatmul.bf16.vlgmr.msrb.gmra.mxu1 %v17764_v48  ;;  %v9942_v57 = vpop.f32.mrf.mxu0  ;;  %v9750_v51 = vshrl.u32 %v17747_v42, 16 }
 0x4c3   : > { %v20523_v50 = vadd.f32 %v9935_v19, %v9337_v20  ;;  %v9752_v37 = vrot.slane %v9750_v51, 3  ;;  %v9006_v20 = vshll.u32 %v17715_v56, 16 }
 0x4c5   : > { %9222 = vmatmul.bf16.gmra.mxu3 %v8993_v10  ;;  %v9756_v18 = vor.u32 %v9755_v17, %v9752_v37  ;;  %v17748_v10 = vld [vmem:[#allocation3 + $0x8c] sm:$0xff] }
 0x4c6   : > { %v20525_v21 = vpop.f32.mrf.mxu1  ;;  %v8451_v61 = vpop.f32.mrf.mxu2 }
 0x4c7   : > { %v8609_v13 = vadd.f32 %v8451_v61, %v19977_v7  ;;  %v8996_v7 = vor.u32 %v8994_v30, %v8992_v59  ;;  %v9757_v14 = vsel %vm541_vm0, %v9747_v54, %v9756_v18 }
 0x4c8   : > { %v9183_v47 = vpop.f32.mrf.mxu3 }
 0x4c9   : > { %v9338_v29 = vadd.f32 %v9180_v44, %v8609_v13  ;;  %v20532_v19 = vpop.f32.mrf.mxu0  ;;  %v9001_v31 = vsel %vm1732_vm1, %v8996_v7, %v9000_v27  ;;  %v9002_v13 = vshrl.u32 %v17714_v58, 16  ;;  %v9008_v47 = vrot.slane %v9006_v20, 1 }
 0x4cb   : > { %8493 = vmatmul.bf16.gmra.mxu2 %v17680_v38  ;;  %v20534_v22 = vadd.f32 %v9937_v41, %v9338_v29  ;;  %v17922_v41 = vld [vmem:[%s21634_s3 + $0x230] sm:$0xff]  ;;  %v9759_v29 = vshrl.u32 %v17748_v10, 16  ;;  %v9004_v30 = vor.u32 %v9002_v13, %v9000_v27 }
 0x4cc   : > { %9984 = vmatmul.bf16.gmra.mxu0 %v9748_v33  ;;  %13185 = vmatpush.bf16.msra.mxu1 %v17922_v41  ;;  %v17766_v33 = vld [vmem:[#allocation3 + $0x20] sm:$0xff]  ;;  %v17749_v27 = vld [vmem:[#allocation3 + $0x94] sm:$0xff] }
 0x4cd   : > { %v9009_v52 = vsel %vm1732_vm1, %v9004_v30, %v9008_v47 }
 0x4ce   : > { %v20536_v15 = vpop.f32.mrf.mxu1  ;;  %v8454_v6 = vpop.f32.mrf.mxu2 }
 0x4cf   : > { %v9761_v6 = vrot.slane %v9759_v29, 3 }
 0x4d0   : > { %v9185_v4 = vpop.f32.mrf.mxu3 }
 0x4d1   : > { %10453 = vmatmul.bf16.gmra.mxu1 %v17765_v55  ;;  %v9947_v3 = vpop.f32.mrf.mxu0 }
 0x4d5   : > { %9227 = vmatmul.bf16.gmra.mxu3 %v9001_v31 }
 0x4d6   : > { %v8088_v23 = vpop.f32.mrf.mxu1  ;;  %v8456_v59 = vpop.f32.mrf.mxu2 }
 0x4d7   : > { %v8611_v35 = vadd.f32 %v8456_v59, %v20028_v43  ;;  %v9762_v43 = vshll.u32 %v17748_v10, 16  ;;  %v9010_v23 = vshrl.u32 %v17715_v56, 16 }
 0x4d8   : > { %v9188_v48 = vpop.f32.mrf.mxu3 }
 0x4d9   : > { %v9340_v44 = vadd.f32 %v9185_v4, %v8611_v35  ;;  %v20547_v62 = vpop.f32.mrf.mxu0  ;;  %v9764_v7 = vrot.slane %v9762_v43, 4  ;;  %v9768_v35 = vshrl.u32 %v17749_v27, 16 }
 0x4db   : > { %8498 = vmatmul.bf16.gmra.mxu2 %v17681_v25  ;;  %v20549_v46 = vadd.f32 %v9942_v57, %v9340_v44  ;;  %v9765_v55 = vor.u32 %v9764_v7, %v9761_v6  ;;  %v17767_v25 = vld [vmem:[#allocation3 + $0x28] sm:$0xff]  ;;  %v17750_v6 = vld [vmem:[#allocation3 + $0x9c] sm:$0xff] }
 0x4dc   : > { %9989 = vmatmul.bf16.gmra.mxu0 %v9757_v14  ;;  %v9012_v14 = vor.u32 %v9010_v23, %v9008_v47  ;;  %v17857_v47 = vld [vmem:[%s21634_s3 + $0x1a8] sm:$0xff] }
 0x4dd   : > { %v9766_v41 = vsel %vm541_vm0, %v9756_v18, %v9765_v55  ;;  %v17825_v18 = vld [vmem:[%s21634_s3 + $0x168] sm:$0xff]  ;;  %11928 = vmatpush.bf16.msra.mxu3 %v17857_v47 }
 0x4de   : > { %v20551_v61 = vpop.f32.mrf.mxu1  ;;  %v8459_v11 = vpop.f32.mrf.mxu2  ;;  %11171 = vmatpush.bf16.msra.mxu2 %v17825_v18  ;;  %v17921_v23 = vld [vmem:[%s21634_s3 + $0x228] sm:$0xff] }
 0x4df   : > { %v8612_v38 = vadd.f32 %v8459_v11, %v20057_v28  ;;  %v9014_v28 = vshll.u32 %v17716_v16, 16  ;;  %v9770_v11 = vrot.slane %v9768_v35, 3  ;;  %13186 = vmatpush.bf16.msra.mxu1 %v17921_v23 }
 0x4e0   : > { %v9190_v42 = vpop.f32.mrf.mxu3 }
 0x4e1   : > { %v9341_v54 = vadd.f32 %v9188_v48, %v8612_v38  ;;  %10458 = vmatmul.bf16.gmra.mxu1 %v17766_v33  ;;  %v20555_v57 = vpop.f32.mrf.mxu0  ;;  %v9016_v59 = vrot.slane %v9014_v28, 1  ;;  %v9771_v48 = vshll.u32 %v17749_v27, 16  ;;  %v17717_v42 = vld [vmem:[#allocation3 + $0x8c] sm:$0xff]  ;;  %v9777_v27 = vshrl.u32 %v17750_v6, 16 }
 0x4e3   : > { %v20561_v37 = vadd.f32 %v20532_v19, %v9341_v54  ;;  %v9017_v19 = vsel %vm1732_vm1, %v9012_v14, %v9016_v59  ;;  %v9773_v13 = vrot.slane %v9771_v48, 4  ;;  %v17683_v54 = vld [vmem:[#allocation3 + $0x7c] sm:$0xff]  ;;  %v9779_v35 = vrot.slane %v9777_v27, 3 }
 0x4e5   : > { %9232 = vmatmul.bf16.gmra.mxu3 %v9009_v52  ;;  %v9774_v43 = vor.u32 %v9773_v13, %v9770_v11 }
 0x4e6   : > { %v20557_v51 = vpop.f32.mrf.mxu1  ;;  %v8461_v58 = vpop.f32.mrf.mxu2 }
 0x4e7   : > { %v9775_v52 = vsel %vm541_vm0, %v9765_v55, %v9774_v43  ;;  %v9018_v58 = vshrl.u32 %v17716_v16, 16  ;;  %v17889_v55 = vld [vmem:[%s21634_s3 + $0x1e8] sm:$0xff] }
 0x4e8   : > { %v9193_v4 = vpop.f32.mrf.mxu3  ;;  %12457 = vmatpush.bf16.msra.mxu0 %v17889_v55 }
 0x4e9   : > { %v9955_v31 = vpop.f32.mrf.mxu0 }
 0x4ea   : > { %v17768_v31 = vld [vmem:[#allocation3 + $0x30] sm:$0xff] }
 0x4eb   : > { %8503 = vmatmul.bf16.gmra.mxu2 %v17682_v45 }
 0x4ec   : > { %9994 = vmatmul.bf16.gmra.mxu0 %v9766_v41  ;;  %v9020_v41 = vor.u32 %v9018_v58, %v9016_v59 }
 0x4ee   : > { %v8096_v17 = vpop.f32.mrf.mxu1  ;;  %v8464_v3 = vpop.f32.mrf.mxu2 }
 0x4ef   : > { %v8614_v44 = vadd.f32 %v8464_v3, %v20096_v49 }
 0x4f0   : > { %v9195_v20 = vpop.f32.mrf.mxu3 }
 0x4f1   : > { %v9343_v10 = vadd.f32 %v9193_v4, %v8614_v44  ;;  %10463 = vmatmul.bf16.gmra.mxu1 %v17767_v25  ;;  %v20568_v56 = vpop.f32.mrf.mxu0  ;;  %v9022_v4 = vshll.u32 %v17717_v42, 16 }
 0x4f3   : > { %v9024_v3 = vrot.slane %v9022_v4, 1  ;;  %v20589_v18 = vadd.f32 %v20547_v62, %v9343_v10 }
 0x4f5   : > { %9237 = vmatmul.bf16.gmra.mxu3 %v9017_v19  ;;  %v9025_v16 = vsel %vm1732_vm1, %v9020_v41, %v9024_v3  ;;  %v17769_v41 = vld [vmem:[#allocation3 + $0x38] sm:$0xff] }
 0x4f6   : > { %v20570_v29 = vpop.f32.mrf.mxu1  ;;  %v8466_v49 = vpop.f32.mrf.mxu2 }
 0x4f7   : > { %v8615_v38 = vadd.f32 %v8466_v49, %v20122_v12  ;;  %v9780_v12 = vshll.u32 %v17750_v6, 16  ;;  %v17684_v49 = vld [vmem:[#allocation3 + $0x84] sm:$0xff] }
 0x4f8   : > { %v9198_v33 = vpop.f32.mrf.mxu3 }
 0x4f9   : > { %v9344_v30 = vadd.f32 %v9195_v20, %v8615_v38  ;;  %v20577_v7 = vpop.f32.mrf.mxu0  ;;  %v9782_v48 = vrot.slane %v9780_v12, 4  ;;  %v17718_v20 = vld [vmem:[#allocation3 + $0x94] sm:$0xff]  ;;  %v17751_v33 = vld [vmem:[#allocation3 + $0xa4] sm:$0xff] }
 0x4fa   : > { %v9030_v47 = vshll.u32 %v17718_v20, 16  ;;  %v9786_v10 = vshrl.u32 %v17751_v33, 16  ;;  %v9789_v4 = vshll.u32 %v17751_v33, 16 }
 0x4fb   : > { %8508 = vmatmul.bf16.gmra.mxu2 %v17683_v54  ;;  %v9783_v14 = vor.u32 %v9782_v48, %v9779_v35 }
 0x4fc   : > { %9999 = vmatmul.bf16.gmra.mxu0 %v9775_v52  ;;  %v9026_v52 = vshrl.u32 %v17717_v42, 16  ;;  %v9032_v62 = vrot.slane %v9030_v47, 1  ;;  %v9788_v42 = vrot.slane %v9786_v10, 3 }
 0x4fd   : > { %v9784_v38 = vsel %vm541_vm0, %v9774_v43, %v9783_v14 }
 0x4fe   : > { %v20579_v45 = vpop.f32.mrf.mxu1  ;;  %v8469_v28 = vpop.f32.mrf.mxu2  ;;  %v9028_v43 = vor.u32 %v9026_v52, %v9024_v3  ;;  %v17770_v52 = vld [vmem:[#allocation3 + $0x40] sm:$0xff] }
 0x500   : > { %v9200_v17 = vpop.f32.mrf.mxu3 }
 0x501   : > { %10468 = vmatmul.bf16.gmra.mxu1 %v17768_v31  ;;  %v9962_v59 = vpop.f32.mrf.mxu0  ;;  %v9033_v31 = vsel %vm1732_vm1, %v9028_v43, %v9032_v62 }
 0x502   : > { %v17752_v59 = vld [vmem:[#allocation3 + $0xac] sm:$0xff] }
 0x503   : > { %v9795_v47 = vshrl.u32 %v17752_v59, 16 }
 0x505   : > { %9242 = vmatmul.bf16.gmra.mxu3 %v9025_v16 }
 0x506   : > { %v8103_v44 = vpop.f32.mrf.mxu1  ;;  %v8471_v25 = vpop.f32.mrf.mxu2 }
 0x507   : > { %v8617_v19 = vadd.f32 %v8471_v25, %v20174_v5  ;;  %v20600_v5 = vadd.f32 %v20555_v57, %v9344_v30  ;;  %v17719_v57 = vld [vmem:[#allocation3 + $0x9c] sm:$0xff] }
 0x508   : > { %v9203_v11 = vpop.f32.mrf.mxu3  ;;  %v9038_v48 = vshll.u32 %v17719_v57, 16 }
 0x509   : > { %v20592_v13 = vadd.f32 %v9200_v17, %v8617_v19  ;;  %v20595_v54 = vpop.f32.mrf.mxu0  ;;  %v9791_v17 = vrot.slane %v9789_v4, 4 }
 0x50b   : > { %8513 = vmatmul.bf16.gmra.mxu2 %v17684_v49  ;;  %v9792_v30 = vor.u32 %v9791_v17, %v9788_v42  ;;  %v9040_v49 = vrot.slane %v9038_v48, 1  ;;  %v17856_v17 = vld [vmem:[%s21634_s3 + $0x1a0] sm:$0xff] }
 0x50c   : > { %10004 = vmatmul.bf16.gmra.mxu0 %v9784_v38  ;;  %v9798_v38 = vshll.u32 %v17752_v59, 16  ;;  %11929 = vmatpush.bf16.msra.mxu3 %v17856_v17 }
 0x50d   : > { %v9793_v3 = vsel %vm541_vm0, %v9783_v14, %v9792_v30  ;;  %v17824_v14 = vld [vmem:[%s21634_s3 + $0x160] sm:$0xff] }
 0x50e   : > { %v20597_v6 = vpop.f32.mrf.mxu1  ;;  %v8474_v58 = vpop.f32.mrf.mxu2  ;;  %11172 = vmatpush.bf16.msra.mxu2 %v17824_v14 }
 0x50f   : > { %v8618_v28 = vadd.f32 %v8474_v58, %v20197_v24  ;;  %v17685_v24 = vld [vmem:[#allocation3 + $0x8c] sm:$0xff] }
 0x510   : > { %v9205_v27 = vpop.f32.mrf.mxu3 }
 0x511   : > { %v20603_v12 = vadd.f32 %v9203_v11, %v8618_v28  ;;  %10473 = vmatmul.bf16.gmra.mxu1 %v17769_v41  ;;  %v20606_v55 = vpop.f32.mrf.mxu0  ;;  %v9034_v11 = vshrl.u32 %v17718_v20, 16  ;;  %v9797_v41 = vrot.slane %v9795_v47, 3  ;;  %v9800_v27 = vrot.slane %v9798_v38, 4 }
 0x513   : > { %v9036_v10 = vor.u32 %v9034_v11, %v9032_v62 }
 0x515   : > { %9247 = vmatmul.bf16.gmra.mxu3 %v9033_v31  ;;  %v9041_v28 = vsel %vm1732_vm1, %v9036_v10, %v9040_v49  ;;  %v9801_v31 = vor.u32 %v9800_v27, %v9797_v41  ;;  %v17888_v10 = vld [vmem:[%s21634_s3 + $0x1e0] sm:$0xff]  ;;  %v17721_v27 = vld [vmem:[#allocation3 + $0xac] sm:$0xff] }
 0x516   : > { %v20608_v23 = vpop.f32.mrf.mxu1  ;;  %v8476_v16 = vpop.f32.mrf.mxu2  ;;  %12458 = vmatpush.bf16.msra.mxu0 %v17888_v10 }
 0x517   : > { %v17720_v16 = vld [vmem:[#allocation3 + $0xa4] sm:$0xff]  ;;  %v9802_v48 = vsel %vm541_vm0, %v9792_v30, %v9801_v31 }
 0x518   : > { %v9208_v35 = vpop.f32.mrf.mxu3 }
 0x519   : > { %v9970_v44 = vpop.f32.mrf.mxu0 }
 0x51a   : > { %v9042_v44 = vshrl.u32 %v17719_v57, 16  ;;  %v17920_v57 = vld [vmem:[%s21634_s3 + $0x220] sm:$0xff] }
 0x51b   : > { %8518 = vmatmul.bf16.gmra.mxu2 %v17685_v24  ;;  %v17686_v24 = vld [vmem:[#allocation3 + $0x94] sm:$0xff]  ;;  %13187 = vmatpush.bf16.msra.mxu1 %v17920_v57 }
 0x51c   : > { %10009 = vmatmul.bf16.gmra.mxu0 %v9793_v3  ;;  %v17753_v3 = vld [vmem:[#allocation3 + $0xb4] sm:$0xff]  ;;  %v9044_v47 = vor.u32 %v9042_v44, %v9040_v49  ;;  %v17754_v44 = vld [vmem:[#allocation3 + $0xbc] sm:$0xff] }
 0x51d   : > { %v9804_v38 = vshrl.u32 %v17753_v3, 16  ;;  %v9816_v10 = vshll.u32 %v17754_v44, 16  ;;  %v17772_v57 = vld [vmem:[#allocation3 + $0x50] sm:$0xff] }
 0x51e   : > { %v8111_v25 = vpop.f32.mrf.mxu1  ;;  %v8479_v19 = vpop.f32.mrf.mxu2 }
 0x51f   : > { %v8620_v33 = vadd.f32 %v8479_v19, %v20235_v26  ;;  %v9046_v25 = vshll.u32 %v17720_v16, 16 }
 0x520   : > { %v9210_v58 = vpop.f32.mrf.mxu3 }
 0x521   : > { %v20612_v4 = vadd.f32 %v9208_v35, %v8620_v33  ;;  %10478 = vmatmul.bf16.gmra.mxu1 %v17770_v52  ;;  %v20618_v20 = vpop.f32.mrf.mxu0  ;;  %v9807_v33 = vshll.u32 %v17753_v3, 16  ;;  %v17771_v52 = vld [vmem:[#allocation3 + $0x48] sm:$0xff]  ;;  %v9048_v30 = vrot.slane %v9046_v25, 1 }
 0x523   : > { %v9809_v14 = vrot.slane %v9807_v33, 4 }
 0x525   : > { %9252 = vmatmul.bf16.gmra.mxu3 %v9041_v28 }
 0x526   : > { %v20620_v43 = vpop.f32.mrf.mxu1  ;;  %v8481_v26 = vpop.f32.mrf.mxu2 }
 0x527   : > { %v8621_v62 = vadd.f32 %v8481_v26, %v20262_v8  ;;  %v20633_v8 = vadd.f32 %v20568_v56, %v20592_v13  ;;  %v9049_v56 = vsel %vm1732_vm1, %v9044_v47, %v9048_v30  ;;  %v9806_v13 = vrot.slane %v9804_v38, 3 }
 0x528   : > { %v9213_v42 = vpop.f32.mrf.mxu3  ;;  %v9050_v38 = vshrl.u32 %v17720_v16, 16 }
 0x529   : > { %v20626_v35 = vadd.f32 %v9210_v58, %v8621_v62  ;;  %v20629_v59 = vpop.f32.mrf.mxu0  ;;  %v9810_v26 = vor.u32 %v9809_v14, %v9806_v13 }
 0x52a   : > { %v9052_v13 = vor.u32 %v9050_v38, %v9048_v30 }
 0x52b   : > { %8523 = vmatmul.bf16.gmra.mxu2 %v17686_v24  ;;  %v17687_v24 = vld [vmem:[#allocation3 + $0x9c] sm:$0xff]  ;;  %v9811_v3 = vsel %vm541_vm0, %v9801_v31, %v9810_v26 }
 0x52c   : > { %10014 = vmatmul.bf16.gmra.mxu0 %v9802_v48  ;;  %v9054_v48 = vshll.u32 %v17721_v27, 16 }
 0x52e   : > { %v20635_v19 = vpop.f32.mrf.mxu1  ;;  %v8484_v11 = vpop.f32.mrf.mxu2  ;;  %v9056_v33 = vrot.slane %v9054_v48, 1 }
 0x530   : > { %v9215_v58 = vpop.f32.mrf.mxu3  ;;  %v9057_v14 = vsel %vm1732_vm1, %v9052_v13, %v9056_v33  ;;  %v17773_v13 = vld [vmem:[#allocation3 + $0x58] sm:$0xff] }
 0x531   : > { %10483 = vmatmul.bf16.gmra.mxu1 %v17771_v52  ;;  %v9977_v49 = vpop.f32.mrf.mxu0  ;;  %v9813_v52 = vshrl.u32 %v17754_v44, 16  ;;  %v17755_v44 = vld [vmem:[#allocation3 + $0xc4] sm:$0xff] }
 0x533   : > { %v9815_v49 = vrot.slane %v9813_v52, 3  ;;  %v9058_v52 = vshrl.u32 %v17721_v27, 16 }
 0x535   : > { %9257 = vmatmul.bf16.gmra.mxu3 %v9049_v56 }
 0x536   : > { %v8118_v28 = vpop.f32.mrf.mxu1  ;;  %v8486_v41 = vpop.f32.mrf.mxu2 }
 0x537   : > { %v8623_v62 = vadd.f32 %v8486_v41, %v20313_v53  ;;  %v9818_v28 = vrot.slane %v9816_v10, 4 }
 0x538   : > { %v9218_v42 = vpop.f32.mrf.mxu3 }
 0x539   : > { %v20645_v17 = vadd.f32 %v9215_v58, %v8623_v62  ;;  %v20648_v25 = vpop.f32.mrf.mxu0 }
 0x53b   : > { %8528 = vmatmul.bf16.gmra.mxu2 %v17687_v24  ;;  %v17722_v24 = vld [vmem:[#allocation3 + $0xb4] sm:$0xff] }
 0x53c   : > { %10019 = vmatmul.bf16.gmra.mxu0 %v9811_v3  ;;  %v17688_v3 = vld [vmem:[#allocation3 + $0xa4] sm:$0xff]  ;;  %v9062_v30 = vshll.u32 %v17722_v24, 16 }
 0x53e   : > { %v10449_v11 = vpop.f32.mrf.mxu1  ;;  %v8489_v47 = vpop.f32.mrf.mxu2  ;;  %v9064_v10 = vrot.slane %v9062_v30, 1 }
 0x53f   : > { %v20651_v53 = vadd.f32 %v10449_v11, %v20457_v0  ;;  %v8624_v58 = vadd.f32 %v8489_v47, %v20336_v32  ;;  %v9819_v0 = vor.u32 %v9818_v28, %v9815_v49 }
 0x540   : > { %v9220_v56 = vpop.f32.mrf.mxu3 }
 0x541   : > { %v20654_v31 = vadd.f32 %v9218_v42, %v8624_v58  ;;  %10488 = vmatmul.bf16.gmra.mxu1 %v17772_v57  ;;  %v20657_v16 = vpop.f32.mrf.mxu0  ;;  %v9820_v42 = vsel %vm541_vm0, %v9810_v26, %v9819_v0  ;;  %v9822_v58 = vshrl.u32 %v17755_v44, 16  ;;  %v9825_v57 = vshll.u32 %v17755_v44, 16  ;;  %v17823_v26 = vld [vmem:[%s21634_s3 + $0x158] sm:$0xff] }
 0x542   : > { %11173 = vmatpush.bf16.msra.mxu2 %v17823_v26 }
 0x545   : > { %9262 = vmatmul.bf16.gmra.mxu3 %v9057_v14  ;;  %v9060_v14 = vor.u32 %v9058_v52, %v9056_v33 }
 0x546   : > { %v10451_v41 = vpop.f32.mrf.mxu1  ;;  %v8491_v62 = vpop.f32.mrf.mxu2 }
 0x547   : > { %v20660_v48 = vadd.f32 %v10451_v41, %v20482_v2  ;;  %v9065_v28 = vsel %vm1732_vm1, %v9060_v14, %v9064_v10  ;;  %v9824_v41 = vrot.slane %v9822_v58, 3  ;;  %v9827_v62 = vrot.slane %v9825_v57, 4  ;;  %v17689_v58 = vld [vmem:[#allocation3 + $0xac] sm:$0xff] }
 0x548   : > { %v9223_v32 = vpop.f32.mrf.mxu3 }
 0x549   : > { %v9985_v11 = vpop.f32.mrf.mxu0 }
 0x54b   : > { %8533 = vmatmul.bf16.gmra.mxu2 %v17688_v3  ;;  %v9475_v3 = vld [vmem:[#allocation3 + $0xcc] sm:$0xf] }
 0x54c   : > { %10024 = vmatmul.bf16.gmra.mxu0 %v9820_v42  ;;  %v20672_v42 = vor.u32 %v9827_v62, %v9824_v41  ;;  %v9589_v33 = vunpack.c.l.b16 %v9475_v3  ;;  %v17774_v3 = vld [vmem:[#allocation3 + $0x60] sm:$0xff] }
 0x54e   : > { %v10454_v47 = vpop.f32.mrf.mxu1  ;;  %v8494_v38 = vpop.f32.mrf.mxu2  ;;  %v9829_v57 = vsel %vm541_vm0, %v9819_v0, %v20672_v42 }
 0x54f   : > { %v8626_v56 = vadd.f32 %v8494_v38, %v20374_v1  ;;  %v17855_v47 = vld [vmem:[%s21634_s3 + $0x198] sm:$0xff] }
 0x550   : > { %v9225_v2 = vpop.f32.mrf.mxu3  ;;  %v20681_v38 = vld [vmem:[#allocation3 + $0xbc] sm:$0xff]  ;;  %11930 = vmatpush.bf16.msra.mxu3 %v17855_v47 }
 0x551   : > { %v20664_v49 = vadd.f32 %v9223_v32, %v8626_v56  ;;  %10493 = vmatmul.bf16.gmra.mxu1 %v17773_v13  ;;  %v20670_v27 = vpop.f32.mrf.mxu0  ;;  %v9614_v56 = vpack.c.b16 %v9589_v33, %v9589_v33  ;;  %v9066_v13 = vshrl.u32 %v17722_v24, 16  ;;  %v9070_v14 = vshll.u32 %v20681_v38, 16  ;;  %v17822_v24 = vld [vmem:[%s21634_s3 + $0x150] sm:$0xff] }
 0x552   : > { %11174 = vmatpush.bf16.msra.mxu2 %v17822_v24 }
 0x553   : > { %v9831_v41 = vshrl.u32 %v9614_v56, 16  ;;  %v9834_v62 = vshll.u32 %v9614_v56, 16  ;;  %v9072_v33 = vrot.slane %v9070_v14, 1  ;;  %v17885_v14 = vld [vmem:[%s21634_s3 + $0x1c8] sm:$0xff] }
 0x555   : > { %9267 = vmatmul.bf16.gmra.mxu3 %v9065_v28  ;;  %v9068_v28 = vor.u32 %v9066_v13, %v9064_v10  ;;  %v17886_v10 = vld [vmem:[%s21634_s3 + $0x1d0] sm:$0xff]  ;;  %v9833_v47 = vrot.slane %v9831_v41, 3  ;;  %v17853_v13 = vld [vmem:[%s21634_s3 + $0x188] sm:$0xff] }
 0x556   : > { %v10456_v1 = vpop.f32.mrf.mxu1  ;;  %v8496_v30 = vpop.f32.mrf.mxu2 }
 0x557   : > { %v20675_v32 = vadd.f32 %v10456_v1, %v20504_v60  ;;  %v8627_v44 = vadd.f32 %v8496_v30, %v20401_v39  ;;  %v17887_v39 = vld [vmem:[%s21634_s3 + $0x1d8] sm:$0xff]  ;;  %v8746_v30 = vld [vmem:[#allocation3 + $0xc4] sm:$0x1] }
 0x558   : > { %v9228_v11 = vpop.f32.mrf.mxu3  ;;  %12459 = vmatpush.bf16.msra.mxu0 %v17887_v39  ;;  %v17821_v39 = vld [vmem:[%s21634_s3 + $0x148] sm:$0xff] }
 0x559   : > { %v20683_v52 = vadd.f32 %v9225_v2, %v8627_v44  ;;  %v20687_v60 = vpop.f32.mrf.mxu0  ;;  %v17854_v44 = vld [vmem:[%s21634_s3 + $0x190] sm:$0xff]  ;;  %v8860_v11 = vunpack.c.l.b16 %v8746_v30  ;;  %11175 = vmatpush.bf16.msra.mxu2 %v17821_v39 }
 0x55a   : > { %11931 = vmatpush.bf16.msra.mxu3 %v17854_v44  ;;  %v17690_v30 = vld [vmem:[#allocation3 + $0xb4] sm:$0xff]  ;;  %v17820_v44 = vld [vmem:[%s21634_s3 + $0x140] sm:$0xff] }
 0x55b   : > { %8538 = vmatmul.bf16.gmra.mxu2 %v17689_v58  ;;  %v9836_v58 = vrot.slane %v9834_v62, 4 }
 0x55c   : > { %10029 = vmatmul.bf16.gmra.mxu0 %v9829_v57  ;;  %v17919_v57 = vld [vmem:[%s21634_s3 + $0x218] sm:$0xff] }
 0x55d   : > { %12460 = vmatpush.bf16.msra.mxu0 %v17886_v10  ;;  %13188 = vmatpush.bf16.msra.mxu1 %v17919_v57  ;;  %v9837_v41 = vor.u32 %v9836_v58, %v9833_v47  ;;  %v17852_v10 = vld [vmem:[%s21634_s3 + $0x180] sm:$0xff]  ;;  %v9074_v57 = vshrl.u32 %v20681_v38, 16 }
 0x55e   : > { %v10459_v2 = vpop.f32.mrf.mxu1  ;;  %v8499_v26 = vpop.f32.mrf.mxu2  ;;  %11932 = vmatpush.bf16.msra.mxu3 %v17853_v13  ;;  %11176 = vmatpush.bf16.msra.mxu2 %v17820_v44 }
 0x55f   : > { %v20694_v0 = vadd.f32 %v10459_v2, %v20513_v40  ;;  %v9073_v40 = vsel %vm1732_vm1, %v9068_v28, %v9072_v33  ;;  %v8885_v28 = vpack.c.b16 %v8860_v11, %v8860_v11  ;;  %v9838_v11 = vsel %vm541_vm0, %v20672_v42, %v9837_v41  ;;  %v17828_v41 = vld [vmem:[#allocation3 + $0x18] sm:$0xf0] }
 0x560   : > { %v9230_v1 = vpop.f32.mrf.mxu3  ;;  %v9076_v42 = vor.u32 %v9074_v57, %v9072_v33 }
 0x561   : > { %10498 = vmatmul.bf16.gmra.mxu1 %v17774_v3  ;;  %v9992_v56 = vpop.f32.mrf.mxu0  ;;  %12461 = vmatpush.bf16.msra.mxu0 %v17885_v14  ;;  %v17775_v14 = vld [vmem:[#allocation3 + $0x68] sm:$0xff] }
 0x562   : > { %11933 = vmatpush.bf16.msra.mxu3 %v17852_v10 }
 0x565   : > { %9272 = vmatmul.bf16.gmra.mxu3 %v9073_v40  ;;  %v17884_v40 = vld [vmem:[%s21634_s3 + $0x1c0] sm:$0xff] }
 0x566   : > { %v10461_v2 = vpop.f32.mrf.mxu1  ;;  %v8501_v26 = vpop.f32.mrf.mxu2  ;;  %12462 = vmatpush.bf16.msra.mxu0 %v17884_v40 }
 0x567   : > { %v8629_v62 = vadd.f32 %v8501_v26, %v20460_v34  ;;  %v9078_v34 = vshll.u32 %v8885_v28, 16  ;;  %v16884_v28 = vld [vmem:[#allocation3 + $0x18] sm:$0x8] }
 0x568   : > { %v9233_v3 = vpop.f32.mrf.mxu3  ;;  %v16885_v38 = vor.u32 %v17828_v41, %v16884_v28 }
 0x569   : > { %v20719_v24 = vadd.f32 %v9230_v1, %v8629_v62  ;;  %v20732_v47 = vpop.f32.mrf.mxu0  ;;  %v9080_v56 = vrot.slane %v9078_v34, 1 }
 0x56b   : > { %8543 = vmatmul.bf16.gmra.mxu2 %v17690_v30  ;;  %v9081_v62 = vsel %vm1732_vm1, %v9076_v42, %v9080_v56  ;;  %v17829_v30 = vld [vmem:[#allocation3 + $0x20] sm:$0xff] }
 0x56c   : > { %10034 = vmatmul.bf16.gmra.mxu0 %v9838_v11  ;;  %v11639_v40 = vshrl.u32 %v17829_v30, 16  ;;  %v11642_v34 = vshll.u32 %v17829_v30, 16  ;;  %v11634_v11 = vshll.u32 %v16885_v38, 16 }
 0x56e   : > { %v10464_v1 = vpop.f32.mrf.mxu1  ;;  %v8504_v58 = vpop.f32.mrf.mxu2  ;;  %v11641_v57 = vrot.slane %v11639_v40, 3  ;;  %v11636_v42 = vrot.slane %v11634_v11, 4 }
 0x56f   : > { %v20736_v39 = vadd.f32 %v10464_v1, %v20523_v50  ;;  %v8630_v13 = vadd.f32 %v8504_v58, %v20486_v9  ;;  %v17691_v1 = vld [vmem:[#allocation3 + $0xbc] sm:$0xff] }
 0x570   : > { %v9235_v2 = vpop.f32.mrf.mxu3  ;;  %v17860_v58 = vld [vmem:[#allocation3 + $0x1c] sm:$0xff] }
 0x571   : > { %21673 = vst [vmem:[#allocation6_spill] sm:$0xff] %v20736_v39  ;;  %v20739_v26 = vadd.f32 %v9233_v3, %v8630_v13  ;;  %10503 = vmatmul.bf16.gmra.mxu1 %v17775_v14  ;;  %v20742_v44 = vpop.f32.mrf.mxu0  ;;  %v11631_v3 = vshrl.u32 %v16885_v38, 16  ;;  %v11644_v13 = vrot.slane %v11642_v34, 4  ;;  %v17796_v14 = vld [vmem:[#allocation3 + $0x10] sm:$0xff] }
 0x573   : > { %v11633_v2 = vrot.slane %v11631_v3, 3  ;;  %v11645_v30 = vor.u32 %v11644_v13, %v11641_v57  ;;  %v10902_v57 = vshrl.u32 %v17796_v14, 16 }
 0x575   : > { %9277 = vmatmul.bf16.gmra.mxu3 %v9081_v62  ;;  %v17797_v62 = vld [vmem:[#allocation3 + $0x18] sm:$0xff]  ;;  %v11637_v38 = vor.u32 %v11636_v42, %v11633_v2 }
 0x576   : > { %v10466_v10 = vpop.f32.mrf.mxu1  ;;  %v8506_v50 = vpop.f32.mrf.mxu2  ;;  %v10909_v40 = vshll.u32 %v17797_v62, 16 }
 0x577   : > { %v20745_v9 = vadd.f32 %v10466_v10, %v20534_v22  ;;  %v17776_v10 = vld [vmem:[#allocation3 + $0x70] sm:$0xff]  ;;  %v11646_v34 = vsel %vm541_vm0, %v11637_v38, %v11645_v30 }
 0x578   : > { %v9238_v33 = vpop.f32.mrf.mxu3  ;;  %v10911_v13 = vrot.slane %v10909_v40, 1 }
 0x579   : > { %21674 = vst [vmem:[#allocation7_spill] sm:$0xff] %v20745_v9  ;;  %v10000_v56 = vpop.f32.mrf.mxu0  ;;  %v10904_v9 = vshll.u32 %v17796_v14, 16 }
 0x57b   : > { %8548 = vmatmul.bf16.gmra.mxu2 %v17691_v1  ;;  %v17830_v1 = vld [vmem:[#allocation3 + $0x28] sm:$0xff]  ;;  %v10906_v11 = vrot.slane %v10904_v9, 1 }
 0x57c   : > { %12463 = vmatmul.bf16.vlgmr.msra.gmra.mxu0 %v17860_v58 }
 0x57d   : > { %v10907_v42 = vor.u32 %v10906_v11, %v10902_v57 }
 0x57e   : > { %v10469_v28 = vpop.f32.mrf.mxu1  ;;  %v8509_v41 = vpop.f32.mrf.mxu2 }
 0x57f   : > { %v8632_v22 = vadd.f32 %v8509_v41, %v20506_v63  ;;  %v11648_v63 = vshrl.u32 %v17830_v1, 16  ;;  %v11651_v28 = vshll.u32 %v17830_v1, 16  ;;  %v10912_v38 = vsel %vm1732_vm1, %v10907_v42, %v10911_v13  ;;  %v17798_v1 = vld [vmem:[#allocation3 + $0x20] sm:$0xff] }
 0x580   : > { %v9240_v50 = vpop.f32.mrf.mxu3  ;;  %v10913_v42 = vshrl.u32 %v17797_v62, 16 }
 0x581   : > { %v20748_v39 = vadd.f32 %v9238_v33, %v8632_v22  ;;  %10508 = vmatmul.bf16.gmra.mxu1 %v17776_v10  ;;  %v20751_v3 = vpop.f32.mrf.mxu0  ;;  %v17861_v10 = vld [vmem:[#allocation3 + $0x24] sm:$0xff]  ;;  %v11653_v9 = vrot.slane %v11651_v28, 4 }
 0x582   : > { %21675 = vst [vmem:[#allocation8_spill] sm:$0xff] %v20751_v3 }
 0x585   : > { %11934 = vmatmul.bf16.vlgmr.msra.gmra.mxu3 %v11646_v34  ;;  %v11650_v34 = vrot.slane %v11648_v63, 3  ;;  %v17831_v63 = vld [vmem:[#allocation3 + $0x30] sm:$0xff] }
 0x586   : > { %v10471_v58 = vpop.f32.mrf.mxu1  ;;  %v8511_v56 = vpop.f32.mrf.mxu2 }
 0x587   : > { %v20754_v41 = vadd.f32 %v10471_v58, %v20549_v46  ;;  %v8633_v33 = vadd.f32 %v8511_v56, %v20515_v36  ;;  %v11654_v46 = vor.u32 %v11653_v9, %v11650_v34  ;;  %v17777_v36 = vld [vmem:[#allocation3 + $0x78] sm:$0xff]  ;;  %v10917_v56 = vshll.u32 %v17798_v1, 16 }
 0x588   : > { %v9243_v2 = vpop.f32.mrf.mxu3 }
 0x589   : > { %21676 = vst [vmem:[#allocation11_spill] sm:$0xff] %v20754_v41  ;;  %v20757_v22 = vadd.f32 %v9240_v50, %v8633_v33  ;;  %v20760_v3 = vpop.f32.mrf.mxu0  ;;  %v17918_v50 = vld [vmem:[%s21634_s3 + $0x210] sm:$0xff]  ;;  %v11655_v57 = vsel %vm541_vm0, %v11645_v30, %v11654_v46 }
 0x58a   : > { %13189 = vmatpush.bf16.msra.mxu1 %v17918_v50 }
 0x58b   : > { %11177 = vmatmul.bf16.vlgmr.msra.gmra.mxu2 %v10912_v38  ;;  %v11660_v38 = vshll.u32 %v17831_v63, 16 }
 0x58c   : > { %12468 = vmatmul.bf16.gmra.mxu0 %v17861_v10  ;;  %v10919_v10 = vrot.slane %v10917_v56, 1  ;;  %v17799_v56 = vld [vmem:[#allocation3 + $0x28] sm:$0xff] }
 0x58d   : > { %v11662_v41 = vrot.slane %v11660_v38, 4 }
 0x58e   : > { %v10474_v14 = vpop.f32.mrf.mxu1  ;;  %v8514_v40 = vpop.f32.mrf.mxu2 }
 0x58f   : > { %v20763_v58 = vadd.f32 %v10474_v14, %v20561_v37  ;;  %v11657_v37 = vshrl.u32 %v17831_v63, 16  ;;  %v10915_v14 = vor.u32 %v10913_v42, %v10911_v13  ;;  %v17778_v13 = vld [vmem:[#allocation3 + $0x80] sm:$0xff]  ;;  %v17832_v42 = vld [vmem:[#allocation3 + $0x38] sm:$0xff] }
 0x590   : > { %v9245_v11 = vpop.f32.mrf.mxu3 }
 0x591   : > { %21677 = vst [vmem:[#allocation12_spill] sm:$0xff] %v20763_v58  ;;  %10513 = vmatmul.bf16.gmra.mxu1 %v17777_v36  ;;  %v10007_v28 = vpop.f32.mrf.mxu0  ;;  %v17862_v36 = vld [vmem:[#allocation3 + $0x2c] sm:$0xff]  ;;  %v10920_v58 = vsel %vm1732_vm1, %v10915_v14, %v10919_v10  ;;  %v11659_v30 = vrot.slane %v11657_v37, 3 }
 0x593   : > { %v11663_v28 = vor.u32 %v11662_v41, %v11659_v30  ;;  %v10921_v41 = vshrl.u32 %v17798_v1, 16 }
 0x595   : > { %11939 = vmatmul.bf16.gmra.mxu3 %v11655_v57 }
 0x596   : > { %v10476_v33 = vpop.f32.mrf.mxu1  ;;  %v8516_v2 = vpop.f32.mrf.mxu2 }
 0x597   : > { %v8635_v34 = vadd.f32 %v8516_v2, %v20525_v21  ;;  %v10925_v2 = vshll.u32 %v17799_v56, 16 }
 0x598   : > { %v9248_v9 = vpop.f32.mrf.mxu3 }
 0x599   : > { %v20770_v40 = vadd.f32 %v9245_v11, %v8635_v34  ;;  %v20773_v57 = vpop.f32.mrf.mxu0  ;;  %v10927_v14 = vrot.slane %v10925_v2, 1 }
 0x59b   : > { %11182 = vmatmul.bf16.gmra.mxu2 %v10920_v58  ;;  %v11664_v58 = vsel %vm541_vm0, %v11654_v46, %v11663_v28 }
 0x59c   : > { %12473 = vmatmul.bf16.gmra.mxu0 %v17862_v36  ;;  %v11669_v36 = vshll.u32 %v17832_v42, 16 }
 0x59e   : > { %v10479_v50 = vpop.f32.mrf.mxu1  ;;  %v8519_v62 = vpop.f32.mrf.mxu2  ;;  %v11671_v46 = vrot.slane %v11669_v36, 4 }
 0x59f   : > { %v20776_v63 = vadd.f32 %v10479_v50, %v20589_v18  ;;  %v8636_v21 = vadd.f32 %v8519_v62, %v20536_v15  ;;  %v11666_v18 = vshrl.u32 %v17832_v42, 16  ;;  %v17863_v50 = vld [vmem:[#allocation3 + $0x34] sm:$0xff]  ;;  %v17779_v42 = vld [vmem:[#allocation3 + $0x88] sm:$0xff] }
 0x5a0   : > { %v9250_v11 = vpop.f32.mrf.mxu3 }
 0x5a1   : > { %21678 = vst [vmem:[#allocation9_spill] sm:$0xff] %v20776_v63  ;;  %v20779_v33 = vadd.f32 %v9248_v9, %v8636_v21  ;;  %10518 = vmatmul.bf16.gmra.mxu1 %v17778_v13  ;;  %v20782_v37 = vpop.f32.mrf.mxu0  ;;  %v10923_v9 = vor.u32 %v10921_v41, %v10919_v10  ;;  %v11668_v21 = vrot.slane %v11666_v18, 3  ;;  %v17833_v41 = vld [vmem:[#allocation3 + $0x40] sm:$0xff] }
 0x5a3   : > { %v10928_v62 = vsel %vm1732_vm1, %v10923_v9, %v10927_v14  ;;  %v11672_v1 = vor.u32 %v11671_v46, %v11668_v21  ;;  %v11678_v21 = vshll.u32 %v17833_v41, 16 }
 0x5a5   : > { %11944 = vmatmul.bf16.gmra.mxu3 %v11664_v58 }
 0x5a6   : > { %v10481_v38 = vpop.f32.mrf.mxu1  ;;  %v8521_v34 = vpop.f32.mrf.mxu2 }
 0x5a7   : > { %v20785_v15 = vadd.f32 %v10481_v38, %v20600_v5  ;;  %v17800_v34 = vld [vmem:[#allocation3 + $0x30] sm:$0xff]  ;;  %v11673_v38 = vsel %vm541_vm0, %v11663_v28, %v11672_v1  ;;  %v17864_v28 = vld [vmem:[#allocation3 + $0x3c] sm:$0xff] }
 0x5a8   : > { %v9253_v30 = vpop.f32.mrf.mxu3  ;;  %v10933_v10 = vshll.u32 %v17800_v34, 16 }
 0x5a9   : > { %21679 = vst [vmem:[#allocation13_spill] sm:$0xff] %v20785_v15  ;;  %v10015_v13 = vpop.f32.mrf.mxu0 }
 0x5aa   : > { %v11675_v13 = vshrl.u32 %v17833_v41, 16  ;;  %v17801_v41 = vld [vmem:[#allocation3 + $0x38] sm:$0xff] }
 0x5ab   : > { %11187 = vmatmul.bf16.gmra.mxu2 %v10928_v62  ;;  %v10935_v62 = vrot.slane %v10933_v10, 1 }
 0x5ac   : > { %12478 = vmatmul.bf16.gmra.mxu0 %v17863_v50  ;;  %v10929_v50 = vshrl.u32 %v17799_v56, 16  ;;  %v10104_v56 = vadd.f32 %v20577_v7, %v20603_v12 }
 0x5ae   : > { %v10484_v11 = vpop.f32.mrf.mxu1  ;;  %v8524_v58 = vpop.f32.mrf.mxu2 }
 0x5af   : > { %v8638_v2 = vadd.f32 %v8524_v58, %v20551_v61  ;;  %v10931_v11 = vor.u32 %v10929_v50, %v10927_v14  ;;  %v10941_v50 = vshll.u32 %v17801_v41, 16 }
 0x5b0   : > { %v9255_v63 = vpop.f32.mrf.mxu3 }
 0x5b1   : > { %v20789_v5 = vadd.f32 %v9253_v30, %v8638_v2  ;;  %10523 = vmatmul.bf16.gmra.mxu1 %v17779_v42  ;;  %v20792_v18 = vpop.f32.mrf.mxu0  ;;  %v10936_v2 = vsel %vm1732_vm1, %v10931_v11, %v10935_v62  ;;  %v11677_v42 = vrot.slane %v11675_v13, 3  ;;  %v10943_v11 = vrot.slane %v10941_v50, 1 }
 0x5b5   : > { %11949 = vmatmul.bf16.gmra.mxu3 %v11673_v38  ;;  %v11680_v38 = vrot.slane %v11678_v21, 4  ;;  %v17834_v21 = vld [vmem:[#allocation3 + $0x48] sm:$0xff] }
 0x5b6   : > { %v10486_v36 = vpop.f32.mrf.mxu1  ;;  %v8526_v9 = vpop.f32.mrf.mxu2 }
 0x5b7   : > { %v20795_v61 = vadd.f32 %v10486_v36, %v20633_v8  ;;  %v8639_v30 = vadd.f32 %v8526_v9, %v20557_v51  ;;  %v11681_v51 = vor.u32 %v11680_v38, %v11677_v42  ;;  %v17917_v9 = vld [vmem:[%s21634_s3 + $0x208] sm:$0xff] }
 0x5b8   : > { %v9258_v46 = vpop.f32.mrf.mxu3  ;;  %13190 = vmatpush.bf16.msra.mxu1 %v17917_v9 }
 0x5b9   : > { %v20798_v58 = vadd.f32 %v9255_v63, %v8639_v30  ;;  %v20801_v15 = vpop.f32.mrf.mxu0  ;;  %v17780_v63 = vld [vmem:[#allocation3 + $0x90] sm:$0xff]  ;;  %v11682_v13 = vsel %vm541_vm0, %v11672_v1, %v11681_v51  ;;  %v10937_v46 = vshrl.u32 %v17800_v34, 16  ;;  %v10106_v34 = vadd.f32 %v20595_v54, %v20612_v4 }
 0x5ba   : > { %v10107_v54 = vadd.f32 %v20606_v55, %v20626_v35  ;;  %v17803_v35 = vld [vmem:[#allocation3 + $0x48] sm:$0xff] }
 0x5bb   : > { %11192 = vmatmul.bf16.gmra.mxu2 %v10936_v2  ;;  %v11687_v2 = vshll.u32 %v17834_v21, 16 }
 0x5bc   : > { %12483 = vmatmul.bf16.gmra.mxu0 %v17864_v28  ;;  %v11684_v28 = vshrl.u32 %v17834_v21, 16  ;;  %v17802_v21 = vld [vmem:[#allocation3 + $0x40] sm:$0xff] }
 0x5be   : > { %v10489_v8 = vpop.f32.mrf.mxu1  ;;  %v8529_v10 = vpop.f32.mrf.mxu2  ;;  %v11686_v1 = vrot.slane %v11684_v28, 3 }
 0x5bf   : > { %v20805_v36 = vadd.f32 %v10489_v8, %v10104_v56  ;;  %v10939_v56 = vor.u32 %v10937_v46, %v10935_v62  ;;  %v17865_v10 = vld [vmem:[#allocation3 + $0x44] sm:$0xff]  ;;  %v10949_v46 = vshll.u32 %v17802_v21, 16 }
 0x5c0   : > { %v9260_v14 = vpop.f32.mrf.mxu3 }
 0x5c1   : > { %21680 = vst [vmem:[#allocation10_spill] sm:$0xff] %v20805_v36  ;;  %10528 = vmatmul.bf16.gmra.mxu1 %v17780_v63  ;;  %v10022_v30 = vpop.f32.mrf.mxu0  ;;  %v10944_v63 = vsel %vm1732_vm1, %v10939_v56, %v10943_v11  ;;  %v11689_v36 = vrot.slane %v11687_v2, 4  ;;  %v17835_v2 = vld [vmem:[#allocation3 + $0x50] sm:$0xff]  ;;  %v10945_v56 = vshrl.u32 %v17801_v41, 16 }
 0x5c5   : > { %11954 = vmatmul.bf16.gmra.mxu3 %v11682_v13 }
 0x5c6   : > { %v10491_v7 = vpop.f32.mrf.mxu1  ;;  %v8531_v12 = vpop.f32.mrf.mxu2 }
 0x5c7   : > { %v8641_v42 = vadd.f32 %v8531_v12, %v20570_v29  ;;  %v11690_v29 = vor.u32 %v11689_v36, %v11686_v1 }
 0x5c8   : > { %v9263_v38 = vpop.f32.mrf.mxu3 }
 0x5c9   : > { %v20812_v8 = vadd.f32 %v9260_v14, %v8641_v42  ;;  %v20815_v13 = vpop.f32.mrf.mxu0  ;;  %v17781_v14 = vld [vmem:[#allocation3 + $0x98] sm:$0xff]  ;;  %v11691_v28 = vsel %vm541_vm0, %v11681_v51, %v11690_v29 }
 0x5cb   : > { %11197 = vmatmul.bf16.gmra.mxu2 %v10944_v63  ;;  %v11696_v63 = vshll.u32 %v17835_v2, 16 }
 0x5cc   : > { %12488 = vmatmul.bf16.gmra.mxu0 %v17865_v10  ;;  %v10951_v10 = vrot.slane %v10949_v46, 1  ;;  %v17782_v46 = vld [vmem:[#allocation3 + $0xa0] sm:$0xff] }
 0x5ce   : > { %v10494_v9 = vpop.f32.mrf.mxu1  ;;  %v8534_v50 = vpop.f32.mrf.mxu2 }
 0x5cf   : > { %v20819_v30 = vadd.f32 %v10494_v9, %v10106_v34  ;;  %v8642_v62 = vadd.f32 %v8534_v50, %v20579_v45  ;;  %v11693_v45 = vshrl.u32 %v17835_v2, 16  ;;  %v10947_v34 = vor.u32 %v10945_v56, %v10943_v11  ;;  %v17866_v9 = vld [vmem:[#allocation3 + $0x4c] sm:$0xff] }
 0x5d0   : > { %v9265_v7 = vpop.f32.mrf.mxu3  ;;  %v10957_v11 = vshll.u32 %v17803_v35, 16 }
 0x5d1   : > { %v20822_v12 = vadd.f32 %v9263_v38, %v8642_v62  ;;  %10533 = vmatmul.bf16.gmra.mxu1 %v17781_v14  ;;  %v20825_v42 = vpop.f32.mrf.mxu0  ;;  %v10952_v51 = vsel %vm1732_vm1, %v10947_v34, %v10951_v10  ;;  %v11695_v50 = vrot.slane %v11693_v45, 3  ;;  %v11698_v62 = vrot.slane %v11696_v63, 4 }
 0x5d2   : > { %v10109_v45 = vadd.f32 %v20618_v20, %v20645_v17  ;;  %v10110_v17 = vadd.f32 %v20629_v59, %v20654_v31 }
 0x5d5   : > { %11959 = vmatmul.bf16.gmra.mxu3 %v11691_v28  ;;  %v11699_v28 = vor.u32 %v11698_v62, %v11695_v50 }
 0x5d6   : > { %v10496_v4 = vpop.f32.mrf.mxu1  ;;  %v8536_v36 = vpop.f32.mrf.mxu2 }
 0x5d7   : > { %v20829_v1 = vadd.f32 %v10496_v4, %v10107_v54  ;;  %v11700_v4 = vsel %vm541_vm0, %v11690_v29, %v11699_v28  ;;  %v17836_v36 = vld [vmem:[#allocation3 + $0x58] sm:$0xff] }
 0x5d8   : > { %v9268_v38 = vpop.f32.mrf.mxu3  ;;  %v11705_v50 = vshll.u32 %v17836_v36, 16 }
 0x5d9   : > { %v10030_v14 = vpop.f32.mrf.mxu0 }
 0x5db   : > { %11202 = vmatmul.bf16.gmra.mxu2 %v10952_v51  ;;  %v10959_v51 = vrot.slane %v10957_v11, 1 }
 0x5dc   : > { %12493 = vmatmul.bf16.gmra.mxu0 %v17866_v9  ;;  %v10953_v9 = vshrl.u32 %v17802_v21, 16 }
 0x5de   : > { %v10499_v7 = vpop.f32.mrf.mxu1  ;;  %v8539_v55 = vpop.f32.mrf.mxu2 }
 0x5df   : > { %v8644_v41 = vadd.f32 %v8539_v55, %v20597_v6  ;;  %v11702_v6 = vshrl.u32 %v17836_v36, 16  ;;  %v10955_v7 = vor.u32 %v10953_v9, %v10951_v10  ;;  %v17867_v55 = vld [vmem:[#allocation3 + $0x54] sm:$0xff]  ;;  %v17783_v10 = vld [vmem:[#allocation3 + $0xa8] sm:$0xff] }
 0x5e0   : > { %v9270_v2 = vpop.f32.mrf.mxu3  ;;  %v17804_v36 = vld [vmem:[#allocation3 + $0x50] sm:$0xff] }
 0x5e1   : > { %v20833_v54 = vadd.f32 %v9268_v38, %v8644_v41  ;;  %10538 = vmatmul.bf16.gmra.mxu1 %v17782_v46  ;;  %v20836_v56 = vpop.f32.mrf.mxu0  ;;  %v10960_v41 = vsel %vm1732_vm1, %v10955_v7, %v10959_v51  ;;  %v11704_v46 = vrot.slane %v11702_v6, 3  ;;  %v17837_v6 = vld [vmem:[#allocation3 + $0x60] sm:$0xff] }
 0x5e2   : > { %v11711_v7 = vshrl.u32 %v17837_v6, 16 }
 0x5e5   : > { %11964 = vmatmul.bf16.gmra.mxu3 %v11700_v4  ;;  %v11707_v4 = vrot.slane %v11705_v50, 4 }
 0x5e6   : > { %v10501_v63 = vpop.f32.mrf.mxu1  ;;  %v8541_v34 = vpop.f32.mrf.mxu2 }
 0x5e7   : > { %v20840_v62 = vadd.f32 %v10501_v63, %v10109_v45  ;;  %v8645_v38 = vadd.f32 %v8541_v34, %v20608_v23  ;;  %v11708_v23 = vor.u32 %v11707_v4, %v11704_v46  ;;  %v17916_v63 = vld [vmem:[%s21634_s3 + $0x200] sm:$0xff]  ;;  %v10965_v34 = vshll.u32 %v17804_v36, 16 }
 0x5e8   : > { %v9273_v14 = vpop.f32.mrf.mxu3  ;;  %13191 = vmatpush.bf16.msra.mxu1 %v17916_v63 }
 0x5e9   : > { %v20843_v29 = vadd.f32 %v9270_v2, %v8645_v38  ;;  %v20846_v20 = vpop.f32.mrf.mxu0  ;;  %v11709_v9 = vsel %vm541_vm0, %v11699_v28, %v11708_v23  ;;  %v10961_v38 = vshrl.u32 %v17803_v35, 16  ;;  %v10967_v14 = vrot.slane %v10965_v34, 1 }
 0x5ea   : > { %v11713_v28 = vrot.slane %v11711_v7, 3  ;;  %v10112_v35 = vadd.f32 %v20648_v25, %v20664_v49  ;;  %v10113_v25 = vadd.f32 %v20657_v16, %v20683_v52  ;;  %v17806_v52 = vld [vmem:[#allocation3 + $0x60] sm:$0xff] }
 0x5eb   : > { %11207 = vmatmul.bf16.gmra.mxu2 %v10960_v41  ;;  %v10963_v4 = vor.u32 %v10961_v38, %v10959_v51 }
 0x5ec   : > { %12498 = vmatmul.bf16.gmra.mxu0 %v17867_v55  ;;  %v11714_v55 = vshll.u32 %v17837_v6, 16  ;;  %v17805_v6 = vld [vmem:[#allocation3 + $0x58] sm:$0xff] }
 0x5ed   : > { %v10973_v38 = vshll.u32 %v17805_v6, 16 }
 0x5ee   : > { %v10504_v21 = vpop.f32.mrf.mxu1  ;;  %v8544_v11 = vpop.f32.mrf.mxu2 }
 0x5ef   : > { %v20850_v45 = vadd.f32 %v10504_v21, %v10110_v17  ;;  %v17868_v21 = vld [vmem:[#allocation3 + $0x5c] sm:$0xff]  ;;  %v10968_v11 = vsel %vm1732_vm1, %v10963_v4, %v10967_v14 }
 0x5f0   : > { %v9275_v2 = vpop.f32.mrf.mxu3 }
 0x5f1   : > { %10543 = vmatmul.bf16.gmra.mxu1 %v17783_v10  ;;  %v10037_v50 = vpop.f32.mrf.mxu0  ;;  %v11716_v10 = vrot.slane %v11714_v55, 4  ;;  %v17838_v55 = vld [vmem:[#allocation3 + $0x68] sm:$0xff] }
 0x5f5   : > { %11969 = vmatmul.bf16.gmra.mxu3 %v11709_v9 }
 0x5f6   : > { %v10506_v59 = vpop.f32.mrf.mxu1  ;;  %v8546_v31 = vpop.f32.mrf.mxu2 }
 0x5f7   : > { %v8647_v41 = vadd.f32 %v8546_v31, %v20620_v43  ;;  %v11717_v43 = vor.u32 %v11716_v10, %v11713_v28  ;;  %v11723_v28 = vshll.u32 %v17838_v55, 16 }
 0x5f8   : > { %v9278_v46 = vpop.f32.mrf.mxu3 }
 0x5f9   : > { %v20857_v17 = vadd.f32 %v9275_v2, %v8647_v41  ;;  %v20860_v9 = vpop.f32.mrf.mxu0  ;;  %v17784_v2 = vld [vmem:[#allocation3 + $0xb0] sm:$0xff]  ;;  %v11718_v7 = vsel %vm541_vm0, %v11708_v23, %v11717_v43 }
 0x5fb   : > { %11212 = vmatmul.bf16.gmra.mxu2 %v10968_v11  ;;  %v10975_v11 = vrot.slane %v10973_v38, 1  ;;  %v17785_v38 = vld [vmem:[#allocation3 + $0xb8] sm:$0xff] }
 0x5fc   : > { %12503 = vmatmul.bf16.gmra.mxu0 %v17868_v21  ;;  %v10969_v21 = vshrl.u32 %v17804_v36, 16 }
 0x5fe   : > { %v10509_v63 = vpop.f32.mrf.mxu1  ;;  %v8549_v34 = vpop.f32.mrf.mxu2 }
 0x5ff   : > { %v20864_v50 = vadd.f32 %v10509_v63, %v10112_v35  ;;  %v8648_v51 = vadd.f32 %v8549_v34, %v20635_v19  ;;  %v11720_v19 = vshrl.u32 %v17838_v55, 16  ;;  %v10971_v35 = vor.u32 %v10969_v21, %v10967_v14  ;;  %v17869_v63 = vld [vmem:[#allocation3 + $0x64] sm:$0xff] }
 0x600   : > { %v9280_v59 = vpop.f32.mrf.mxu3  ;;  %v10981_v14 = vshll.u32 %v17806_v52, 16 }
 0x601   : > { %v20867_v31 = vadd.f32 %v9278_v46, %v8648_v51  ;;  %10548 = vmatmul.bf16.gmra.mxu1 %v17784_v2  ;;  %v20870_v41 = vpop.f32.mrf.mxu0  ;;  %v10976_v23 = vsel %vm1732_vm1, %v10971_v35, %v10975_v11  ;;  %v11722_v34 = vrot.slane %v11720_v19, 3  ;;  %v11725_v51 = vrot.slane %v11723_v28, 4 }
 0x602   : > { %v10115_v19 = vadd.f32 %v20670_v27, %v20719_v24  ;;  %v10116_v24 = vadd.f32 %v20687_v60, %v20739_v26 }
 0x605   : > { %11974 = vmatmul.bf16.gmra.mxu3 %v11718_v7  ;;  %v11726_v7 = vor.u32 %v11725_v51, %v11722_v34 }
 0x606   : > { %v10511_v49 = vpop.f32.mrf.mxu1  ;;  %v8551_v4 = vpop.f32.mrf.mxu2 }
 0x607   : > { %v20874_v10 = vadd.f32 %v10511_v49, %v10113_v25  ;;  %v11727_v49 = vsel %vm541_vm0, %v11717_v43, %v11726_v7  ;;  %v17839_v4 = vld [vmem:[#allocation3 + $0x70] sm:$0xff] }
 0x608   : > { %v11935_v46 = vpop.f32.mrf.mxu3  ;;  %v11732_v34 = vshll.u32 %v17839_v4, 16 }
 0x609   : > { %v12469_v2 = vpop.f32.mrf.mxu0 }
 0x60b   : > { %11217 = vmatmul.bf16.gmra.mxu2 %v10976_v23  ;;  %v10983_v23 = vrot.slane %v10981_v14, 1 }
 0x60c   : > { %12508 = vmatmul.bf16.gmra.mxu0 %v17869_v63  ;;  %v10977_v63 = vshrl.u32 %v17805_v6, 16 }
 0x60e   : > { %v10514_v59 = vpop.f32.mrf.mxu1  ;;  %v11178_v16 = vpop.f32.mrf.mxu2 }
 0x60f   : > { %v11346_v36 = vadd.f32 %v11178_v16, %v20651_v53  ;;  %v11729_v53 = vshrl.u32 %v17839_v4, 16  ;;  %v10979_v59 = vor.u32 %v10977_v63, %v10975_v11  ;;  %v17870_v16 = vld [vmem:[#allocation3 + $0x6c] sm:$0xff]  ;;  %v17786_v11 = vld [vmem:[#allocation3 + $0xc0] sm:$0xff]  ;;  %v17840_v63 = vld [vmem:[#allocation3 + $0x78] sm:$0xff] }
 0x610   : > { %v11937_v55 = vpop.f32.mrf.mxu3  ;;  %v17807_v4 = vld [vmem:[#allocation3 + $0x68] sm:$0xff]  ;;  %v11738_v60 = vshrl.u32 %v17840_v63, 16  ;;  %v11741_v26 = vshll.u32 %v17840_v63, 16  ;;  %v20906_v63 = vld [vmem:[#allocation3 + $0x70] sm:$0xff] }
 0x611   : > { %v20878_v25 = vadd.f32 %v11935_v46, %v11346_v36  ;;  %10553 = vmatmul.bf16.gmra.mxu1 %v17785_v38  ;;  %v20881_v21 = vpop.f32.mrf.mxu0  ;;  %v10984_v36 = vsel %vm1732_vm1, %v10979_v59, %v10983_v23  ;;  %v11731_v38 = vrot.slane %v11729_v53, 3 }
 0x615   : > { %11979 = vmatmul.bf16.gmra.mxu3 %v11727_v49  ;;  %v11734_v49 = vrot.slane %v11732_v34, 4 }
 0x616   : > { %v10516_v28 = vpop.f32.mrf.mxu1  ;;  %v11180_v35 = vpop.f32.mrf.mxu2 }
 0x617   : > { %v20885_v51 = vadd.f32 %v10516_v28, %v10115_v19  ;;  %v11347_v46 = vadd.f32 %v11180_v35, %v20660_v48  ;;  %v11735_v48 = vor.u32 %v11734_v49, %v11731_v38  ;;  %v10989_v28 = vshll.u32 %v17807_v4, 16 }
 0x618   : > { %v11940_v2 = vpop.f32.mrf.mxu3 }
 0x619   : > { %v20888_v43 = vadd.f32 %v11937_v55, %v11347_v46  ;;  %v20891_v27 = vpop.f32.mrf.mxu0  ;;  %v11736_v35 = vsel %vm541_vm0, %v11726_v7, %v11735_v48  ;;  %v10985_v2 = vshrl.u32 %v17806_v52, 16  ;;  %v10991_v59 = vrot.slane %v10989_v28, 1 }
 0x61a   : > { %v11743_v7 = vrot.slane %v11741_v26, 4  ;;  %v10118_v52 = vadd.f32 %v20732_v47, %v20748_v39  ;;  %v17841_v47 = vld [vmem:[#allocation3 + $0x80] sm:$0xff] }
 0x61b   : > { %11222 = vmatmul.bf16.gmra.mxu2 %v10984_v36  ;;  %v10987_v38 = vor.u32 %v10985_v2, %v10983_v23  ;;  %v17892_v2 = vld [vmem:[#allocation3 + $0x1c] sm:$0xff] }
 0x61c   : > { %12513 = vmatmul.bf16.gmra.mxu0 %v17870_v16 }
 0x61e   : > { %v10519_v6 = vpop.f32.mrf.mxu1  ;;  %v11183_v14 = vpop.f32.mrf.mxu2 }
 0x61f   : > { %v20895_v19 = vadd.f32 %v10519_v6, %v10116_v24  ;;  %v17871_v24 = vld [vmem:[#allocation3 + $0x74] sm:$0xff]  ;;  %v10992_v6 = vsel %vm1732_vm1, %v10987_v38, %v10991_v59  ;;  %v11740_v14 = vrot.slane %v11738_v60, 3  ;;  %v10997_v60 = vshll.u32 %v20906_v63, 16 }
 0x620   : > { %v11942_v55 = vpop.f32.mrf.mxu3  ;;  %v10119_v38 = vadd.f32 %v20742_v44, %v20757_v22  ;;  %v12917_v22 = vshrl.u32 %v17892_v2, 16 }
 0x621   : > { %21681 = vst [vmem:[#allocation14_spill] sm:$0xff] %v20895_v19  ;;  %10558 = vmatmul.bf16.gmra.mxu1 %v17786_v11  ;;  %v12476_v53 = vpop.f32.mrf.mxu0 }
 0x622   : > { %v17787_v53 = vld [vmem:[#allocation3 + $0xc8] sm:$0xff] }
 0x625   : > { %11984 = vmatmul.bf16.gmra.mxu3 %v11736_v35 }
 0x626   : > { %v10521_v34 = vpop.f32.mrf.mxu1  ;;  %v11185_v46 = vpop.f32.mrf.mxu2 }
 0x627   : > { %v11349_v16 = vadd.f32 %v11185_v46, %v20675_v32  ;;  %v11744_v32 = vor.u32 %v11743_v7, %v11740_v14  ;;  %v10993_v14 = vshrl.u32 %v17807_v4, 16  ;;  %v11747_v7 = vshrl.u32 %v17841_v47, 16 }
 0x628   : > { %v11945_v36 = vpop.f32.mrf.mxu3 }
 0x629   : > { %v20899_v49 = vadd.f32 %v11942_v55, %v11349_v16  ;;  %v20902_v11 = vpop.f32.mrf.mxu0  ;;  %v11745_v26 = vsel %vm541_vm0, %v11735_v48, %v11744_v32  ;;  %v17893_v16 = vld [vmem:[#allocation3 + $0x24] sm:$0xff] }
 0x62a   : > { %21682 = vst [vmem:[#allocation15_spill] sm:$0xff] %v20902_v11  ;;  %v12924_v48 = vshll.u32 %v17893_v16, 16 }
 0x62b   : > { %11227 = vmatmul.bf16.gmra.mxu2 %v10992_v6 }
 0x62c   : > { %12518 = vmatmul.bf16.gmra.mxu0 %v17871_v24  ;;  %v12919_v24 = vshll.u32 %v17892_v2, 16 }
 0x62e   : > { %v10524_v28 = vpop.f32.mrf.mxu1  ;;  %v11188_v35 = vpop.f32.mrf.mxu2 }
 0x62f   : > { %v20908_v23 = vadd.f32 %v10524_v28, %v10118_v52  ;;  %v11350_v55 = vadd.f32 %v11188_v35, %v20694_v0  ;;  %v11750_v52 = vshll.u32 %v17841_v47, 16  ;;  %v17809_v47 = vld [vmem:[#allocation3 + $0x78] sm:$0xff] }
 0x630   : > { %v11947_v34 = vpop.f32.mrf.mxu3 }
 0x631   : > { %21683 = vst [vmem:[#allocation16_spill] sm:$0xff] %v20908_v23  ;;  %v20911_v46 = vadd.f32 %v11945_v36, %v11350_v55  ;;  %10563 = vmatmul.bf16.gmra.mxu1 %v17787_v53  ;;  %v20915_v39 = vpop.f32.mrf.mxu0  ;;  %v10999_v36 = vrot.slane %v10997_v60, 1  ;;  %v10995_v55 = vor.u32 %v10993_v14, %v10991_v59  ;;  %v17872_v53 = vld [vmem:[#allocation3 + $0x7c] sm:$0xff]  ;;  %v11749_v23 = vrot.slane %v11747_v7, 3 }
 0x632   : > { %21684 = vst [vmem:[#allocation17_spill] sm:$0xff] %v20915_v39  ;;  %v11752_v39 = vrot.slane %v11750_v52, 4  ;;  %v17842_v52 = vld [vmem:[#allocation3 + $0x88] sm:$0xff] }
 0x633   : > { %v11000_v34 = vsel %vm1732_vm1, %v10995_v55, %v10999_v36  ;;  %v21688_v55 = vld [vmem:[#allocation8_spill] sm:$0xff] }
 0x635   : > { %11989 = vmatmul.bf16.gmra.mxu3 %v11745_v26  ;;  %v12921_v26 = vrot.slane %v12919_v24, 1  ;;  %v11005_v24 = vshll.u32 %v17809_v47, 16 }
 0x636   : > { %v10526_v0 = vpop.f32.mrf.mxu1  ;;  %v11190_v6 = vpop.f32.mrf.mxu2 }
 0x637   : > { %v20919_v28 = vadd.f32 %v10526_v0, %v10119_v38  ;;  %v12926_v6 = vrot.slane %v12924_v48, 1  ;;  %v12922_v19 = vor.u32 %v12921_v26, %v12917_v22  ;;  %v11753_v38 = vor.u32 %v11752_v39, %v11749_v23  ;;  %v21686_v0 = vld [vmem:[#allocation6_spill] sm:$0xff]  ;;  %v17894_v26 = vld [vmem:[#allocation3 + $0x2c] sm:$0xff] }
 0x638   : > { %v11950_v35 = vpop.f32.mrf.mxu3  ;;  %v10121_v48 = vadd.f32 %v21688_v55, %v20770_v40  ;;  %v11001_v39 = vshrl.u32 %v20906_v63, 16 }
 0x639   : > { %21685 = vst [vmem:[#allocation18_spill] sm:$0xff] %v20919_v28  ;;  %v12484_v44 = vpop.f32.mrf.mxu0  ;;  %v12927_v14 = vsel %vm1732_vm1, %v12922_v19, %v12926_v6  ;;  %v11754_v7 = vsel %vm541_vm0, %v11744_v32, %v11753_v38  ;;  %v11756_v19 = vshrl.u32 %v17842_v52, 16 }
 0x63a   : > { %v21689_v44 = vld [vmem:[#allocation7_spill] sm:$0xff] }
 0x63b   : > { %11232 = vmatmul.bf16.gmra.mxu2 %v11000_v34  ;;  %v11007_v34 = vrot.slane %v11005_v24, 1  ;;  %v11758_v55 = vrot.slane %v11756_v19, 3 }
 0x63c   : > { %12523 = vmatmul.bf16.gmra.mxu0 %v17872_v53 }
 0x63e   : > { %v10529_v4 = vpop.f32.mrf.mxu1  ;;  %v11193_v60 = vpop.f32.mrf.mxu2 }
 0x63f   : > { %v11352_v28 = vadd.f32 %v11193_v60, %v21686_v0  ;;  %v11003_v4 = vor.u32 %v11001_v39, %v10999_v36  ;;  %v12928_v0 = vshrl.u32 %v17893_v16, 16 }
 0x640   : > { %v11952_v59 = vpop.f32.mrf.mxu3 }
 0x641   : > { %v20924_v11 = vadd.f32 %v11950_v35, %v11352_v28  ;;  %13192 = vmatmul.bf16.vlgmr.msra.gmra.mxu1 %v12927_v14  ;;  %v20927_v2 = vpop.f32.mrf.mxu0  ;;  %v11759_v28 = vshll.u32 %v17842_v52, 16  ;;  %v17873_v14 = vld [vmem:[#allocation3 + $0x84] sm:$0xff]  ;;  %v11008_v40 = vsel %vm1732_vm1, %v11003_v4, %v11007_v34  ;;  %v12930_v24 = vor.u32 %v12928_v0, %v12926_v6 }
 0x642   : > { %21687 = vst [vmem:[#allocation6_spill] sm:$0xff] %v20927_v2  ;;  %v10122_v52 = vadd.f32 %v20760_v3, %v20779_v33  ;;  %v11009_v33 = vshrl.u32 %v17809_v47, 16  ;;  %v12936_v47 = vshrl.u32 %v17894_v26, 16 }
 0x643   : > { %v11761_v2 = vrot.slane %v11759_v28, 4 }
 0x645   : > { %11994 = vmatmul.bf16.gmra.mxu3 %v11754_v7  ;;  %v12932_v7 = vshll.u32 %v17894_v26, 16 }
 0x646   : > { %v10531_v53 = vpop.f32.mrf.mxu1  ;;  %v11195_v23 = vpop.f32.mrf.mxu2 }
 0x647   : > { %v20932_v35 = vadd.f32 %v10531_v53, %v10121_v48  ;;  %v11353_v22 = vadd.f32 %v11195_v23, %v21689_v44  ;;  %v12934_v36 = vrot.slane %v12932_v7, 1  ;;  %v11762_v23 = vor.u32 %v11761_v2, %v11758_v55  ;;  %v21690_v2 = vld [vmem:[#allocation11_spill] sm:$0xff] }
 0x648   : > { %v11955_v32 = vpop.f32.mrf.mxu3 }
 0x649   : > { %v20935_v60 = vadd.f32 %v11952_v59, %v11353_v22  ;;  %v20938_v63 = vpop.f32.mrf.mxu0  ;;  %v17810_v59 = vld [vmem:[#allocation3 + $0x80] sm:$0xff]  ;;  %v12935_v44 = vsel %vm1732_vm1, %v12930_v24, %v12934_v36  ;;  %v11763_v28 = vsel %vm541_vm0, %v11753_v38, %v11762_v23  ;;  %v17843_v22 = vld [vmem:[#allocation3 + $0x90] sm:$0xff] }
 0x64a   : > { %v11013_v19 = vshll.u32 %v17810_v59, 16  ;;  %v17895_v32 = vld [vmem:[#allocation3 + $0x34] sm:$0xff] }
 0x64b   : > { %11237 = vmatmul.bf16.gmra.mxu2 %v11008_v40  ;;  %v11768_v40 = vshll.u32 %v17843_v22, 16 }
 0x64c   : > { %12528 = vmatmul.bf16.gmra.mxu0 %v17873_v14  ;;  %v11015_v0 = vrot.slane %v11013_v19, 1  ;;  %v11765_v14 = vshrl.u32 %v17843_v22, 16  ;;  %v10124_v22 = vadd.f32 %v20773_v57, %v20789_v5  ;;  %v17896_v5 = vld [vmem:[#allocation3 + $0x3c] sm:$0xff] }
 0x64e   : > { %v10534_v48 = vpop.f32.mrf.mxu1  ;;  %v11198_v53 = vpop.f32.mrf.mxu2 }
 0x64f   : > { %v20942_v16 = vadd.f32 %v10534_v48, %v10122_v52  ;;  %v11011_v52 = vor.u32 %v11009_v33, %v11007_v34  ;;  %v12940_v48 = vshll.u32 %v17895_v32, 16  ;;  %v17874_v53 = vld [vmem:[#allocation3 + $0x8c] sm:$0xff]  ;;  %v12938_v34 = vor.u32 %v12936_v47, %v12934_v36 }
 0x650   : > { %v11957_v39 = vpop.f32.mrf.mxu3  ;;  %v17811_v33 = vld [vmem:[#allocation3 + $0x88] sm:$0xff]  ;;  %v10125_v36 = vadd.f32 %v20782_v37, %v20798_v58  ;;  %v11017_v47 = vshrl.u32 %v17810_v59, 16  ;;  %v12944_v37 = vshrl.u32 %v17895_v32, 16 }
 0x651   : > { %13197 = vmatmul.bf16.gmra.mxu1 %v12935_v44  ;;  %v12491_v6 = vpop.f32.mrf.mxu0  ;;  %v11016_v38 = vsel %vm1732_vm1, %v11011_v52, %v11015_v0  ;;  %v11767_v44 = vrot.slane %v11765_v14, 3  ;;  %v12942_v19 = vrot.slane %v12940_v48, 1  ;;  %v11021_v26 = vshll.u32 %v17811_v33, 16 }
 0x655   : > { %11999 = vmatmul.bf16.gmra.mxu3 %v11763_v28  ;;  %v11770_v28 = vrot.slane %v11768_v40, 4  ;;  %v12943_v40 = vsel %vm1732_vm1, %v12938_v34, %v12942_v19 }
 0x656   : > { %v10536_v4 = vpop.f32.mrf.mxu1  ;;  %v11200_v3 = vpop.f32.mrf.mxu2 }
 0x657   : > { %v11355_v7 = vadd.f32 %v11200_v3, %v21690_v2 }
 0x658   : > { %v11960_v55 = vpop.f32.mrf.mxu3 }
 0x659   : > { %v20947_v24 = vadd.f32 %v11957_v39, %v11355_v7  ;;  %v20950_v6 = vpop.f32.mrf.mxu0  ;;  %v11771_v39 = vor.u32 %v11770_v28, %v11767_v44  ;;  %v21692_v7 = vld [vmem:[#allocation12_spill] sm:$0xff] }
 0x65b   : > { %11242 = vmatmul.bf16.gmra.mxu2 %v11016_v38  ;;  %v11772_v48 = vsel %vm541_vm0, %v11762_v23, %v11771_v39  ;;  %v17875_v23 = vld [vmem:[#allocation3 + $0x94] sm:$0xff] }
 0x65c   : > { %12533 = vmatmul.bf16.gmra.mxu0 %v17874_v53  ;;  %v17844_v53 = vld [vmem:[#allocation3 + $0x98] sm:$0xff] }
 0x65e   : > { %v10539_v4 = vpop.f32.mrf.mxu1  ;;  %v11203_v3 = vpop.f32.mrf.mxu2 }
 0x65f   : > { %v20954_v2 = vadd.f32 %v10539_v4, %v10124_v22  ;;  %v11356_v52 = vadd.f32 %v11203_v3, %v21692_v7  ;;  %v11023_v22 = vrot.slane %v11021_v26, 1  ;;  %v11774_v4 = vshrl.u32 %v17844_v53, 16 }
 0x660   : > { %v11962_v14 = vpop.f32.mrf.mxu3  ;;  %v11777_v3 = vshll.u32 %v17844_v53, 16  ;;  %v11019_v7 = vor.u32 %v11017_v47, %v11015_v0  ;;  %v12946_v26 = vor.u32 %v12944_v37, %v12942_v19  ;;  %v10127_v19 = vadd.f32 %v20792_v18, %v20812_v8 }
 0x661   : > { %21691 = vst [vmem:[#allocation8_spill] sm:$0xff] %v20954_v2  ;;  %v20958_v38 = vadd.f32 %v11960_v55, %v11356_v52  ;;  %13202 = vmatmul.bf16.gmra.mxu1 %v12943_v40  ;;  %v20961_v57 = vpop.f32.mrf.mxu0  ;;  %v12948_v52 = vshll.u32 %v17896_v5, 16  ;;  %v11776_v40 = vrot.slane %v11774_v4, 3 }
 0x662   : > { %21693 = vst [vmem:[#allocation7_spill] sm:$0xff] %v20961_v57  ;;  %v11024_v14 = vsel %vm1732_vm1, %v11019_v7, %v11023_v22  ;;  %v17812_v57 = vld [vmem:[#allocation3 + $0x90] sm:$0xff] }
 0x663   : > { %v12950_v58 = vrot.slane %v12948_v52, 1  ;;  %v11029_v4 = vshll.u32 %v17812_v57, 16 }
 0x665   : > { %12004 = vmatmul.bf16.gmra.mxu3 %v11772_v48  ;;  %v11779_v48 = vrot.slane %v11777_v3, 4  ;;  %v12951_v0 = vsel %vm1732_vm1, %v12946_v26, %v12950_v58 }
 0x666   : > { %v10541_v44 = vpop.f32.mrf.mxu1  ;;  %v11205_v28 = vpop.f32.mrf.mxu2 }
 0x667   : > { %v20965_v55 = vadd.f32 %v10541_v44, %v10125_v36  ;;  %v11780_v53 = vor.u32 %v11779_v48, %v11776_v40  ;;  %v21695_v36 = vld [vmem:[#allocation9_spill] sm:$0xff]  ;;  %v17897_v40 = vld [vmem:[#allocation3 + $0x44] sm:$0xff] }
 0x668   : > { %v11965_v34 = vpop.f32.mrf.mxu3  ;;  %v12956_v18 = vshll.u32 %v17897_v40, 16 }
 0x669   : > { %21694 = vst [vmem:[#allocation11_spill] sm:$0xff] %v20965_v55  ;;  %v12499_v2 = vpop.f32.mrf.mxu0  ;;  %v11781_v3 = vsel %vm541_vm0, %v11771_v39, %v11780_v53 }
 0x66a   : > { %v17845_v2 = vld [vmem:[#allocation3 + $0xa0] sm:$0xff] }
 0x66b   : > { %11247 = vmatmul.bf16.gmra.mxu2 %v11024_v14  ;;  %v11031_v14 = vrot.slane %v11029_v4, 1  ;;  %v11783_v48 = vshrl.u32 %v17845_v2, 16  ;;  %v11786_v37 = vshll.u32 %v17845_v2, 16  ;;  %v10128_v2 = vadd.f32 %v20801_v15, %v20822_v12 }
 0x66c   : > { %12538 = vmatmul.bf16.gmra.mxu0 %v17875_v23  ;;  %v11025_v23 = vshrl.u32 %v17811_v33, 16  ;;  %v11033_v12 = vshrl.u32 %v17812_v57, 16  ;;  %v12960_v57 = vshrl.u32 %v17897_v40, 16 }
 0x66d   : > { %v11785_v8 = vrot.slane %v11783_v48, 3 }
 0x66e   : > { %v10544_v28 = vpop.f32.mrf.mxu1  ;;  %v11208_v59 = vpop.f32.mrf.mxu2  ;;  %v11027_v39 = vor.u32 %v11025_v23, %v11023_v22  ;;  %v12958_v22 = vrot.slane %v12956_v18, 1 }
 0x66f   : > { %v11358_v44 = vadd.f32 %v11208_v59, %v21695_v36  ;;  %v21697_v28 = vld [vmem:[#allocation13_spill] sm:$0xff] }
 0x670   : > { %v11967_v55 = vpop.f32.mrf.mxu3 }
 0x671   : > { %v20970_v47 = vadd.f32 %v11965_v34, %v11358_v44  ;;  %13207 = vmatmul.bf16.gmra.mxu1 %v12951_v0  ;;  %v20973_v32 = vpop.f32.mrf.mxu0  ;;  %v12952_v44 = vshrl.u32 %v17896_v5, 16  ;;  %v17876_v0 = vld [vmem:[#allocation3 + $0x9c] sm:$0xff] }
 0x672   : > { %21696 = vst [vmem:[#allocation12_spill] sm:$0xff] %v20973_v32  ;;  %v11788_v32 = vrot.slane %v11786_v37, 4 }
 0x673   : > { %v12954_v4 = vor.u32 %v12952_v44, %v12950_v58 }
 0x675   : > { %12009 = vmatmul.bf16.gmra.mxu3 %v11781_v3  ;;  %v11032_v3 = vsel %vm1732_vm1, %v11027_v39, %v11031_v14 }
 0x676   : > { %v10546_v7 = vpop.f32.mrf.mxu1  ;;  %v11210_v52 = vpop.f32.mrf.mxu2 }
 0x677   : > { %v20977_v34 = vadd.f32 %v10546_v7, %v10127_v19  ;;  %v11359_v59 = vadd.f32 %v11210_v52, %v21697_v28  ;;  %v11789_v52 = vor.u32 %v11788_v32, %v11785_v8  ;;  %v12959_v28 = vsel %vm1732_vm1, %v12954_v4, %v12958_v22 }
 0x678   : > { %v11970_v26 = vpop.f32.mrf.mxu3  ;;  %v11035_v8 = vor.u32 %v11033_v12, %v11031_v14  ;;  %v12962_v14 = vor.u32 %v12960_v57, %v12958_v22  ;;  %v21699_v12 = vld [vmem:[#allocation10_spill] sm:$0xff]  ;;  %v10131_v22 = vadd.f32 %v20825_v42, %v20843_v29 }
 0x679   : > { %v20980_v36 = vadd.f32 %v11967_v55, %v11359_v59  ;;  %v20983_v33 = vpop.f32.mrf.mxu0  ;;  %v17813_v55 = vld [vmem:[#allocation3 + $0x98] sm:$0xff]  ;;  %v11790_v37 = vsel %vm541_vm0, %v11780_v53, %v11789_v52  ;;  %v17846_v59 = vld [vmem:[#allocation3 + $0xa8] sm:$0xff] }
 0x67a   : > { %v11037_v48 = vshll.u32 %v17813_v55, 16  ;;  %v17898_v26 = vld [vmem:[#allocation3 + $0x4c] sm:$0xff] }
 0x67b   : > { %11252 = vmatmul.bf16.gmra.mxu2 %v11032_v3  ;;  %v11795_v3 = vshll.u32 %v17846_v59, 16  ;;  %v12968_v42 = vshrl.u32 %v17898_v26, 16 }
 0x67c   : > { %12543 = vmatmul.bf16.gmra.mxu0 %v17876_v0  ;;  %v11039_v44 = vrot.slane %v11037_v48, 1  ;;  %v11792_v0 = vshrl.u32 %v17846_v59, 16  ;;  %v10130_v59 = vadd.f32 %v20815_v13, %v20833_v54  ;;  %v17899_v54 = vld [vmem:[#allocation3 + $0x54] sm:$0xff] }
 0x67e   : > { %v10549_v19 = vpop.f32.mrf.mxu1  ;;  %v11213_v7 = vpop.f32.mrf.mxu2  ;;  %v11040_v53 = vsel %vm1732_vm1, %v11035_v8, %v11039_v44 }
 0x67f   : > { %v20987_v5 = vadd.f32 %v10549_v19, %v10128_v2  ;;  %v12964_v2 = vshll.u32 %v17898_v26, 16  ;;  %v17877_v19 = vld [vmem:[#allocation3 + $0xa4] sm:$0xff]  ;;  %v11794_v7 = vrot.slane %v11792_v0, 3 }
 0x680   : > { %v11972_v23 = vpop.f32.mrf.mxu3 }
 0x681   : > { %13212 = vmatmul.bf16.gmra.mxu1 %v12959_v28  ;;  %v12506_v58 = vpop.f32.mrf.mxu0  ;;  %v11797_v28 = vrot.slane %v11795_v3, 4  ;;  %v12966_v48 = vrot.slane %v12964_v2, 1 }
 0x683   : > { %v12967_v3 = vsel %vm1732_vm1, %v12962_v14, %v12966_v48 }
 0x685   : > { %12014 = vmatmul.bf16.gmra.mxu3 %v11790_v37 }
 0x686   : > { %v10551_v39 = vpop.f32.mrf.mxu1  ;;  %v11215_v15 = vpop.f32.mrf.mxu2 }
 0x687   : > { %v11361_v32 = vadd.f32 %v11215_v15, %v20795_v61  ;;  %v17814_v39 = vld [vmem:[#allocation3 + $0xa0] sm:$0xff] }
 0x688   : > { %v11975_v18 = vpop.f32.mrf.mxu3  ;;  %v11045_v40 = vshll.u32 %v17814_v39, 16 }
 0x689   : > { %v20992_v4 = vadd.f32 %v11972_v23, %v11361_v32  ;;  %v20995_v37 = vpop.f32.mrf.mxu0  ;;  %v11798_v23 = vor.u32 %v11797_v28, %v11794_v7  ;;  %v11041_v28 = vshrl.u32 %v17813_v55, 16 }
 0x68a   : > { %v11047_v57 = vrot.slane %v11045_v40, 1  ;;  %v12970_v40 = vor.u32 %v12968_v42, %v12966_v48  ;;  %v10133_v48 = vadd.f32 %v20836_v56, %v20857_v17 }
 0x68b   : > { %11257 = vmatmul.bf16.gmra.mxu2 %v11040_v53  ;;  %v11799_v2 = vsel %vm541_vm0, %v11789_v52, %v11798_v23  ;;  %v11043_v14 = vor.u32 %v11041_v28, %v11039_v44  ;;  %v17878_v52 = vld [vmem:[#allocation3 + $0xac] sm:$0xff] }
 0x68c   : > { %12548 = vmatmul.bf16.gmra.mxu0 %v17877_v19  ;;  %v17847_v19 = vld [vmem:[#allocation3 + $0xb0] sm:$0xff] }
 0x68e   : > { %v10554_v61 = vpop.f32.mrf.mxu1  ;;  %v11218_v58 = vpop.f32.mrf.mxu2 }
 0x68f   : > { %v20999_v15 = vadd.f32 %v10554_v61, %v10130_v59  ;;  %v11362_v32 = vadd.f32 %v11218_v58, %v21699_v12  ;;  %v11801_v59 = vshrl.u32 %v17847_v19, 16  ;;  %v11804_v61 = vshll.u32 %v17847_v19, 16 }
 0x690   : > { %v11977_v0 = vpop.f32.mrf.mxu3  ;;  %v12972_v12 = vshll.u32 %v17899_v54, 16 }
 0x691   : > { %21698 = vst [vmem:[#allocation9_spill] sm:$0xff] %v20999_v15  ;;  %v21003_v8 = vadd.f32 %v11975_v18, %v11362_v32  ;;  %13217 = vmatmul.bf16.gmra.mxu1 %v12967_v3  ;;  %v21006_v13 = vpop.f32.mrf.mxu0  ;;  %v11048_v32 = vsel %vm1732_vm1, %v11043_v14, %v11047_v57  ;;  %v11803_v0 = vrot.slane %v11801_v59, 3  ;;  %v11806_v3 = vrot.slane %v11804_v61, 4  ;;  %v17815_v15 = vld [vmem:[#allocation3 + $0xa8] sm:$0xff]  ;;  %v17848_v14 = vld [vmem:[#allocation3 + $0xb8] sm:$0xff] }
 0x692   : > { %v12974_v29 = vrot.slane %v12972_v12, 1  ;;  %v11053_v59 = vshll.u32 %v17815_v15, 16 }
 0x693   : > { %v11807_v19 = vor.u32 %v11806_v3, %v11803_v0  ;;  %v17900_v0 = vld [vmem:[#allocation3 + $0x5c] sm:$0xff]  ;;  %v11810_v3 = vshrl.u32 %v17848_v14, 16 }
 0x694   : > { %v12975_v44 = vsel %vm1732_vm1, %v12970_v40, %v12974_v29  ;;  %v12976_v40 = vshrl.u32 %v17899_v54, 16  ;;  %v12980_v56 = vshll.u32 %v17900_v0, 16 }
 0x695   : > { %12019 = vmatmul.bf16.gmra.mxu3 %v11799_v2  ;;  %v11808_v61 = vsel %vm541_vm0, %v11798_v23, %v11807_v19  ;;  %v11812_v17 = vrot.slane %v11810_v3, 3 }
 0x696   : > { %v10556_v53 = vpop.f32.mrf.mxu1  ;;  %v11220_v7 = vpop.f32.mrf.mxu2 }
 0x697   : > { %v21010_v18 = vadd.f32 %v10556_v53, %v10131_v22 }
 0x698   : > { %v11980_v58 = vpop.f32.mrf.mxu3 }
 0x699   : > { %v12514_v2 = vpop.f32.mrf.mxu0 }
 0x69a   : > { %v11813_v2 = vshll.u32 %v17848_v14, 16  ;;  %v10134_v14 = vadd.f32 %v20846_v20, %v20867_v31  ;;  %v11057_v31 = vshrl.u32 %v17815_v15, 16 }
 0x69b   : > { %11262 = vmatmul.bf16.gmra.mxu2 %v11048_v32  ;;  %v11049_v32 = vshrl.u32 %v17814_v39, 16 }
 0x69c   : > { %12553 = vmatmul.bf16.gmra.mxu0 %v17878_v52 }
 0x69d   : > { %v11051_v23 = vor.u32 %v11049_v32, %v11047_v57  ;;  %v12982_v57 = vrot.slane %v12980_v56, 1 }
 0x69e   : > { %v10559_v7 = vpop.f32.mrf.mxu1  ;;  %v11223_v55 = vpop.f32.mrf.mxu2 }
 0x69f   : > { %v11364_v22 = vadd.f32 %v11223_v55, %v20819_v30  ;;  %v11055_v30 = vrot.slane %v11053_v59, 1  ;;  %v12978_v59 = vor.u32 %v12976_v40, %v12974_v29  ;;  %v21036_v29 = vld [vmem:[#allocation3 + $0x64] sm:$0xff] }
 0x6a0   : > { %v11982_v53 = vpop.f32.mrf.mxu3 }
 0x6a1   : > { %v21015_v28 = vadd.f32 %v11980_v58, %v11364_v22  ;;  %13222 = vmatmul.bf16.gmra.mxu1 %v12975_v44  ;;  %v21018_v26 = vpop.f32.mrf.mxu0  ;;  %v17879_v22 = vld [vmem:[#allocation3 + $0xb4] sm:$0xff]  ;;  %v11056_v44 = vsel %vm1732_vm1, %v11051_v23, %v11055_v30 }
 0x6a5   : > { %12024 = vmatmul.bf16.gmra.mxu3 %v11808_v61  ;;  %v11815_v61 = vrot.slane %v11813_v2, 4  ;;  %v17849_v2 = vld [vmem:[#allocation3 + $0xc0] sm:$0xff] }
 0x6a6   : > { %v10561_v12 = vpop.f32.mrf.mxu1  ;;  %v11225_v52 = vpop.f32.mrf.mxu2  ;;  %v11819_v40 = vshrl.u32 %v17849_v2, 16 }
 0x6a7   : > { %v21022_v58 = vadd.f32 %v10561_v12, %v10133_v48  ;;  %v11365_v42 = vadd.f32 %v11225_v52, %v20829_v1  ;;  %v11816_v12 = vor.u32 %v11815_v61, %v11812_v17  ;;  %v12983_v52 = vsel %vm1732_vm1, %v12978_v59, %v12982_v57 }
 0x6a8   : > { %v11985_v7 = vpop.f32.mrf.mxu3  ;;  %v11059_v17 = vor.u32 %v11057_v31, %v11055_v30  ;;  %v12988_v61 = vshll.u32 %v21036_v29, 16 }
 0x6a9   : > { %v21025_v55 = vadd.f32 %v11982_v53, %v11365_v42  ;;  %v21028_v39 = vpop.f32.mrf.mxu0  ;;  %v17816_v53 = vld [vmem:[#allocation3 + $0xb0] sm:$0xff]  ;;  %v11817_v3 = vsel %vm541_vm0, %v11807_v19, %v11816_v12  ;;  %v17880_v19 = vld [vmem:[#allocation3 + $0xbc] sm:$0xff] }
 0x6aa   : > { %v11061_v32 = vshll.u32 %v17816_v53, 16  ;;  %v12990_v15 = vrot.slane %v12988_v61, 1  ;;  %v12633_v61 = vadd.f32 %v20870_v41, %v20888_v43 }
 0x6ab   : > { %11267 = vmatmul.bf16.gmra.mxu2 %v11056_v44 }
 0x6ac   : > { %12558 = vmatmul.bf16.gmra.mxu0 %v17879_v22  ;;  %v11063_v23 = vrot.slane %v11061_v32, 1  ;;  %v11822_v22 = vshll.u32 %v17849_v2, 16  ;;  %v12632_v32 = vadd.f32 %v20860_v9, %v20878_v25  ;;  %v21050_v2 = vld [vmem:[#allocation3 + $0xb8] sm:$0xff] }
 0x6ad   : > { %v11069_v25 = vshll.u32 %v21050_v2, 16 }
 0x6ae   : > { %v10564_v1 = vpop.f32.mrf.mxu1  ;;  %v11228_v48 = vpop.f32.mrf.mxu2 }
 0x6af   : > { %v21032_v54 = vadd.f32 %v10564_v1, %v10134_v14  ;;  %v11064_v14 = vsel %vm1732_vm1, %v11059_v17, %v11063_v23  ;;  %v11821_v1 = vrot.slane %v11819_v40, 3  ;;  %v11824_v48 = vrot.slane %v11822_v22, 4  ;;  %v21062_v17 = vld [vmem:[#allocation3 + $0x6c] sm:$0xff] }
 0x6b0   : > { %v11987_v56 = vpop.f32.mrf.mxu3 }
 0x6b1   : > { %13227 = vmatmul.bf16.gmra.mxu1 %v12983_v52  ;;  %v12521_v42 = vpop.f32.mrf.mxu0  ;;  %v12984_v52 = vshrl.u32 %v17900_v0, 16 }
 0x6b2   : > { %v11825_v42 = vor.u32 %v11824_v48, %v11821_v1  ;;  %v11071_v1 = vrot.slane %v11069_v25, 1 }
 0x6b4   : > { %v11826_v22 = vsel %vm541_vm0, %v11816_v12, %v11825_v42  ;;  %v12996_v12 = vshll.u32 %v21062_v17, 16 }
 0x6b5   : > { %12029 = vmatmul.bf16.gmra.mxu3 %v11817_v3  ;;  %v12986_v3 = vor.u32 %v12984_v52, %v12982_v57 }
 0x6b6   : > { %v10566_v7 = vpop.f32.mrf.mxu1  ;;  %v11230_v20 = vpop.f32.mrf.mxu2  ;;  %v12998_v25 = vrot.slane %v12996_v12, 1  ;;  %v17851_v12 = vld [vmem:[#allocation3 + $0xd0] sm:$0xff] }
 0x6b7   : > { %v11367_v44 = vadd.f32 %v11230_v20, %v20840_v62  ;;  %v21048_v62 = vld [vmem:[%s21635_s4] ss:$0 sm:$0xff]  ;;  %v12991_v20 = vsel %vm1732_vm1, %v12986_v3, %v12990_v15 }
 0x6b8   : > { %v11990_v40 = vpop.f32.mrf.mxu3 }
 0x6b9   : > { %v21040_v59 = vadd.f32 %v11987_v56, %v11367_v44  ;;  %v17850_v44 = vld [vmem:[#allocation3 + $0xc8] sm:$0xff] }
 0x6ba   : > { %v11831_v48 = vshll.u32 %v17850_v44, 16 }
 0x6bb   : > { %11272 = vmatmul.bf16.gmra.mxu2 %v11064_v14  ;;  %v11065_v14 = vshrl.u32 %v17816_v53, 16 }
 0x6bc   : > { %12563 = vmatmul.bf16.gmra.mxu0 %v17880_v19 }
 0x6be   : > { %v13193_v30 = vpop.f32.mrf.mxu1  ;;  %v11233_v0 = vpop.f32.mrf.mxu2 }
 0x6bf   : > { %v13361_v7 = vadd.f32 %v13193_v30, %v12632_v32  ;;  %v11368_v9 = vadd.f32 %v11233_v0, %v20850_v45  ;;  %v11828_v45 = vshrl.u32 %v17850_v44, 16  ;;  %v11067_v32 = vor.u32 %v11065_v14, %v11063_v23 }
 0x6c0   : > { %v12992_v23 = vshrl.u32 %v21036_v29, 16 }
 0x6c1   : > { %v21054_v31 = vadd.f32 %v21048_v62, %v13361_v7  ;;  %13232 = vmatmul.bf16.gmra.mxu1 %v12991_v20  ;;  %v21060_v56 = vadd.f32 %v11990_v40, %v11368_v9  ;;  %v11992_v7 = vpop.f32.mrf.mxu3  ;;  %v17881_v20 = vld [vmem:[#allocation3 + $0xc4] sm:$0xff]  ;;  %v11072_v0 = vsel %vm1732_vm1, %v11067_v32, %v11071_v1  ;;  %v11830_v40 = vrot.slane %v11828_v45, 3 }
 0x6c2   : > { %v11833_v9 = vrot.slane %v11831_v48, 4 }
 0x6c3   : > { %v17266_v57 = vmul.f32 -1.442695, %v21054_v31 }
 0x6c5   : > { %12034 = vmatmul.bf16.gmra.mxu3 %v11826_v22  ;;  %18342 = vpow2.f32 %v17266_v57  ;;  %v21075_v22 = vpop.f32.mrf.mxu0  ;;  %v12994_v57 = vor.u32 %v12992_v23, %v12990_v15  ;;  %v11837_v23 = vshrl.u32 %v17851_v12, 16 }
 0x6c6   : > { %v13195_v19 = vpop.f32.mrf.mxu1  ;;  %v11235_v3 = vpop.f32.mrf.mxu2 }
 0x6c7   : > { %v13362_v52 = vadd.f32 %v13195_v19, %v12633_v61  ;;  %v21078_v61 = vld [vmem:[#allocation3 + $0xc0] sm:$0xff]  ;;  %v21080_v19 = vor.u32 %v11833_v9, %v11830_v40  ;;  %v12999_v14 = vsel %vm1732_vm1, %v12994_v57, %v12998_v25  ;;  %v11073_v9 = vshrl.u32 %v21050_v2, 16 }
 0x6c8   : > { %v11077_v29 = vshll.u32 %v21078_v61, 16 }
 0x6c9   : > { %v21068_v30 = vadd.f32 %v21048_v62, %v13362_v52  ;;  %v11995_v48 = vpop.f32.mrf.mxu3  ;;  %v11835_v32 = vsel %vm541_vm0, %v11825_v42, %v21080_v19 }
 0x6cb   : > { %v18343_v41 = vpop.eup %18342  ;;  %v17267_v43 = vmul.f32 -1.442695, %v21068_v30  ;;  %11277 = vmatmul.bf16.gmra.mxu2 %v11072_v0 }
 0x6cc   : > { %12568 = vmatmul.bf16.gmra.mxu0 %v17881_v20  ;;  %v21072_v53 = vadd.f32 1.0, %v18343_v41  ;;  %v21097_v41 = vld [vmem:[#allocation3 + $0x74] sm:$0xff] }
 0x6cd   : > { %18344 = vpow2.f32 %v17267_v43  ;;  %v21092_v40 = vpop.f32.mrf.mxu0  ;;  %v21100_v43 = vrot.slane %v11077_v29, 1  ;;  %v13004_v2 = vshll.u32 %v21097_v41, 16 }
 0x6ce   : > { %18346 = vrcp.f32 %v21072_v53  ;;  %v13198_v44 = vpop.f32.mrf.mxu1  ;;  %v11238_v45 = vpop.f32.mrf.mxu2  ;;  %21700 = vst [vmem:[#allocation13_spill] sm:$0xff] %v21092_v40  ;;  %v11839_v40 = vrot.slane %v11837_v23, 3  ;;  %vm13754_vm5 = vweird.f32 %v21072_v53 }
 0x6cf   : > { %v11370_v52 = vadd.f32 %v11238_v45, %v20864_v50  ;;  %v12635_v50 = vadd.f32 %v20881_v21, %v20899_v49  ;;  %v11840_v44 = vshll.u32 %v17851_v12, 16  ;;  %v11075_v45 = vor.u32 %v11073_v9, %v11071_v1 }
 0x6d0   : > { %v13000_v49 = vshrl.u32 %v21062_v17, 16  ;;  %v13758_v9 = vand.u32 2147483647, %v21072_v53 }
 0x6d1   : > { %13237 = vmatmul.bf16.gmra.mxu1 %v12999_v14  ;;  %v21089_v20 = vadd.f32 %v11995_v48, %v11370_v52  ;;  %v11997_v21 = vpop.f32.mrf.mxu3  ;;  %v11080_v29 = vsel %vm1732_vm1, %v11075_v45, %v21100_v43  ;;  %v11842_v12 = vrot.slane %v11840_v44, 4  ;;  %v12636_v44 = vadd.f32 %v20891_v27, %v20911_v46 }
 0x6d2   : > { %vm13759_vm7 = vcmp.eq.f32.partialorder %v13758_v9, 8.507059e+37 }
 0x6d3   : > { %v18345_v3 = vpop.eup %18344 }
 0x6d4   : > { %v18347_v15 = vpop.eup %18346  ;;  %v21087_v7 = vadd.f32 1.0, %v18345_v3 }
 0x6d5   : > { %12039 = vmatmul.bf16.gmra.mxu3 %v11835_v32  ;;  %v13750_v0 = vmul.f32 %v18347_v15, %v21072_v53  ;;  %vm13755_vm4 = vweird.f32 %v18347_v15  ;;  %v12529_v23 = vpop.f32.mrf.mxu0 }
 0x6d6   : > { %18348 = vrcp.f32 %v21087_v7  ;;  %v13200_v42 = vpop.f32.mrf.mxu1  ;;  %v11240_v32 = vpop.f32.mrf.mxu2  ;;  %vm21119_vm6 = vmor %vm13754_vm5, %vm13755_vm4  ;;  %v13775_v27 = vand.u32 2147483648, %v21087_v7  ;;  %vm13769_vm9 = vweird.f32 %v21087_v7 }
 0x6d7   : > { %v13751_v57 = vsub.f32 1.0, %v13750_v0  ;;  %v13364_v14 = vadd.f32 %v13200_v42, %v12635_v50  ;;  %v11371_v3 = vadd.f32 %v11240_v32, %v20874_v10  ;;  %v13760_v42 = vand.u32 2147483648, %v21072_v53  ;;  %v21125_v32 = vld [vmem:[#allocation3 + $0xc8] sm:$0xff] }
 0x6d9   : > { %v13752_v48 = vmul.f32 %v18347_v15, %v13751_v57  ;;  %v21103_v52 = vadd.f32 %v21048_v62, %v13364_v14  ;;  %v21113_v17 = vadd.f32 %v11997_v21, %v11371_v3  ;;  %v13002_v57 = vor.u32 %v13000_v49, %v12998_v25  ;;  %v12000_v23 = vpop.f32.mrf.mxu3 }
 0x6da   : > { %v21127_v21 = vor.u32 %v11842_v12, %v11839_v40  ;;  %v13761_v3 = vor.u32 1.1754944e-38, %v13760_v42  ;;  %v13776_v14 = vor.u32 1.1754944e-38, %v13775_v27 }
 0x6db   : > { %v13753_v0 = vadd.f32 %v18347_v15, %v13752_v48  ;;  %v17269_v1 = vmul.f32 -1.442695, %v21103_v52  ;;  %11282 = vmatmul.bf16.gmra.mxu2 %v11080_v29  ;;  %v21123_v48 = vrot.slane %v13004_v2, 1  ;;  %v18148_v29 = vld [vmem:[#allocation2 + $0x10] sm:$0xff]   ;;  %v13773_v2 = vand.u32 2147483647, %v21087_v7 }
 0x6dc   : > { %v18349_v50 = vpop.eup %18348  ;;  %v11844_v9 = vsel %vm541_vm0, %v21080_v19, %v21127_v21 }
 0x6dd   : > { %v13765_v10 = vmul.f32 %v18349_v50, %v21087_v7  ;;  %18350 = vpow2.f32 %v17269_v1  ;;  %v13757_v53 = vsel %vm21119_vm6, %v18347_v15, %v13753_v0  ;;  %v13007_v46 = vsel %vm1732_vm1, %v13002_v57, %v21123_v48  ;;  %v21150_v19 = vpop.f32.mrf.mxu0 }
 0x6de   : > { %v13203_v45 = vpop.f32.mrf.mxu1  ;;  %vm13770_vm8 = vweird.f32 %v18349_v50  ;;  %v11243_v12 = vpop.f32.mrf.mxu2  ;;  %v13762_v15 = vsel %vm13759_vm7, %v13761_v3, %v13757_v53  ;;  %v11085_v0 = vshll.u32 %v21125_v32, 16  ;;  %v21147_v53 = vld [vmem:[#allocation3 + $0x7c] sm:$0xff]  ;;  %vm13774_vm11 = vcmp.eq.f32.partialorder %v13773_v2, 8.507059e+37 }
 0x6df   : > { %v13766_v25 = vsub.f32 1.0, %v13765_v10  ;;  %v13365_v49 = vadd.f32 %v13203_v45, %v12636_v44  ;;  %v17966_v44 = vunpack.c.l.bf16 %v18148_v29  ;;  %vm13771_vm10 = vmor %vm13769_vm9, %vm13770_vm8  ;;  %v17967_v45 = vunpack.c.h.bf16 %v18148_v29  ;;  %v10761_v12 = vld [vmem:[#allocation3 + $0xd0] sm:$0x1] }
 0x6e0   : > { %v11087_v27 = vrot.slane %v11085_v0, 1  ;;  %v10875_v0 = vunpack.c.l.b16 %v10761_v12 }
 0x6e1   : > { %v13767_v1 = vmul.f32 %v18349_v50, %v13766_v25  ;;  %v21136_v40 = vadd.f32 %v21048_v62, %v13365_v49  ;;  %13242 = vmatmul.bf16.gmra.mxu1 %v13007_v46  ;;  %v14469_v49 = vmul.f32 %v13762_v15, %v21054_v31  ;;  %v13012_v31 = vshll.u32 %v21147_v53, 16 }
 0x6e3   : > { %v18351_v42 = vpop.eup %18350  ;;  %v13768_v57 = vadd.f32 %v18349_v50, %v13767_v1  ;;  %v17270_v10 = vmul.f32 -1.442695, %v21136_v40  ;;  %v11081_v1 = vshrl.u32 %v21078_v61, 16 }
 0x6e4   : > { %v21145_v25 = vadd.f32 1.0, %v18351_v42 }
 0x6e5   : > { %12044 = vmatmul.bf16.gmra.mxu3 %v11844_v9  ;;  %v13772_v3 = vsel %vm13771_vm10, %v18349_v50, %v13768_v57  ;;  %18352 = vpow2.f32 %v17270_v10  ;;  %v11083_v23 = vor.u32 %v11081_v1, %v21100_v43  ;;  %v14613_v50 = vadd.f32 %v17966_v44, %v14469_v49  ;;  %v12002_v9 = vpop.f32.mrf.mxu3 }
 0x6e6   : > { %v13777_v7 = vsel %vm13774_vm11, %v13776_v14, %v13772_v3  ;;  %18354 = vrcp.f32 %v21145_v25  ;;  %v13205_v46 = vpop.f32.mrf.mxu1  ;;  %v11245_v15 = vpop.f32.mrf.mxu2  ;;  %v13008_v14 = vshrl.u32 %v21097_v41, 16  ;;  %vm13799_vm13 = vweird.f32 %v21145_v25 }
 0x6e7   : > { %v14470_v29 = vmul.f32 %v13777_v7, %v21068_v30  ;;  %v11373_v61 = vadd.f32 %v11245_v15, %v20885_v51  ;;  %v11088_v30 = vsel %vm1732_vm1, %v11083_v23, %v11087_v27  ;;  %v21175_v3 = vpop.f32.mrf.mxu0  ;;  %v21703_v51 = vld [vmem:[#allocation15_spill] sm:$0xff] }
 0x6e8   : > { %v12638_v7 = vadd.f32 %v21703_v51, %v20924_v11  ;;  %v13010_v1 = vor.u32 %v13008_v14, %v21123_v48  ;;  %v21704_v11 = vld [vmem:[#allocation14_spill] sm:$0xff]  ;;  %v13803_v14 = vand.u32 2147483647, %v21145_v25 }
 0x6e9   : > { %v14614_v2 = vadd.f32 %v17967_v45, %v14470_v29  ;;  %v21168_v44 = vadd.f32 %v12002_v9, %v11373_v61  ;;  %v21171_v45 = vrot.slane %v13012_v31, 1  ;;  %v10900_v29 = vpack.c.b16 %v10875_v0, %v10875_v0  ;;  %v17882_v9 = vld [vmem:[#allocation3 + $0xcc] sm:$0xff]  ;;  %v21188_v0 = vld [vmem:[#allocation3 + $0x84] sm:$0xff] }
 0x6ea   : > { %12573 = vmatmul.bf16.gmra.mxu0 %v17882_v9  ;;  %vm13804_vm15 = vcmp.eq.f32.partialorder %v13803_v14, 8.507059e+37 }
 0x6eb   : > { %v18353_v42 = vpop.eup %18352  ;;  %v18063_v43 = vpack.c.bf16 %v14614_v2, %v14613_v50  ;;  %11287 = vmatmul.bf16.gmra.mxu2 %v11088_v30  ;;  %v13015_v41 = vsel %vm1732_vm1, %v13010_v1, %v21171_v45  ;;  %v11093_v30 = vshll.u32 %v10900_v29, 16  ;;  %v21705_v29 = vld [vmem:[#allocation17_spill] sm:$0xff] }
 0x6ec   : > { %v18355_v57 = vpop.eup %18354  ;;  %v21166_v10 = vadd.f32 1.0, %v18353_v42 }
 0x6ed   : > { %18064 = vst [vmem:[%s21162_s17] sm:$0xff] %v18063_v43   ;;  %v13795_v49 = vmul.f32 %v18355_v57, %v21145_v25  ;;  %v12005_v15 = vpop.f32.mrf.mxu3  ;;  %vm13800_vm12 = vweird.f32 %v18355_v57 }
 0x6ee   : > { %18356 = vrcp.f32 %v21166_v10  ;;  %v13208_v46 = vpop.f32.mrf.mxu1  ;;  %v11248_v2 = vpop.f32.mrf.mxu2  ;;  %vm21199_vm14 = vmor %vm13799_vm13, %vm13800_vm12  ;;  %vm13814_vm3 = vweird.f32 %v21166_v10 }
 0x6ef   : > { %v13796_v12 = vsub.f32 1.0, %v13795_v49  ;;  %v13367_v23 = vadd.f32 %v13208_v46, %v12638_v7  ;;  %v11374_v61 = vadd.f32 %v11248_v2, %v21704_v11  ;;  %v13805_v49 = vand.u32 2147483648, %v21145_v25  ;;  %v12536_v1 = vpop.f32.mrf.mxu0 }
 0x6f0   : > { %v11089_v7 = vshrl.u32 %v21125_v32, 16  ;;  %v11095_v2 = vrot.slane %v11093_v30, 1  ;;  %v13020_v25 = vshll.u32 %v21188_v0, 16  ;;  %v13818_v1 = vand.u32 2147483647, %v21166_v10 }
 0x6f1   : > { %v13797_v31 = vmul.f32 %v18355_v57, %v13796_v12  ;;  %v21184_v50 = vadd.f32 %v21048_v62, %v13367_v23  ;;  %13247 = vmatmul.bf16.gmra.mxu1 %v13015_v41  ;;  %v21192_v51 = vadd.f32 %v12005_v15, %v11374_v61  ;;  %v12639_v12 = vadd.f32 %v21705_v29, %v20935_v60  ;;  %v18150_v29 = vld [vmem:[#allocation2 + $0x20] sm:$0xf]  }
 0x6f2   : > { %v13806_v11 = vor.u32 1.1754944e-38, %v13805_v49  ;;  %v13820_v61 = vand.u32 2147483648, %v21166_v10  ;;  %v21215_v23 = vrot.slane %v13020_v25, 1  ;;  %vm13819_vm5 = vcmp.eq.f32.partialorder %v13818_v1, 8.507059e+37 }
 0x6f3   : > { %v13798_v42 = vadd.f32 %v18355_v57, %v13797_v31  ;;  %v17272_v48 = vmul.f32 -1.442695, %v21184_v50  ;;  %v11091_v31 = vor.u32 %v11089_v7, %v11087_v27 }
 0x6f4   : > { %v18357_v43 = vpop.eup %18356 }
 0x6f5   : > { %v13810_v46 = vmul.f32 %v18357_v43, %v21166_v10  ;;  %18358 = vpow2.f32 %v17272_v48  ;;  %v13802_v15 = vsel %vm21199_vm14, %v18355_v57, %v13798_v42  ;;  %v18149_v48 = vld [vmem:[#allocation2 + $0x18] sm:$0xff]   ;;  %vm13815_vm2 = vweird.f32 %v18357_v43  ;;  %v12007_v7 = vpop.f32.mrf.mxu3 }
 0x6f6   : > { %v13210_v41 = vpop.f32.mrf.mxu1  ;;  %v11250_v30 = vpop.f32.mrf.mxu2  ;;  %v13807_v57 = vsel %vm13804_vm15, %v13806_v11, %v13802_v15  ;;  %v11096_v42 = vsel %vm1732_vm1, %v11091_v31, %v11095_v2  ;;  %vm13816_vm4 = vmor %vm13814_vm3, %vm13815_vm2  ;;  %v11490_v10 = vld [vmem:[#allocation3 + $0xd8] sm:$0xf] }
 0x6f7   : > { %v13811_v32 = vsub.f32 1.0, %v13810_v46  ;;  %v13368_v9 = vadd.f32 %v13210_v41, %v12639_v12  ;;  %v13016_v46 = vshrl.u32 %v21147_v53, 16  ;;  %v17971_v41 = vunpack.c.h.bf16 %v18149_v48  ;;  %v21221_v53 = vpop.f32.mrf.mxu0 }
 0x6f8   : > { %v14472_v31 = vmul.f32 %v13807_v57, %v21103_v52 }
 0x6f9   : > { %v13812_v60 = vmul.f32 %v18357_v43, %v13811_v32  ;;  %v21209_v27 = vadd.f32 %v21048_v62, %v13368_v9  ;;  %v13821_v32 = vor.u32 1.1754944e-38, %v13820_v61  ;;  %v17974_v9 = vunpack.c.l.bf16 %v18150_v29 }
 0x6fa   : > { %v13018_v11 = vor.u32 %v13016_v46, %v21171_v45  ;;  %v11604_v61 = vunpack.c.l.b16 %v11490_v10  ;;  %v14616_v52 = vadd.f32 %v17971_v41, %v14472_v31 }
 0x6fb   : > { %v18359_v14 = vpop.eup %18358  ;;  %v13813_v49 = vadd.f32 %v18357_v43, %v13812_v60  ;;  %v17273_v12 = vmul.f32 -1.442695, %v21209_v27  ;;  %11292 = vmatmul.bf16.gmra.mxu2 %v11096_v42  ;;  %v17883_v60 = vld [vmem:[#allocation3 + $0xd4] sm:$0xff] }
 0x6fc   : > { %v21218_v30 = vadd.f32 1.0, %v18359_v14  ;;  %v13023_v29 = vsel %vm1732_vm1, %v13018_v11, %v21215_v23  ;;  %v11629_v1 = vpack.c.b16 %v11604_v61, %v11604_v61  ;;  %v21708_v42 = vld [vmem:[#allocation16_spill] sm:$0xff]  ;;  %12578 = vmatmul.bf16.gmra.mxu0 %v17883_v60 }
 0x6fd   : > { %v13817_v2 = vsel %vm13816_vm4, %v18357_v43, %v13813_v49  ;;  %18360 = vpow2.f32 %v17273_v12  ;;  %v12010_v57 = vpop.f32.mrf.mxu3 }
 0x6fe   : > { %v13822_v15 = vsel %vm13819_vm5, %v13821_v32, %v13817_v2  ;;  %18362 = vrcp.f32 %v21218_v30  ;;  %v13213_v25 = vpop.f32.mrf.mxu1  ;;  %v11253_v7 = vpop.f32.mrf.mxu2  ;;  %v11846_v32 = vshrl.u32 %v11629_v1, 16  ;;  %v11849_v45 = vshll.u32 %v11629_v1, 16 }
 0x6ff   : > { %v14473_v48 = vmul.f32 %v13822_v15, %v21136_v40  ;;  %v11376_v14 = vadd.f32 %v11253_v7, %v21708_v42  ;;  %v21235_v10 = vpop.f32.mrf.mxu0  ;;  %v21709_v15 = vld [vmem:[#allocation6_spill] sm:$0xff] }
 0x700   : > { %v11851_v31 = vrot.slane %v11849_v45, 4  ;;  %v12641_v25 = vadd.f32 %v21709_v15, %v20947_v24  ;;  %v21710_v42 = vld [vmem:[#allocation18_spill] sm:$0xff] }
 0x701   : > { %v14617_v43 = vadd.f32 %v17974_v9, %v14473_v48  ;;  %13252 = vmatmul.bf16.gmra.mxu1 %v13023_v29  ;;  %v21231_v2 = vadd.f32 %v12010_v57, %v11376_v14  ;;  %v11848_v9 = vrot.slane %v11846_v32, 3  ;;  %v21240_v48 = vld [vmem:[#allocation3 + $0x8c] sm:$0xff]  ;;  %v13024_v14 = vshrl.u32 %v21188_v0, 16 }
 0x703   : > { %v18361_v49 = vpop.eup %18360  ;;  %v18068_v12 = vpack.c.bf16 %v14617_v43, %v14616_v52  ;;  %v11852_v60 = vor.u32 %v11851_v31, %v11848_v9  ;;  %v13026_v31 = vor.u32 %v13024_v14, %v21215_v23 }
 0x704   : > { %v18363_v40 = vpop.eup %18362  ;;  %v21229_v46 = vadd.f32 1.0, %v18361_v49  ;;  %v13028_v49 = vshll.u32 %v21240_v48, 16 }
 0x705   : > { %18172 = vst [vmem:[%s21162_s17 + $0x8] sm:$0xff] %v18068_v12   ;;  %v13840_v41 = vmul.f32 %v18363_v40, %v21218_v30  ;;  %v11853_v43 = vsel %vm541_vm0, %v21127_v21, %v11852_v60  ;;  %v12012_v57 = vpop.f32.mrf.mxu3  ;;  %vm13845_vm6 = vweird.f32 %v18363_v40  ;;  %v13850_v21 = vand.u32 2147483648, %v21218_v30 }
 0x706   : > { %18364 = vrcp.f32 %v21229_v46  ;;  %v13215_v11 = vpop.f32.mrf.mxu1  ;;  %v11255_v7 = vpop.f32.mrf.mxu2  ;;  %12049 = vmatmul.bf16.gmra.mxu3 %v11853_v43  ;;  %vm13844_vm0 = vweird.f32 %v21218_v30  ;;  %v13030_v60 = vrot.slane %v13028_v49, 1  ;;  %v13865_v43 = vand.u32 2147483648, %v21229_v46 }
 0x707   : > { %v13841_v61 = vsub.f32 1.0, %v13840_v41  ;;  %v13370_v29 = vadd.f32 %v13215_v11, %v12641_v25  ;;  %v11377_v24 = vadd.f32 %v11255_v7, %v21710_v42  ;;  %v13848_v41 = vand.u32 2147483647, %v21218_v30  ;;  %v12544_v0 = vpop.f32.mrf.mxu0  ;;  %vm21260_vm7 = vmor %vm13844_vm0, %vm13845_vm6 }
 0x708   : > { %v12642_v25 = vadd.f32 %v20938_v63, %v20958_v38  ;;  %v13851_v30 = vor.u32 1.1754944e-38, %v13850_v21  ;;  %v13031_v7 = vsel %vm1732_vm1, %v13026_v31, %v13030_v60  ;;  %v13863_v63 = vand.u32 2147483647, %v21229_v46  ;;  %v21274_v0 = vld [vmem:[#allocation3 + $0x94] sm:$0xff] }
 0x709   : > { %v13842_v52 = vmul.f32 %v18363_v40, %v13841_v61  ;;  %v21245_v1 = vadd.f32 %v21048_v62, %v13370_v29  ;;  %v21253_v9 = vadd.f32 %v12012_v57, %v11377_v24  ;;  %vm13849_vm8 = vcmp.eq.f32.partialorder %v13848_v41, 8.507059e+37  ;;  %v18151_v57 = vld [vmem:[#allocation2 + $0x28] sm:$0xff]  }
 0x70a   : > { %vm13859_vm10 = vweird.f32 %v21229_v46  ;;  %v17978_v41 = vunpack.c.l.bf16 %v18151_v57  ;;  %v13866_v21 = vor.u32 1.1754944e-38, %v13865_v43  ;;  %v17979_v31 = vunpack.c.h.bf16 %v18151_v57 }
 0x70b   : > { %v13843_v12 = vadd.f32 %v18363_v40, %v13842_v52  ;;  %v17275_v32 = vmul.f32 -1.442695, %v21245_v1  ;;  %vm13864_vm12 = vcmp.eq.f32.partialorder %v13863_v63, 8.507059e+37 }
 0x70c   : > { %v18365_v45 = vpop.eup %18364 }
 0x70d   : > { %v13855_v15 = vmul.f32 %v18365_v45, %v21229_v46  ;;  %18366 = vpow2.f32 %v17275_v32  ;;  %v13847_v29 = vsel %vm21260_vm7, %v18363_v40, %v13843_v12  ;;  %vm13860_vm9 = vweird.f32 %v18365_v45  ;;  %v12015_v14 = vpop.f32.mrf.mxu3 }
 0x70e   : > { %v13218_v61 = vpop.f32.mrf.mxu1  ;;  %v11258_v24 = vpop.f32.mrf.mxu2  ;;  %v13852_v40 = vsel %vm13849_vm8, %v13851_v30, %v13847_v29  ;;  %vm13861_vm11 = vmor %vm13859_vm10, %vm13860_vm9 }
 0x70f   : > { %v13856_v52 = vsub.f32 1.0, %v13855_v15  ;;  %v13371_v23 = vadd.f32 %v13218_v61, %v12642_v25  ;;  %v14475_v25 = vmul.f32 %v13852_v40, %v21184_v50  ;;  %v21277_v61 = vpop.f32.mrf.mxu0  ;;  %v13032_v40 = vshrl.u32 %v21240_v48, 16 }
 0x711   : > { %v13857_v42 = vmul.f32 %v18365_v45, %v13856_v52  ;;  %v21270_v38 = vadd.f32 %v21048_v62, %v13371_v23  ;;  %13257 = vmatmul.bf16.gmra.mxu1 %v13031_v7  ;;  %v13036_v23 = vshll.u32 %v21274_v0, 16  ;;  %v14619_v30 = vadd.f32 %v17978_v41, %v14475_v25 }
 0x712   : > { %v13034_v41 = vor.u32 %v13032_v40, %v13030_v60 }
 0x713   : > { %v18367_v49 = vpop.eup %18366  ;;  %v13858_v12 = vadd.f32 %v18365_v45, %v13857_v42  ;;  %v17276_v32 = vmul.f32 -1.442695, %v21270_v38 }
 0x714   : > { %v13710_v15 = vadd.f32 1.0, %v18367_v49  ;;  %v21287_v49 = vrot.slane %v13036_v23, 1 }
 0x715   : > { %v13862_v11 = vsel %vm13861_vm11, %v18365_v45, %v13858_v12  ;;  %18368 = vpow2.f32 %v17276_v32  ;;  %v12017_v57 = vpop.f32.mrf.mxu3  ;;  %v12644_v32 = vadd.f32 %v20950_v6, %v20970_v47  ;;  %v21302_v47 = vld [vmem:[#allocation3 + $0x9c] sm:$0xff] }
 0x716   : > { %v13867_v29 = vsel %vm13864_vm12, %v13866_v21, %v13862_v11  ;;  %18370 = vrcp.f32 %v13710_v15  ;;  %v13220_v46 = vpop.f32.mrf.mxu1  ;;  %v11260_v7 = vpop.f32.mrf.mxu2  ;;  %v13039_v25 = vsel %vm1732_vm1, %v13034_v41, %v21287_v49  ;;  %vm13889_vm14 = vweird.f32 %v13710_v15 }
 0x717   : > { %v14476_v52 = vmul.f32 %v13867_v29, %v21209_v27  ;;  %v11379_v42 = vadd.f32 %v11260_v7, %v20932_v35  ;;  %v21290_v12 = vpop.f32.mrf.mxu0  ;;  %v13044_v41 = vshll.u32 %v21302_v47, 16 }
 0x719   : > { %v14620_v43 = vadd.f32 %v17979_v31, %v14476_v52  ;;  %v21284_v14 = vadd.f32 %v12017_v57, %v11379_v42 }
 0x71b   : > { %v18369_v50 = vpop.eup %18368  ;;  %v18073_v45 = vpack.c.bf16 %v14620_v43, %v14619_v30  ;;  %v13893_v30 = vand.u32 2147483647, %v13710_v15  ;;  %v13895_v43 = vand.u32 2147483648, %v13710_v15 }
 0x71c   : > { %v18371_v63 = vpop.eup %18370  ;;  %v21282_v24 = vadd.f32 1.0, %v18369_v50  ;;  %v21713_v50 = vld [vmem:[#allocation7_spill] sm:$0xff] }
 0x71d   : > { %18173 = vst [vmem:[%s21162_s17 + $0x10] sm:$0xff] %v18073_v45   ;;  %v13885_v27 = vmul.f32 %v18371_v63, %v13710_v15  ;;  %v12020_v46 = vpop.f32.mrf.mxu3  ;;  %vm13890_vm13 = vweird.f32 %v18371_v63  ;;  %v12645_v45 = vadd.f32 %v21713_v50, %v20980_v36  ;;  %vm13894_vm2 = vcmp.eq.f32.partialorder %v13893_v30, 8.507059e+37 }
 0x71e   : > { %18372 = vrcp.f32 %v21282_v24  ;;  %v13223_v35 = vpop.f32.mrf.mxu1  ;;  %v11263_v29 = vpop.f32.mrf.mxu2  ;;  %vm21309_vm15 = vmor %vm13889_vm14, %vm13890_vm13  ;;  %v13896_v15 = vor.u32 1.1754944e-38, %v13895_v43  ;;  %v13908_v36 = vand.u32 2147483647, %v21282_v24  ;;  %vm13904_vm4 = vweird.f32 %v21282_v24 }
 0x71f   : > { %v13886_v21 = vsub.f32 1.0, %v13885_v27  ;;  %v13373_v31 = vadd.f32 %v13223_v35, %v12644_v32  ;;  %v11380_v52 = vadd.f32 %v11263_v29, %v20942_v16  ;;  %v12551_v42 = vpop.f32.mrf.mxu0  ;;  %v13046_v43 = vrot.slane %v13044_v41, 1 }
 0x720   : > { %vm13909_vm6 = vcmp.eq.f32.partialorder %v13908_v36, 8.507059e+37 }
 0x721   : > { %v13887_v11 = vmul.f32 %v18371_v63, %v13886_v21  ;;  %v21298_v48 = vadd.f32 %v21048_v62, %v13373_v31  ;;  %13262 = vmatmul.bf16.gmra.mxu1 %v13039_v25  ;;  %v21304_v7 = vadd.f32 %v12020_v46, %v11380_v52  ;;  %v13910_v21 = vand.u32 2147483648, %v21282_v24  ;;  %v18152_v31 = vld [vmem:[#allocation2 + $0x30] sm:$0xff]  }
 0x722   : > { %v17983_v42 = vunpack.c.h.bf16 %v18152_v31 }
 0x723   : > { %v13888_v23 = vadd.f32 %v18371_v63, %v13887_v11  ;;  %v17278_v6 = vmul.f32 -1.442695, %v21298_v48  ;;  %v18153_v11 = vld [vmem:[#allocation2 + $0x38] sm:$0xf]   ;;  %v13911_v50 = vor.u32 1.1754944e-38, %v13910_v21 }
 0x724   : > { %v18373_v60 = vpop.eup %18372 }
 0x725   : > { %v13900_v57 = vmul.f32 %v18373_v60, %v21282_v24  ;;  %18374 = vpow2.f32 %v17278_v6  ;;  %v13892_v27 = vsel %vm21309_vm15, %v18371_v63, %v13888_v23  ;;  %vm13905_vm3 = vweird.f32 %v18373_v60  ;;  %v12022_v52 = vpop.f32.mrf.mxu3 }
 0x726   : > { %v13225_v40 = vpop.f32.mrf.mxu1  ;;  %v11265_v46 = vpop.f32.mrf.mxu2  ;;  %v13897_v63 = vsel %vm13894_vm2, %v13896_v15, %v13892_v27  ;;  %v13040_v23 = vshrl.u32 %v21274_v0, 16  ;;  %vm13906_vm5 = vmor %vm13904_vm4, %vm13905_vm3 }
 0x727   : > { %v13901_v32 = vsub.f32 1.0, %v13900_v57  ;;  %v13374_v35 = vadd.f32 %v13225_v40, %v12645_v45  ;;  %v17986_v45 = vunpack.c.l.bf16 %v18153_v11  ;;  %v14478_v40 = vmul.f32 %v13897_v63, %v21245_v1  ;;  %v21325_v27 = vpop.f32.mrf.mxu0  ;;  %v21716_v1 = vld [vmem:[#allocation8_spill] sm:$0xff] }
 0x728   : > { %v13042_v24 = vor.u32 %v13040_v23, %v21287_v49 }
 0x729   : > { %v13902_v25 = vmul.f32 %v18373_v60, %v13901_v32  ;;  %v21319_v29 = vadd.f32 %v21048_v62, %v13374_v35  ;;  %v14622_v21 = vadd.f32 %v17983_v42, %v14478_v40  ;;  %v21341_v42 = vld [vmem:[#allocation3 + $0xa4] sm:$0xff] }
 0x72a   : > { %v13047_v15 = vsel %vm1732_vm1, %v13042_v24, %v13046_v43  ;;  %v21718_v24 = vld [vmem:[#allocation11_spill] sm:$0xff] }
 0x72b   : > { %v18375_v6 = vpop.eup %18374  ;;  %v13903_v57 = vadd.f32 %v18373_v60, %v13902_v25  ;;  %v17279_v30 = vmul.f32 -1.442695, %v21319_v29 }
 0x72c   : > { %v13713_v16 = vadd.f32 1.0, %v18375_v6 }
 0x72d   : > { %v13907_v32 = vsel %vm13906_vm5, %v18373_v60, %v13903_v57  ;;  %18376 = vpow2.f32 %v17279_v30  ;;  %v12025_v11 = vpop.f32.mrf.mxu3 }
 0x72e   : > { %v13912_v0 = vsel %vm13909_vm6, %v13911_v50, %v13907_v32  ;;  %18378 = vrcp.f32 %v13713_v16  ;;  %v13228_v35 = vpop.f32.mrf.mxu1  ;;  %v11268_v25 = vpop.f32.mrf.mxu2  ;;  %vm13934_vm7 = vweird.f32 %v13713_v16 }
 0x72f   : > { %v14479_v41 = vmul.f32 %v13912_v0, %v21270_v38  ;;  %v11382_v60 = vadd.f32 %v11268_v25, %v21716_v1  ;;  %v21336_v23 = vpop.f32.mrf.mxu0  ;;  %v21717_v38 = vld [vmem:[#allocation12_spill] sm:$0xff]  ;;  %v13940_v1 = vand.u32 2147483648, %v13713_v16 }
 0x730   : > { %v12647_v57 = vadd.f32 %v21717_v38, %v20992_v4 }
 0x731   : > { %v14623_v31 = vadd.f32 %v17986_v45, %v14479_v41  ;;  %13267 = vmatmul.bf16.gmra.mxu1 %v13047_v15  ;;  %v21333_v6 = vadd.f32 %v12025_v11, %v11382_v60  ;;  %v13048_v15 = vshrl.u32 %v21302_v47, 16  ;;  %v13938_v11 = vand.u32 2147483647, %v13713_v16 }
 0x732   : > { %v12648_v47 = vadd.f32 %v20983_v33, %v21003_v8 }
 0x733   : > { %v18377_v36 = vpop.eup %18376  ;;  %v18078_v46 = vpack.c.bf16 %v14623_v31, %v14622_v21  ;;  %v13052_v21 = vshll.u32 %v21341_v42, 16  ;;  %vm13939_vm9 = vcmp.eq.f32.partialorder %v13938_v11, 8.507059e+37 }
 0x734   : > { %v18379_v52 = vpop.eup %18378  ;;  %v21331_v63 = vadd.f32 1.0, %v18377_v36  ;;  %v13050_v36 = vor.u32 %v13048_v15, %v13046_v43  ;;  %v13941_v43 = vor.u32 1.1754944e-38, %v13940_v1 }
 0x735   : > { %18174 = vst [vmem:[%s21162_s17 + $0x18] sm:$0xff] %v18078_v46   ;;  %v13930_v49 = vmul.f32 %v18379_v52, %v13713_v16  ;;  %v12027_v35 = vpop.f32.mrf.mxu3  ;;  %vm13935_vm0 = vweird.f32 %v18379_v52 }
 0x736   : > { %18380 = vrcp.f32 %v21331_v63  ;;  %v13230_v30 = vpop.f32.mrf.mxu1  ;;  %v11270_v0 = vpop.f32.mrf.mxu2  ;;  %vm21355_vm8 = vmor %vm13934_vm7, %vm13935_vm0  ;;  %v13955_v16 = vand.u32 2147483648, %v21331_v63  ;;  %v13953_v33 = vand.u32 2147483647, %v21331_v63  ;;  %vm13949_vm11 = vweird.f32 %v21331_v63 }
 0x737   : > { %v13931_v50 = vsub.f32 1.0, %v13930_v49  ;;  %v13376_v45 = vadd.f32 %v13230_v30, %v12647_v57  ;;  %v11383_v41 = vadd.f32 %v11270_v0, %v21718_v24  ;;  %v12559_v49 = vpop.f32.mrf.mxu0  ;;  %v13054_v30 = vrot.slane %v13052_v21, 1 }
 0x738   : > { %v13956_v1 = vor.u32 1.1754944e-38, %v13955_v16  ;;  %v21369_v49 = vld [vmem:[#allocation3 + $0xac] sm:$0xff]  ;;  %vm13954_vm13 = vcmp.eq.f32.partialorder %v13953_v33, 8.507059e+37 }
 0x739   : > { %v13932_v40 = vmul.f32 %v18379_v52, %v13931_v50  ;;  %v21344_v32 = vadd.f32 %v21048_v62, %v13376_v45  ;;  %v21350_v60 = vadd.f32 %v12027_v35, %v11383_v41  ;;  %v13055_v0 = vsel %vm1732_vm1, %v13050_v36, %v13054_v30  ;;  %v18154_v35 = vld [vmem:[#allocation2 + $0x40] sm:$0xff]  }
 0x73a   : > { %v17990_v11 = vunpack.c.l.bf16 %v18154_v35  ;;  %v17991_v36 = vunpack.c.h.bf16 %v18154_v35 }
 0x73b   : > { %v13933_v4 = vadd.f32 %v18379_v52, %v13932_v40  ;;  %v17281_v31 = vmul.f32 -1.442695, %v21344_v32 }
 0x73c   : > { %v18381_v25 = vpop.eup %18380 }
 0x73d   : > { %v13945_v46 = vmul.f32 %v18381_v25, %v21331_v63  ;;  %18382 = vpow2.f32 %v17281_v31  ;;  %v13937_v50 = vsel %vm21355_vm8, %v18379_v52, %v13933_v4  ;;  %vm13950_vm10 = vweird.f32 %v18381_v25  ;;  %v12030_v15 = vpop.f32.mrf.mxu3 }
 0x73e   : > { %v13233_v57 = vpop.f32.mrf.mxu1  ;;  %v11273_v41 = vpop.f32.mrf.mxu2  ;;  %v13942_v52 = vsel %vm13939_vm9, %v13941_v43, %v13937_v50  ;;  %vm13951_vm12 = vmor %vm13949_vm11, %vm13950_vm10  ;;  %v13056_v15 = vshrl.u32 %v21341_v42, 16  ;;  %v21395_v42 = vld [vmem:[%s21635_s4] ss:$0 sm:$0xff] }
 0x73f   : > { %v13946_v45 = vsub.f32 1.0, %v13945_v46  ;;  %v13377_v40 = vadd.f32 %v13233_v57, %v12648_v47  ;;  %v21372_v38 = vpop.f32.mrf.mxu0 }
 0x741   : > { %v13947_v24 = vmul.f32 %v18381_v25, %v13946_v45  ;;  %v21365_v8 = vadd.f32 %v21048_v62, %v13377_v40  ;;  %13272 = vmatmul.bf16.gmra.mxu1 %v13055_v0  ;;  %v14481_v62 = vmul.f32 %v13942_v52, %v21298_v48  ;;  %v13060_v45 = vshll.u32 %v21369_v49, 16 }
 0x743   : > { %v18383_v21 = vpop.eup %18382  ;;  %v13948_v4 = vadd.f32 %v18381_v25, %v13947_v24  ;;  %v17282_v31 = vmul.f32 -1.442695, %v21365_v8  ;;  %v14625_v40 = vadd.f32 %v17990_v11, %v14481_v62  ;;  %v21382_v52 = vrot.slane %v13060_v45, 1 }
 0x744   : > { %v13716_v46 = vadd.f32 1.0, %v18383_v21 }
 0x745   : > { %v13952_v47 = vsel %vm13951_vm12, %v18381_v25, %v13948_v4  ;;  %18384 = vpow2.f32 %v17282_v31  ;;  %v12032_v0 = vpop.f32.mrf.mxu3  ;;  %v12650_v4 = vadd.f32 %v20995_v37, %v21015_v28  ;;  %v13058_v31 = vor.u32 %v13056_v15, %v13054_v30 }
 0x746   : > { %v13957_v57 = vsel %vm13954_vm13, %v13956_v1, %v13952_v47  ;;  %18386 = vrcp.f32 %v13716_v46  ;;  %v13235_v63 = vpop.f32.mrf.mxu1  ;;  %v11275_v16 = vpop.f32.mrf.mxu2  ;;  %vm13979_vm15 = vweird.f32 %v13716_v46 }
 0x747   : > { %v14482_v50 = vmul.f32 %v13957_v57, %v21319_v29  ;;  %v11385_v35 = vadd.f32 %v11275_v16, %v20977_v34  ;;  %v21385_v21 = vpop.f32.mrf.mxu0 }
 0x749   : > { %v14626_v43 = vadd.f32 %v17991_v36, %v14482_v50  ;;  %v21379_v41 = vadd.f32 %v12032_v0, %v11385_v35  ;;  %v13063_v36 = vsel %vm1732_vm1, %v13058_v31, %v21382_v52  ;;  %v21402_v50 = vld [vmem:[#allocation3 + $0xb4] sm:$0xff] }
 0x74b   : > { %v18385_v48 = vpop.eup %18384  ;;  %v18083_v25 = vpack.c.bf16 %v14626_v43, %v14625_v40  ;;  %v13983_v40 = vand.u32 2147483647, %v13716_v46  ;;  %v13985_v43 = vand.u32 2147483648, %v13716_v46 }
 0x74c   : > { %v18387_v24 = vpop.eup %18386  ;;  %v21377_v33 = vadd.f32 1.0, %v18385_v48  ;;  %v12651_v48 = vadd.f32 %v21006_v13, %v21025_v55  ;;  %v18156_v55 = vld [vmem:[#allocation2 + $0x50] sm:$0xf]  }
 0x74d   : > { %18175 = vst [vmem:[%s21162_s17 + $0x20] sm:$0xff] %v18083_v25   ;;  %v13975_v29 = vmul.f32 %v18387_v24, %v13716_v46  ;;  %v12035_v37 = vpop.f32.mrf.mxu3  ;;  %vm13980_vm14 = vweird.f32 %v18387_v24  ;;  %vm13984_vm3 = vcmp.eq.f32.partialorder %v13983_v40, 8.507059e+37  ;;  %v13986_v46 = vor.u32 1.1754944e-38, %v13985_v43 }
 0x74e   : > { %18388 = vrcp.f32 %v21377_v33  ;;  %v13238_v34 = vpop.f32.mrf.mxu1  ;;  %v11278_v57 = vpop.f32.mrf.mxu2  ;;  %vm21409_vm2 = vmor %vm13979_vm15, %vm13980_vm14  ;;  %v14000_v31 = vand.u32 2147483648, %v21377_v33  ;;  %v13998_v13 = vand.u32 2147483647, %v21377_v33  ;;  %vm13994_vm5 = vweird.f32 %v21377_v33 }
 0x74f   : > { %v13976_v11 = vsub.f32 1.0, %v13975_v29  ;;  %v13379_v1 = vadd.f32 %v13238_v34, %v12650_v4  ;;  %v11386_v28 = vadd.f32 %v11278_v57, %v20987_v5  ;;  %v12566_v35 = vpop.f32.mrf.mxu0  ;;  %v13068_v34 = vshll.u32 %v21402_v50, 16 }
 0x750   : > { %v17998_v35 = vunpack.c.l.bf16 %v18156_v55  ;;  %vm13999_vm0 = vcmp.eq.f32.partialorder %v13998_v13, 8.507059e+37 }
 0x751   : > { %v13977_v62 = vmul.f32 %v18387_v24, %v13976_v11  ;;  %v21398_v47 = vadd.f32 %v21395_v42, %v13379_v1  ;;  %13277 = vmatmul.bf16.gmra.mxu1 %v13063_v36  ;;  %v21404_v16 = vadd.f32 %v12035_v37, %v11386_v28  ;;  %v18155_v11 = vld [vmem:[#allocation2 + $0x48] sm:$0xff]   ;;  %v13064_v37 = vshrl.u32 %v21369_v49, 16 }
 0x752   : > { %v13070_v40 = vrot.slane %v13068_v34, 1  ;;  %v17995_v43 = vunpack.c.h.bf16 %v18155_v11 }
 0x753   : > { %v13978_v30 = vadd.f32 %v18387_v24, %v13977_v62  ;;  %v17284_v63 = vmul.f32 -1.442695, %v21398_v47 }
 0x754   : > { %v18389_v45 = vpop.eup %18388 }
 0x755   : > { %v13990_v0 = vmul.f32 %v18389_v45, %v21377_v33  ;;  %18390 = vpow2.f32 %v17284_v63  ;;  %v13982_v15 = vsel %vm21409_vm2, %v18387_v24, %v13978_v30  ;;  %vm13995_vm4 = vweird.f32 %v18389_v45  ;;  %v12037_v57 = vpop.f32.mrf.mxu3 }
 0x756   : > { %v13240_v25 = vpop.f32.mrf.mxu1  ;;  %v11280_v62 = vpop.f32.mrf.mxu2  ;;  %v13987_v24 = vsel %vm13984_vm3, %v13986_v46, %v13982_v15  ;;  %vm13996_vm6 = vmor %vm13994_vm5, %vm13995_vm4  ;;  %v13066_v33 = vor.u32 %v13064_v37, %v21382_v52 }
 0x757   : > { %v13991_v29 = vsub.f32 1.0, %v13990_v0  ;;  %v13380_v4 = vadd.f32 %v13240_v25, %v12651_v48  ;;  %v14001_v0 = vor.u32 1.1754944e-38, %v14000_v31  ;;  %v14484_v5 = vmul.f32 %v13987_v24, %v21344_v32  ;;  %v21425_v49 = vpop.f32.mrf.mxu0  ;;  %v21723_v32 = vld [vmem:[#allocation9_spill] sm:$0xff] }
 0x758   : > { %v13071_v34 = vsel %vm1732_vm1, %v13066_v33, %v13070_v40 }
 0x759   : > { %v13992_v1 = vmul.f32 %v18389_v45, %v13991_v29  ;;  %v21419_v36 = vadd.f32 %v21395_v42, %v13380_v4  ;;  %v14628_v46 = vadd.f32 %v17995_v43, %v14484_v5 }
 0x75b   : > { %v18391_v28 = vpop.eup %18390  ;;  %v13993_v30 = vadd.f32 %v18389_v45, %v13992_v1  ;;  %v17285_v63 = vmul.f32 -1.442695, %v21419_v36 }
 0x75c   : > { %v13719_v48 = vadd.f32 1.0, %v18391_v28  ;;  %v21439_v28 = vld [vmem:[#allocation3 + $0xbc] sm:$0xff] }
 0x75d   : > { %v13997_v25 = vsel %vm13996_vm6, %v18389_v45, %v13993_v30  ;;  %18392 = vpow2.f32 %v17285_v63  ;;  %v12040_v1 = vpop.f32.mrf.mxu3 }
 0x75e   : > { %v14002_v15 = vsel %vm13999_vm0, %v14001_v0, %v13997_v25  ;;  %18394 = vrcp.f32 %v13719_v48  ;;  %v13243_v29 = vpop.f32.mrf.mxu1  ;;  %v11283_v11 = vpop.f32.mrf.mxu2  ;;  %vm14024_vm8 = vweird.f32 %v13719_v48 }
 0x75f   : > { %v14485_v4 = vmul.f32 %v14002_v15, %v21365_v8  ;;  %v11388_v45 = vadd.f32 %v11283_v11, %v21723_v32  ;;  %v12653_v8 = vadd.f32 %v21018_v26, %v21040_v59  ;;  %v21441_v43 = vpop.f32.mrf.mxu0  ;;  %v13072_v29 = vshrl.u32 %v21402_v50, 16 }
 0x760   : > { %v13076_v26 = vshll.u32 %v21439_v28, 16 }
 0x761   : > { %v14629_v31 = vadd.f32 %v17998_v35, %v14485_v4  ;;  %13282 = vmatmul.bf16.gmra.mxu1 %v13071_v34  ;;  %v21433_v24 = vadd.f32 %v12040_v1, %v11388_v45  ;;  %v14028_v34 = vand.u32 2147483647, %v13719_v48  ;;  %v13074_v11 = vor.u32 %v13072_v29, %v13070_v40 }
 0x762   : > { %v13078_v45 = vrot.slane %v13076_v26, 1 }
 0x763   : > { %v18393_v13 = vpop.eup %18392  ;;  %v18088_v55 = vpack.c.bf16 %v14629_v31, %v14628_v46  ;;  %v14030_v46 = vand.u32 2147483648, %v13719_v48  ;;  %vm14029_vm10 = vcmp.eq.f32.partialorder %v14028_v34, 8.507059e+37 }
 0x764   : > { %v18395_v62 = vpop.eup %18394  ;;  %v21431_v57 = vadd.f32 1.0, %v18393_v13 }
 0x765   : > { %18176 = vst [vmem:[%s21162_s17 + $0x28] sm:$0xff] %v18088_v55   ;;  %v14020_v52 = vmul.f32 %v18395_v62, %v13719_v48  ;;  %v12042_v25 = vpop.f32.mrf.mxu3  ;;  %vm14025_vm7 = vweird.f32 %v18395_v62  ;;  %v14031_v40 = vor.u32 1.1754944e-38, %v14030_v46  ;;  %v21469_v46 = vld [vmem:[#allocation3 + $0xc4] sm:$0xff] }
 0x766   : > { %18396 = vrcp.f32 %v21431_v57  ;;  %v13245_v37 = vpop.f32.mrf.mxu1  ;;  %v11285_v5 = vpop.f32.mrf.mxu2  ;;  %vm21455_vm9 = vmor %vm14024_vm8, %vm14025_vm7  ;;  %v14045_v48 = vand.u32 2147483648, %v21431_v57  ;;  %vm14039_vm12 = vweird.f32 %v21431_v57 }
 0x767   : > { %v14021_v30 = vsub.f32 1.0, %v14020_v52  ;;  %v13382_v63 = vadd.f32 %v13245_v37, %v12653_v8  ;;  %v11389_v15 = vadd.f32 %v11285_v5, %v21010_v18  ;;  %v12654_v18 = vadd.f32 %v21028_v39, %v21060_v56  ;;  %v12574_v37 = vpop.f32.mrf.mxu0 }
 0x768   : > { %v13079_v8 = vsel %vm1732_vm1, %v13074_v11, %v13078_v45  ;;  %v14043_v56 = vand.u32 2147483647, %v21431_v57 }
 0x769   : > { %v14022_v0 = vmul.f32 %v18395_v62, %v14021_v30  ;;  %v21444_v35 = vadd.f32 %v21395_v42, %v13382_v63  ;;  %v21450_v31 = vadd.f32 %v12042_v25, %v11389_v15  ;;  %v18157_v30 = vld [vmem:[#allocation2 + $0x58] sm:$0xff]  }
 0x76a   : > { %v18002_v26 = vunpack.c.l.bf16 %v18157_v30  ;;  %vm14044_vm14 = vcmp.eq.f32.partialorder %v14043_v56, 8.507059e+37  ;;  %v13080_v56 = vshrl.u32 %v21439_v28, 16 }
 0x76b   : > { %v14023_v59 = vadd.f32 %v18395_v62, %v14022_v0  ;;  %v17287_v33 = vmul.f32 -1.442695, %v21444_v35 }
 0x76c   : > { %v18397_v4 = vpop.eup %18396 }
 0x76d   : > { %v14035_v1 = vmul.f32 %v18397_v4, %v21431_v57  ;;  %18398 = vpow2.f32 %v17287_v33  ;;  %v14027_v13 = vsel %vm21455_vm9, %v18395_v62, %v14023_v59  ;;  %vm14040_vm11 = vweird.f32 %v18397_v4  ;;  %v12045_v5 = vpop.f32.mrf.mxu3 }
 0x76e   : > { %v13248_v32 = vpop.f32.mrf.mxu1  ;;  %v11288_v0 = vpop.f32.mrf.mxu2  ;;  %v14032_v62 = vsel %vm14029_vm10, %v14031_v40, %v14027_v13  ;;  %vm14041_vm13 = vmor %vm14039_vm12, %vm14040_vm11  ;;  %v14046_v59 = vor.u32 1.1754944e-38, %v14045_v48  ;;  %v18003_v33 = vunpack.c.h.bf16 %v18157_v30  ;;  %v13084_v13 = vshll.u32 %v21469_v46, 16 }
 0x76f   : > { %v14036_v55 = vsub.f32 1.0, %v14035_v1  ;;  %v13383_v52 = vadd.f32 %v13248_v32, %v12654_v18  ;;  %v14487_v11 = vmul.f32 %v14032_v62, %v21398_v47  ;;  %v12576_v32 = vpop.f32.mrf.mxu0  ;;  %v12656_v5 = vadd.f32 %v21075_v22, %v21089_v20 }
 0x770   : > { %v13086_v0 = vrot.slane %v13084_v13, 1  ;;  %v21726_v13 = vld [vmem:[#allocation13_spill] sm:$0xff] }
 0x771   : > { %v14037_v39 = vmul.f32 %v18397_v4, %v14036_v55  ;;  %v21465_v63 = vadd.f32 %v21395_v42, %v13383_v52  ;;  %13287 = vmatmul.bf16.gmra.mxu1 %v13079_v8  ;;  %v14631_v55 = vadd.f32 %v18002_v26, %v14487_v11 }
 0x773   : > { %v18399_v25 = vpop.eup %18398  ;;  %v14038_v15 = vadd.f32 %v18397_v4, %v14037_v39  ;;  %v17288_v29 = vmul.f32 -1.442695, %v21465_v63 }
 0x774   : > { %v13722_v34 = vadd.f32 1.0, %v18399_v25  ;;  %v13082_v25 = vor.u32 %v13080_v56, %v13078_v45  ;;  %v21490_v45 = vld [vmem:[#allocation3 + $0xcc] sm:$0xff]  ;;  %v18158_v56 = vld [vmem:[#allocation2 + $0x60] sm:$0xff]  }
 0x775   : > { %v14042_v1 = vsel %vm14041_vm13, %v18397_v4, %v14038_v15  ;;  %18400 = vpow2.f32 %v17288_v29  ;;  %v12047_v47 = vpop.f32.mrf.mxu3 }
 0x776   : > { %v14047_v18 = vsel %vm14044_vm14, %v14046_v59, %v14042_v1  ;;  %18402 = vrcp.f32 %v13722_v34  ;;  %v13250_v50 = vpop.f32.mrf.mxu1  ;;  %v11290_v40 = vpop.f32.mrf.mxu2  ;;  %v13087_v26 = vsel %vm1732_vm1, %v13082_v25, %v13086_v0  ;;  %vm14069_vm2 = vweird.f32 %v13722_v34 }
 0x777   : > { %v14488_v57 = vmul.f32 %v14047_v18, %v21419_v36  ;;  %v11391_v48 = vadd.f32 %v11290_v40, %v21022_v58  ;;  %v14073_v50 = vand.u32 2147483647, %v13722_v34 }
 0x779   : > { %v14632_v52 = vadd.f32 %v18003_v33, %v14488_v57  ;;  %v12148_v39 = vadd.f32 %v12047_v47, %v11391_v48  ;;  %v12579_v11 = vpop.f32.mrf.mxu0  ;;  %v14075_v57 = vand.u32 2147483648, %v13722_v34  ;;  %vm14074_vm4 = vcmp.eq.f32.partialorder %v14073_v50, 8.507059e+37 }
 0x77b   : > { %v18401_v8 = vpop.eup %18400  ;;  %v18093_v37 = vpack.c.bf16 %v14632_v52, %v14631_v55  ;;  %v21482_v15 = vadd.f32 %v12576_v32, %v12148_v39  ;;  %v12657_v55 = vadd.f32 %v21726_v13, %v21113_v17  ;;  %v13088_v39 = vshrl.u32 %v21469_v46, 16 }
 0x77c   : > { %v18403_v4 = vpop.eup %18402  ;;  %v21475_v30 = vadd.f32 1.0, %v18401_v8 }
 0x77d   : > { %18177 = vst [vmem:[%s21162_s17 + $0x30] sm:$0xff] %v18093_v37   ;;  %v14065_v36 = vmul.f32 %v18403_v4, %v13722_v34  ;;  %vm14070_vm15 = vweird.f32 %v18403_v4  ;;  %v13092_v37 = vshll.u32 %v21490_v45, 16  ;;  %v14076_v34 = vor.u32 1.1754944e-38, %v14075_v57 }
 0x77e   : > { %18404 = vrcp.f32 %v21475_v30  ;;  %v13253_v62 = vpop.f32.mrf.mxu1  ;;  %v11293_v28 = vpop.f32.mrf.mxu2  ;;  %vm21495_vm3 = vmor %vm14069_vm2, %vm14070_vm15  ;;  %v14090_v47 = vand.u32 2147483648, %v21475_v30  ;;  %vm14084_vm6 = vweird.f32 %v21475_v30 }
 0x77f   : > { %v14066_v58 = vsub.f32 1.0, %v14065_v36  ;;  %v13385_v29 = vadd.f32 %v13253_v62, %v12656_v5  ;;  %v11392_v1 = vadd.f32 %v11293_v28, %v21032_v54  ;;  %v14088_v36 = vand.u32 2147483647, %v21475_v30  ;;  %v18159_v5 = vld [vmem:[#allocation2 + $0x68] sm:$0xf]  }
 0x780   : > { %v21510_v46 = vrot.slane %v13092_v37, 1  ;;  %v18010_v50 = vunpack.c.l.bf16 %v18159_v5 }
 0x781   : > { %v14067_v59 = vmul.f32 %v18403_v4, %v14066_v58  ;;  %v21486_v33 = vadd.f32 %v21395_v42, %v13385_v29  ;;  %13292 = vmatmul.bf16.gmra.mxu1 %v13087_v26  ;;  %v12581_v25 = vpop.f32.mrf.mxu0  ;;  %v13090_v29 = vor.u32 %v13088_v39, %v13086_v0  ;;  %vm14089_vm7 = vcmp.eq.f32.partialorder %v14088_v36, 8.507059e+37 }
 0x783   : > { %v14068_v22 = vadd.f32 %v18403_v4, %v14067_v59  ;;  %v17290_v20 = vmul.f32 -1.442695, %v21486_v33 }
 0x784   : > { %v18405_v18 = vpop.eup %18404 }
 0x785   : > { %v14080_v32 = vmul.f32 %v18405_v18, %v21475_v30  ;;  %18406 = vpow2.f32 %v17290_v20  ;;  %v14072_v40 = vsel %vm21495_vm3, %v18403_v4, %v14068_v22  ;;  %vm14085_vm5 = vweird.f32 %v18405_v18 }
 0x786   : > { %v13255_v54 = vpop.f32.mrf.mxu1  ;;  %v11295_v4 = vpop.f32.mrf.mxu2  ;;  %v14077_v58 = vsel %vm14074_vm4, %v14076_v34, %v14072_v40  ;;  %v18007_v22 = vunpack.c.h.bf16 %v18158_v56  ;;  %vm14086_vm0 = vmor %vm14084_vm6, %vm14085_vm5  ;;  %v14091_v20 = vor.u32 1.1754944e-38, %v14090_v47  ;;  %v13095_v40 = vsel %vm1732_vm1, %v13090_v29, %v21510_v46 }
 0x787   : > { %v14081_v48 = vsub.f32 1.0, %v14080_v32  ;;  %v13386_v8 = vadd.f32 %v13255_v54, %v12657_v55  ;;  %v14490_v32 = vmul.f32 %v14077_v58, %v21444_v35  ;;  %v12659_v56 = vadd.f32 %v21150_v19, %v21168_v44 }
 0x789   : > { %v14082_v17 = vmul.f32 %v18405_v18, %v14081_v48  ;;  %v21506_v62 = vadd.f32 %v21395_v42, %v13386_v8  ;;  %v12050_v55 = vpop.f32.mrf.mxu3  ;;  %v14634_v48 = vadd.f32 %v18007_v22, %v14490_v32  ;;  %v18160_v32 = vld [vmem:[#allocation2 + $0x70] sm:$0xff]  }
 0x78a   : > { %v12149_v54 = vadd.f32 %v12050_v55, %v11392_v1 }
 0x78b   : > { %v18407_v26 = vpop.eup %18406  ;;  %v14083_v59 = vadd.f32 %v18405_v18, %v14082_v17  ;;  %v17291_v28 = vmul.f32 -1.442695, %v21506_v62 }
 0x78c   : > { %v13725_v57 = vadd.f32 1.0, %v18407_v26  ;;  %v21516_v37 = vadd.f32 %v12579_v11, %v12149_v54  ;;  %v12660_v26 = vadd.f32 %v21175_v3, %v21192_v51 }
 0x78d   : > { %v14087_v13 = vsel %vm14086_vm0, %v18405_v18, %v14083_v59  ;;  %18408 = vpow2.f32 %v17291_v28 }
 0x78e   : > { %v14092_v0 = vsel %vm14089_vm7, %v14091_v20, %v14087_v13  ;;  %18410 = vrcp.f32 %v13725_v57  ;;  %v13258_v52 = vpop.f32.mrf.mxu1  ;;  %v14120_v29 = vand.u32 2147483648, %v13725_v57  ;;  %vm14114_vm9 = vweird.f32 %v13725_v57 }
 0x78f   : > { %v14491_v30 = vmul.f32 %v14092_v0, %v21465_v63  ;;  %v14118_v19 = vand.u32 2147483647, %v13725_v57 }
 0x791   : > { %v14635_v8 = vadd.f32 %v18010_v50, %v14491_v30  ;;  %13297 = vmatmul.bf16.gmra.mxu1 %v13095_v40  ;;  %v12052_v17 = vpop.f32.mrf.mxu3  ;;  %v14121_v50 = vor.u32 1.1754944e-38, %v14120_v29  ;;  %vm14119_vm11 = vcmp.eq.f32.partialorder %v14118_v19, 8.507059e+37  ;;  %v12662_v19 = vadd.f32 %v21221_v53, %v21231_v2 }
 0x792   : > { %v12663_v2 = vadd.f32 %v21235_v10, %v21253_v9  ;;  %v18162_v9 = vld [vmem:[#allocation2 + $0x80] sm:$0xf]  }
 0x793   : > { %v18409_v35 = vpop.eup %18408  ;;  %v18098_v18 = vpack.c.bf16 %v14635_v8, %v14634_v48  ;;  %v18015_v48 = vunpack.c.h.bf16 %v18160_v32 }
 0x794   : > { %v18411_v34 = vpop.eup %18410  ;;  %v13726_v47 = vadd.f32 1.0, %v18409_v35 }
 0x795   : > { %18178 = vst [vmem:[%s21162_s17 + $0x38] sm:$0xff] %v18098_v18   ;;  %v14110_v39 = vmul.f32 %v18411_v34, %v13725_v57  ;;  %vm14115_vm8 = vweird.f32 %v18411_v34  ;;  %v18014_v57 = vunpack.c.l.bf16 %v18160_v32 }
 0x796   : > { %18412 = vrcp.f32 %v13726_v47  ;;  %v13260_v63 = vpop.f32.mrf.mxu1  ;;  %vm14116_vm10 = vmor %vm14114_vm9, %vm14115_vm8  ;;  %v14133_v13 = vand.u32 2147483647, %v13726_v47  ;;  %v14135_v55 = vand.u32 2147483648, %v13726_v47  ;;  %vm14129_vm13 = vweird.f32 %v13726_v47 }
 0x797   : > { %v14111_v1 = vsub.f32 1.0, %v14110_v39  ;;  %v13388_v36 = vadd.f32 %v13260_v63, %v12659_v56  ;;  %v13096_v39 = vshrl.u32 %v21490_v45, 16 }
 0x798   : > { %vm14134_vm15 = vcmp.eq.f32.partialorder %v14133_v13, 8.507059e+37  ;;  %v14136_v40 = vor.u32 1.1754944e-38, %v14135_v55 }
 0x799   : > { %v14112_v5 = vmul.f32 %v18411_v34, %v14111_v1  ;;  %v21522_v4 = vadd.f32 %v21395_v42, %v13388_v36  ;;  %v13098_v63 = vor.u32 %v13096_v39, %v21510_v46 }
 0x79b   : > { %v14113_v11 = vadd.f32 %v18411_v34, %v14112_v5  ;;  %v17293_v25 = vmul.f32 -1.442695, %v21522_v4 }
 0x79c   : > { %v18413_v58 = vpop.eup %18412 }
 0x79d   : > { %v14125_v44 = vmul.f32 %v18413_v58, %v13726_v47  ;;  %18414 = vpow2.f32 %v17293_v25  ;;  %v14117_v28 = vsel %vm14116_vm10, %v18411_v34, %v14113_v11  ;;  %vm14130_vm12 = vweird.f32 %v18413_v58  ;;  %v17915_v34 = vld [vmem:[#allocation3 + $0xd4] sm:$0xff] }
 0x79e   : > { %v13263_v59 = vpop.f32.mrf.mxu1  ;;  %v14122_v3 = vsel %vm14119_vm11, %v14121_v50, %v14117_v28  ;;  %vm14131_vm14 = vmor %vm14129_vm13, %vm14130_vm12  ;;  %v13100_v1 = vshll.u32 %v17915_v34, 16  ;;  %v13104_v50 = vshrl.u32 %v17915_v34, 16 }
 0x79f   : > { %v14126_v22 = vsub.f32 1.0, %v14125_v44  ;;  %v13389_v20 = vadd.f32 %v13263_v59, %v12660_v26  ;;  %v14493_v35 = vmul.f32 %v14122_v3, %v21486_v33 }
 0x7a0   : > { %v13102_v11 = vrot.slane %v13100_v1, 1 }
 0x7a1   : > { %v14127_v0 = vmul.f32 %v18413_v58, %v14126_v22  ;;  %v21528_v52 = vadd.f32 %v21395_v42, %v13389_v20  ;;  %v14637_v36 = vadd.f32 %v18014_v57, %v14493_v35  ;;  %v12776_v22 = vld [vmem:[#allocation3 + $0xdc] sm:$0x1] }
 0x7a2   : > { %v13103_v33 = vsel %vm1732_vm1, %v13098_v63, %v13102_v11  ;;  %v12890_v20 = vunpack.c.l.b16 %v12776_v22 }
 0x7a3   : > { %v18415_v51 = vpop.eup %18414  ;;  %v14128_v30 = vadd.f32 %v18413_v58, %v14127_v0  ;;  %v17294_v54 = vmul.f32 -1.442695, %v21528_v52  ;;  %13302 = vmatmul.bf16.gmra.mxu1 %v13103_v33  ;;  %v18022_v33 = vunpack.c.l.bf16 %v18162_v9 }
 0x7a4   : > { %v13728_v8 = vadd.f32 1.0, %v18415_v51  ;;  %v12915_v51 = vpack.c.b16 %v12890_v20, %v12890_v20 }
 0x7a5   : > { %v14132_v18 = vsel %vm14131_vm14, %v18413_v58, %v14128_v30  ;;  %18416 = vpow2.f32 %v17294_v54  ;;  %v13106_v30 = vor.u32 %v13104_v50, %v13102_v11 }
 0x7a6   : > { %v14137_v56 = vsel %vm14134_vm15, %v14136_v40, %v14132_v18  ;;  %18418 = vrcp.f32 %v13728_v8  ;;  %v13265_v17 = vpop.f32.mrf.mxu1  ;;  %v14163_v0 = vand.u32 2147483647, %v13728_v8  ;;  %v14165_v3 = vand.u32 2147483648, %v13728_v8 }
 0x7a7   : > { %v14494_v47 = vmul.f32 %v14137_v56, %v21506_v62  ;;  %vm14159_vm3 = vweird.f32 %v13728_v8  ;;  %v13108_v54 = vshll.u32 %v12915_v51, 16  ;;  %v18161_v56 = vld [vmem:[#allocation2 + $0x78] sm:$0xff]  }
 0x7a8   : > { %vm14164_vm5 = vcmp.eq.f32.partialorder %v14163_v0, 8.507059e+37  ;;  %v14166_v34 = vor.u32 1.1754944e-38, %v14165_v3  ;;  %v12665_v0 = vadd.f32 %v21277_v61, %v21284_v14  ;;  %v12666_v61 = vadd.f32 %v21290_v12, %v21304_v7 }
 0x7a9   : > { %v14638_v5 = vadd.f32 %v18015_v48, %v14494_v47  ;;  %v13110_v39 = vrot.slane %v13108_v54, 1 }
 0x7ab   : > { %v18417_v25 = vpop.eup %18416  ;;  %v18103_v29 = vpack.c.bf16 %v14638_v5, %v14637_v36  ;;  %v13111_v1 = vsel %vm1732_vm1, %v13106_v30, %v13110_v39  ;;  %v18163_v39 = vld [vmem:[#allocation2 + $0x88] sm:$0xff]  }
 0x7ac   : > { %v18419_v58 = vpop.eup %18418  ;;  %v13729_v26 = vadd.f32 1.0, %v18417_v25  ;;  %v18019_v25 = vunpack.c.h.bf16 %v18161_v56  ;;  %v18026_v7 = vunpack.c.l.bf16 %v18163_v39 }
 0x7ad   : > { %18179 = vst [vmem:[%s21162_s17 + $0x40] sm:$0xff] %v18103_v29   ;;  %v14155_v45 = vmul.f32 %v18419_v58, %v13728_v8  ;;  %vm14160_vm2 = vweird.f32 %v18419_v58 }
 0x7ae   : > { %18420 = vrcp.f32 %v13729_v26  ;;  %v13268_v62 = vpop.f32.mrf.mxu1  ;;  %vm21545_vm4 = vmor %vm14159_vm3, %vm14160_vm2  ;;  %v14180_v8 = vand.u32 2147483648, %v13729_v26  ;;  %v14178_v10 = vand.u32 2147483647, %v13729_v26  ;;  %vm14174_vm0 = vweird.f32 %v13729_v26 }
 0x7af   : > { %v14156_v44 = vsub.f32 1.0, %v14155_v45  ;;  %v13391_v46 = vadd.f32 %v13268_v62, %v12662_v19 }
 0x7b0   : > { %v14181_v29 = vor.u32 1.1754944e-38, %v14180_v8  ;;  %vm14179_vm8 = vcmp.eq.f32.partialorder %v14178_v10, 8.507059e+37 }
 0x7b1   : > { %v14157_v59 = vmul.f32 %v18419_v58, %v14156_v44  ;;  %v21540_v28 = vadd.f32 %v21395_v42, %v13391_v46 }
 0x7b3   : > { %v14158_v32 = vadd.f32 %v18419_v58, %v14157_v59  ;;  %v17296_v13 = vmul.f32 -1.442695, %v21540_v28  ;;  %13307 = vmatmul.bf16.gmra.mxu1 %v13111_v1 }
 0x7b4   : > { %v18421_v55 = vpop.eup %18420 }
 0x7b5   : > { %v14170_v53 = vmul.f32 %v18421_v55, %v13729_v26  ;;  %18422 = vpow2.f32 %v17296_v13  ;;  %v14162_v48 = vsel %vm21545_vm4, %v18419_v58, %v14158_v32  ;;  %vm14175_vm6 = vweird.f32 %v18421_v55 }
 0x7b6   : > { %v13270_v40 = vpop.f32.mrf.mxu1  ;;  %v14167_v63 = vsel %vm14164_vm5, %v14166_v34, %v14162_v48  ;;  %vm14176_vm7 = vmor %vm14174_vm0, %vm14175_vm6 }
 0x7b7   : > { %v14171_v35 = vsub.f32 1.0, %v14170_v53  ;;  %v13392_v18 = vadd.f32 %v13270_v40, %v12663_v2  ;;  %v14496_v45 = vmul.f32 %v14167_v63, %v21522_v4 }
 0x7b9   : > { %v14172_v17 = vmul.f32 %v18421_v55, %v14171_v35  ;;  %v21552_v47 = vadd.f32 %v21395_v42, %v13392_v18  ;;  %v14640_v26 = vadd.f32 %v18019_v25, %v14496_v45 }
 0x7bb   : > { %v18423_v36 = vpop.eup %18422  ;;  %v14173_v5 = vadd.f32 %v18421_v55, %v14172_v17  ;;  %v17297_v11 = vmul.f32 -1.442695, %v21552_v47 }
 0x7bc   : > { %v13731_v58 = vadd.f32 1.0, %v18423_v36 }
 0x7bd   : > { %v14177_v19 = vsel %vm14176_vm7, %v18421_v55, %v14173_v5  ;;  %18424 = vpow2.f32 %v17297_v11  ;;  %v18027_v5 = vunpack.c.h.bf16 %v18163_v39 }
 0x7be   : > { %v14182_v62 = vsel %vm14179_vm8, %v14181_v29, %v14177_v19  ;;  %18426 = vrcp.f32 %v13731_v58  ;;  %v13273_v44 = vpop.f32.mrf.mxu1  ;;  %v14208_v30 = vand.u32 2147483647, %v13731_v58  ;;  %v14210_v54 = vand.u32 2147483648, %v13731_v58 }
 0x7bf   : > { %v14497_v46 = vmul.f32 %v14182_v62, %v21528_v52  ;;  %vm14204_vm9 = vweird.f32 %v13731_v58 }
 0x7c0   : > { %vm14209_vm11 = vcmp.eq.f32.partialorder %v14208_v30, 8.507059e+37  ;;  %v14211_v34 = vor.u32 1.1754944e-38, %v14210_v54 }
 0x7c1   : > { %v14641_v59 = vadd.f32 %v18022_v33, %v14497_v46 }
 0x7c3   : > { %v18425_v22 = vpop.eup %18424  ;;  %v18108_v20 = vpack.c.bf16 %v14641_v59, %v14640_v26 }
 0x7c4   : > { %v18427_v50 = vpop.eup %18426  ;;  %v13732_v32 = vadd.f32 1.0, %v18425_v22 }
 0x7c5   : > { %18180 = vst [vmem:[%s21162_s17 + $0x48] sm:$0xff] %v18108_v20   ;;  %v14200_v13 = vmul.f32 %v18427_v50, %v13731_v58  ;;  %vm14205_vm1 = vweird.f32 %v18427_v50  ;;  %v12668_v20 = vadd.f32 %v21325_v27, %v21333_v6  ;;  %v12669_v27 = vadd.f32 %v21336_v23, %v21350_v60 }
 0x7c6   : > { %18428 = vrcp.f32 %v13732_v32  ;;  %v13275_v4 = vpop.f32.mrf.mxu1  ;;  %vm14206_vm10 = vmor %vm14204_vm9, %vm14205_vm1  ;;  %v14225_v8 = vand.u32 2147483648, %v13732_v32  ;;  %v14223_v17 = vand.u32 2147483647, %v13732_v32  ;;  %vm14219_vm13 = vweird.f32 %v13732_v32 }
 0x7c7   : > { %v14201_v55 = vsub.f32 1.0, %v14200_v13  ;;  %v13394_v3 = vadd.f32 %v13275_v4, %v12665_v0 }
 0x7c8   : > { %v14226_v36 = vor.u32 1.1754944e-38, %v14225_v8  ;;  %vm14224_vm15 = vcmp.eq.f32.partialorder %v14223_v17, 8.507059e+37 }
 0x7c9   : > { %v14202_v51 = vmul.f32 %v18427_v50, %v14201_v55  ;;  %v21562_v53 = vadd.f32 %v21395_v42, %v13394_v3 }
 0x7cb   : > { %v14203_v52 = vadd.f32 %v18427_v50, %v14202_v51  ;;  %v17299_v2 = vmul.f32 -1.442695, %v21562_v53 }
 0x7cc   : > { %v18429_v57 = vpop.eup %18428 }
 0x7cd   : > { %v14215_v40 = vmul.f32 %v18429_v57, %v13732_v32  ;;  %18430 = vpow2.f32 %v17299_v2  ;;  %v14207_v48 = vsel %vm14206_vm10, %v18427_v50, %v14203_v52  ;;  %vm14220_vm12 = vweird.f32 %v18429_v57 }
 0x7ce   : > { %v13278_v14 = vpop.f32.mrf.mxu1  ;;  %v14212_v9 = vsel %vm14209_vm11, %v14211_v34, %v14207_v48  ;;  %vm14221_vm14 = vmor %vm14219_vm13, %vm14220_vm12 }
 0x7cf   : > { %v14216_v35 = vsub.f32 1.0, %v14215_v40  ;;  %v13395_v18 = vadd.f32 %v13278_v14, %v12666_v61  ;;  %v14499_v25 = vmul.f32 %v14212_v9, %v21540_v28  ;;  %v18164_v61 = vld [vmem:[#allocation2 + $0x90] sm:$0xff]  }
 0x7d0   : > { %v18031_v60 = vunpack.c.h.bf16 %v18164_v61 }
 0x7d1   : > { %v14217_v56 = vmul.f32 %v18429_v57, %v14216_v35  ;;  %v21568_v10 = vadd.f32 %v21395_v42, %v13395_v18  ;;  %v14643_v19 = vadd.f32 %v18026_v7, %v14499_v25  ;;  %v18165_v35 = vld [vmem:[#allocation2 + $0x98] sm:$0xf]  }
 0x7d2   : > { %v18034_v17 = vunpack.c.l.bf16 %v18165_v35 }
 0x7d3   : > { %v18431_v63 = vpop.eup %18430  ;;  %v14218_v1 = vadd.f32 %v18429_v57, %v14217_v56  ;;  %v17300_v12 = vmul.f32 -1.442695, %v21568_v10 }
 0x7d4   : > { %v13734_v11 = vadd.f32 1.0, %v18431_v63 }
 0x7d5   : > { %v14222_v29 = vsel %vm14221_vm14, %v18429_v57, %v14218_v1  ;;  %18432 = vpow2.f32 %v17300_v12 }
 0x7d6   : > { %v14227_v33 = vsel %vm14224_vm15, %v14226_v36, %v14222_v29  ;;  %18434 = vrcp.f32 %v13734_v11  ;;  %v13280_v58 = vpop.f32.mrf.mxu1  ;;  %v14253_v3 = vand.u32 2147483647, %v13734_v11  ;;  %v14255_v51 = vand.u32 2147483648, %v13734_v11 }
 0x7d7   : > { %v14500_v45 = vmul.f32 %v14227_v33, %v21552_v47  ;;  %vm14249_vm3 = vweird.f32 %v13734_v11 }
 0x7d8   : > { %vm14254_vm5 = vcmp.eq.f32.partialorder %v14253_v3, 8.507059e+37  ;;  %v14256_v54 = vor.u32 1.1754944e-38, %v14255_v51  ;;  %v18166_v3 = vld [vmem:[#allocation2 + $0xa0] sm:$0xff]  }
 0x7d9   : > { %v14644_v62 = vadd.f32 %v18027_v5, %v14500_v45 }
 0x7db   : > { %v18433_v44 = vpop.eup %18432  ;;  %v18113_v46 = vpack.c.bf16 %v14644_v62, %v14643_v19  ;;  %v12671_v19 = vadd.f32 %v21372_v38, %v21379_v41  ;;  %v12672_v38 = vadd.f32 %v21385_v21, %v21404_v16  ;;  %v18038_v16 = vunpack.c.l.bf16 %v18166_v3 }
 0x7dc   : > { %v18435_v26 = vpop.eup %18434  ;;  %v13735_v59 = vadd.f32 1.0, %v18433_v44 }
 0x7dd   : > { %18181 = vst [vmem:[%s21162_s17 + $0x50] sm:$0xff] %v18113_v46   ;;  %v14245_v22 = vmul.f32 %v18435_v26, %v13734_v11  ;;  %vm14250_vm2 = vweird.f32 %v18435_v26 }
 0x7de   : > { %18436 = vrcp.f32 %v13735_v59  ;;  %v13283_v28 = vpop.f32.mrf.mxu1  ;;  %vm14251_vm4 = vmor %vm14249_vm3, %vm14250_vm2  ;;  %v14270_v40 = vand.u32 2147483648, %v13735_v59  ;;  %v14268_v48 = vand.u32 2147483647, %v13735_v59  ;;  %vm14264_vm0 = vweird.f32 %v13735_v59 }
 0x7df   : > { %v14246_v50 = vsub.f32 1.0, %v14245_v22  ;;  %v13397_v32 = vadd.f32 %v13283_v28, %v12668_v20 }
 0x7e0   : > { %v14271_v56 = vor.u32 1.1754944e-38, %v14270_v40  ;;  %vm14269_vm8 = vcmp.eq.f32.partialorder %v14268_v48, 8.507059e+37 }
 0x7e1   : > { %v14247_v13 = vmul.f32 %v18435_v26, %v14246_v50  ;;  %v21577_v0 = vadd.f32 %v21395_v42, %v13397_v32 }
 0x7e3   : > { %v14248_v47 = vadd.f32 %v18435_v26, %v14247_v13  ;;  %v17302_v4 = vmul.f32 -1.442695, %v21577_v0 }
 0x7e4   : > { %v18437_v55 = vpop.eup %18436 }
 0x7e5   : > { %v14260_v52 = vmul.f32 %v18437_v55, %v13735_v59  ;;  %18438 = vpow2.f32 %v17302_v4  ;;  %v14252_v2 = vsel %vm14251_vm4, %v18435_v26, %v14248_v47  ;;  %vm14265_vm6 = vweird.f32 %v18437_v55 }
 0x7e6   : > { %v13285_v6 = vpop.f32.mrf.mxu1  ;;  %v14257_v34 = vsel %vm14254_vm5, %v14256_v54, %v14252_v2  ;;  %vm14266_vm7 = vmor %vm14264_vm0, %vm14265_vm6  ;;  %v18039_v54 = vunpack.c.h.bf16 %v18166_v3 }
 0x7e7   : > { %v14261_v57 = vsub.f32 1.0, %v14260_v52  ;;  %v13398_v30 = vadd.f32 %v13285_v6, %v12669_v27  ;;  %v14502_v63 = vmul.f32 %v14257_v34, %v21562_v53 }
 0x7e9   : > { %v14262_v14 = vmul.f32 %v18437_v55, %v14261_v57  ;;  %v21583_v18 = vadd.f32 %v21395_v42, %v13398_v30  ;;  %v14646_v5 = vadd.f32 %v18031_v60, %v14502_v63 }
 0x7eb   : > { %v18439_v8 = vpop.eup %18438  ;;  %v14263_v39 = vadd.f32 %v18437_v55, %v14262_v14  ;;  %v17303_v23 = vmul.f32 -1.442695, %v21583_v18 }
 0x7ec   : > { %v13737_v9 = vadd.f32 1.0, %v18439_v8 }
 0x7ed   : > { %v14267_v1 = vsel %vm14266_vm7, %v18437_v55, %v14263_v39  ;;  %18440 = vpow2.f32 %v17303_v23 }
 0x7ee   : > { %v14272_v12 = vsel %vm14269_vm8, %v14271_v56, %v14267_v1  ;;  %18442 = vrcp.f32 %v13737_v9  ;;  %v13288_v7 = vpop.f32.mrf.mxu1  ;;  %v14298_v20 = vand.u32 2147483647, %v13737_v9  ;;  %v14300_v28 = vand.u32 2147483648, %v13737_v9 }
 0x7ef   : > { %v14503_v36 = vmul.f32 %v14272_v12, %v21568_v10  ;;  %vm14294_vm9 = vweird.f32 %v13737_v9 }
 0x7f0   : > { %vm14299_vm11 = vcmp.eq.f32.partialorder %v14298_v20, 8.507059e+37  ;;  %v14301_v4 = vor.u32 1.1754944e-38, %v14300_v28 }
 0x7f1   : > { %v14647_v11 = vadd.f32 %v18034_v17, %v14503_v36 }
 0x7f3   : > { %v18441_v25 = vpop.eup %18440  ;;  %v18118_v29 = vpack.c.bf16 %v14647_v11, %v14646_v5 }
 0x7f4   : > { %v18443_v33 = vpop.eup %18442  ;;  %v13738_v58 = vadd.f32 1.0, %v18441_v25 }
 0x7f5   : > { %18182 = vst [vmem:[%s21162_s17 + $0x58] sm:$0xff] %v18118_v29   ;;  %v14290_v45 = vmul.f32 %v18443_v33, %v13737_v9  ;;  %vm14295_vm1 = vweird.f32 %v18443_v33  ;;  %v12674_v9 = vadd.f32 %v21425_v49, %v21433_v24  ;;  %v12675_v29 = vadd.f32 %v21441_v43, %v21450_v31 }
 0x7f6   : > { %18444 = vrcp.f32 %v13738_v58  ;;  %v13290_v53 = vpop.f32.mrf.mxu1  ;;  %vm14296_vm10 = vmor %vm14294_vm9, %vm14295_vm1  ;;  %v14315_v55 = vand.u32 2147483648, %v13738_v58  ;;  %v14313_v52 = vand.u32 2147483647, %v13738_v58  ;;  %vm14309_vm13 = vweird.f32 %v13738_v58 }
 0x7f7   : > { %v14291_v62 = vsub.f32 1.0, %v14290_v45  ;;  %v13400_v44 = vadd.f32 %v13290_v53, %v12671_v19 }
 0x7f8   : > { %v14316_v30 = vor.u32 1.1754944e-38, %v14315_v55  ;;  %vm14314_vm15 = vcmp.eq.f32.partialorder %v14313_v52, 8.507059e+37 }
 0x7f9   : > { %v14292_v46 = vmul.f32 %v18443_v33, %v14291_v62  ;;  %v21592_v26 = vadd.f32 %v21395_v42, %v13400_v44  ;;  %v18167_v44 = vld [vmem:[#allocation2 + $0xa8] sm:$0xff]  }
 0x7fa   : > { %v18043_v31 = vunpack.c.h.bf16 %v18167_v44 }
 0x7fb   : > { %v14293_v10 = vadd.f32 %v18443_v33, %v14292_v46  ;;  %v17305_v59 = vmul.f32 -1.442695, %v21592_v26 }
 0x7fc   : > { %v18445_v22 = vpop.eup %18444 }
 0x7fd   : > { %v14305_v50 = vmul.f32 %v18445_v22, %v13738_v58  ;;  %18446 = vpow2.f32 %v17305_v59  ;;  %v14297_v32 = vsel %vm14296_vm10, %v18443_v33, %v14293_v10  ;;  %vm14310_vm12 = vweird.f32 %v18445_v22  ;;  %v18168_v59 = vld [vmem:[#allocation2 + $0xb0] sm:$0xf]  }
 0x7fe   : > { %v13293_v41 = vpop.f32.mrf.mxu1  ;;  %v14302_v6 = vsel %vm14299_vm11, %v14301_v4, %v14297_v32  ;;  %vm14311_vm14 = vmor %vm14309_vm13, %vm14310_vm12 }
 0x7ff   : > { %v14306_v13 = vsub.f32 1.0, %v14305_v50  ;;  %v13401_v47 = vadd.f32 %v13293_v41, %v12672_v38  ;;  %v14505_v61 = vmul.f32 %v14302_v6, %v21577_v0  ;;  %v18046_v41 = vunpack.c.l.bf16 %v18168_v59 }
 0x801   : > { %v14307_v51 = vmul.f32 %v18445_v22, %v14306_v13  ;;  %v21598_v27 = vadd.f32 %v21395_v42, %v13401_v47  ;;  %v14649_v34 = vadd.f32 %v18038_v16, %v14505_v61 }
 0x803   : > { %v18447_v2 = vpop.eup %18446  ;;  %v14308_v57 = vadd.f32 %v18445_v22, %v14307_v51  ;;  %v17306_v21 = vmul.f32 -1.442695, %v21598_v27 }
 0x804   : > { %v13740_v40 = vadd.f32 1.0, %v18447_v2 }
 0x805   : > { %v14312_v14 = vsel %vm14311_vm14, %v18445_v22, %v14308_v57  ;;  %18448 = vpow2.f32 %v17306_v21 }
 0x806   : > { %v14317_v48 = vsel %vm14314_vm15, %v14316_v30, %v14312_v14  ;;  %18450 = vrcp.f32 %v13740_v40  ;;  %v13295_v42 = vpop.f32.mrf.mxu1  ;;  %v14343_v25 = vand.u32 2147483647, %v13740_v40  ;;  %v14345_v49 = vand.u32 2147483648, %v13740_v40 }
 0x807   : > { %v14506_v35 = vmul.f32 %v14317_v48, %v21583_v18  ;;  %v21609_v18 = vld [vmem:[%s21635_s4] ss:$0 sm:$0xff]  ;;  %vm14339_vm3 = vweird.f32 %v13740_v40 }
 0x808   : > { %vm14344_vm5 = vcmp.eq.f32.partialorder %v14343_v25, 8.507059e+37  ;;  %v14346_v53 = vor.u32 1.1754944e-38, %v14345_v49 }
 0x809   : > { %v14650_v8 = vadd.f32 %v18039_v54, %v14506_v35 }
 0x80b   : > { %v18449_v39 = vpop.eup %18448  ;;  %v18123_v23 = vpack.c.bf16 %v14650_v8, %v14649_v34  ;;  %v18169_v8 = vld [vmem:[#allocation2 + $0xb8] sm:$0xff]  }
 0x80c   : > { %v18451_v60 = vpop.eup %18450  ;;  %v13741_v56 = vadd.f32 1.0, %v18449_v39 }
 0x80d   : > { %18183 = vst [vmem:[%s21162_s17 + $0x60] sm:$0xff] %v18123_v23   ;;  %v14335_v17 = vmul.f32 %v18451_v60, %v13740_v40  ;;  %vm14340_vm2 = vweird.f32 %v18451_v60 }
 0x80e   : > { %18452 = vrcp.f32 %v13741_v56  ;;  %v13298_v0 = vpop.f32.mrf.mxu1  ;;  %vm14341_vm4 = vmor %vm14339_vm3, %vm14340_vm2  ;;  %v14360_v62 = vand.u32 2147483648, %v13741_v56  ;;  %v14358_v10 = vand.u32 2147483647, %v13741_v56  ;;  %vm14354_vm0 = vweird.f32 %v13741_v56 }
 0x80f   : > { %v14336_v63 = vsub.f32 1.0, %v14335_v17  ;;  %v13403_v1 = vadd.f32 %v13298_v0, %v12674_v9  ;;  %v18050_v0 = vunpack.c.l.bf16 %v18169_v8 }
 0x810   : > { %v14361_v38 = vor.u32 1.1754944e-38, %v14360_v62  ;;  %vm14359_vm8 = vcmp.eq.f32.partialorder %v14358_v10, 8.507059e+37 }
 0x811   : > { %v14337_v12 = vmul.f32 %v18451_v60, %v14336_v63  ;;  %v21612_v7 = vadd.f32 %v21609_v18, %v13403_v1 }
 0x813   : > { %v14338_v36 = vadd.f32 %v18451_v60, %v14337_v12  ;;  %v17308_v5 = vmul.f32 -1.442695, %v21612_v7 }
 0x814   : > { %v18453_v11 = vpop.eup %18452 }
 0x815   : > { %v14350_v24 = vmul.f32 %v18453_v11, %v13741_v56  ;;  %18454 = vpow2.f32 %v17308_v5  ;;  %v14342_v58 = vsel %vm14341_vm4, %v18451_v60, %v14338_v36  ;;  %vm14355_vm6 = vweird.f32 %v18453_v11 }
 0x816   : > { %v13300_v33 = vpop.f32.mrf.mxu1  ;;  %v14347_v20 = vsel %vm14344_vm5, %v14346_v53, %v14342_v58  ;;  %vm14356_vm7 = vmor %vm14354_vm0, %vm14355_vm6  ;;  %v18051_v5 = vunpack.c.h.bf16 %v18169_v8 }
 0x817   : > { %v14351_v45 = vsub.f32 1.0, %v14350_v24  ;;  %v13404_v19 = vadd.f32 %v13300_v33, %v12675_v29  ;;  %v14508_v13 = vmul.f32 %v14347_v20, %v21592_v26 }
 0x819   : > { %v14352_v46 = vmul.f32 %v18453_v11, %v14351_v45  ;;  %v13552_v22 = vadd.f32 %v21609_v18, %v13404_v19  ;;  %v14652_v3 = vadd.f32 %v18043_v31, %v14508_v13  ;;  %v18170_v13 = vld [vmem:[#allocation2 + $0xc0] sm:$0xff]  }
 0x81b   : > { %v18455_v28 = vpop.eup %18454  ;;  %v14353_v50 = vadd.f32 %v18453_v11, %v14352_v46  ;;  %v17309_v43 = vmul.f32 -1.442695, %v13552_v22 }
 0x81c   : > { %v13743_v32 = vadd.f32 1.0, %v18455_v28 }
 0x81d   : > { %v14357_v47 = vsel %vm14356_vm7, %v18453_v11, %v14353_v50  ;;  %18456 = vpow2.f32 %v17309_v43 }
 0x81e   : > { %v14362_v4 = vsel %vm14359_vm8, %v14361_v38, %v14357_v47  ;;  %18458 = vrcp.f32 %v13743_v32  ;;  %v14390_v61 = vand.u32 2147483648, %v13743_v32  ;;  %vm14384_vm9 = vweird.f32 %v13743_v32 }
 0x81f   : > { %v14509_v55 = vmul.f32 %v14362_v4, %v21598_v27  ;;  %v14388_v14 = vand.u32 2147483647, %v13743_v32 }
 0x820   : > { %v13303_v54 = vpop.f32.mrf.mxu1  ;;  %v14391_v35 = vor.u32 1.1754944e-38, %v14390_v61 }
 0x821   : > { %v14653_v51 = vadd.f32 %v18046_v41, %v14509_v55  ;;  %vm14389_vm11 = vcmp.eq.f32.partialorder %v14388_v14, 8.507059e+37 }
 0x823   : > { %v18457_v52 = vpop.eup %18456  ;;  %v18128_v6 = vpack.c.bf16 %v14653_v51, %v14652_v3  ;;  %v18171_v3 = vld [vmem:[#allocation2 + $0xc8] sm:$0xf]  }
 0x824   : > { %v18459_v2 = vpop.eup %18458  ;;  %v13744_v57 = vadd.f32 1.0, %v18457_v52  ;;  %v18055_v52 = vunpack.c.h.bf16 %v18170_v13 }
 0x825   : > { %18184 = vst [vmem:[%s21162_s17 + $0x68] sm:$0xff] %v18128_v6   ;;  %v14380_v21 = vmul.f32 %v18459_v2, %v13743_v32  ;;  %vm14385_vm1 = vweird.f32 %v18459_v2 }
 0x826   : > { %18460 = vrcp.f32 %v13744_v57  ;;  %vm14386_vm10 = vmor %vm14384_vm9, %vm14385_vm1  ;;  %v14405_v34 = vand.u32 2147483648, %v13744_v57  ;;  %v14403_v23 = vand.u32 2147483647, %v13744_v57  ;;  %vm14399_vm13 = vweird.f32 %v13744_v57 }
 0x827   : > { %v14381_v16 = vsub.f32 1.0, %v14380_v21  ;;  %v18058_v21 = vunpack.c.l.bf16 %v18171_v3 }
 0x828   : > { %v13305_v60 = vpop.f32.mrf.mxu1  ;;  %v14406_v63 = vor.u32 1.1754944e-38, %v14405_v34  ;;  %vm14404_vm15 = vcmp.eq.f32.partialorder %v14403_v23, 8.507059e+37 }
 0x829   : > { %v14382_v30 = vmul.f32 %v18459_v2, %v14381_v16  ;;  %v13406_v17 = vadd.f32 %v13305_v60, %v21482_v15 }
 0x82b   : > { %v14383_v26 = vadd.f32 %v18459_v2, %v14382_v30  ;;  %v13554_v1 = vadd.f32 %v21609_v18, %v13406_v17 }
 0x82c   : > { %v18461_v40 = vpop.eup %18460 }
 0x82d   : > { %v14395_v48 = vmul.f32 %v18461_v40, %v13744_v57  ;;  %v14387_v27 = vsel %vm14386_vm10, %v18459_v2, %v14383_v26  ;;  %vm14400_vm12 = vweird.f32 %v18461_v40  ;;  %v17311_v25 = vmul.f32 -1.442695, %v13554_v1 }
 0x82e   : > { %v14392_v56 = vsel %vm14389_vm11, %v14391_v35, %v14387_v27  ;;  %vm14401_vm14 = vmor %vm14399_vm13, %vm14400_vm12 }
 0x82f   : > { %v14396_v42 = vsub.f32 1.0, %v14395_v48  ;;  %v14511_v12 = vmul.f32 %v14392_v56, %v21612_v7  ;;  %18462 = vpow2.f32 %v17311_v25 }
 0x830   : > { %v13308_v15 = vpop.f32.mrf.mxu1 }
 0x831   : > { %v14397_v39 = vmul.f32 %v18461_v40, %v14396_v42  ;;  %v14655_v24 = vadd.f32 %v18050_v0, %v14511_v12  ;;  %v13407_v33 = vadd.f32 %v13308_v15, %v21516_v37 }
 0x833   : > { %v14398_v9 = vadd.f32 %v18461_v40, %v14397_v39  ;;  %v13555_v45 = vadd.f32 %v21609_v18, %v13407_v33 }
 0x835   : > { %v14402_v36 = vsel %vm14401_vm14, %v18461_v40, %v14398_v9  ;;  %v18463_v19 = vpop.eup %18462  ;;  %v17312_v53 = vmul.f32 -1.442695, %v13555_v45 }
 0x836   : > { %v14407_v11 = vsel %vm14404_vm15, %v14406_v63, %v14402_v36  ;;  %v13746_v62 = vadd.f32 1.0, %v18463_v19 }
 0x837   : > { %v14512_v49 = vmul.f32 %v14407_v11, %v13552_v22  ;;  %18464 = vpow2.f32 %v17312_v53 }
 0x838   : > { %18466 = vrcp.f32 %v13746_v62  ;;  %v13310_v7 = vpop.f32.mrf.mxu1  ;;  %v14435_v50 = vand.u32 2147483648, %v13746_v62  ;;  %vm14429_vm3 = vweird.f32 %v13746_v62  ;;  %v14433_v18 = vand.u32 2147483647, %v13746_v62 }
 0x839   : > { %v14656_v29 = vadd.f32 %v18051_v5, %v14512_v49 }
 0x83a   : > { %v14436_v41 = vor.u32 1.1754944e-38, %v14435_v50  ;;  %vm14434_vm5 = vcmp.eq.f32.partialorder %v14433_v18, 8.507059e+37 }
 0x83b   : > { %v18133_v58 = vpack.c.bf16 %v14656_v29, %v14655_v24 }
 0x83d   : > { %18185 = vst [vmem:[%s21162_s17 + $0x70] sm:$0xff] %v18133_v58   ;;  %v18465_v44 = vpop.eup %18464 }
 0x83e   : > { %v18467_v46 = vpop.eup %18466  ;;  %v13747_v10 = vadd.f32 1.0, %v18465_v44 }
 0x83f   : > { %v14425_v59 = vmul.f32 %v18467_v46, %v13746_v62  ;;  %vm14430_vm2 = vweird.f32 %v18467_v46 }
 0x840   : > { %18468 = vrcp.f32 %v13747_v10  ;;  %vm14431_vm4 = vmor %vm14429_vm3, %vm14430_vm2  ;;  %v14450_v32 = vand.u32 2147483648, %v13747_v10  ;;  %v14448_v4 = vand.u32 2147483647, %v13747_v10  ;;  %vm14444_vm0 = vweird.f32 %v13747_v10 }
 0x841   : > { %v14426_v22 = vsub.f32 1.0, %v14425_v59 }
 0x842   : > { %v14451_v6 = vor.u32 1.1754944e-38, %v14450_v32  ;;  %vm14449_vm8 = vcmp.eq.f32.partialorder %v14448_v4, 8.507059e+37 }
 0x843   : > { %v14427_v20 = vmul.f32 %v18467_v46, %v14426_v22 }
 0x845   : > { %v14428_v28 = vadd.f32 %v18467_v46, %v14427_v20 }
 0x846   : > { %v18469_v37 = vpop.eup %18468 }
 0x847   : > { %v14440_v43 = vmul.f32 %v18469_v37, %v13747_v10  ;;  %v14432_v31 = vsel %vm14431_vm4, %v18467_v46, %v14428_v28  ;;  %vm14445_vm6 = vweird.f32 %v18469_v37 }
 0x848   : > { %v14437_v55 = vsel %vm14434_vm5, %v14436_v41, %v14432_v31  ;;  %vm14446_vm7 = vmor %vm14444_vm0, %vm14445_vm6 }
 0x849   : > { %v14441_v38 = vsub.f32 1.0, %v14440_v43  ;;  %v14514_v2 = vmul.f32 %v14437_v55, %v13554_v1 }
 0x84b   : > { %v14442_v47 = vmul.f32 %v18469_v37, %v14441_v38  ;;  %v14658_v54 = vadd.f32 %v18055_v52, %v14514_v2 }
 0x84d   : > { %v14443_v51 = vadd.f32 %v18469_v37, %v14442_v47 }
 0x84f   : > { %v14447_v57 = vsel %vm14446_vm7, %v18469_v37, %v14443_v51 }
 0x850   : > { %v14452_v16 = vsel %vm14449_vm8, %v14451_v6, %v14447_v57 }
 0x851   : > { %v14515_v30 = vmul.f32 %v14452_v16, %v13555_v45 }
 0x853   : > { %v14659_v26 = vadd.f32 %v18058_v21, %v14515_v30 }
 0x855   : > { %v18138_v40 = vpack.c.bf16 %v14659_v26, %v14658_v54 }
 0x857   : > { %18186 = vst [vmem:[%s21162_s17 + $0x78] sm:$0xff] %v18138_v40  }
 0x858 PF: > { %s15_s18 = sadd.s32 1, %s18481_s18  }
 0x859   : > { %p12_p4 = scmp.ge.s32.totalorder %s15_s18, 4  }
 0x85b   :  { %14 = sbr.rel (!%p12_p4) target bundleno = 1 (0x1), region = 100 }

</bundles_post_ra>
